<compile_context>
chip_gen: v7x
topology: tpu7x:2x2x1
jax: 0.10.0
libtpu: 0.0.40
codegen_flags: <defaults>
</compile_context>

<pallas_src>
import functools

import jax
import jax.numpy as jnp
from jax.experimental import pallas as pl
from jax.experimental.pallas import tpu as pltpu

K = 5                    # ConvTranspose2d kernel size
BN_EPS = 1e-5

# ConvTranspose2d(k=5, s=2, p=2, op=1) phase decomposition:
# output row oy = 2*j + e reads 1-zero-ring-padded input row j + d with kernel
# row kh = _TAP_KH[e][d]; shifts d with no entry contribute nothing.
_TAP_KH = ({0: 4, 1: 2, 2: 0},       # even output rows: kh 4/2/0 for d=0/1/2
           {1: 3, 2: 1})             # odd  output rows: kh 3/1   for d=1/2
_PHASES = ((0, 0), (0, 1), (1, 0), (1, 1))   # (ey, ex), packed along N


def _round_up(v, m):
    return (v + m - 1) // m * m


# ---------------------------------------------------------------------------
# Pallas kernels
# ---------------------------------------------------------------------------
def _linear_bn_relu_kernel(x_ref, w_ref, g_ref, b_ref, o_ref):
    # x:(N,K) f32, w:(K,F) bf16, g/b:(1,F) f32 -> o:(N,F) f32
    # Linear -> BatchNorm1d (training batch stats, biased var) -> ReLU, fused.
    y = jnp.dot(x_ref[...].astype(jnp.bfloat16), w_ref[...],
                preferred_element_type=jnp.float32)
    mean = jnp.mean(y, axis=0, keepdims=True)
    var = jnp.maximum(jnp.mean(y * y, axis=0, keepdims=True) - mean * mean, 0.0)
    a = g_ref[...] * jax.lax.rsqrt(var + BN_EPS)
    o_ref[...] = jnp.maximum((y - mean) * a + b_ref[...], 0.0)


def _dconv_nhwc_kernel(x_ref, a_ref, b_ref, pm_ref, vm_ref, w_ref,
                       o_ref, st_ref, *, wp, span):
    # Channels-last transposed-conv block (one image per grid step).
    #   x : (1, S, Cin)  previous raw output, ring-padded + flattened (+2 tail)
    #   a/b : (1, Cin) previous BN scale/shift;  pm : (S,1) interior mask
    #   vm : (span,1) valid-output-row mask
    #   w : (9, Cin, 4*Cout) bf16 phase-merged per-shift weights
    #   o : (1, span, 4*Cout) pre-BN conv output; st : (1, 2, 4*Cout) sum/sumsq
    x = x_ref[0]                                                  # (S, Cin)
    xn = (jnp.maximum(x * a_ref[...] + b_ref[...], 0.0)
          * pm_ref[...]).astype(jnp.bfloat16)
    nout = w_ref.shape[2]
    acc = jnp.zeros((span, nout), jnp.float32)
    for dy in range(3):                                           # 9 shifts,
        for dx in range(3):                                       # 9 MXU dots
            off = dy * wp + dx
            acc = acc + jnp.dot(xn[off:off + span, :], w_ref[dy * 3 + dx],
                                preferred_element_type=jnp.float32)
    yv = acc * vm_ref[...]                                        # zero slack rows
    o_ref[0] = yv
    st_ref[0] = jnp.concatenate(
        [jnp.sum(yv, axis=0, keepdims=True),
         jnp.sum(yv * yv, axis=0, keepdims=True)], axis=0)


def _dconv_cf_kernel(*refs, wp, lpad, emit_stats, apply_tanh):
    # Channel-first transposed-conv block (spatial on the lane dim); used for
    # the small-Cout layers so accumulators / stores stay lane-dense.
    #   x : (1, Cin, Spad) previous raw output, ring-padded + flattened + lane
    #       padded;  a/b : (Cin,1);  pm : (1,Spad) interior mask
    #   vm : (1, lpad) valid-col mask (stats path only);  bias : (4*Cout, 1)
    #   w : (9, 4*Cout, Cin) bf16;  o : (1, 4*Cout, lpad);  st : (1, 4*Cout, 2)
    if emit_stats:
        x_ref, a_ref, b_ref, pm_ref, vm_ref, w_ref, o_ref, st_ref = refs
    else:
        x_ref, a_ref, b_ref, pm_ref, bias_ref, w_ref, o_ref = refs
    x = x_ref[0]                                                  # (Cin, Spad)
    xn = (jnp.maximum(x * a_ref[...] + b_ref[...], 0.0)
          * pm_ref[...]).astype(jnp.bfloat16)
    nout = w_ref.shape[1]
    acc = jnp.zeros((nout, lpad), jnp.float32)
    for dy in range(3):
        for dx in range(3):
            off = dy * wp + dx
            acc = acc + jnp.dot(w_ref[dy * 3 + dx], xn[:, off:off + lpad],
                                preferred_element_type=jnp.float32)
    if emit_stats:
        yv = acc * vm_ref[...]
        st_ref[0] = jnp.concatenate(
            [jnp.sum(yv, axis=1, keepdims=True),
             jnp.sum(yv * yv, axis=1, keepdims=True)], axis=1)
        o_ref[0] = acc
    else:
        out = acc + bias_ref[...]
        if apply_tanh:
            # Note: tanh also hits the slack columns (cropped later) - benign.
            out = jnp.tanh(out)
        o_ref[0] = out


# ---------------------------------------------------------------------------
# pallas_call wrappers
# ---------------------------------------------------------------------------
def linear_bn_relu(x, w_bf16, gamma, beta):
    n, k = x.shape
    f = w_bf16.shape[1]
    return pl.pallas_call(
        _linear_bn_relu_kernel,
        out_shape=jax.ShapeDtypeStruct((n, f), jnp.float32),
        grid=(1,),
        in_specs=[pl.BlockSpec((n, k), lambda i: (0, 0)),
                  pl.BlockSpec((k, f), lambda i: (0, 0)),
                  pl.BlockSpec((1, f), lambda i: (0, 0)),
                  pl.BlockSpec((1, f), lambda i: (0, 0))],
        out_specs=pl.BlockSpec((n, f), lambda i: (0, 0)),
    )(x, w_bf16, gamma, beta)


def dconv_nhwc(x_flat, a, b, w_merged, *, hin_in, win_in):
    n, s, cin = x_flat.shape
    wp, hp = win_in + 2, hin_in + 2
    span = hin_in * wp
    nout = w_merged.shape[2]
    pm = jnp.pad(jnp.ones((hin_in, win_in), jnp.float32), 1).reshape(hp * wp, 1)
    pm = jnp.pad(pm, ((0, s - hp * wp), (0, 0)))
    vm = jnp.pad(jnp.ones((hin_in, win_in), jnp.float32),
                 ((0, 0), (0, 2))).reshape(span, 1)
    kern = functools.partial(_dconv_nhwc_kernel, wp=wp, span=span)
    return pl.pallas_call(
        kern,
        out_shape=(jax.ShapeDtypeStruct((n, span, nout), jnp.float32),
                   jax.ShapeDtypeStruct((n, 2, nout), jnp.float32)),
        grid=(n,),
        in_specs=[pl.BlockSpec((1, s, cin), lambda i: (i, 0, 0)),
                  pl.BlockSpec((1, cin), lambda i: (0, 0)),
                  pl.BlockSpec((1, cin), lambda i: (0, 0)),
                  pl.BlockSpec((s, 1), lambda i: (0, 0)),
                  pl.BlockSpec((span, 1), lambda i: (0, 0)),
                  pl.BlockSpec(w_merged.shape, lambda i: (0, 0, 0))],
        out_specs=(pl.BlockSpec((1, span, nout), lambda i: (i, 0, 0)),
                   pl.BlockSpec((1, 2, nout), lambda i: (i, 0, 0))),
        compiler_params=pltpu.CompilerParams(
            dimension_semantics=("parallel",),
            vmem_limit_bytes=32 * 1024 * 1024),
    )(x_flat, a, b, pm, vm, w_merged)


def dconv_cf(x_cf, a, b, w_merged, *, hin_in, win_in, bias=None,
             emit_stats=True, apply_tanh=False):
    n, cin, spad = x_cf.shape
    wp, hp = win_in + 2, hin_in + 2
    span = hin_in * wp
    lpad = _round_up(span, 128)
    nout = w_merged.shape[1]
    pm = jnp.pad(jnp.ones((hin_in, win_in), jnp.float32), 1).reshape(1, hp * wp)
    pm = jnp.pad(pm, ((0, 0), (0, spad - hp * wp)))
    kern = functools.partial(_dconv_cf_kernel, wp=wp, lpad=lpad,
                             emit_stats=emit_stats, apply_tanh=apply_tanh)
    ins = [x_cf, a, b, pm]
    in_specs = [pl.BlockSpec((1, cin, spad), lambda i: (i, 0, 0)),
                pl.BlockSpec((cin, 1), lambda i: (0, 0)),
                pl.BlockSpec((cin, 1), lambda i: (0, 0)),
                pl.BlockSpec((1, spad), lambda i: (0, 0))]
    if emit_stats:
        vm = jnp.pad(jnp.ones((hin_in, win_in), jnp.float32),
                     ((0, 0), (0, 2))).reshape(1, span)
        vm = jnp.pad(vm, ((0, 0), (0, lpad - span)))
        ins.append(vm)
        in_specs.append(pl.BlockSpec((1, lpad), lambda i: (0, 0)))
        out_shape = (jax.ShapeDtypeStruct((n, nout, lpad), jnp.float32),
                     jax.ShapeDtypeStruct((n, nout, 2), jnp.float32))
        out_specs = (pl.BlockSpec((1, nout, lpad), lambda i: (i, 0, 0)),
                     pl.BlockSpec((1, nout, 2), lambda i: (i, 0, 0)))
    else:
        assert bias is not None
        ins.append(bias)
        in_specs.append(pl.BlockSpec((nout, 1), lambda i: (0, 0)))
        out_shape = jax.ShapeDtypeStruct((n, nout, lpad), jnp.float32)
        out_specs = pl.BlockSpec((1, nout, lpad), lambda i: (i, 0, 0))
    ins.append(w_merged)
    in_specs.append(pl.BlockSpec(w_merged.shape, lambda i: (0, 0, 0)))
    return pl.pallas_call(
        kern, out_shape=out_shape, grid=(n,),
        in_specs=in_specs, out_specs=out_specs,
        compiler_params=pltpu.CompilerParams(
            dimension_semantics=("parallel",),
            vmem_limit_bytes=32 * 1024 * 1024),
    )(*ins)


# ---------------------------------------------------------------------------
# Layout glue (small XLA ops: phase interleave, ring pad, flatten)
# ---------------------------------------------------------------------------
def _nhwc_flat_input(img):
    # (N,H,W,C) -> (N,(H+2)*(W+2)+2, C): zero ring pad, flatten, +2 zero rows
    # so every shifted span slice in the kernel stays in bounds.
    n, h, w, c = img.shape
    xp = jnp.pad(img, ((0, 0), (1, 1), (1, 1), (0, 0))).reshape(
        n, (h + 2) * (w + 2), c)
    return jnp.pad(xp, ((0, 0), (0, 2), (0, 0)))


def _cf_spad(hin, win):
    wp = win + 2
    lpad = _round_up(hin * wp, 128)
    return _round_up(2 * wp + 2 + lpad, 128)


def _cf_flat_input(img, spad):
    # (N,C,H,W) -> (N,C,spad): zero ring pad, flatten spatial, zero-pad lanes.
    n, c, h, w = img.shape
    hp, wp = h + 2, w + 2
    xp = jnp.pad(img, ((0, 0), (0, 0), (1, 1), (1, 1))).reshape(n, c, hp * wp)
    return jnp.pad(xp, ((0, 0), (0, 0), (0, spad - hp * wp)))


def _interleave_nhwc(conv, hin, win, cout):
    # (N, hin*(win+2), 4*Cout) -> (N, 2*hin, 2*win, Cout); crops slack cols.
    n = conv.shape[0]
    t = conv.reshape(n, hin, win + 2, 2, 2, cout)[:, :, :win]
    t = jnp.transpose(t, (0, 1, 3, 2, 4, 5))
    return t.reshape(n, 2 * hin, 2 * win, cout)


def _interleave_cf(conv, hin, win, cout):
    # (N, 4*Cout, lpad) -> (N, Cout, 2*hin, 2*win); crops slack cols.
    n = conv.shape[0]
    t = conv[:, :, :hin * (win + 2)].reshape(n, 2, 2, cout, hin, win + 2)
    t = t[..., :win]
    t = jnp.transpose(t, (0, 3, 4, 1, 5, 2))
    return t.reshape(n, cout, 2 * hin, 2 * win)


def _bn_scale_shift(ssum, ssq, count, gamma, beta):
    # training-mode BatchNorm: biased variance, eps=1e-5
    mean = ssum / count
    var = jnp.maximum(ssq / count - mean * mean, 0.0)
    a = gamma * jax.lax.rsqrt(var + BN_EPS)
    return a, beta - mean * a


def _bn_from_stats_nhwc(st, count, gamma, beta, cout):
    s = jnp.sum(st, axis=0).reshape(2, 4, cout).sum(axis=1)       # (2, Cout)
    return _bn_scale_shift(s[0], s[1], count, gamma, beta)


def _bn_from_stats_cf(st, count, gamma, beta, cout):
    s = jnp.sum(st, axis=0).reshape(4, cout, 2).sum(axis=0)       # (Cout, 2)
    return _bn_scale_shift(s[:, 0], s[:, 1], count, gamma, beta)


# ---------------------------------------------------------------------------
# Parameters
# ---------------------------------------------------------------------------
def init_generator_params(key, in_dim, dim):
    """Synthetic parameters in PyTorch layouts (weights_init distribution)."""
    c8 = dim * 8
    f = c8 * 16
    ks = jax.random.split(key, 10)
    p = {}
    p["l1_w"] = 0.02 * jax.random.normal(ks[0], (in_dim, f), jnp.float32)
    p["bn1_g"] = 1.0 + 0.02 * jax.random.normal(ks[1], (f,), jnp.float32)
    p["bn1_b"] = jnp.zeros((f,), jnp.float32)
    chans = [(c8, c8), (c8, c8), (c8, dim)]
    for li, (ci, co) in enumerate(chans):
        p[f"dc{li}_w"] = 0.02 * jax.random.normal(
            ks[2 + 2 * li], (ci, co, K, K), jnp.float32)          # (Cin,Cout,5,5)
        p[f"dc{li}_bn_g"] = 1.0 + 0.02 * jax.random.normal(
            ks[3 + 2 * li], (co,), jnp.float32)
        p[f"dc{li}_bn_b"] = jnp.zeros((co,), jnp.float32)
    p["dc3_w"] = 0.02 * jax.random.normal(ks[8], (dim, 3, K, K), jnp.float32)
    p["dc3_b"] = 0.01 * jax.random.normal(ks[9], (3,), jnp.float32)
    return p


def _merge_shift_weights(w_pt, channels_first_out):
    # (Cin,Cout,5,5) PyTorch ConvTranspose2d weight -> (9, ...) bf16 tensor of
    # per-shift weights with the 4 output phases packed along the N dim.
    cin, cout = w_pt.shape[0], w_pt.shape[1]
    mats = []
    for dy in range(3):
        for dx in range(3):
            blocks = []
            for (ey, ex) in _PHASES:
                kh = _TAP_KH[ey].get(dy)
                kw = _TAP_KH[ex].get(dx)
                if kh is None or kw is None:
                    blocks.append(jnp.zeros((cin, cout), w_pt.dtype))
                else:
                    blocks.append(w_pt[:, :, kh, kw])
            m = jnp.concatenate(blocks, axis=1)                   # (Cin, 4*Cout)
            if channels_first_out:
                m = m.T                                           # (4*Cout, Cin)
            mats.append(m)
    return jnp.stack(mats, axis=0).astype(jnp.bfloat16)


def prepare_params(p, in_dim, dim):
    """One-time preprocessing (outside the forward path): permute the linear
    features into (h,w,c) order and build phase-merged per-shift bf16 weights."""
    c8 = dim * 8
    hh, ww, cc = jnp.meshgrid(jnp.arange(4), jnp.arange(4), jnp.arange(c8),
                              indexing="ij")
    perm = (cc * 16 + hh * 4 + ww).reshape(-1)
    q = {
        "l1_w": p["l1_w"][:, perm].astype(jnp.bfloat16),
        "bn1_g": p["bn1_g"][perm].reshape(1, -1),
        "bn1_b": p["bn1_b"][perm].reshape(1, -1),
        "dc3_b": jnp.tile(p["dc3_b"], 4).reshape(12, 1),          # phase-major
    }
    for li, cf in ((0, False), (1, False), (2, True), (3, True)):
        q[f"dc{li}_w"] = _merge_shift_weights(p[f"dc{li}_w"],
                                              channels_first_out=cf)
    for li in range(3):
        q[f"dc{li}_bn_g"] = p[f"dc{li}_bn_g"]
        q[f"dc{li}_bn_b"] = p[f"dc{li}_bn_b"]
    return q


# ---------------------------------------------------------------------------
# Forward pass
# ---------------------------------------------------------------------------
def generator_forward(x, params, dim):
    n = x.shape[0]
    c8 = dim * 8

    # l1: Linear + BatchNorm1d + ReLU fused (features pre-permuted to (h,w,c)).
    y = linear_bn_relu(x, params["l1_w"], params["bn1_g"], params["bn1_b"])
    y = y.reshape(n, 4, 4, c8)

    ones_c = jnp.ones((1, c8), jnp.float32)
    zeros_c = jnp.zeros((1, c8), jnp.float32)

    # dc0: 4x4 -> 8x8 (c8 -> c8); input already normalised + activated.
    conv0, st0 = dconv_nhwc(_nhwc_flat_input(y), ones_c, zeros_c,
                            params["dc0_w"], hin_in=4, win_in=4)
    a0, b0 = _bn_from_stats_nhwc(st0, n * 64.0,
                                 params["dc0_bn_g"], params["dc0_bn_b"], c8)

    # dc1: 8x8 -> 16x16; BN+ReLU of dc0 fused into the conv input stage.
    x1 = _nhwc_flat_input(_interleave_nhwc(conv0, 4, 4, c8))
    conv1, st1 = dconv_nhwc(x1, a0.reshape(1, c8), b0.reshape(1, c8),
                            params["dc1_w"], hin_in=8, win_in=8)
    a1, b1 = _bn_from_stats_nhwc(st1, n * 256.0,
                                 params["dc1_bn_g"], params["dc1_bn_b"], c8)

    # dc2: 16x16 -> 32x32 (c8 -> dim), channel-first lane-dense kernel.
    img1 = jnp.transpose(_interleave_nhwc(conv1, 8, 8, c8), (0, 3, 1, 2))
    x2 = _cf_flat_input(img1, _cf_spad(16, 16))
    conv2, st2 = dconv_cf(x2, a1.reshape(c8, 1), b1.reshape(c8, 1),
                          params["dc2_w"], hin_in=16, win_in=16)
    a2, b2 = _bn_from_stats_cf(st2, n * 1024.0,
                               params["dc2_bn_g"], params["dc2_bn_b"], dim)

    # dc3: 32x32 -> 64x64 (dim -> 3); bias + Tanh fused, no BN stats emitted.
    x3 = _cf_flat_input(_interleave_cf(conv2, 16, 16, dim), _cf_spad(32, 32))
    conv3 = dconv_cf(x3, a2.reshape(dim, 1), b2.reshape(dim, 1),
                     params["dc3_w"], hin_in=32, win_in=32,
                     bias=params["dc3_b"], emit_stats=False, apply_tanh=True)

    return _interleave_cf(conv3, 32, 32, 3)                       # (N,3,64,64)


if __name__ == "__main__":
    batch, in_dim, dim = 2, 32, 16     # small shapes; output is still (N,3,64,64)
    x = jax.random.normal(jax.random.PRNGKey(0), (batch, in_dim), jnp.float32)
    raw_params = init_generator_params(jax.random.PRNGKey(1), in_dim, dim)
    params = prepare_params(raw_params, in_dim, dim)   # one-time weight prep

    fwd = jax.jit(functools.partial(generator_forward, dim=dim))
    out = fwd(x, params)
    jax.block_until_ready(out)

    assert out.shape == (batch, 3, 64, 64), out.shape
    assert out.dtype == jnp.float32
    assert bool(jnp.all(jnp.isfinite(out)))
    assert bool(jnp.all(jnp.abs(out) <= 1.0 + 1e-6))   # tanh range
    print("KERNEL_OK")
</pallas_src>

<mosaic_0001>
module attributes {stable_mosaic.version = 11 : i64} {
  func.func @_linear_bn_relu_kernel(%arg0: i32, %arg1: memref<2x32xf32, #tpu.memory_space<vmem>>, %arg2: memref<32x2048xbf16, #tpu.memory_space<vmem>>, %arg3: memref<1x2048xf32, #tpu.memory_space<vmem>>, %arg4: memref<1x2048xf32, #tpu.memory_space<vmem>>, %arg5: memref<2x2048xf32, #tpu.memory_space<vmem>>) attributes {dimension_semantics = [#tpu.dimension_semantics<arbitrary>], iteration_bounds = array<i64: 1>, scalar_prefetch = 0 : i64, scratch_operands = 0 : i64, tpu.core_type = #tpu.core_type<tc>, window_params = [{pipeline_mode = #tpu.pipeline_mode<synchronous>, transform_indices = @transform_0, window_bounds = array<i64: 2, 32>}, {pipeline_mode = #tpu.pipeline_mode<synchronous>, transform_indices = @transform_1, window_bounds = array<i64: 32, 2048>}, {pipeline_mode = #tpu.pipeline_mode<synchronous>, transform_indices = @transform_2, window_bounds = array<i64: 1, 2048>}, {pipeline_mode = #tpu.pipeline_mode<synchronous>, transform_indices = @transform_3, window_bounds = array<i64: 1, 2048>}, {pipeline_mode = #tpu.pipeline_mode<synchronous>, transform_indices = @transform_4, window_bounds = array<i64: 2, 2048>}]} {
    %c0 = arith.constant 0 : index
    %c0_0 = arith.constant 0 : index
    %0 = vector.load %arg1[%c0, %c0_0] : memref<2x32xf32, #tpu.memory_space<vmem>>, vector<2x32xf32>
    %1 = arith.truncf %0 : vector<2x32xf32> to vector<2x32xbf16>
    %c0_1 = arith.constant 0 : index
    %c0_2 = arith.constant 0 : index
    %2 = vector.load %arg2[%c0_1, %c0_2] : memref<32x2048xbf16, #tpu.memory_space<vmem>>, vector<32x2048xbf16>
    %cst = arith.constant dense<0.000000e+00> : vector<2x2048xf32>
    %3 = tpu.matmul %1, %2, %cst {dimension_numbers = #tpu.dot_dimension_numbers<[1], [0], [0], [1], [0, 0, 1, 1], [], []>} : vector<2x32xbf16>, vector<32x2048xbf16>, vector<2x2048xf32> -> vector<2x2048xf32>
    %cst_3 = arith.constant dense<0.000000e+00> : vector<2048xf32>
    %4 = vector.multi_reduction <add>, %3, %cst_3 [0] : vector<2x2048xf32> to vector<2048xf32>
    %5 = vector.shape_cast %4 : vector<2048xf32> to vector<1x2048xf32>
    %cst_4 = arith.constant 2.000000e+00 : f32
    %6 = vector.broadcast %cst_4 : f32 to vector<1x2048xf32>
    %7 = arith.divf %5, %6 : vector<1x2048xf32>
    %8 = arith.mulf %3, %3 : vector<2x2048xf32>
    %cst_5 = arith.constant dense<0.000000e+00> : vector<2048xf32>
    %9 = vector.multi_reduction <add>, %8, %cst_5 [0] : vector<2x2048xf32> to vector<2048xf32>
    %10 = vector.shape_cast %9 : vector<2048xf32> to vector<1x2048xf32>
    %cst_6 = arith.constant 2.000000e+00 : f32
    %11 = vector.broadcast %cst_6 : f32 to vector<1x2048xf32>
    %12 = arith.divf %10, %11 : vector<1x2048xf32>
    %13 = arith.mulf %7, %7 : vector<1x2048xf32>
    %14 = arith.subf %12, %13 : vector<1x2048xf32>
    %cst_7 = arith.constant 0.000000e+00 : f32
    %15 = vector.broadcast %cst_7 : f32 to vector<1x2048xf32>
    %16 = arith.maximumf %14, %15 : vector<1x2048xf32>
    %c0_8 = arith.constant 0 : index
    %c0_9 = arith.constant 0 : index
    %17 = vector.load %arg3[%c0_8, %c0_9] : memref<1x2048xf32, #tpu.memory_space<vmem>>, vector<1x2048xf32>
    %cst_10 = arith.constant 9.99999974E-6 : f32
    %18 = vector.broadcast %cst_10 : f32 to vector<1x2048xf32>
    %19 = arith.addf %16, %18 : vector<1x2048xf32>
    %20 = math.rsqrt %19 : vector<1x2048xf32>
    %21 = arith.mulf %17, %20 : vector<1x2048xf32>
    %22 = vector.broadcast %7 : vector<1x2048xf32> to vector<2x2048xf32>
    %23 = arith.subf %3, %22 : vector<2x2048xf32>
    %24 = vector.broadcast %21 : vector<1x2048xf32> to vector<2x2048xf32>
    %25 = arith.mulf %23, %24 : vector<2x2048xf32>
    %c0_11 = arith.constant 0 : index
    %c0_12 = arith.constant 0 : index
    %26 = vector.load %arg4[%c0_11, %c0_12] : memref<1x2048xf32, #tpu.memory_space<vmem>>, vector<1x2048xf32>
    %27 = vector.broadcast %26 : vector<1x2048xf32> to vector<2x2048xf32>
    %28 = arith.addf %25, %27 : vector<2x2048xf32>
    %cst_13 = arith.constant 0.000000e+00 : f32
    %29 = vector.broadcast %cst_13 : f32 to vector<2x2048xf32>
    %30 = arith.maximumf %28, %29 : vector<2x2048xf32>
    %c0_14 = arith.constant 0 : index
    %c0_15 = arith.constant 0 : index
    %31 = vector.load %arg5[%c0_14, %c0_15] : memref<2x2048xf32, #tpu.memory_space<vmem>>, vector<2x2048xf32>
    tpu.vector_store %arg5[%c0_14, %c0_15], %30 {strides = array<i32>} : memref<2x2048xf32, #tpu.memory_space<vmem>>, vector<2x2048xf32>,
    return
  }
  func.func @transform_0(%arg0: i32) -> (i32, i32) {
    %c0_i32 = arith.constant 0 : i32
    %c0_i32_0 = arith.constant 0 : i32
    %c0_i32_1 = arith.constant 0 : i32
    return %c0_i32, %c0_i32_0 : i32, i32
  }
  func.func @transform_1(%arg0: i32) -> (i32, i32) {
    %c0_i32 = arith.constant 0 : i32
    %c0_i32_0 = arith.constant 0 : i32
    %c0_i32_1 = arith.constant 0 : i32
    return %c0_i32, %c0_i32_0 : i32, i32
  }
  func.func @transform_2(%arg0: i32) -> (i32, i32) {
    %c0_i32 = arith.constant 0 : i32
    %c0_i32_0 = arith.constant 0 : i32
    %c0_i32_1 = arith.constant 0 : i32
    return %c0_i32, %c0_i32_0 : i32, i32
  }
  func.func @transform_3(%arg0: i32) -> (i32, i32) {
    %c0_i32 = arith.constant 0 : i32
    %c0_i32_0 = arith.constant 0 : i32
    %c0_i32_1 = arith.constant 0 : i32
    return %c0_i32, %c0_i32_0 : i32, i32
  }
  func.func @transform_4(%arg0: i32) -> (i32, i32) {
    %c0_i32 = arith.constant 0 : i32
    %c0_i32_0 = arith.constant 0 : i32
    %c0_i32_1 = arith.constant 0 : i32
    return %c0_i32, %c0_i32_0 : i32, i32
  }
}

module attributes {stable_mosaic.version = 11 : i64} {
  func.func @_dconv_nhwc_kernel(%arg0: i32, %arg1: memref<1x38x128xf32, #tpu.memory_space<vmem>>, %arg2: memref<1x128xf32, #tpu.memory_space<vmem>>, %arg3: memref<1x128xf32, #tpu.memory_space<vmem>>, %arg4: memref<38x1xf32, #tpu.memory_space<vmem>>, %arg5: memref<24x1xf32, #tpu.memory_space<vmem>>, %arg6: memref<9x128x512xbf16, #tpu.memory_space<vmem>>, %arg7: memref<1x24x512xf32, #tpu.memory_space<vmem>>, %arg8: memref<1x2x512xf32, #tpu.memory_space<vmem>>) attributes {dimension_semantics = [#tpu.dimension_semantics<parallel>], iteration_bounds = array<i64: 2>, scalar_prefetch = 0 : i64, scratch_operands = 0 : i64, tpu.core_type = #tpu.core_type<tc>, window_params = [{transform_indices = @transform_0, window_bounds = array<i64: 1, 38, 128>}, {pipeline_mode = #tpu.pipeline_mode<synchronous>, transform_indices = @transform_1, window_bounds = array<i64: 1, 128>}, {pipeline_mode = #tpu.pipeline_mode<synchronous>, transform_indices = @transform_2, window_bounds = array<i64: 1, 128>}, {pipeline_mode = #tpu.pipeline_mode<synchronous>, transform_indices = @transform_3, window_bounds = array<i64: 38, 1>}, {pipeline_mode = #tpu.pipeline_mode<synchronous>, transform_indices = @transform_4, window_bounds = array<i64: 24, 1>}, {pipeline_mode = #tpu.pipeline_mode<synchronous>, transform_indices = @transform_5, window_bounds = array<i64: 9, 128, 512>}, {transform_indices = @transform_6, window_bounds = array<i64: 1, 24, 512>}, {transform_indices = @transform_7, window_bounds = array<i64: 1, 2, 512>}]} {
    %c0 = arith.constant 0 : index
    %c0_0 = arith.constant 0 : index
    %c0_1 = arith.constant 0 : index
    %0 = vector.load %arg1[%c0, %c0_0, %c0_1] : memref<1x38x128xf32, #tpu.memory_space<vmem>>, vector<1x38x128xf32>
    %1 = vector.shape_cast %0 : vector<1x38x128xf32> to vector<38x128xf32>
    %c0_2 = arith.constant 0 : index
    %c0_3 = arith.constant 0 : index
    %2 = vector.load %arg2[%c0_2, %c0_3] : memref<1x128xf32, #tpu.memory_space<vmem>>, vector<1x128xf32>
    %3 = vector.broadcast %2 : vector<1x128xf32> to vector<38x128xf32>
    %4 = arith.mulf %1, %3 : vector<38x128xf32>
    %c0_4 = arith.constant 0 : index
    %c0_5 = arith.constant 0 : index
    %5 = vector.load %arg3[%c0_4, %c0_5] : memref<1x128xf32, #tpu.memory_space<vmem>>, vector<1x128xf32>
    %6 = vector.broadcast %5 : vector<1x128xf32> to vector<38x128xf32>
    %7 = arith.addf %4, %6 : vector<38x128xf32>
    %cst = arith.constant 0.000000e+00 : f32
    %8 = vector.broadcast %cst : f32 to vector<38x128xf32>
    %9 = arith.maximumf %7, %8 : vector<38x128xf32>
    %c0_6 = arith.constant 0 : index
    %c0_7 = arith.constant 0 : index
    %10 = vector.load %arg4[%c0_6, %c0_7] : memref<38x1xf32, #tpu.memory_space<vmem>>, vector<38x1xf32>
    %11 = vector.broadcast %10 : vector<38x1xf32> to vector<38x128xf32>
    %12 = arith.mulf %9, %11 : vector<38x128xf32>
    %13 = arith.truncf %12 : vector<38x128xf32> to vector<38x128xbf16>
    %cst_8 = arith.constant 0.000000e+00 : f32
    %14 = vector.broadcast %cst_8 : f32 to vector<24x512xf32>
    %15 = vector.extract_strided_slice %13 {offsets = [0, 0], sizes = [24, 128], strides = [1, 1]} : vector<38x128xbf16> to vector<24x128xbf16>
    %c0_9 = arith.constant 0 : index
    %c0_10 = arith.constant 0 : index
    %c0_11 = arith.constant 0 : index
    %16 = vector.load %arg6[%c0_9, %c0_10, %c0_11] : memref<9x128x512xbf16, #tpu.memory_space<vmem>>, vector<1x128x512xbf16>
    %17 = vector.shape_cast %16 : vector<1x128x512xbf16> to vector<128x512xbf16>
    %cst_12 = arith.constant dense<0.000000e+00> : vector<24x512xf32>
    %18 = tpu.matmul %15, %17, %cst_12 {dimension_numbers = #tpu.dot_dimension_numbers<[1], [0], [0], [1], [0, 0, 1, 1], [], []>} : vector<24x128xbf16>, vector<128x512xbf16>, vector<24x512xf32> -> vector<24x512xf32>
    %19 = arith.addf %14, %18 : vector<24x512xf32>
    %20 = vector.extract_strided_slice %13 {offsets = [1, 0], sizes = [24, 128], strides = [1, 1]} : vector<38x128xbf16> to vector<24x128xbf16>
    %c1 = arith.constant 1 : index
    %c0_13 = arith.constant 0 : index
    %c0_14 = arith.constant 0 : index
    %21 = vector.load %arg6[%c1, %c0_13, %c0_14] : memref<9x128x512xbf16, #tpu.memory_space<vmem>>, vector<1x128x512xbf16>
    %22 = vector.shape_cast %21 : vector<1x128x512xbf16> to vector<128x512xbf16>
    %cst_15 = arith.constant dense<0.000000e+00> : vector<24x512xf32>
    %23 = tpu.matmul %20, %22, %cst_15 {dimension_numbers = #tpu.dot_dimension_numbers<[1], [0], [0], [1], [0, 0, 1, 1], [], []>} : vector<24x128xbf16>, vector<128x512xbf16>, vector<24x512xf32> -> vector<24x512xf32>
    %24 = arith.addf %19, %23 : vector<24x512xf32>
    %25 = vector.extract_strided_slice %13 {offsets = [2, 0], sizes = [24, 128], strides = [1, 1]} : vector<38x128xbf16> to vector<24x128xbf16>
    %c2 = arith.constant 2 : index
    %c0_16 = arith.constant 0 : index
    %c0_17 = arith.constant 0 : index
    %26 = vector.load %arg6[%c2, %c0_16, %c0_17] : memref<9x128x512xbf16, #tpu.memory_space<vmem>>, vector<1x128x512xbf16>
    %27 = vector.shape_cast %26 : vector<1x128x512xbf16> to vector<128x512xbf16>
    %cst_18 = arith.constant dense<0.000000e+00> : vector<24x512xf32>
    %28 = tpu.matmul %25, %27, %cst_18 {dimension_numbers = #tpu.dot_dimension_numbers<[1], [0], [0], [1], [0, 0, 1, 1], [], []>} : vector<24x128xbf16>, vector<128x512xbf16>, vector<24x512xf32> -> vector<24x512xf32>
    %29 = arith.addf %24, %28 : vector<24x512xf32>
    %30 = vector.extract_strided_slice %13 {offsets = [6, 0], sizes = [24, 128], strides = [1, 1]} : vector<38x128xbf16> to vector<24x128xbf16>
    %c3 = arith.constant 3 : index
    %c0_19 = arith.constant 0 : index
    %c0_20 = arith.constant 0 : index
    %31 = vector.load %arg6[%c3, %c0_19, %c0_20] : memref<9x128x512xbf16, #tpu.memory_space<vmem>>, vector<1x128x512xbf16>
    %32 = vector.shape_cast %31 : vector<1x128x512xbf16> to vector<128x512xbf16>
    %cst_21 = arith.constant dense<0.000000e+00> : vector<24x512xf32>
    %33 = tpu.matmul %30, %32, %cst_21 {dimension_numbers = #tpu.dot_dimension_numbers<[1], [0], [0], [1], [0, 0, 1, 1], [], []>} : vector<24x128xbf16>, vector<128x512xbf16>, vector<24x512xf32> -> vector<24x512xf32>
    %34 = arith.addf %29, %33 : vector<24x512xf32>
    %35 = vector.extract_strided_slice %13 {offsets = [7, 0], sizes = [24, 128], strides = [1, 1]} : vector<38x128xbf16> to vector<24x128xbf16>
    %c4 = arith.constant 4 : index
    %c0_22 = arith.constant 0 : index
    %c0_23 = arith.constant 0 : index
    %36 = vector.load %arg6[%c4, %c0_22, %c0_23] : memref<9x128x512xbf16, #tpu.memory_space<vmem>>, vector<1x128x512xbf16>
    %37 = vector.shape_cast %36 : vector<1x128x512xbf16> to vector<128x512xbf16>
    %cst_24 = arith.constant dense<0.000000e+00> : vector<24x512xf32>
    %38 = tpu.matmul %35, %37, %cst_24 {dimension_numbers = #tpu.dot_dimension_numbers<[1], [0], [0], [1], [0, 0, 1, 1], [], []>} : vector<24x128xbf16>, vector<128x512xbf16>, vector<24x512xf32> -> vector<24x512xf32>
    %39 = arith.addf %34, %38 : vector<24x512xf32>
    %40 = vector.extract_strided_slice %13 {offsets = [8, 0], sizes = [24, 128], strides = [1, 1]} : vector<38x128xbf16> to vector<24x128xbf16>
    %c5 = arith.constant 5 : index
    %c0_25 = arith.constant 0 : index
    %c0_26 = arith.constant 0 : index
    %41 = vector.load %arg6[%c5, %c0_25, %c0_26] : memref<9x128x512xbf16, #tpu.memory_space<vmem>>, vector<1x128x512xbf16>
    %42 = vector.shape_cast %41 : vector<1x128x512xbf16> to vector<128x512xbf16>
    %cst_27 = arith.constant dense<0.000000e+00> : vector<24x512xf32>
    %43 = tpu.matmul %40, %42, %cst_27 {dimension_numbers = #tpu.dot_dimension_numbers<[1], [0], [0], [1], [0, 0, 1, 1], [], []>} : vector<24x128xbf16>, vector<128x512xbf16>, vector<24x512xf32> -> vector<24x512xf32>
    %44 = arith.addf %39, %43 : vector<24x512xf32>
    %45 = vector.extract_strided_slice %13 {offsets = [12, 0], sizes = [24, 128], strides = [1, 1]} : vector<38x128xbf16> to vector<24x128xbf16>
    %c6 = arith.constant 6 : index
    %c0_28 = arith.constant 0 : index
    %c0_29 = arith.constant 0 : index
    %46 = vector.load %arg6[%c6, %c0_28, %c0_29] : memref<9x128x512xbf16, #tpu.memory_space<vmem>>, vector<1x128x512xbf16>
    %47 = vector.shape_cast %46 : vector<1x128x512xbf16> to vector<128x512xbf16>
    %cst_30 = arith.constant dense<0.000000e+00> : vector<24x512xf32>
    %48 = tpu.matmul %45, %47, %cst_30 {dimension_numbers = #tpu.dot_dimension_numbers<[1], [0], [0], [1], [0, 0, 1, 1], [], []>} : vector<24x128xbf16>, vector<128x512xbf16>, vector<24x512xf32> -> vector<24x512xf32>
    %49 = arith.addf %44, %48 : vector<24x512xf32>
    %50 = vector.extract_strided_slice %13 {offsets = [13, 0], sizes = [24, 128], strides = [1, 1]} : vector<38x128xbf16> to vector<24x128xbf16>
    %c7 = arith.constant 7 : index
    %c0_31 = arith.constant 0 : index
    %c0_32 = arith.constant 0 : index
    %51 = vector.load %arg6[%c7, %c0_31, %c0_32] : memref<9x128x512xbf16, #tpu.memory_space<vmem>>, vector<1x128x512xbf16>
    %52 = vector.shape_cast %51 : vector<1x128x512xbf16> to vector<128x512xbf16>
    %cst_33 = arith.constant dense<0.000000e+00> : vector<24x512xf32>
    %53 = tpu.matmul %50, %52, %cst_33 {dimension_numbers = #tpu.dot_dimension_numbers<[1], [0], [0], [1], [0, 0, 1, 1], [], []>} : vector<24x128xbf16>, vector<128x512xbf16>, vector<24x512xf32> -> vector<24x512xf32>
    %54 = arith.addf %49, %53 : vector<24x512xf32>
    %55 = vector.extract_strided_slice %13 {offsets = [14, 0], sizes = [24, 128], strides = [1, 1]} : vector<38x128xbf16> to vector<24x128xbf16>
    %c8 = arith.constant 8 : index
    %c0_34 = arith.constant 0 : index
    %c0_35 = arith.constant 0 : index
    %56 = vector.load %arg6[%c8, %c0_34, %c0_35] : memref<9x128x512xbf16, #tpu.memory_space<vmem>>, vector<1x128x512xbf16>
    %57 = vector.shape_cast %56 : vector<1x128x512xbf16> to vector<128x512xbf16>
    %cst_36 = arith.constant dense<0.000000e+00> : vector<24x512xf32>
    %58 = tpu.matmul %55, %57, %cst_36 {dimension_numbers = #tpu.dot_dimension_numbers<[1], [0], [0], [1], [0, 0, 1, 1], [], []>} : vector<24x128xbf16>, vector<128x512xbf16>, vector<24x512xf32> -> vector<24x512xf32>
    %59 = arith.addf %54, %58 : vector<24x512xf32>
    %c0_37 = arith.constant 0 : index
    %c0_38 = arith.constant 0 : index
    %60 = vector.load %arg5[%c0_37, %c0_38] : memref<24x1xf32, #tpu.memory_space<vmem>>, vector<24x1xf32>
    %61 = vector.broadcast %60 : vector<24x1xf32> to vector<24x512xf32>
    %62 = arith.mulf %59, %61 : vector<24x512xf32>
    %c0_39 = arith.constant 0 : index
    %c0_40 = arith.constant 0 : index
    %c0_41 = arith.constant 0 : index
    %63 = vector.load %arg7[%c0_39, %c0_40, %c0_41] : memref<1x24x512xf32, #tpu.memory_space<vmem>>, vector<1x24x512xf32>
    %64 = vector.shape_cast %63 : vector<1x24x512xf32> to vector<24x512xf32>
    %65 = vector.shape_cast %62 : vector<24x512xf32> to vector<1x24x512xf32>
    tpu.vector_store %arg7[%c0_39, %c0_40, %c0_41], %65 {strides = array<i32>} : memref<1x24x512xf32, #tpu.memory_space<vmem>>, vector<1x24x512xf32>,
    %cst_42 = arith.constant dense<0.000000e+00> : vector<512xf32>
    %66 = vector.multi_reduction <add>, %62, %cst_42 [0] : vector<24x512xf32> to vector<512xf32>
    %67 = vector.shape_cast %66 : vector<512xf32> to vector<1x512xf32>
    %68 = arith.mulf %62, %62 : vector<24x512xf32>
    %cst_43 = arith.constant dense<0.000000e+00> : vector<512xf32>
    %69 = vector.multi_reduction <add>, %68, %cst_43 [0] : vector<24x512xf32> to vector<512xf32>
    %70 = vector.shape_cast %69 : vector<512xf32> to vector<1x512xf32>
    %71 = tpu.concatenate %67, %70 in 0 : vector<1x512xf32>, vector<1x512xf32> -> vector<2x512xf32>
    %c0_44 = arith.constant 0 : index
    %c0_45 = arith.constant 0 : index
    %c0_46 = arith.constant 0 : index
    %72 = vector.load %arg8[%c0_44, %c0_45, %c0_46] : memref<1x2x512xf32, #tpu.memory_space<vmem>>, vector<1x2x512xf32>
    %73 = vector.shape_cast %72 : vector<1x2x512xf32> to vector<2x512xf32>
    %74 = vector.shape_cast %71 : vector<2x512xf32> to vector<1x2x512xf32>
    tpu.vector_store %arg8[%c0_44, %c0_45, %c0_46], %74 {strides = array<i32>} : memref<1x2x512xf32, #tpu.memory_space<vmem>>, vector<1x2x512xf32>,
    return
  }
  func.func @transform_0(%arg0: i32) -> (i32, i32, i32) {
    %c0_i32 = arith.constant 0 : i32
    %c0_i32_0 = arith.constant 0 : i32
    %c0_i32_1 = arith.constant 0 : i32
    return %arg0, %c0_i32, %c0_i32_0 : i32, i32, i32
  }
  func.func @transform_1(%arg0: i32) -> (i32, i32) {
    %c0_i32 = arith.constant 0 : i32
    %c0_i32_0 = arith.constant 0 : i32
    %c0_i32_1 = arith.constant 0 : i32
    return %c0_i32, %c0_i32_0 : i32, i32
  }
  func.func @transform_2(%arg0: i32) -> (i32, i32) {
    %c0_i32 = arith.constant 0 : i32
    %c0_i32_0 = arith.constant 0 : i32
    %c0_i32_1 = arith.constant 0 : i32
    return %c0_i32, %c0_i32_0 : i32, i32
  }
  func.func @transform_3(%arg0: i32) -> (i32, i32) {
    %c0_i32 = arith.constant 0 : i32
    %c0_i32_0 = arith.constant 0 : i32
    %c0_i32_1 = arith.constant 0 : i32
    return %c0_i32, %c0_i32_0 : i32, i32
  }
  func.func @transform_4(%arg0: i32) -> (i32, i32) {
    %c0_i32 = arith.constant 0 : i32
    %c0_i32_0 = arith.constant 0 : i32
    %c0_i32_1 = arith.constant 0 : i32
    return %c0_i32, %c0_i32_0 : i32, i32
  }
  func.func @transform_5(%arg0: i32) -> (i32, i32, i32) {
    %c0_i32 = arith.constant 0 : i32
    %c0_i32_0 = arith.constant 0 : i32
    %c0_i32_1 = arith.constant 0 : i32
    %c0_i32_2 = arith.constant 0 : i32
    return %c0_i32, %c0_i32_0, %c0_i32_1 : i32, i32, i32
  }
  func.func @transform_6(%arg0: i32) -> (i32, i32, i32) {
    %c0_i32 = arith.constant 0 : i32
    %c0_i32_0 = arith.constant 0 : i32
    %c0_i32_1 = arith.constant 0 : i32
    return %arg0, %c0_i32, %c0_i32_0 : i32, i32, i32
  }
  func.func @transform_7(%arg0: i32) -> (i32, i32, i32) {
    %c0_i32 = arith.constant 0 : i32
    %c0_i32_0 = arith.constant 0 : i32
    %c0_i32_1 = arith.constant 0 : i32
    return %arg0, %c0_i32, %c0_i32_0 : i32, i32, i32
  }
}

module attributes {stable_mosaic.version = 11 : i64} {
  func.func @_dconv_nhwc_kernel(%arg0: i32, %arg1: memref<1x102x128xf32, #tpu.memory_space<vmem>>, %arg2: memref<1x128xf32, #tpu.memory_space<vmem>>, %arg3: memref<1x128xf32, #tpu.memory_space<vmem>>, %arg4: memref<102x1xf32, #tpu.memory_space<vmem>>, %arg5: memref<80x1xf32, #tpu.memory_space<vmem>>, %arg6: memref<9x128x512xbf16, #tpu.memory_space<vmem>>, %arg7: memref<1x80x512xf32, #tpu.memory_space<vmem>>, %arg8: memref<1x2x512xf32, #tpu.memory_space<vmem>>) attributes {dimension_semantics = [#tpu.dimension_semantics<parallel>], iteration_bounds = array<i64: 2>, scalar_prefetch = 0 : i64, scratch_operands = 0 : i64, tpu.core_type = #tpu.core_type<tc>, window_params = [{transform_indices = @transform_0, window_bounds = array<i64: 1, 102, 128>}, {pipeline_mode = #tpu.pipeline_mode<synchronous>, transform_indices = @transform_1, window_bounds = array<i64: 1, 128>}, {pipeline_mode = #tpu.pipeline_mode<synchronous>, transform_indices = @transform_2, window_bounds = array<i64: 1, 128>}, {pipeline_mode = #tpu.pipeline_mode<synchronous>, transform_indices = @transform_3, window_bounds = array<i64: 102, 1>}, {pipeline_mode = #tpu.pipeline_mode<synchronous>, transform_indices = @transform_4, window_bounds = array<i64: 80, 1>}, {pipeline_mode = #tpu.pipeline_mode<synchronous>, transform_indices = @transform_5, window_bounds = array<i64: 9, 128, 512>}, {transform_indices = @transform_6, window_bounds = array<i64: 1, 80, 512>}, {transform_indices = @transform_7, window_bounds = array<i64: 1, 2, 512>}]} {
    %c0 = arith.constant 0 : index
    %c0_0 = arith.constant 0 : index
    %c0_1 = arith.constant 0 : index
    %0 = vector.load %arg1[%c0, %c0_0, %c0_1] : memref<1x102x128xf32, #tpu.memory_space<vmem>>, vector<1x102x128xf32>
    %1 = vector.shape_cast %0 : vector<1x102x128xf32> to vector<102x128xf32>
    %c0_2 = arith.constant 0 : index
    %c0_3 = arith.constant 0 : index
    %2 = vector.load %arg2[%c0_2, %c0_3] : memref<1x128xf32, #tpu.memory_space<vmem>>, vector<1x128xf32>
    %3 = vector.broadcast %2 : vector<1x128xf32> to vector<102x128xf32>
    %4 = arith.mulf %1, %3 : vector<102x128xf32>
    %c0_4 = arith.constant 0 : index
    %c0_5 = arith.constant 0 : index
    %5 = vector.load %arg3[%c0_4, %c0_5] : memref<1x128xf32, #tpu.memory_space<vmem>>, vector<1x128xf32>
    %6 = vector.broadcast %5 : vector<1x128xf32> to vector<102x128xf32>
    %7 = arith.addf %4, %6 : vector<102x128xf32>
    %cst = arith.constant 0.000000e+00 : f32
    %8 = vector.broadcast %cst : f32 to vector<102x128xf32>
    %9 = arith.maximumf %7, %8 : vector<102x128xf32>
    %c0_6 = arith.constant 0 : index
    %c0_7 = arith.constant 0 : index
    %10 = vector.load %arg4[%c0_6, %c0_7] : memref<102x1xf32, #tpu.memory_space<vmem>>, vector<102x1xf32>
    %11 = vector.broadcast %10 : vector<102x1xf32> to vector<102x128xf32>
    %12 = arith.mulf %9, %11 : vector<102x128xf32>
    %13 = arith.truncf %12 : vector<102x128xf32> to vector<102x128xbf16>
    %cst_8 = arith.constant 0.000000e+00 : f32
    %14 = vector.broadcast %cst_8 : f32 to vector<80x512xf32>
    %15 = vector.extract_strided_slice %13 {offsets = [0, 0], sizes = [80, 128], strides = [1, 1]} : vector<102x128xbf16> to vector<80x128xbf16>
    %c0_9 = arith.constant 0 : index
    %c0_10 = arith.constant 0 : index
    %c0_11 = arith.constant 0 : index
    %16 = vector.load %arg6[%c0_9, %c0_10, %c0_11] : memref<9x128x512xbf16, #tpu.memory_space<vmem>>, vector<1x128x512xbf16>
    %17 = vector.shape_cast %16 : vector<1x128x512xbf16> to vector<128x512xbf16>
    %cst_12 = arith.constant dense<0.000000e+00> : vector<80x512xf32>
    %18 = tpu.matmul %15, %17, %cst_12 {dimension_numbers = #tpu.dot_dimension_numbers<[1], [0], [0], [1], [0, 0, 1, 1], [], []>} : vector<80x128xbf16>, vector<128x512xbf16>, vector<80x512xf32> -> vector<80x512xf32>
    %19 = arith.addf %14, %18 : vector<80x512xf32>
    %20 = vector.extract_strided_slice %13 {offsets = [1, 0], sizes = [80, 128], strides = [1, 1]} : vector<102x128xbf16> to vector<80x128xbf16>
    %c1 = arith.constant 1 : index
    %c0_13 = arith.constant 0 : index
    %c0_14 = arith.constant 0 : index
    %21 = vector.load %arg6[%c1, %c0_13, %c0_14] : memref<9x128x512xbf16, #tpu.memory_space<vmem>>, vector<1x128x512xbf16>
    %22 = vector.shape_cast %21 : vector<1x128x512xbf16> to vector<128x512xbf16>
    %cst_15 = arith.constant dense<0.000000e+00> : vector<80x512xf32>
    %23 = tpu.matmul %20, %22, %cst_15 {dimension_numbers = #tpu.dot_dimension_numbers<[1], [0], [0], [1], [0, 0, 1, 1], [], []>} : vector<80x128xbf16>, vector<128x512xbf16>, vector<80x512xf32> -> vector<80x512xf32>
    %24 = arith.addf %19, %23 : vector<80x512xf32>
    %25 = vector.extract_strided_slice %13 {offsets = [2, 0], sizes = [80, 128], strides = [1, 1]} : vector<102x128xbf16> to vector<80x128xbf16>
    %c2 = arith.constant 2 : index
    %c0_16 = arith.constant 0 : index
    %c0_17 = arith.constant 0 : index
    %26 = vector.load %arg6[%c2, %c0_16, %c0_17] : memref<9x128x512xbf16, #tpu.memory_space<vmem>>, vector<1x128x512xbf16>
    %27 = vector.shape_cast %26 : vector<1x128x512xbf16> to vector<128x512xbf16>
    %cst_18 = arith.constant dense<0.000000e+00> : vector<80x512xf32>
    %28 = tpu.matmul %25, %27, %cst_18 {dimension_numbers = #tpu.dot_dimension_numbers<[1], [0], [0], [1], [0, 0, 1, 1], [], []>} : vector<80x128xbf16>, vector<128x512xbf16>, vector<80x512xf32> -> vector<80x512xf32>
    %29 = arith.addf %24, %28 : vector<80x512xf32>
    %30 = vector.extract_strided_slice %13 {offsets = [10, 0], sizes = [80, 128], strides = [1, 1]} : vector<102x128xbf16> to vector<80x128xbf16>
    %c3 = arith.constant 3 : index
    %c0_19 = arith.constant 0 : index
    %c0_20 = arith.constant 0 : index
    %31 = vector.load %arg6[%c3, %c0_19, %c0_20] : memref<9x128x512xbf16, #tpu.memory_space<vmem>>, vector<1x128x512xbf16>
    %32 = vector.shape_cast %31 : vector<1x128x512xbf16> to vector<128x512xbf16>
    %cst_21 = arith.constant dense<0.000000e+00> : vector<80x512xf32>
    %33 = tpu.matmul %30, %32, %cst_21 {dimension_numbers = #tpu.dot_dimension_numbers<[1], [0], [0], [1], [0, 0, 1, 1], [], []>} : vector<80x128xbf16>, vector<128x512xbf16>, vector<80x512xf32> -> vector<80x512xf32>
    %34 = arith.addf %29, %33 : vector<80x512xf32>
    %35 = vector.extract_strided_slice %13 {offsets = [11, 0], sizes = [80, 128], strides = [1, 1]} : vector<102x128xbf16> to vector<80x128xbf16>
    %c4 = arith.constant 4 : index
    %c0_22 = arith.constant 0 : index
    %c0_23 = arith.constant 0 : index
    %36 = vector.load %arg6[%c4, %c0_22, %c0_23] : memref<9x128x512xbf16, #tpu.memory_space<vmem>>, vector<1x128x512xbf16>
    %37 = vector.shape_cast %36 : vector<1x128x512xbf16> to vector<128x512xbf16>
    %cst_24 = arith.constant dense<0.000000e+00> : vector<80x512xf32>
    %38 = tpu.matmul %35, %37, %cst_24 {dimension_numbers = #tpu.dot_dimension_numbers<[1], [0], [0], [1], [0, 0, 1, 1], [], []>} : vector<80x128xbf16>, vector<128x512xbf16>, vector<80x512xf32> -> vector<80x512xf32>
    %39 = arith.addf %34, %38 : vector<80x512xf32>
    %40 = vector.extract_strided_slice %13 {offsets = [12, 0], sizes = [80, 128], strides = [1, 1]} : vector<102x128xbf16> to vector<80x128xbf16>
    %c5 = arith.constant 5 : index
    %c0_25 = arith.constant 0 : index
    %c0_26 = arith.constant 0 : index
    %41 = vector.load %arg6[%c5, %c0_25, %c0_26] : memref<9x128x512xbf16, #tpu.memory_space<vmem>>, vector<1x128x512xbf16>
    %42 = vector.shape_cast %41 : vector<1x128x512xbf16> to vector<128x512xbf16>
    %cst_27 = arith.constant dense<0.000000e+00> : vector<80x512xf32>
    %43 = tpu.matmul %40, %42, %cst_27 {dimension_numbers = #tpu.dot_dimension_numbers<[1], [0], [0], [1], [0, 0, 1, 1], [], []>} : vector<80x128xbf16>, vector<128x512xbf16>, vector<80x512xf32> -> vector<80x512xf32>
    %44 = arith.addf %39, %43 : vector<80x512xf32>
    %45 = vector.extract_strided_slice %13 {offsets = [20, 0], sizes = [80, 128], strides = [1, 1]} : vector<102x128xbf16> to vector<80x128xbf16>
    %c6 = arith.constant 6 : index
    %c0_28 = arith.constant 0 : index
    %c0_29 = arith.constant 0 : index
    %46 = vector.load %arg6[%c6, %c0_28, %c0_29] : memref<9x128x512xbf16, #tpu.memory_space<vmem>>, vector<1x128x512xbf16>
    %47 = vector.shape_cast %46 : vector<1x128x512xbf16> to vector<128x512xbf16>
    %cst_30 = arith.constant dense<0.000000e+00> : vector<80x512xf32>
    %48 = tpu.matmul %45, %47, %cst_30 {dimension_numbers = #tpu.dot_dimension_numbers<[1], [0], [0], [1], [0, 0, 1, 1], [], []>} : vector<80x128xbf16>, vector<128x512xbf16>, vector<80x512xf32> -> vector<80x512xf32>
    %49 = arith.addf %44, %48 : vector<80x512xf32>
    %50 = vector.extract_strided_slice %13 {offsets = [21, 0], sizes = [80, 128], strides = [1, 1]} : vector<102x128xbf16> to vector<80x128xbf16>
    %c7 = arith.constant 7 : index
    %c0_31 = arith.constant 0 : index
    %c0_32 = arith.constant 0 : index
    %51 = vector.load %arg6[%c7, %c0_31, %c0_32] : memref<9x128x512xbf16, #tpu.memory_space<vmem>>, vector<1x128x512xbf16>
    %52 = vector.shape_cast %51 : vector<1x128x512xbf16> to vector<128x512xbf16>
    %cst_33 = arith.constant dense<0.000000e+00> : vector<80x512xf32>
    %53 = tpu.matmul %50, %52, %cst_33 {dimension_numbers = #tpu.dot_dimension_numbers<[1], [0], [0], [1], [0, 0, 1, 1], [], []>} : vector<80x128xbf16>, vector<128x512xbf16>, vector<80x512xf32> -> vector<80x512xf32>
    %54 = arith.addf %49, %53 : vector<80x512xf32>
    %55 = vector.extract_strided_slice %13 {offsets = [22, 0], sizes = [80, 128], strides = [1, 1]} : vector<102x128xbf16> to vector<80x128xbf16>
    %c8 = arith.constant 8 : index
    %c0_34 = arith.constant 0 : index
    %c0_35 = arith.constant 0 : index
    %56 = vector.load %arg6[%c8, %c0_34, %c0_35] : memref<9x128x512xbf16, #tpu.memory_space<vmem>>, vector<1x128x512xbf16>
    %57 = vector.shape_cast %56 : vector<1x128x512xbf16> to vector<128x512xbf16>
    %cst_36 = arith.constant dense<0.000000e+00> : vector<80x512xf32>
    %58 = tpu.matmul %55, %57, %cst_36 {dimension_numbers = #tpu.dot_dimension_numbers<[1], [0], [0], [1], [0, 0, 1, 1], [], []>} : vector<80x128xbf16>, vector<128x512xbf16>, vector<80x512xf32> -> vector<80x512xf32>
    %59 = arith.addf %54, %58 : vector<80x512xf32>
    %c0_37 = arith.constant 0 : index
    %c0_38 = arith.constant 0 : index
    %60 = vector.load %arg5[%c0_37, %c0_38] : memref<80x1xf32, #tpu.memory_space<vmem>>, vector<80x1xf32>
    %61 = vector.broadcast %60 : vector<80x1xf32> to vector<80x512xf32>
    %62 = arith.mulf %59, %61 : vector<80x512xf32>
    %c0_39 = arith.constant 0 : index
    %c0_40 = arith.constant 0 : index
    %c0_41 = arith.constant 0 : index
    %63 = vector.load %arg7[%c0_39, %c0_40, %c0_41] : memref<1x80x512xf32, #tpu.memory_space<vmem>>, vector<1x80x512xf32>
    %64 = vector.shape_cast %63 : vector<1x80x512xf32> to vector<80x512xf32>
    %65 = vector.shape_cast %62 : vector<80x512xf32> to vector<1x80x512xf32>
    tpu.vector_store %arg7[%c0_39, %c0_40, %c0_41], %65 {strides = array<i32>} : memref<1x80x512xf32, #tpu.memory_space<vmem>>, vector<1x80x512xf32>,
    %cst_42 = arith.constant dense<0.000000e+00> : vector<512xf32>
    %66 = vector.multi_reduction <add>, %62, %cst_42 [0] : vector<80x512xf32> to vector<512xf32>
    %67 = vector.shape_cast %66 : vector<512xf32> to vector<1x512xf32>
    %68 = arith.mulf %62, %62 : vector<80x512xf32>
    %cst_43 = arith.constant dense<0.000000e+00> : vector<512xf32>
    %69 = vector.multi_reduction <add>, %68, %cst_43 [0] : vector<80x512xf32> to vector<512xf32>
    %70 = vector.shape_cast %69 : vector<512xf32> to vector<1x512xf32>
    %71 = tpu.concatenate %67, %70 in 0 : vector<1x512xf32>, vector<1x512xf32> -> vector<2x512xf32>
    %c0_44 = arith.constant 0 : index
    %c0_45 = arith.constant 0 : index
    %c0_46 = arith.constant 0 : index
    %72 = vector.load %arg8[%c0_44, %c0_45, %c0_46] : memref<1x2x512xf32, #tpu.memory_space<vmem>>, vector<1x2x512xf32>
    %73 = vector.shape_cast %72 : vector<1x2x512xf32> to vector<2x512xf32>
    %74 = vector.shape_cast %71 : vector<2x512xf32> to vector<1x2x512xf32>
    tpu.vector_store %arg8[%c0_44, %c0_45, %c0_46], %74 {strides = array<i32>} : memref<1x2x512xf32, #tpu.memory_space<vmem>>, vector<1x2x512xf32>,
    return
  }
  func.func @transform_0(%arg0: i32) -> (i32, i32, i32) {
    %c0_i32 = arith.constant 0 : i32
    %c0_i32_0 = arith.constant 0 : i32
    %c0_i32_1 = arith.constant 0 : i32
    return %arg0, %c0_i32, %c0_i32_0 : i32, i32, i32
  }
  func.func @transform_1(%arg0: i32) -> (i32, i32) {
    %c0_i32 = arith.constant 0 : i32
    %c0_i32_0 = arith.constant 0 : i32
    %c0_i32_1 = arith.constant 0 : i32
    return %c0_i32, %c0_i32_0 : i32, i32
  }
  func.func @transform_2(%arg0: i32) -> (i32, i32) {
    %c0_i32 = arith.constant 0 : i32
    %c0_i32_0 = arith.constant 0 : i32
    %c0_i32_1 = arith.constant 0 : i32
    return %c0_i32, %c0_i32_0 : i32, i32
  }
  func.func @transform_3(%arg0: i32) -> (i32, i32) {
    %c0_i32 = arith.constant 0 : i32
    %c0_i32_0 = arith.constant 0 : i32
    %c0_i32_1 = arith.constant 0 : i32
    return %c0_i32, %c0_i32_0 : i32, i32
  }
  func.func @transform_4(%arg0: i32) -> (i32, i32) {
    %c0_i32 = arith.constant 0 : i32
    %c0_i32_0 = arith.constant 0 : i32
    %c0_i32_1 = arith.constant 0 : i32
    return %c0_i32, %c0_i32_0 : i32, i32
  }
  func.func @transform_5(%arg0: i32) -> (i32, i32, i32) {
    %c0_i32 = arith.constant 0 : i32
    %c0_i32_0 = arith.constant 0 : i32
    %c0_i32_1 = arith.constant 0 : i32
    %c0_i32_2 = arith.constant 0 : i32
    return %c0_i32, %c0_i32_0, %c0_i32_1 : i32, i32, i32
  }
  func.func @transform_6(%arg0: i32) -> (i32, i32, i32) {
    %c0_i32 = arith.constant 0 : i32
    %c0_i32_0 = arith.constant 0 : i32
    %c0_i32_1 = arith.constant 0 : i32
    return %arg0, %c0_i32, %c0_i32_0 : i32, i32, i32
  }
  func.func @transform_7(%arg0: i32) -> (i32, i32, i32) {
    %c0_i32 = arith.constant 0 : i32
    %c0_i32_0 = arith.constant 0 : i32
    %c0_i32_1 = arith.constant 0 : i32
    return %arg0, %c0_i32, %c0_i32_0 : i32, i32, i32
  }
}

module attributes {stable_mosaic.version = 11 : i64} {
  func.func @_dconv_cf_kernel(%arg0: i32, %arg1: memref<1x128x512xf32, #tpu.memory_space<vmem>>, %arg2: memref<128x1xf32, #tpu.memory_space<vmem>>, %arg3: memref<128x1xf32, #tpu.memory_space<vmem>>, %arg4: memref<1x512xf32, #tpu.memory_space<vmem>>, %arg5: memref<1x384xf32, #tpu.memory_space<vmem>>, %arg6: memref<9x64x128xbf16, #tpu.memory_space<vmem>>, %arg7: memref<1x64x384xf32, #tpu.memory_space<vmem>>, %arg8: memref<1x64x2xf32, #tpu.memory_space<vmem>>) attributes {dimension_semantics = [#tpu.dimension_semantics<parallel>], iteration_bounds = array<i64: 2>, scalar_prefetch = 0 : i64, scratch_operands = 0 : i64, tpu.core_type = #tpu.core_type<tc>, window_params = [{transform_indices = @transform_0, window_bounds = array<i64: 1, 128, 512>}, {pipeline_mode = #tpu.pipeline_mode<synchronous>, transform_indices = @transform_1, window_bounds = array<i64: 128, 1>}, {pipeline_mode = #tpu.pipeline_mode<synchronous>, transform_indices = @transform_2, window_bounds = array<i64: 128, 1>}, {pipeline_mode = #tpu.pipeline_mode<synchronous>, transform_indices = @transform_3, window_bounds = array<i64: 1, 512>}, {pipeline_mode = #tpu.pipeline_mode<synchronous>, transform_indices = @transform_4, window_bounds = array<i64: 1, 384>}, {pipeline_mode = #tpu.pipeline_mode<synchronous>, transform_indices = @transform_5, window_bounds = array<i64: 9, 64, 128>}, {transform_indices = @transform_6, window_bounds = array<i64: 1, 64, 384>}, {transform_indices = @transform_7, window_bounds = array<i64: 1, 64, 2>}]} {
    %c0 = arith.constant 0 : index
    %c0_0 = arith.constant 0 : index
    %c0_1 = arith.constant 0 : index
    %0 = vector.load %arg1[%c0, %c0_0, %c0_1] : memref<1x128x512xf32, #tpu.memory_space<vmem>>, vector<1x128x512xf32>
    %1 = vector.shape_cast %0 : vector<1x128x512xf32> to vector<128x512xf32>
    %c0_2 = arith.constant 0 : index
    %c0_3 = arith.constant 0 : index
    %2 = vector.load %arg2[%c0_2, %c0_3] : memref<128x1xf32, #tpu.memory_space<vmem>>, vector<128x1xf32>
    %3 = vector.broadcast %2 : vector<128x1xf32> to vector<128x512xf32>
    %4 = arith.mulf %1, %3 : vector<128x512xf32>
    %c0_4 = arith.constant 0 : index
    %c0_5 = arith.constant 0 : index
    %5 = vector.load %arg3[%c0_4, %c0_5] : memref<128x1xf32, #tpu.memory_space<vmem>>, vector<128x1xf32>
    %6 = vector.broadcast %5 : vector<128x1xf32> to vector<128x512xf32>
    %7 = arith.addf %4, %6 : vector<128x512xf32>
    %cst = arith.constant 0.000000e+00 : f32
    %8 = vector.broadcast %cst : f32 to vector<128x512xf32>
    %9 = arith.maximumf %7, %8 : vector<128x512xf32>
    %c0_6 = arith.constant 0 : index
    %c0_7 = arith.constant 0 : index
    %10 = vector.load %arg4[%c0_6, %c0_7] : memref<1x512xf32, #tpu.memory_space<vmem>>, vector<1x512xf32>
    %11 = vector.broadcast %10 : vector<1x512xf32> to vector<128x512xf32>
    %12 = arith.mulf %9, %11 : vector<128x512xf32>
    %13 = arith.truncf %12 : vector<128x512xf32> to vector<128x512xbf16>
    %cst_8 = arith.constant 0.000000e+00 : f32
    %14 = vector.broadcast %cst_8 : f32 to vector<64x384xf32>
    %c0_9 = arith.constant 0 : index
    %c0_10 = arith.constant 0 : index
    %c0_11 = arith.constant 0 : index
    %15 = vector.load %arg6[%c0_9, %c0_10, %c0_11] : memref<9x64x128xbf16, #tpu.memory_space<vmem>>, vector<1x64x128xbf16>
    %16 = vector.shape_cast %15 : vector<1x64x128xbf16> to vector<64x128xbf16>
    %17 = vector.extract_strided_slice %13 {offsets = [0, 0], sizes = [128, 384], strides = [1, 1]} : vector<128x512xbf16> to vector<128x384xbf16>
    %cst_12 = arith.constant dense<0.000000e+00> : vector<64x384xf32>
    %18 = tpu.matmul %16, %17, %cst_12 {dimension_numbers = #tpu.dot_dimension_numbers<[1], [0], [0], [1], [0, 0, 1, 1], [], []>} : vector<64x128xbf16>, vector<128x384xbf16>, vector<64x384xf32> -> vector<64x384xf32>
    %19 = arith.addf %14, %18 : vector<64x384xf32>
    %c1 = arith.constant 1 : index
    %c0_13 = arith.constant 0 : index
    %c0_14 = arith.constant 0 : index
    %20 = vector.load %arg6[%c1, %c0_13, %c0_14] : memref<9x64x128xbf16, #tpu.memory_space<vmem>>, vector<1x64x128xbf16>
    %21 = vector.shape_cast %20 : vector<1x64x128xbf16> to vector<64x128xbf16>
    %22 = vector.extract_strided_slice %13 {offsets = [0, 1], sizes = [128, 384], strides = [1, 1]} : vector<128x512xbf16> to vector<128x384xbf16>
    %cst_15 = arith.constant dense<0.000000e+00> : vector<64x384xf32>
    %23 = tpu.matmul %21, %22, %cst_15 {dimension_numbers = #tpu.dot_dimension_numbers<[1], [0], [0], [1], [0, 0, 1, 1], [], []>} : vector<64x128xbf16>, vector<128x384xbf16>, vector<64x384xf32> -> vector<64x384xf32>
    %24 = arith.addf %19, %23 : vector<64x384xf32>
    %c2 = arith.constant 2 : index
    %c0_16 = arith.constant 0 : index
    %c0_17 = arith.constant 0 : index
    %25 = vector.load %arg6[%c2, %c0_16, %c0_17] : memref<9x64x128xbf16, #tpu.memory_space<vmem>>, vector<1x64x128xbf16>
    %26 = vector.shape_cast %25 : vector<1x64x128xbf16> to vector<64x128xbf16>
    %27 = vector.extract_strided_slice %13 {offsets = [0, 2], sizes = [128, 384], strides = [1, 1]} : vector<128x512xbf16> to vector<128x384xbf16>
    %cst_18 = arith.constant dense<0.000000e+00> : vector<64x384xf32>
    %28 = tpu.matmul %26, %27, %cst_18 {dimension_numbers = #tpu.dot_dimension_numbers<[1], [0], [0], [1], [0, 0, 1, 1], [], []>} : vector<64x128xbf16>, vector<128x384xbf16>, vector<64x384xf32> -> vector<64x384xf32>
    %29 = arith.addf %24, %28 : vector<64x384xf32>
    %c3 = arith.constant 3 : index
    %c0_19 = arith.constant 0 : index
    %c0_20 = arith.constant 0 : index
    %30 = vector.load %arg6[%c3, %c0_19, %c0_20] : memref<9x64x128xbf16, #tpu.memory_space<vmem>>, vector<1x64x128xbf16>
    %31 = vector.shape_cast %30 : vector<1x64x128xbf16> to vector<64x128xbf16>
    %32 = vector.extract_strided_slice %13 {offsets = [0, 18], sizes = [128, 384], strides = [1, 1]} : vector<128x512xbf16> to vector<128x384xbf16>
    %cst_21 = arith.constant dense<0.000000e+00> : vector<64x384xf32>
    %33 = tpu.matmul %31, %32, %cst_21 {dimension_numbers = #tpu.dot_dimension_numbers<[1], [0], [0], [1], [0, 0, 1, 1], [], []>} : vector<64x128xbf16>, vector<128x384xbf16>, vector<64x384xf32> -> vector<64x384xf32>
    %34 = arith.addf %29, %33 : vector<64x384xf32>
    %c4 = arith.constant 4 : index
    %c0_22 = arith.constant 0 : index
    %c0_23 = arith.constant 0 : index
    %35 = vector.load %arg6[%c4, %c0_22, %c0_23] : memref<9x64x128xbf16, #tpu.memory_space<vmem>>, vector<1x64x128xbf16>
    %36 = vector.shape_cast %35 : vector<1x64x128xbf16> to vector<64x128xbf16>
    %37 = vector.extract_strided_slice %13 {offsets = [0, 19], sizes = [128, 384], strides = [1, 1]} : vector<128x512xbf16> to vector<128x384xbf16>
    %cst_24 = arith.constant dense<0.000000e+00> : vector<64x384xf32>
    %38 = tpu.matmul %36, %37, %cst_24 {dimension_numbers = #tpu.dot_dimension_numbers<[1], [0], [0], [1], [0, 0, 1, 1], [], []>} : vector<64x128xbf16>, vector<128x384xbf16>, vector<64x384xf32> -> vector<64x384xf32>
    %39 = arith.addf %34, %38 : vector<64x384xf32>
    %c5 = arith.constant 5 : index
    %c0_25 = arith.constant 0 : index
    %c0_26 = arith.constant 0 : index
    %40 = vector.load %arg6[%c5, %c0_25, %c0_26] : memref<9x64x128xbf16, #tpu.memory_space<vmem>>, vector<1x64x128xbf16>
    %41 = vector.shape_cast %40 : vector<1x64x128xbf16> to vector<64x128xbf16>
    %42 = vector.extract_strided_slice %13 {offsets = [0, 20], sizes = [128, 384], strides = [1, 1]} : vector<128x512xbf16> to vector<128x384xbf16>
    %cst_27 = arith.constant dense<0.000000e+00> : vector<64x384xf32>
    %43 = tpu.matmul %41, %42, %cst_27 {dimension_numbers = #tpu.dot_dimension_numbers<[1], [0], [0], [1], [0, 0, 1, 1], [], []>} : vector<64x128xbf16>, vector<128x384xbf16>, vector<64x384xf32> -> vector<64x384xf32>
    %44 = arith.addf %39, %43 : vector<64x384xf32>
    %c6 = arith.constant 6 : index
    %c0_28 = arith.constant 0 : index
    %c0_29 = arith.constant 0 : index
    %45 = vector.load %arg6[%c6, %c0_28, %c0_29] : memref<9x64x128xbf16, #tpu.memory_space<vmem>>, vector<1x64x128xbf16>
    %46 = vector.shape_cast %45 : vector<1x64x128xbf16> to vector<64x128xbf16>
    %47 = vector.extract_strided_slice %13 {offsets = [0, 36], sizes = [128, 384], strides = [1, 1]} : vector<128x512xbf16> to vector<128x384xbf16>
    %cst_30 = arith.constant dense<0.000000e+00> : vector<64x384xf32>
    %48 = tpu.matmul %46, %47, %cst_30 {dimension_numbers = #tpu.dot_dimension_numbers<[1], [0], [0], [1], [0, 0, 1, 1], [], []>} : vector<64x128xbf16>, vector<128x384xbf16>, vector<64x384xf32> -> vector<64x384xf32>
    %49 = arith.addf %44, %48 : vector<64x384xf32>
    %c7 = arith.constant 7 : index
    %c0_31 = arith.constant 0 : index
    %c0_32 = arith.constant 0 : index
    %50 = vector.load %arg6[%c7, %c0_31, %c0_32] : memref<9x64x128xbf16, #tpu.memory_space<vmem>>, vector<1x64x128xbf16>
    %51 = vector.shape_cast %50 : vector<1x64x128xbf16> to vector<64x128xbf16>
    %52 = vector.extract_strided_slice %13 {offsets = [0, 37], sizes = [128, 384], strides = [1, 1]} : vector<128x512xbf16> to vector<128x384xbf16>
    %cst_33 = arith.constant dense<0.000000e+00> : vector<64x384xf32>
    %53 = tpu.matmul %51, %52, %cst_33 {dimension_numbers = #tpu.dot_dimension_numbers<[1], [0], [0], [1], [0, 0, 1, 1], [], []>} : vector<64x128xbf16>, vector<128x384xbf16>, vector<64x384xf32> -> vector<64x384xf32>
    %54 = arith.addf %49, %53 : vector<64x384xf32>
    %c8 = arith.constant 8 : index
    %c0_34 = arith.constant 0 : index
    %c0_35 = arith.constant 0 : index
    %55 = vector.load %arg6[%c8, %c0_34, %c0_35] : memref<9x64x128xbf16, #tpu.memory_space<vmem>>, vector<1x64x128xbf16>
    %56 = vector.shape_cast %55 : vector<1x64x128xbf16> to vector<64x128xbf16>
    %57 = vector.extract_strided_slice %13 {offsets = [0, 38], sizes = [128, 384], strides = [1, 1]} : vector<128x512xbf16> to vector<128x384xbf16>
    %cst_36 = arith.constant dense<0.000000e+00> : vector<64x384xf32>
    %58 = tpu.matmul %56, %57, %cst_36 {dimension_numbers = #tpu.dot_dimension_numbers<[1], [0], [0], [1], [0, 0, 1, 1], [], []>} : vector<64x128xbf16>, vector<128x384xbf16>, vector<64x384xf32> -> vector<64x384xf32>
    %59 = arith.addf %54, %58 : vector<64x384xf32>
    %c0_37 = arith.constant 0 : index
    %c0_38 = arith.constant 0 : index
    %60 = vector.load %arg5[%c0_37, %c0_38] : memref<1x384xf32, #tpu.memory_space<vmem>>, vector<1x384xf32>
    %61 = vector.broadcast %60 : vector<1x384xf32> to vector<64x384xf32>
    %62 = arith.mulf %59, %61 : vector<64x384xf32>
    %cst_39 = arith.constant dense<0.000000e+00> : vector<64xf32>
    %63 = vector.multi_reduction <add>, %62, %cst_39 [1] : vector<64x384xf32> to vector<64xf32>
    %64 = vector.shape_cast %63 : vector<64xf32> to vector<64x1xf32>
    %65 = arith.mulf %62, %62 : vector<64x384xf32>
    %cst_40 = arith.constant dense<0.000000e+00> : vector<64xf32>
    %66 = vector.multi_reduction <add>, %65, %cst_40 [1] : vector<64x384xf32> to vector<64xf32>
    %67 = vector.shape_cast %66 : vector<64xf32> to vector<64x1xf32>
    %68 = tpu.concatenate %64, %67 in 1 : vector<64x1xf32>, vector<64x1xf32> -> vector<64x2xf32>
    %c0_41 = arith.constant 0 : index
    %c0_42 = arith.constant 0 : index
    %c0_43 = arith.constant 0 : index
    %69 = vector.load %arg8[%c0_41, %c0_42, %c0_43] : memref<1x64x2xf32, #tpu.memory_space<vmem>>, vector<1x64x2xf32>
    %70 = vector.shape_cast %69 : vector<1x64x2xf32> to vector<64x2xf32>
    %71 = vector.shape_cast %68 : vector<64x2xf32> to vector<1x64x2xf32>
    tpu.vector_store %arg8[%c0_41, %c0_42, %c0_43], %71 {strides = array<i32>} : memref<1x64x2xf32, #tpu.memory_space<vmem>>, vector<1x64x2xf32>,
    %c0_44 = arith.constant 0 : index
    %c0_45 = arith.constant 0 : index
    %c0_46 = arith.constant 0 : index
    %72 = vector.load %arg7[%c0_44, %c0_45, %c0_46] : memref<1x64x384xf32, #tpu.memory_space<vmem>>, vector<1x64x384xf32>
    %73 = vector.shape_cast %72 : vector<1x64x384xf32> to vector<64x384xf32>
    %74 = vector.shape_cast %59 : vector<64x384xf32> to vector<1x64x384xf32>
    tpu.vector_store %arg7[%c0_44, %c0_45, %c0_46], %74 {strides = array<i32>} : memref<1x64x384xf32, #tpu.memory_space<vmem>>, vector<1x64x384xf32>,
    return
  }
  func.func @transform_0(%arg0: i32) -> (i32, i32, i32) {
    %c0_i32 = arith.constant 0 : i32
    %c0_i32_0 = arith.constant 0 : i32
    %c0_i32_1 = arith.constant 0 : i32
    return %arg0, %c0_i32, %c0_i32_0 : i32, i32, i32
  }
  func.func @transform_1(%arg0: i32) -> (i32, i32) {
    %c0_i32 = arith.constant 0 : i32
    %c0_i32_0 = arith.constant 0 : i32
    %c0_i32_1 = arith.constant 0 : i32
    return %c0_i32, %c0_i32_0 : i32, i32
  }
  func.func @transform_2(%arg0: i32) -> (i32, i32) {
    %c0_i32 = arith.constant 0 : i32
    %c0_i32_0 = arith.constant 0 : i32
    %c0_i32_1 = arith.constant 0 : i32
    return %c0_i32, %c0_i32_0 : i32, i32
  }
  func.func @transform_3(%arg0: i32) -> (i32, i32) {
    %c0_i32 = arith.constant 0 : i32
    %c0_i32_0 = arith.constant 0 : i32
    %c0_i32_1 = arith.constant 0 : i32
    return %c0_i32, %c0_i32_0 : i32, i32
  }
  func.func @transform_4(%arg0: i32) -> (i32, i32) {
    %c0_i32 = arith.constant 0 : i32
    %c0_i32_0 = arith.constant 0 : i32
    %c0_i32_1 = arith.constant 0 : i32
    return %c0_i32, %c0_i32_0 : i32, i32
  }
  func.func @transform_5(%arg0: i32) -> (i32, i32, i32) {
    %c0_i32 = arith.constant 0 : i32
    %c0_i32_0 = arith.constant 0 : i32
    %c0_i32_1 = arith.constant 0 : i32
    %c0_i32_2 = arith.constant 0 : i32
    return %c0_i32, %c0_i32_0, %c0_i32_1 : i32, i32, i32
  }
  func.func @transform_6(%arg0: i32) -> (i32, i32, i32) {
    %c0_i32 = arith.constant 0 : i32
    %c0_i32_0 = arith.constant 0 : i32
    %c0_i32_1 = arith.constant 0 : i32
    return %arg0, %c0_i32, %c0_i32_0 : i32, i32, i32
  }
  func.func @transform_7(%arg0: i32) -> (i32, i32, i32) {
    %c0_i32 = arith.constant 0 : i32
    %c0_i32_0 = arith.constant 0 : i32
    %c0_i32_1 = arith.constant 0 : i32
    return %arg0, %c0_i32, %c0_i32_0 : i32, i32, i32
  }
}

module attributes {stable_mosaic.version = 11 : i64} {
  func.func @_dconv_cf_kernel(%arg0: i32, %arg1: memref<1x16x1280xf32, #tpu.memory_space<vmem>>, %arg2: memref<16x1xf32, #tpu.memory_space<vmem>>, %arg3: memref<16x1xf32, #tpu.memory_space<vmem>>, %arg4: memref<1x1280xf32, #tpu.memory_space<vmem>>, %arg5: memref<12x1xf32, #tpu.memory_space<vmem>>, %arg6: memref<9x12x16xbf16, #tpu.memory_space<vmem>>, %arg7: memref<1x12x1152xf32, #tpu.memory_space<vmem>>) attributes {dimension_semantics = [#tpu.dimension_semantics<parallel>], iteration_bounds = array<i64: 2>, scalar_prefetch = 0 : i64, scratch_operands = 0 : i64, tpu.core_type = #tpu.core_type<tc>, window_params = [{transform_indices = @transform_0, window_bounds = array<i64: 1, 16, 1280>}, {pipeline_mode = #tpu.pipeline_mode<synchronous>, transform_indices = @transform_1, window_bounds = array<i64: 16, 1>}, {pipeline_mode = #tpu.pipeline_mode<synchronous>, transform_indices = @transform_2, window_bounds = array<i64: 16, 1>}, {pipeline_mode = #tpu.pipeline_mode<synchronous>, transform_indices = @transform_3, window_bounds = array<i64: 1, 1280>}, {pipeline_mode = #tpu.pipeline_mode<synchronous>, transform_indices = @transform_4, window_bounds = array<i64: 12, 1>}, {pipeline_mode = #tpu.pipeline_mode<synchronous>, transform_indices = @transform_5, window_bounds = array<i64: 9, 12, 16>}, {transform_indices = @transform_6, window_bounds = array<i64: 1, 12, 1152>}]} {
    %c0 = arith.constant 0 : index
    %c0_0 = arith.constant 0 : index
    %c0_1 = arith.constant 0 : index
    %0 = vector.load %arg1[%c0, %c0_0, %c0_1] : memref<1x16x1280xf32, #tpu.memory_space<vmem>>, vector<1x16x1280xf32>
    %1 = vector.shape_cast %0 : vector<1x16x1280xf32> to vector<16x1280xf32>
    %c0_2 = arith.constant 0 : index
    %c0_3 = arith.constant 0 : index
    %2 = vector.load %arg2[%c0_2, %c0_3] : memref<16x1xf32, #tpu.memory_space<vmem>>, vector<16x1xf32>
    %3 = vector.broadcast %2 : vector<16x1xf32> to vector<16x1280xf32>
    %4 = arith.mulf %1, %3 : vector<16x1280xf32>
    %c0_4 = arith.constant 0 : index
    %c0_5 = arith.constant 0 : index
    %5 = vector.load %arg3[%c0_4, %c0_5] : memref<16x1xf32, #tpu.memory_space<vmem>>, vector<16x1xf32>
    %6 = vector.broadcast %5 : vector<16x1xf32> to vector<16x1280xf32>
    %7 = arith.addf %4, %6 : vector<16x1280xf32>
    %cst = arith.constant 0.000000e+00 : f32
    %8 = vector.broadcast %cst : f32 to vector<16x1280xf32>
    %9 = arith.maximumf %7, %8 : vector<16x1280xf32>
    %c0_6 = arith.constant 0 : index
    %c0_7 = arith.constant 0 : index
    %10 = vector.load %arg4[%c0_6, %c0_7] : memref<1x1280xf32, #tpu.memory_space<vmem>>, vector<1x1280xf32>
    %11 = vector.broadcast %10 : vector<1x1280xf32> to vector<16x1280xf32>
    %12 = arith.mulf %9, %11 : vector<16x1280xf32>
    %13 = arith.truncf %12 : vector<16x1280xf32> to vector<16x1280xbf16>
    %cst_8 = arith.constant 0.000000e+00 : f32
    %14 = vector.broadcast %cst_8 : f32 to vector<12x1152xf32>
    %c0_9 = arith.constant 0 : index
    %c0_10 = arith.constant 0 : index
    %c0_11 = arith.constant 0 : index
    %15 = vector.load %arg6[%c0_9, %c0_10, %c0_11] : memref<9x12x16xbf16, #tpu.memory_space<vmem>>, vector<1x12x16xbf16>
    %16 = vector.shape_cast %15 : vector<1x12x16xbf16> to vector<12x16xbf16>
    %17 = vector.extract_strided_slice %13 {offsets = [0, 0], sizes = [16, 1152], strides = [1, 1]} : vector<16x1280xbf16> to vector<16x1152xbf16>
    %cst_12 = arith.constant dense<0.000000e+00> : vector<12x1152xf32>
    %18 = tpu.matmul %16, %17, %cst_12 {dimension_numbers = #tpu.dot_dimension_numbers<[1], [0], [0], [1], [0, 0, 1, 1], [], []>} : vector<12x16xbf16>, vector<16x1152xbf16>, vector<12x1152xf32> -> vector<12x1152xf32>
    %19 = arith.addf %14, %18 : vector<12x1152xf32>
    %c1 = arith.constant 1 : index
    %c0_13 = arith.constant 0 : index
    %c0_14 = arith.constant 0 : index
    %20 = vector.load %arg6[%c1, %c0_13, %c0_14] : memref<9x12x16xbf16, #tpu.memory_space<vmem>>, vector<1x12x16xbf16>
    %21 = vector.shape_cast %20 : vector<1x12x16xbf16> to vector<12x16xbf16>
    %22 = vector.extract_strided_slice %13 {offsets = [0, 1], sizes = [16, 1152], strides = [1, 1]} : vector<16x1280xbf16> to vector<16x1152xbf16>
    %cst_15 = arith.constant dense<0.000000e+00> : vector<12x1152xf32>
    %23 = tpu.matmul %21, %22, %cst_15 {dimension_numbers = #tpu.dot_dimension_numbers<[1], [0], [0], [1], [0, 0, 1, 1], [], []>} : vector<12x16xbf16>, vector<16x1152xbf16>, vector<12x1152xf32> -> vector<12x1152xf32>
    %24 = arith.addf %19, %23 : vector<12x1152xf32>
    %c2 = arith.constant 2 : index
    %c0_16 = arith.constant 0 : index
    %c0_17 = arith.constant 0 : index
    %25 = vector.load %arg6[%c2, %c0_16, %c0_17] : memref<9x12x16xbf16, #tpu.memory_space<vmem>>, vector<1x12x16xbf16>
    %26 = vector.shape_cast %25 : vector<1x12x16xbf16> to vector<12x16xbf16>
    %27 = vector.extract_strided_slice %13 {offsets = [0, 2], sizes = [16, 1152], strides = [1, 1]} : vector<16x1280xbf16> to vector<16x1152xbf16>
    %cst_18 = arith.constant dense<0.000000e+00> : vector<12x1152xf32>
    %28 = tpu.matmul %26, %27, %cst_18 {dimension_numbers = #tpu.dot_dimension_numbers<[1], [0], [0], [1], [0, 0, 1, 1], [], []>} : vector<12x16xbf16>, vector<16x1152xbf16>, vector<12x1152xf32> -> vector<12x1152xf32>
    %29 = arith.addf %24, %28 : vector<12x1152xf32>
    %c3 = arith.constant 3 : index
    %c0_19 = arith.constant 0 : index
    %c0_20 = arith.constant 0 : index
    %30 = vector.load %arg6[%c3, %c0_19, %c0_20] : memref<9x12x16xbf16, #tpu.memory_space<vmem>>, vector<1x12x16xbf16>
    %31 = vector.shape_cast %30 : vector<1x12x16xbf16> to vector<12x16xbf16>
    %32 = vector.extract_strided_slice %13 {offsets = [0, 34], sizes = [16, 1152], strides = [1, 1]} : vector<16x1280xbf16> to vector<16x1152xbf16>
    %cst_21 = arith.constant dense<0.000000e+00> : vector<12x1152xf32>
    %33 = tpu.matmul %31, %32, %cst_21 {dimension_numbers = #tpu.dot_dimension_numbers<[1], [0], [0], [1], [0, 0, 1, 1], [], []>} : vector<12x16xbf16>, vector<16x1152xbf16>, vector<12x1152xf32> -> vector<12x1152xf32>
    %34 = arith.addf %29, %33 : vector<12x1152xf32>
    %c4 = arith.constant 4 : index
    %c0_22 = arith.constant 0 : index
    %c0_23 = arith.constant 0 : index
    %35 = vector.load %arg6[%c4, %c0_22, %c0_23] : memref<9x12x16xbf16, #tpu.memory_space<vmem>>, vector<1x12x16xbf16>
    %36 = vector.shape_cast %35 : vector<1x12x16xbf16> to vector<12x16xbf16>
    %37 = vector.extract_strided_slice %13 {offsets = [0, 35], sizes = [16, 1152], strides = [1, 1]} : vector<16x1280xbf16> to vector<16x1152xbf16>
    %cst_24 = arith.constant dense<0.000000e+00> : vector<12x1152xf32>
    %38 = tpu.matmul %36, %37, %cst_24 {dimension_numbers = #tpu.dot_dimension_numbers<[1], [0], [0], [1], [0, 0, 1, 1], [], []>} : vector<12x16xbf16>, vector<16x1152xbf16>, vector<12x1152xf32> -> vector<12x1152xf32>
    %39 = arith.addf %34, %38 : vector<12x1152xf32>
    %c5 = arith.constant 5 : index
    %c0_25 = arith.constant 0 : index
    %c0_26 = arith.constant 0 : index
    %40 = vector.load %arg6[%c5, %c0_25, %c0_26] : memref<9x12x16xbf16, #tpu.memory_space<vmem>>, vector<1x12x16xbf16>
    %41 = vector.shape_cast %40 : vector<1x12x16xbf16> to vector<12x16xbf16>
    %42 = vector.extract_strided_slice %13 {offsets = [0, 36], sizes = [16, 1152], strides = [1, 1]} : vector<16x1280xbf16> to vector<16x1152xbf16>
    %cst_27 = arith.constant dense<0.000000e+00> : vector<12x1152xf32>
    %43 = tpu.matmul %41, %42, %cst_27 {dimension_numbers = #tpu.dot_dimension_numbers<[1], [0], [0], [1], [0, 0, 1, 1], [], []>} : vector<12x16xbf16>, vector<16x1152xbf16>, vector<12x1152xf32> -> vector<12x1152xf32>
    %44 = arith.addf %39, %43 : vector<12x1152xf32>
    %c6 = arith.constant 6 : index
    %c0_28 = arith.constant 0 : index
    %c0_29 = arith.constant 0 : index
    %45 = vector.load %arg6[%c6, %c0_28, %c0_29] : memref<9x12x16xbf16, #tpu.memory_space<vmem>>, vector<1x12x16xbf16>
    %46 = vector.shape_cast %45 : vector<1x12x16xbf16> to vector<12x16xbf16>
    %47 = vector.extract_strided_slice %13 {offsets = [0, 68], sizes = [16, 1152], strides = [1, 1]} : vector<16x1280xbf16> to vector<16x1152xbf16>
    %cst_30 = arith.constant dense<0.000000e+00> : vector<12x1152xf32>
    %48 = tpu.matmul %46, %47, %cst_30 {dimension_numbers = #tpu.dot_dimension_numbers<[1], [0], [0], [1], [0, 0, 1, 1], [], []>} : vector<12x16xbf16>, vector<16x1152xbf16>, vector<12x1152xf32> -> vector<12x1152xf32>
    %49 = arith.addf %44, %48 : vector<12x1152xf32>
    %c7 = arith.constant 7 : index
    %c0_31 = arith.constant 0 : index
    %c0_32 = arith.constant 0 : index
    %50 = vector.load %arg6[%c7, %c0_31, %c0_32] : memref<9x12x16xbf16, #tpu.memory_space<vmem>>, vector<1x12x16xbf16>
    %51 = vector.shape_cast %50 : vector<1x12x16xbf16> to vector<12x16xbf16>
    %52 = vector.extract_strided_slice %13 {offsets = [0, 69], sizes = [16, 1152], strides = [1, 1]} : vector<16x1280xbf16> to vector<16x1152xbf16>
    %cst_33 = arith.constant dense<0.000000e+00> : vector<12x1152xf32>
    %53 = tpu.matmul %51, %52, %cst_33 {dimension_numbers = #tpu.dot_dimension_numbers<[1], [0], [0], [1], [0, 0, 1, 1], [], []>} : vector<12x16xbf16>, vector<16x1152xbf16>, vector<12x1152xf32> -> vector<12x1152xf32>
    %54 = arith.addf %49, %53 : vector<12x1152xf32>
    %c8 = arith.constant 8 : index
    %c0_34 = arith.constant 0 : index
    %c0_35 = arith.constant 0 : index
    %55 = vector.load %arg6[%c8, %c0_34, %c0_35] : memref<9x12x16xbf16, #tpu.memory_space<vmem>>, vector<1x12x16xbf16>
    %56 = vector.shape_cast %55 : vector<1x12x16xbf16> to vector<12x16xbf16>
    %57 = vector.extract_strided_slice %13 {offsets = [0, 70], sizes = [16, 1152], strides = [1, 1]} : vector<16x1280xbf16> to vector<16x1152xbf16>
    %cst_36 = arith.constant dense<0.000000e+00> : vector<12x1152xf32>
    %58 = tpu.matmul %56, %57, %cst_36 {dimension_numbers = #tpu.dot_dimension_numbers<[1], [0], [0], [1], [0, 0, 1, 1], [], []>} : vector<12x16xbf16>, vector<16x1152xbf16>, vector<12x1152xf32> -> vector<12x1152xf32>
    %59 = arith.addf %54, %58 : vector<12x1152xf32>
    %c0_37 = arith.constant 0 : index
    %c0_38 = arith.constant 0 : index
    %60 = vector.load %arg5[%c0_37, %c0_38] : memref<12x1xf32, #tpu.memory_space<vmem>>, vector<12x1xf32>
    %61 = vector.broadcast %60 : vector<12x1xf32> to vector<12x1152xf32>
    %62 = arith.addf %59, %61 : vector<12x1152xf32>
    %63 = math.tanh %62 : vector<12x1152xf32>
    %c0_39 = arith.constant 0 : index
    %c0_40 = arith.constant 0 : index
    %c0_41 = arith.constant 0 : index
    %64 = vector.load %arg7[%c0_39, %c0_40, %c0_41] : memref<1x12x1152xf32, #tpu.memory_space<vmem>>, vector<1x12x1152xf32>
    %65 = vector.shape_cast %64 : vector<1x12x1152xf32> to vector<12x1152xf32>
    %66 = vector.shape_cast %63 : vector<12x1152xf32> to vector<1x12x1152xf32>
    tpu.vector_store %arg7[%c0_39, %c0_40, %c0_41], %66 {strides = array<i32>} : memref<1x12x1152xf32, #tpu.memory_space<vmem>>, vector<1x12x1152xf32>,
    return
  }
  func.func @transform_0(%arg0: i32) -> (i32, i32, i32) {
    %c0_i32 = arith.constant 0 : i32
    %c0_i32_0 = arith.constant 0 : i32
    %c0_i32_1 = arith.constant 0 : i32
    return %arg0, %c0_i32, %c0_i32_0 : i32, i32, i32
  }
  func.func @transform_1(%arg0: i32) -> (i32, i32) {
    %c0_i32 = arith.constant 0 : i32
    %c0_i32_0 = arith.constant 0 : i32
    %c0_i32_1 = arith.constant 0 : i32
    return %c0_i32, %c0_i32_0 : i32, i32
  }
  func.func @transform_2(%arg0: i32) -> (i32, i32) {
    %c0_i32 = arith.constant 0 : i32
    %c0_i32_0 = arith.constant 0 : i32
    %c0_i32_1 = arith.constant 0 : i32
    return %c0_i32, %c0_i32_0 : i32, i32
  }
  func.func @transform_3(%arg0: i32) -> (i32, i32) {
    %c0_i32 = arith.constant 0 : i32
    %c0_i32_0 = arith.constant 0 : i32
    %c0_i32_1 = arith.constant 0 : i32
    return %c0_i32, %c0_i32_0 : i32, i32
  }
  func.func @transform_4(%arg0: i32) -> (i32, i32) {
    %c0_i32 = arith.constant 0 : i32
    %c0_i32_0 = arith.constant 0 : i32
    %c0_i32_1 = arith.constant 0 : i32
    return %c0_i32, %c0_i32_0 : i32, i32
  }
  func.func @transform_5(%arg0: i32) -> (i32, i32, i32) {
    %c0_i32 = arith.constant 0 : i32
    %c0_i32_0 = arith.constant 0 : i32
    %c0_i32_1 = arith.constant 0 : i32
    %c0_i32_2 = arith.constant 0 : i32
    return %c0_i32, %c0_i32_0, %c0_i32_1 : i32, i32, i32
  }
  func.func @transform_6(%arg0: i32) -> (i32, i32, i32) {
    %c0_i32 = arith.constant 0 : i32
    %c0_i32_0 = arith.constant 0 : i32
    %c0_i32_1 = arith.constant 0 : i32
    return %arg0, %c0_i32, %c0_i32_0 : i32, i32, i32
  }
}

</mosaic_0001>

<bundles_post_ra>
// kernel: generator_forward.5
= control target key start
LH: loop header
LB: loop body
LE: loop exit
PB: predicated region body
PF: predicated region fallthrough
CT: control target
= control target key end

     0   :  { %9 = vsyncpa [#allocation3], 0  ;;  %s2060_s0 = inlined_call_operand.hbm [shape: f32[2,32], index: 0, kind: input, shape index: {}]   ;;  %s2061_s1 = inlined_call_operand.hbm [shape: bf16[32,2048], index: 1, kind: input, shape index: {}]   ;;  %s2062_s2 = inlined_call_operand.hbm [shape: f32[1,2048], index: 2, kind: input, shape index: {}]   ;;  %s2063_s3 = inlined_call_operand.hbm [shape: f32[1,2048], index: 3, kind: input, shape index: {}]   ;;  %s2064_s4 = inlined_call_operand.vmem [shape: f32[2,2048], index: 4, kind: output, shape index: {}]  }
   0x1   :  { %10 = vsyncpa [#allocation5], 0 }
   0x2   :  { %11 = vsyncpa [#allocation8], 0  ;;  %s1571_s15 = smov [#allocation4]   ;;  %s1477_s19 = scalar_lea.hbm %s2061_s1, 4096 }
   0x3   :  { %s27_s16 = sshll.u32 %s1571_s15, 4  ;;  %p1478_p0 = scmp.ne.s32.totalorder %s2061_s1, %s1477_s19  ;;  %s28_s16 = int_to_ptr.vmem [resolvable:$true] %s27_s16 }
   0x4   :  { %p1481_p1 = scmp.lt.u32.totalorder %s1477_s19, %s2061_s1 }
   0x6   :  { %p1483_p2 = pnand %p1481_p1, %p1478_p0 }
   0x8   :  { %1486 = shalt.err (!%p1483_p2)
}
   0x9   :  { %s1487_s24 = scalar_lea.vmem %s28_s16, 4096  ;;  %p1492_p4 = scmp.lt.s32.totalorder %s28_s16, %s28_s16 }
   0xa   :  { %p1488_p3 = scmp.ne.s32.totalorder %s28_s16, %s1487_s24  ;;  %p1493_p5 = scmp.lt.s32.totalorder %s1487_s24, %s1487_s24 }
   0xc   :  { %p1494_p6 = por %p1493_p5, %p1492_p4 }
   0xe   :  { %p1495_p7 = pnand %p1494_p6, %p1488_p3 }
  0x10   :  { %1498 = shalt.err (!%p1495_p7)
}
  0x11   :  { %s1572_s25 = smov 1024   ;;  %s1573_s26 = smov 64  }
  0x12   :  { %33 = dma.hbm_to_vmem [thread:$0]  %s2061_s1, 4096, %s28_s16, [#allocation5], %s1572_s25, %s1572_s25, %s1573_s26  }
  0x13   :  { %s1574_s29 = smov [#allocation2]   ;;  %s1575_s5 = smov [#allocation6]  }
  0x14   :  { %s18_s30 = sshll.u32 %s1574_s29, 4  ;;  %s40_s6 = sshll.u32 %s1575_s5, 4  ;;  %s19_s30 = int_to_ptr.vmem [resolvable:$true] %s18_s30  ;;  %s41_s6 = int_to_ptr.vmem [resolvable:$true] %s40_s6 }
  0x15   :  { %s1499_s9 = scalar_lea.hbm %s2060_s0, 32 }
  0x16   :  { %p1500_p8 = scmp.ne.s32.totalorder %s2060_s0, %s1499_s9  ;;  %p1503_p9 = scmp.lt.u32.totalorder %s1499_s9, %s2060_s0 }
  0x18   :  { %p1505_p10 = pnand %p1503_p9, %p1500_p8 }
  0x1a   :  { %1508 = shalt.err (!%p1505_p10)
}
  0x1b   :  { %s1509_s1 = scalar_lea.vmem %s19_s30, 32  ;;  %p1514_p12 = scmp.lt.s32.totalorder %s19_s30, %s19_s30 }
  0x1c   :  { %p1510_p11 = scmp.ne.s32.totalorder %s19_s30, %s1509_s1  ;;  %p1515_p13 = scmp.lt.s32.totalorder %s1509_s1, %s1509_s1 }
  0x1e   :  { %p1516_p0 = por %p1515_p13, %p1514_p12 }
  0x20   :  { %p1517_p1 = pnand %p1516_p0, %p1510_p11 }
  0x22   :  { %1520 = shalt.err (!%p1517_p1)
}
  0x23   :  { %21 = dma.hbm_to_vmem [thread:$0]  %s2060_s0, 32, %s19_s30, [#allocation3]  }
  0x24   :  { %s1521_s18 = scalar_lea.hbm %s2062_s2, 256 }
  0x25   :  { %p1522_p2 = scmp.ne.s32.totalorder %s2062_s2, %s1521_s18  ;;  %p1525_p3 = scmp.lt.u32.totalorder %s1521_s18, %s2062_s2 }
  0x27   :  { %p1527_p4 = pnand %p1525_p3, %p1522_p2 }
  0x29   :  { %1530 = shalt.err (!%p1527_p4)
}
  0x2a   :  { %s1531_s23 = scalar_lea.vmem %s41_s6, 256  ;;  %p1536_p6 = scmp.lt.s32.totalorder %s41_s6, %s41_s6 }
  0x2b   :  { %p1532_p5 = scmp.ne.s32.totalorder %s41_s6, %s1531_s23  ;;  %p1537_p7 = scmp.lt.s32.totalorder %s1531_s23, %s1531_s23 }
  0x2d   :  { %p1538_p8 = por %p1537_p7, %p1536_p6 }
  0x2f   :  { %p1539_p9 = pnand %p1538_p8, %p1532_p5 }
  0x31   :  { %1542 = shalt.err (!%p1539_p9)
}
  0x32   :  { %43 = dma.hbm_to_vmem [thread:$0]  %s2062_s2, 256, %s41_s6, [#allocation5]  }
  0x33   :  { %s1576_s25 = smov [#allocation7]   ;;  %s1543_s29 = scalar_lea.hbm %s2063_s3, 256 }
  0x34   :  { %s50_s26 = sshll.u32 %s1576_s25, 4  ;;  %p1544_p10 = scmp.ne.s32.totalorder %s2063_s3, %s1543_s29  ;;  %s51_s26 = int_to_ptr.vmem [resolvable:$true] %s50_s26 }
  0x35   :  { %p1547_p11 = scmp.lt.u32.totalorder %s1543_s29, %s2063_s3 }
  0x37   :  { %p1549_p12 = pnand %p1547_p11, %p1544_p10 }
  0x39   :  { %1552 = shalt.err (!%p1549_p12)
}
  0x3a   :  { %s1553_s9 = scalar_lea.vmem %s51_s26, 256  ;;  %p1558_p0 = scmp.lt.s32.totalorder %s51_s26, %s51_s26 }
  0x3b   :  { %p1554_p13 = scmp.ne.s32.totalorder %s51_s26, %s1553_s9  ;;  %p1559_p1 = scmp.lt.s32.totalorder %s1553_s9, %s1553_s9 }
  0x3d   :  { %p1560_p2 = por %p1559_p1, %p1558_p0 }
  0x3f   :  { %p1561_p3 = pnand %p1560_p2, %p1554_p13 }
  0x41   :  { %1564 = shalt.err (!%p1561_p3)
}
  0x42   :  { %53 = dma.hbm_to_vmem [thread:$0]  %s2063_s3, 256, %s51_s26, [#allocation8]  }
  0x43   :  { %1565 = dma.done.wait [#allocation3], 32  }
  0x44   :  { %1566 = vsyncadd [#allocation3], 4294967264 }
  0x45   :  { %1567 = dma.done.wait [#allocation5], 4352  }
  0x46   :  { %1568 = vsyncadd [#allocation5], 4294962944 }
  0x47   :  { %1569 = dma.done.wait [#allocation8], 256  }
  0x48   :  { %1570 = vsyncadd [#allocation8], 4294967040  ;;  %v1577_v0 = vmov 0   ;;  %v69_v1 = vld [vmem:[#allocation4] sm:$0xff]  ;;  %v70_v3 = vld [vmem:[#allocation4 + $0x8] sm:$0xff]  ;;  %vm261_vm0 = vcmask 261120  }
  0x49   :  { %297 = vmatprep.mubr.bf16.mxu0 %v1577_v0  ;;  %338 = vmatprep.mubr.bf16.mxu1 %v1577_v0  ;;  %v77_v2 = vld [vmem:[#allocation4 + $0x40] sm:$0xff]  ;;  %v78_v5 = vld [vmem:[#allocation4 + $0x48] sm:$0xff]  ;;  %v71_v15 = vld [vmem:[#allocation4 + $0x10] sm:$0xff]  ;;  %vm593_vm1 = vcmask 1041408  }
  0x4a   :  { %v1397_v4 = vcombine.high %v69_v1, %v77_v2  ;;  %v1396_v6 = vcombine.low %v69_v1, %v77_v2  ;;  %v85_v7 = vld [vmem:[#allocation4 + $0x80] sm:$0xff]  ;;  %v1399_v9 = vcombine.high %v70_v3, %v78_v5  ;;  %v1398_v10 = vcombine.low %v70_v3, %v78_v5  ;;  %v86_v12 = vld [vmem:[#allocation4 + $0x88] sm:$0xff]  ;;  %v79_v16 = vld [vmem:[#allocation4 + $0x50] sm:$0xff] }
  0x4b   :  { %v93_v8 = vld [vmem:[#allocation4 + $0xc0] sm:$0xff]  ;;  %v94_v13 = vld [vmem:[#allocation4 + $0xc8] sm:$0xff]  ;;  %v72_v17 = vld [vmem:[#allocation4 + $0x18] sm:$0xff]  ;;  %v1401_v22 = vcombine.high %v71_v15, %v79_v16  ;;  %v1400_v29 = vcombine.low %v71_v15, %v79_v16 }
  0x4c   :  { %v1413_v11 = vcombine.high %v85_v7, %v93_v8  ;;  %265 = vmatprep.subr.bf16.mxu0 %v1397_v4  ;;  %v1415_v14 = vcombine.high %v86_v12, %v94_v13  ;;  %306 = vmatprep.subr.bf16.mxu1 %v1399_v9  ;;  %v1412_v18 = vcombine.low %v85_v7, %v93_v8  ;;  %v67_v19 = vld [vmem:[#allocation2] sm:$0x3]  ;;  %v87_v24 = vld [vmem:[#allocation4 + $0x90] sm:$0xff]  ;;  %v73_v33 = vld [vmem:[#allocation4 + $0x20] sm:$0xff]  ;;  %v1578_v4 = vmov 1966171168  }
  0x4d   :  { %266 = vmatpush1.bf16.msra.mxu0 %v1396_v6  ;;  %v80_v20 = vld [vmem:[#allocation4 + $0x58] sm:$0xff]  ;;  %307 = vmatpush1.bf16.msra.mxu1 %v1398_v10  ;;  %v1414_v21 = vcombine.low %v86_v12, %v94_v13  ;;  %v95_v25 = vld [vmem:[#allocation4 + $0xd0] sm:$0xff]  ;;  %v1655_v26 = vpack.c.bf16 %v67_v19, %v67_v19  ;;  %v81_v34 = vld [vmem:[#allocation4 + $0x60] sm:$0xff]  ;;  %v970_v5 = vunpack.c.l.s4 %v1578_v4  ;;  %v972_v6 = vlaneseq }
  0x4e   :  { %267 = vmatprep.subr.bf16.mxu0 %v1413_v11  ;;  %308 = vmatprep.subr.bf16.mxu1 %v1415_v14  ;;  %v1403_v23 = vcombine.high %v72_v17, %v80_v20  ;;  %v88_v27 = vld [vmem:[#allocation4 + $0x98] sm:$0xff]  ;;  %v1402_v30 = vcombine.low %v72_v17, %v80_v20  ;;  %v1417_v31 = vcombine.high %v87_v24, %v95_v25  ;;  %v74_v35 = vld [vmem:[#allocation4 + $0x28] sm:$0xff]  ;;  %v89_v41 = vld [vmem:[#allocation4 + $0xa0] sm:$0xff] }
  0x4f   :  { %v96_v28 = vld [vmem:[#allocation4 + $0xd8] sm:$0xff]  ;;  %v82_v36 = vld [vmem:[#allocation4 + $0x68] sm:$0xff]  ;;  %v1416_v37 = vcombine.low %v87_v24, %v95_v25  ;;  %v1405_v39 = vcombine.high %v73_v33, %v81_v34  ;;  %v97_v42 = vld [vmem:[#allocation4 + $0xe0] sm:$0xff]  ;;  %v1404_v45 = vcombine.low %v73_v33, %v81_v34  ;;  %v971_v7 = vunpack.c.0.s8 %v970_v5 }
  0x50   :  { %v1419_v32 = vcombine.high %v88_v27, %v96_v28  ;;  %v1418_v38 = vcombine.low %v88_v27, %v96_v28  ;;  %v1407_v40 = vcombine.high %v74_v35, %v82_v36  ;;  %v90_v43 = vld [vmem:[#allocation4 + $0xa8] sm:$0xff]  ;;  %v1406_v46 = vcombine.low %v74_v35, %v82_v36  ;;  %v75_v49 = vld [vmem:[#allocation4 + $0x30] sm:$0xff]  ;;  %v76_v51 = vld [vmem:[#allocation4 + $0x38] sm:$0xff] }
  0x51   :  { %268 = vmatpush1.bf16.msra.mxu0 %v1412_v18  ;;  %309 = vmatpush1.bf16.msra.mxu1 %v1414_v21  ;;  %v98_v44 = vld [vmem:[#allocation4 + $0xe8] sm:$0xff]  ;;  %v1421_v47 = vcombine.high %v89_v41, %v97_v42  ;;  %v83_v50 = vld [vmem:[#allocation4 + $0x70] sm:$0xff]  ;;  %v84_v52 = vld [vmem:[#allocation4 + $0x78] sm:$0xff]  ;;  %v1420_v53 = vcombine.low %v89_v41, %v97_v42  ;;  %v1679_v8 = vshrl.u32 %v972_v6, 7 }
  0x52   :  { %347 = vmatprep.subr.bf16.mxu0 %v1401_v22  ;;  %388 = vmatprep.subr.bf16.mxu1 %v1403_v23  ;;  %v1423_v48 = vcombine.high %v90_v43, %v98_v44  ;;  %v1422_v54 = vcombine.low %v90_v43, %v98_v44  ;;  %v1409_v55 = vcombine.high %v75_v49, %v83_v50  ;;  %v91_v57 = vld [vmem:[#allocation4 + $0xb0] sm:$0xff]  ;;  %v92_v59 = vld [vmem:[#allocation4 + $0xb8] sm:$0xff] }
  0x53   :  { %v1411_v56 = vcombine.high %v76_v51, %v84_v52  ;;  %v99_v58 = vld [vmem:[#allocation4 + $0xf0] sm:$0xff]  ;;  %v100_v60 = vld [vmem:[#allocation4 + $0xf8] sm:$0xff]  ;;  %v1408_v61 = vcombine.low %v75_v49, %v83_v50  ;;  %v1410_v62 = vcombine.low %v76_v51, %v84_v52  ;;  %v1682_v9 = vsub.s32 %v971_v7, %v1679_v8 }
  0x54   :  { %1428 = vmatmul.mubr.msk.bf16.vlgmr.msra.gmra.mrb[0].mxu0 %vm261_vm0, %v1655_v26  ;;  %1429 = vmatmul.mubr.msk.bf16.vlgmr.msra.gmra.mrb[0].mxu1 %vm261_vm0, %v1655_v26  ;;  %v1425_v63 = vcombine.high %v91_v57, %v99_v58  ;;  %v1427_v1 = vcombine.high %v92_v59, %v100_v60  ;;  %v1424_v2 = vcombine.low %v91_v57, %v99_v58  ;;  %v1690_v11 = vsub.s32 1, %v1679_v8 }
  0x55   :  { %348 = vmatpush1.bf16.msra.mxu0 %v1400_v29  ;;  %389 = vmatpush1.bf16.msra.mxu1 %v1402_v30  ;;  %v1426_v3 = vcombine.low %v92_v59, %v100_v60  ;;  %v1693_v12 = vsub.s32 2, %v1679_v8  ;;  %v1696_v13 = vsub.s32 3, %v1679_v8  ;;  %v1699_v14 = vsub.s32 4, %v1679_v8 }
  0x56   :  { %349 = vmatprep.subr.bf16.mxu0 %v1417_v31  ;;  %390 = vmatprep.subr.bf16.mxu1 %v1419_v32  ;;  %v1710_v19 = vsub.s32 5, %v1679_v8  ;;  %v1713_v20 = vsub.s32 6, %v1679_v8 }
  0x57   :  { %379 = vmatprep.mubr.bf16.mxu0 %v1577_v0  ;;  %420 = vmatprep.mubr.bf16.mxu1 %v1577_v0 }
  0x59   :  { %350 = vmatpush1.bf16.msra.mxu0 %v1416_v37  ;;  %391 = vmatpush1.bf16.msra.mxu1 %v1418_v38 }
  0x5a   :  { %429 = vmatprep.subr.bf16.mxu0 %v1405_v39  ;;  %470 = vmatprep.subr.bf16.mxu1 %v1407_v40 }
  0x5c   :  { %1430 = vmatmul.mubr.msk.bf16.vlgmr.msra.gmra.mrb[4].mxu0 %vm261_vm0, %v1655_v26  ;;  %1431 = vmatmul.mubr.msk.bf16.vlgmr.msra.gmra.mrb[4].mxu1 %vm261_vm0, %v1655_v26 }
  0x5d   :  { %430 = vmatpush1.bf16.msra.mxu0 %v1404_v45  ;;  %471 = vmatpush1.bf16.msra.mxu1 %v1406_v46 }
  0x5e   :  { %431 = vmatprep.subr.bf16.mxu0 %v1421_v47  ;;  %472 = vmatprep.subr.bf16.mxu1 %v1423_v48 }
  0x5f   :  { %461 = vmatprep.mubr.bf16.mxu0 %v1577_v0  ;;  %502 = vmatprep.mubr.bf16.mxu1 %v1577_v0 }
  0x61   :  { %432 = vmatpush1.bf16.msra.mxu0 %v1420_v53  ;;  %473 = vmatpush1.bf16.msra.mxu1 %v1422_v54 }
  0x62   :  { %511 = vmatprep.subr.bf16.mxu0 %v1409_v55  ;;  %552 = vmatprep.subr.bf16.mxu1 %v1411_v56 }
  0x64   :  { %1432 = vmatmul.mubr.msk.bf16.vlgmr.msra.gmra.mrb[8].mxu0 %vm261_vm0, %v1655_v26  ;;  %1433 = vmatmul.mubr.msk.bf16.vlgmr.msra.gmra.mrb[8].mxu1 %vm261_vm0, %v1655_v26 }
  0x65   :  { %512 = vmatpush1.bf16.msra.mxu0 %v1408_v61  ;;  %553 = vmatpush1.bf16.msra.mxu1 %v1410_v62 }
  0x66   :  { %513 = vmatprep.subr.bf16.mxu0 %v1425_v63  ;;  %554 = vmatprep.subr.bf16.mxu1 %v1427_v1 }
  0x67   :  { %543 = vmatprep.mubr.bf16.mxu0 %v1577_v0  ;;  %584 = vmatprep.mubr.bf16.mxu1 %v1577_v0  ;;  %v1685_v0 = vsub.s32 0, %v1679_v8 }
  0x69   :  { %514 = vmatpush1.bf16.msra.mxu0 %v1424_v2  ;;  %555 = vmatpush1.bf16.msra.mxu1 %v1426_v3 }
  0x6c   :  { %1434 = vmatmul.mubr.msk.bf16.vlgmr.msra.gmra.mrb[12].mxu0 %vm261_vm0, %v1655_v26  ;;  %1435 = vmatmul.mubr.msk.bf16.vlgmr.msra.gmra.mrb[12].mxu1 %vm261_vm0, %v1655_v26 }
 0x127   :  { %v1687_v10 = vpop.f32.mrb[0].mxu0  ;;  %v1705_v17 = vpop.f32.mrb[0].mxu1 }
 0x128   :  { %v594_v15 = vsel %vm593_vm1, %v1687_v10, 0.0  ;;  %v723_v16 = vmul.f32 %v1687_v10, %v1687_v10  ;;  %v1707_v18 = vpop.f32.mrb[1].mxu0  ;;  %v608_v22 = vsel %vm593_vm1, %v1705_v17, 0.0  ;;  %v725_v23 = vmul.f32 %v1705_v17, %v1705_v17  ;;  %v1721_v25 = vpop.f32.mrb[1].mxu1 }
 0x129   :  { %v595_v21 = vrot.slane %v594_v15, 4  ;;  %v601_v24 = vsel %vm593_vm1, %v1707_v18, 0.0  ;;  %v303_v26 = vpop.f32.mrb[2].mxu0  ;;  %v609_v28 = vrot.slane %v608_v22, 4  ;;  %v724_v30 = vmul.f32 %v1707_v18, %v1707_v18  ;;  %v344_v31 = vpop.f32.mrb[2].mxu1 }
 0x12a   :  { %v739_v27 = vsel %vm593_vm1, %v723_v16, 0.0  ;;  %v602_v29 = vrot.slane %v601_v24, 4  ;;  %v304_v32 = vpop.f32.mrb[3].mxu0  ;;  %v753_v35 = vsel %vm593_vm1, %v725_v23, 0.0  ;;  %v615_v36 = vsel %vm593_vm1, %v1721_v25, 0.0  ;;  %v345_v37 = vpop.f32.mrb[3].mxu1 }
 0x12b   :  { %v596_v33 = vadd.f32 %v595_v21, %v594_v15  ;;  %v740_v34 = vrot.slane %v739_v27, 4  ;;  %v610_v38 = vadd.f32 %v609_v28, %v608_v22  ;;  %v754_v39 = vrot.slane %v753_v35, 4 }
 0x12c   :  { %v603_v40 = vadd.f32 %v602_v29, %v601_v24  ;;  %v746_v41 = vsel %vm593_vm1, %v724_v30, 0.0  ;;  %v616_v45 = vrot.slane %v615_v36, 4  ;;  %v726_v49 = vmul.f32 %v1721_v25, %v1721_v25 }
 0x12d   :  { %v597_v42 = vrot.slane %v596_v33, 2  ;;  %v741_v43 = vadd.f32 %v740_v34, %v739_v27  ;;  %v747_v44 = vrot.slane %v746_v41, 4  ;;  %v611_v46 = vrot.slane %v610_v38, 2 }
 0x12e   :  { %v755_v47 = vadd.f32 %v754_v39, %v753_v35  ;;  %v604_v48 = vrot.slane %v603_v40, 2  ;;  %v617_v53 = vadd.f32 %v616_v45, %v615_v36  ;;  %v760_v58 = vsel %vm593_vm1, %v726_v49, 0.0  ;;  %v1743_v35 = vld [vmem:[#allocation7] sm:$0xff] }
 0x12f   :  { %v598_v50 = vadd.f32 %v597_v42, %v596_v33  ;;  %v742_v51 = vrot.slane %v741_v43, 2  ;;  %v748_v52 = vadd.f32 %v747_v44, %v746_v41  ;;  %v1732_v54 = vpop.f32.mrb[4].mxu0  ;;  %v612_v55 = vadd.f32 %v611_v46, %v610_v38  ;;  %v1735_v59 = vpop.f32.mrb[4].mxu1 }
 0x130   :  { %v756_v56 = vrot.slane %v755_v47, 2  ;;  %v605_v57 = vadd.f32 %v604_v48, %v603_v40  ;;  %v1737_v60 = vpop.f32.mrb[5].mxu0  ;;  %v618_v1 = vrot.slane %v617_v53, 2  ;;  %v1739_v2 = vpop.f32.mrb[5].mxu1  ;;  %v761_v7 = vrot.slane %v760_v58, 4 }
 0x131   :  { %v599_v61 = vrot.slane %v598_v50, 1  ;;  %v743_v62 = vadd.f32 %v742_v51, %v741_v43  ;;  %v749_v63 = vrot.slane %v748_v52, 2  ;;  %v385_v3 = vpop.f32.mrb[6].mxu0  ;;  %v613_v4 = vrot.slane %v612_v55, 1  ;;  %v426_v15 = vpop.f32.mrb[6].mxu1 }
 0x132   :  { %v757_v5 = vadd.f32 %v756_v56, %v755_v47  ;;  %v606_v6 = vrot.slane %v605_v57, 1  ;;  %v386_v16 = vpop.f32.mrb[7].mxu0  ;;  %v619_v24 = vadd.f32 %v618_v1, %v617_v53  ;;  %v427_v26 = vpop.f32.mrb[7].mxu1  ;;  %v762_v30 = vadd.f32 %v761_v7, %v760_v58 }
 0x133   :  { %v600_v21 = vadd.f32 %v599_v61, %v598_v50  ;;  %v744_v22 = vrot.slane %v743_v62, 1  ;;  %v750_v23 = vadd.f32 %v749_v63, %v748_v52  ;;  %v614_v27 = vadd.f32 %v613_v4, %v612_v55 }
 0x134   :  { %v758_v28 = vrot.slane %v757_v5, 1  ;;  %v607_v29 = vadd.f32 %v606_v6, %v605_v57  ;;  %v620_v34 = vrot.slane %v619_v24, 1  ;;  %v763_v39 = vrot.slane %v762_v30, 2 }
 0x135   :  { %v1741_v31 = vmul.f32 0.5, %v600_v21  ;;  %v745_v32 = vadd.f32 %v744_v22, %v743_v62  ;;  %v751_v33 = vrot.slane %v750_v23, 1  ;;  %v1745_v36 = vmul.f32 0.5, %v614_v27 }
 0x136   :  { %v759_v37 = vadd.f32 %v758_v28, %v757_v5  ;;  %v1747_v38 = vmul.f32 0.5, %v607_v29  ;;  %v1752_v43 = vsub.s32 7, %v1679_v8  ;;  %v621_v53 = vadd.f32 %v620_v34, %v619_v24 }
 0x137   :  { %v851_v40 = vmul.f32 0.5, %v745_v32  ;;  %v867_v41 = vmul.f32 %v1741_v31, %v1741_v31  ;;  %v752_v42 = vadd.f32 %v751_v33, %v750_v23  ;;  %v1754_v44 = vpop.f32.mrb[8].mxu0  ;;  %v869_v46 = vmul.f32 %v1745_v36, %v1745_v36  ;;  %v1762_v49 = vpop.f32.mrb[8].mxu1 }
 0x138   :  { %2070 = vst [vmem:[#allocation12_spill] sm:$0xff] %v1754_v44  ;;  %v853_v45 = vmul.f32 0.5, %v759_v37  ;;  %v868_v47 = vmul.f32 %v1747_v38, %v1747_v38  ;;  %2071 = vst [vmem:[#allocation13_spill] sm:$0xff] %v1762_v49  ;;  %v1764_v50 = vpop.f32.mrb[9].mxu0  ;;  %v1768_v56 = vpop.f32.mrb[9].mxu1  ;;  %v764_v61 = vadd.f32 %v763_v39, %v762_v30  ;;  %v622_v62 = vsel %vm593_vm1, %v1732_v54, 0.0 }
 0x139   :  { %2072 = vst [vmem:[#allocation14_spill] sm:$0xff] %v1764_v50  ;;  %v883_v51 = vsub.f32 %v851_v40, %v867_v41  ;;  %v852_v52 = vmul.f32 0.5, %v752_v42  ;;  %v467_v57 = vpop.f32.mrb[10].mxu0  ;;  %v727_v63 = vmul.f32 %v1732_v54, %v1732_v54  ;;  %v508_v1 = vpop.f32.mrb[10].mxu1  ;;  %v1774_v6 = vmul.f32 0.5, %v621_v53 }
 0x13a   :  { %v885_v58 = vsub.f32 %v853_v45, %v869_v46  ;;  %v468_v3 = vpop.f32.mrb[11].mxu0  ;;  %v623_v7 = vrot.slane %v622_v62, 4  ;;  %v509_v15 = vpop.f32.mrb[11].mxu1  ;;  %v765_v21 = vrot.slane %v764_v61, 1  ;;  %v636_v23 = vsel %vm593_vm1, %v1735_v59, 0.0 }
 0x13b   :  { %v899_v4 = vmax.f32 %v883_v51, 0.0  ;;  %v884_v5 = vsub.f32 %v852_v52, %v868_v47  ;;  %v767_v22 = vsel %vm593_vm1, %v727_v63, 0.0  ;;  %v870_v27 = vmul.f32 %v1774_v6, %v1774_v6 }
 0x13c   :  { %v901_v16 = vmax.f32 %v885_v58, 0.0  ;;  %v766_v30 = vadd.f32 %v765_v21, %v764_v61  ;;  %v624_v32 = vadd.f32 %v623_v7, %v622_v62  ;;  %v768_v33 = vrot.slane %v767_v22, 4 }
 0x13d   :  { %v917_v24 = vadd.f32 1e-05, %v899_v4  ;;  %v900_v26 = vmax.f32 %v884_v5, 0.0  ;;  %v637_v37 = vrot.slane %v636_v23, 4  ;;  %v729_v39 = vmul.f32 %v1735_v59, %v1735_v59 }
 0x13e   :  { %v919_v29 = vadd.f32 1e-05, %v901_v16  ;;  %v854_v41 = vmul.f32 0.5, %v766_v30  ;;  %v625_v42 = vrot.slane %v624_v32, 2  ;;  %v769_v45 = vadd.f32 %v768_v33, %v767_v22 }
 0x13f   :  { %1445 = vrsqrt.f32 %v917_v24  ;;  %v918_v34 = vadd.f32 1e-05, %v900_v26  ;;  %v1785_v40 = vpop.f32.mrb[12].mxu0  ;;  %v1787_v46 = vpop.f32.mrb[12].mxu1  ;;  %v638_v51 = vadd.f32 %v637_v37, %v636_v23  ;;  %v781_v52 = vsel %vm593_vm1, %v729_v39, 0.0 }
 0x140   :  { %1447 = vrsqrt.f32 %v919_v29  ;;  %2073 = vst [vmem:[#allocation15_spill] sm:$0xff] %v1787_v46  ;;  %v1789_v47 = vpop.f32.mrb[13].mxu0  ;;  %v629_v53 = vsel %vm593_vm1, %v1737_v60, 0.0  ;;  %v1794_v57 = vpop.f32.mrb[13].mxu1  ;;  %v886_v61 = vsub.f32 %v854_v41, %v870_v27  ;;  %v626_v62 = vadd.f32 %v625_v42, %v624_v32 }
 0x141   :  { %1449 = vrsqrt.f32 %v918_v34  ;;  %v549_v58 = vpop.f32.mrb[14].mxu0  ;;  %v770_v63 = vrot.slane %v769_v45, 2  ;;  %v782_v1 = vrot.slane %v781_v52, 4  ;;  %v590_v3 = vpop.f32.mrb[14].mxu1  ;;  %v639_v5 = vrot.slane %v638_v51, 2 }
 0x142   :  { %v550_v4 = vpop.f32.mrb[15].mxu0  ;;  %v630_v7 = vrot.slane %v629_v53, 4  ;;  %v728_v15 = vmul.f32 %v1737_v60, %v1737_v60  ;;  %v643_v16 = vsel %vm593_vm1, %v1739_v2, 0.0  ;;  %v591_v21 = vpop.f32.mrb[15].mxu1  ;;  %v902_v22 = vmax.f32 %v886_v61, 0.0 }
 0x143   :  { %v627_v23 = vrot.slane %v626_v62, 1  ;;  %v771_v24 = vadd.f32 %v770_v63, %v769_v45  ;;  %v783_v26 = vadd.f32 %v782_v1, %v781_v52  ;;  %v640_v29 = vadd.f32 %v639_v5, %v638_v51 }
 0x144   :  { %v631_v27 = vadd.f32 %v630_v7, %v629_v53  ;;  %v774_v30 = vsel %vm593_vm1, %v728_v15, 0.0  ;;  %v644_v32 = vrot.slane %v643_v16, 4  ;;  %v920_v33 = vadd.f32 1e-05, %v902_v22 }
 0x145   :  { %v628_v34 = vadd.f32 %v627_v23, %v626_v62  ;;  %v772_v37 = vrot.slane %v771_v24, 1  ;;  %v784_v39 = vrot.slane %v783_v26, 2  ;;  %v641_v41 = vrot.slane %v640_v29, 1 }
 0x146   :  { %v632_v42 = vrot.slane %v631_v27, 2  ;;  %v775_v58 = vrot.slane %v774_v30, 4  ;;  %v645_v3 = vadd.f32 %v644_v32, %v643_v16  ;;  %1451 = vrsqrt.f32 %v920_v33 }
 0x147   :  { %v1801_v4 = vmul.f32 0.5, %v628_v34  ;;  %v773_v61 = vadd.f32 %v772_v37, %v771_v24  ;;  %v785_v21 = vadd.f32 %v784_v39, %v783_v26  ;;  %v642_v52 = vadd.f32 %v641_v41, %v640_v29 }
 0x148   :  { %v633_v51 = vadd.f32 %v632_v42, %v631_v27  ;;  %v776_v53 = vadd.f32 %v775_v58, %v774_v30  ;;  %v646_v63 = vrot.slane %v645_v3, 2  ;;  %v730_v30 = vmul.f32 %v1739_v2, %v1739_v2 }
 0x149   :  { %v1446_v45 = vpop.eup %1445  ;;  %v855_v5 = vmul.f32 0.5, %v773_v61  ;;  %v871_v62 = vmul.f32 %v1801_v4, %v1801_v4  ;;  %v786_v7 = vrot.slane %v785_v21, 1  ;;  %v1807_v22 = vmul.f32 0.5, %v642_v52 }
 0x14a   :  { %v1448_v1 = vpop.eup %1447  ;;  %v634_v23 = vrot.slane %v633_v51, 1  ;;  %v777_v24 = vrot.slane %v776_v53, 2  ;;  %v647_v26 = vadd.f32 %v646_v63, %v645_v3  ;;  %v650_v52 = vsel %vm593_vm1, %v1754_v44, 0.0 }
 0x14b   :  { %v1450_v16 = vpop.eup %1449  ;;  %v887_v29 = vsub.f32 %v855_v5, %v871_v62  ;;  %v787_v27 = vadd.f32 %v786_v7, %v785_v21  ;;  %v873_v33 = vmul.f32 %v1807_v22, %v1807_v22 }
 0x14c   :  { %v965_v32 = vcombine.low %v1446_v45, %v1450_v16  ;;  %v635_v34 = vadd.f32 %v634_v23, %v633_v51  ;;  %v778_v37 = vadd.f32 %v777_v24, %v776_v53  ;;  %v648_v58 = vrot.slane %v647_v26, 1 }
 0x14d   :  { %v903_v41 = vmax.f32 %v887_v29, 0.0  ;;  %v857_v42 = vmul.f32 0.5, %v787_v27  ;;  %v788_v45 = vsel %vm593_vm1, %v730_v30, 0.0  ;;  %v651_v16 = vrot.slane %v650_v52, 4 }
 0x14e   :  { %v1817_v61 = vmul.f32 0.5, %v635_v34  ;;  %v779_v21 = vrot.slane %v778_v37, 1  ;;  %v649_v53 = vadd.f32 %v648_v58, %v647_v26  ;;  %v789_v5 = vrot.slane %v788_v45, 4 }
 0x14f   :  { %v921_v63 = vadd.f32 1e-05, %v903_v41  ;;  %v889_v51 = vsub.f32 %v857_v42, %v873_v33  ;;  %v1825_v24 = vrot.slane %v965_v32, %v1682_v9  ;;  %v652_v41 = vadd.f32 %v651_v16, %v650_v52 }
 0x150   :  { %v780_v62 = vadd.f32 %v779_v21, %v778_v37  ;;  %v872_v7 = vmul.f32 %v1817_v61, %v1817_v61  ;;  %v1452_v23 = vpop.eup %1451  ;;  %v790_v27 = vadd.f32 %v789_v5, %v788_v45  ;;  %v731_v26 = vmul.f32 %v1754_v44, %v1754_v44 }
 0x151   :  { %v905_v29 = vmax.f32 %v889_v51, 0.0  ;;  %v966_v34 = vcombine.low %v1448_v1, %v1452_v23  ;;  %1453 = vrsqrt.f32 %v921_v63  ;;  %v1831_v33 = vmul.f32 0.5, %v649_v53 }
 0x152   :  { %v856_v3 = vmul.f32 0.5, %v780_v62  ;;  %v791_v37 = vrot.slane %v790_v27, 2  ;;  %v1579_v42 = vmov 1983009808   ;;  %v653_v45 = vrot.slane %v652_v41, 2 }
 0x153   :  { %v1833_v58 = vunpack.c.l.s4 %v1579_v42  ;;  %v1836_v32 = vrot.slane %v966_v34, %v1682_v9  ;;  %v795_v51 = vsel %vm593_vm1, %v731_v26, 0.0  ;;  %v923_v1 = vadd.f32 1e-05, %v905_v29 }
 0x154   :  { %v888_v21 = vsub.f32 %v856_v3, %v872_v7  ;;  %v792_v5 = vadd.f32 %v791_v37, %v790_v27  ;;  %v796_v52 = vrot.slane %v795_v51, 4  ;;  %v664_v62 = vsel %vm593_vm1, %v1762_v49, 0.0 }
 0x155   :  { %v654_v16 = vadd.f32 %v653_v45, %v652_v41  ;;  %v665_v23 = vrot.slane %v664_v62, 4  ;;  %v733_v3 = vmul.f32 %v1762_v49, %v1762_v49  ;;  %v657_v7 = vsel %vm593_vm1, %v1764_v50, 0.0 }
 0x156   :  { %v904_v53 = vmax.f32 %v888_v21, 0.0  ;;  %v793_v42 = vrot.slane %v792_v5, 1  ;;  %v797_v30 = vadd.f32 %v796_v52, %v795_v51  ;;  %v874_v27 = vmul.f32 %v1831_v33, %v1831_v33 }
 0x157   :  { %v655_v34 = vrot.slane %v654_v16, 1  ;;  %v666_v26 = vadd.f32 %v665_v23, %v664_v62  ;;  %v809_v21 = vsel %vm593_vm1, %v733_v3, 0.0  ;;  %v658_v41 = vrot.slane %v657_v7, 4 }
 0x158   :  { %v922_v29 = vadd.f32 1e-05, %v904_v53  ;;  %v794_v37 = vadd.f32 %v793_v42, %v792_v5  ;;  %v798_v39 = vrot.slane %v797_v30, 2  ;;  %v810_v52 = vrot.slane %v809_v21, 4 }
 0x159   :  { %v656_v45 = vadd.f32 %v655_v34, %v654_v16  ;;  %v667_v51 = vrot.slane %v666_v26, 2  ;;  %v659_v55 = vadd.f32 %v658_v41, %v657_v7  ;;  %v732_v53 = vmul.f32 %v1764_v50, %v1764_v50 }
 0x15a   :  { %1455 = vrsqrt.f32 %v922_v29  ;;  %v858_v15 = vmul.f32 0.5, %v794_v37  ;;  %v799_v28 = vadd.f32 %v798_v39, %v797_v30  ;;  %v811_v49 = vadd.f32 %v810_v52, %v809_v21 }
 0x15b   :  { %v1852_v48 = vmul.f32 0.5, %v656_v45  ;;  %v668_v63 = vadd.f32 %v667_v51, %v666_v26  ;;  %v671_v5 = vsel %vm593_vm1, %v1768_v56, 0.0  ;;  %v1856_v62 = vpop.eup %1453  ;;  %v660_v16 = vrot.slane %v659_v55, 2 }
 0x15c   :  { %v890_v23 = vsub.f32 %v858_v15, %v874_v27  ;;  %v800_v42 = vrot.slane %v799_v28, 1  ;;  %v802_v3 = vsel %vm593_vm1, %v732_v53, 0.0  ;;  %1457 = vrsqrt.f32 %v923_v1 }
 0x15d   :  { %2074 = vst [vmem:[#allocation16_spill] sm:$0xff] %v1852_v48  ;;  %v875_v39 = vmul.f32 %v1852_v48, %v1852_v48  ;;  %v669_v30 = vrot.slane %v668_v63, 1  ;;  %v812_v7 = vrot.slane %v811_v49, 2  ;;  %v661_v26 = vadd.f32 %v660_v16, %v659_v55 }
 0x15e   :  { %v906_v29 = vmax.f32 %v890_v23, 0.0  ;;  %v801_v34 = vadd.f32 %v800_v42, %v799_v28  ;;  %v803_v37 = vrot.slane %v802_v3, 4  ;;  %v672_v45 = vrot.slane %v671_v5, 4 }
 0x15f   :  { %v670_v21 = vadd.f32 %v669_v30, %v668_v63  ;;  %v813_v41 = vadd.f32 %v812_v7, %v811_v49  ;;  %v734_v15 = vmul.f32 %v1768_v56, %v1768_v56  ;;  %v662_v52 = vrot.slane %v661_v26, 1 }
 0x160   :  { %v924_v27 = vadd.f32 1e-05, %v906_v29  ;;  %v859_v51 = vmul.f32 0.5, %v801_v34  ;;  %v804_v53 = vadd.f32 %v803_v37, %v802_v3  ;;  %v1317_v1 = vunpack.c.0.s8 %v1833_v58 }
 0x161   :  { %v1864_v50 = vmul.f32 0.5, %v670_v21  ;;  %v814_v44 = vrot.slane %v813_v41, 1  ;;  %v673_v48 = vadd.f32 %v672_v45, %v671_v5  ;;  %v663_v28 = vadd.f32 %v662_v52, %v661_v26 }
 0x162   :  { %1459 = vrsqrt.f32 %v924_v27  ;;  %v805_v55 = vrot.slane %v804_v53, 2  ;;  %v816_v63 = vsel %vm593_vm1, %v734_v15, 0.0  ;;  %v891_v42 = vsub.f32 %v859_v51, %v875_v39 }
 0x163   :  { %v815_v16 = vadd.f32 %v814_v44, %v813_v41  ;;  %v674_v30 = vrot.slane %v673_v48, 2  ;;  %v877_v58 = vmul.f32 %v1864_v50, %v1864_v50  ;;  %v1872_v7 = vmul.f32 0.5, %v663_v28 }
 0x164   :  { %v1456_v49 = vpop.eup %1455  ;;  %v806_v5 = vadd.f32 %v805_v55, %v804_v53  ;;  %v817_v26 = vrot.slane %v816_v63, 4  ;;  %v678_v37 = vsel %vm593_vm1, %v1785_v40, 0.0  ;;  %v2075_v45 = vcombine.low %v1825_v24, %v1836_v32 }
 0x165   :  { %v967_v3 = vcombine.low %v1856_v62, %v1456_v49  ;;  %v861_v29 = vmul.f32 0.5, %v815_v16  ;;  %v675_v34 = vadd.f32 %v674_v30, %v673_v48  ;;  %v1881_v62 = vsub.s32 %v1317_v1, %v1679_v8 }
 0x166   :  { %v807_v39 = vrot.slane %v806_v5, 1  ;;  %v1458_v41 = vpop.eup %1457  ;;  %v1887_v48 = vrot.slane %v2075_v45, %v1682_v9  ;;  %v907_v15 = vmax.f32 %v891_v42, 0.0  ;;  %v818_v51 = vadd.f32 %v817_v26, %v816_v63 }
 0x167   :  { %v676_v27 = vrot.slane %v675_v34, 1  ;;  %v876_v53 = vmul.f32 %v1872_v7, %v1872_v7  ;;  %v679_v28 = vrot.slane %v678_v37, 4  ;;  %v735_v8 = vmul.f32 %v1785_v40, %v1785_v40 }
 0x168   :  { %v808_v52 = vadd.f32 %v807_v39, %v806_v5  ;;  %v893_v1 = vsub.f32 %v861_v29, %v877_v58  ;;  %v819_v49 = vrot.slane %v818_v51, 2  ;;  %v692_v16 = vsel %vm593_vm1, %v1787_v46, 0.0 }
 0x169   :  { %v677_v55 = vadd.f32 %v676_v27, %v675_v34  ;;  %v680_v32 = vadd.f32 %v679_v28, %v678_v37  ;;  %v823_v42 = vsel %vm593_vm1, %v735_v8, 0.0  ;;  %v693_v30 = vrot.slane %v692_v16, 4 }
 0x16a   :  { %v860_v24 = vmul.f32 0.5, %v808_v52  ;;  %v989_v63 = vrot.slane %v967_v3, %v1682_v9  ;;  %v820_v26 = vadd.f32 %v819_v49, %v818_v51  ;;  %v824_v39 = vrot.slane %v823_v42, 4 }
 0x16b   :  { %v1897_v5 = vmul.f32 0.5, %v677_v55  ;;  %v681_v44 = vrot.slane %v680_v32, 2  ;;  %v694_v58 = vadd.f32 %v693_v30, %v692_v16  ;;  %v737_v29 = vmul.f32 %v1787_v46, %v1787_v46 }
 0x16c   :  { %v1460_v45 = vpop.eup %1459  ;;  %v892_v23 = vsub.f32 %v860_v24, %v876_v53  ;;  %v925_v27 = vadd.f32 1e-05, %v907_v15  ;;  %v909_v52 = vmax.f32 %v893_v1, 0.0  ;;  %v821_v37 = vrot.slane %v820_v26, 1 }
 0x16d   :  { %v968_v34 = vcombine.low %v1458_v41, %v1460_v45  ;;  %v878_v8 = vmul.f32 %v1897_v5, %v1897_v5  ;;  %v682_v3 = vadd.f32 %v681_v44, %v680_v32  ;;  %v825_v55 = vadd.f32 %v824_v39, %v823_v42 }
 0x16e   :  { %v908_v28 = vmax.f32 %v892_v23, 0.0  ;;  %v822_v49 = vadd.f32 %v821_v37, %v820_v26  ;;  %v695_v21 = vrot.slane %v694_v58, 2  ;;  %v837_v53 = vsel %vm593_vm1, %v737_v29, 0.0 }
 0x16f   :  { %v996_v51 = vrot.slane %v968_v34, %v1682_v9  ;;  %v683_v24 = vrot.slane %v682_v3, 1  ;;  %v826_v30 = vrot.slane %v825_v55, 2  ;;  %v838_v46 = vrot.slane %v837_v53, 4 }
 0x170   :  { %v926_v16 = vadd.f32 1e-05, %v908_v28  ;;  %1461 = vrsqrt.f32 %v925_v27  ;;  %v862_v15 = vmul.f32 0.5, %v822_v49  ;;  %v685_v23 = vsel %vm593_vm1, %v1789_v47, 0.0  ;;  %v915_v27 = vld [vmem:[#allocation6] sm:$0xff] }
 0x171   :  { %v998_v41 = vcombine.low %v989_v63, %v996_v51  ;;  %v927_v1 = vadd.f32 1e-05, %v909_v52  ;;  %v684_v45 = vadd.f32 %v683_v24, %v682_v3  ;;  %v1907_v44 = vadd.f32 %v695_v21, %v694_v58 }
 0x172   :  { %v839_v32 = vadd.f32 %v838_v46, %v837_v53  ;;  %v894_v26 = vsub.f32 %v862_v15, %v878_v8  ;;  %v1910_v39 = vadd.f32 %v826_v30, %v825_v55  ;;  %v686_v29 = vrot.slane %v685_v23, 4 }
 0x173   :  { %v1012_v42 = vrot.slane %v998_v41, %v1682_v9  ;;  %v1068_v34 = vsub.f32 %v1707_v18, %v1747_v38  ;;  %v1070_v63 = vsub.f32 %v1721_v25, %v1774_v6  ;;  %1463 = vrsqrt.f32 %v926_v16 }
 0x174   :  { %v840_v37 = vrot.slane %v839_v32, 2  ;;  %v1071_v21 = vsub.f32 %v1732_v54, %v1801_v4  ;;  %v910_v58 = vmax.f32 %v894_v26, 0.0  ;;  %v1919_v52 = vadd.f32 %v686_v29, %v685_v23 }
 0x175   :  { %v1013_v46 = vcombine.low %v1887_v48, %v1012_v42  ;;  %v1073_v28 = vsub.f32 %v1735_v59, %v1807_v22  ;;  %v1072_v18 = vsub.f32 %v1737_v60, %v1817_v61  ;;  %v1074_v25 = vsub.f32 %v1739_v2, %v1831_v33 }
 0x176   :  { %1465 = vrsqrt.f32 %v927_v1  ;;  %v1927_v6 = vmul.f32 0.5, %v684_v45  ;;  %v828_v54 = vrot.slane %v1910_v39, 1  ;;  %v697_v4 = vrot.slane %v1907_v44, 1 }
 0x177   :  { %v1065_v38 = vmul.f32 %v1013_v46, %v915_v27  ;;  %v928_v48 = vadd.f32 1e-05, %v910_v58  ;;  %v1931_v8 = vadd.f32 %v840_v37, %v839_v32  ;;  %v688_v3 = vrot.slane %v1919_v52, 2 }
 0x178   :  { %v736_v59 = vmul.f32 %v1789_v47, %v1789_v47  ;;  %v2076_v16 = vsub.f32 %v1687_v10, %v1741_v31  ;;  %v2077_v41 = vsub.f32 %v1705_v17, %v1745_v36  ;;  %v2078_v26 = vrot.slane %v1743_v35, %v1685_v0 }
 0x179   :  { %v1088_v60 = vrot.slane %v1065_v38, %v1685_v0  ;;  %v1092_v2 = vrot.slane %v1065_v38, %v1690_v11  ;;  %v1096_v22 = vrot.slane %v1065_v38, %v1693_v12  ;;  %v1100_v61 = vrot.slane %v1065_v38, %v1696_v13 }
 0x17a   :  { %v1104_v33 = vrot.slane %v1065_v38, %v1699_v14  ;;  %v1108_v55 = vrot.slane %v1065_v38, %v1710_v19  ;;  %v1112_v51 = vrot.slane %v1065_v38, %v1713_v20  ;;  %v1116_v49 = vrot.slane %v1065_v38, %v1752_v43  ;;  %v1944_v53 = vpop.eup %1461 }
 0x17b   :  { %v1165_v24 = vmul.f32 %v1088_v60, %v2076_v16  ;;  %v1166_v30 = vmul.f32 %v1092_v2, %v1068_v34  ;;  %v1167_v15 = vmul.f32 %v1096_v22, %v2077_v41  ;;  %v1168_v23 = vmul.f32 %v1100_v61, %v1070_v63 }
 0x17c   :  { %v1169_v1 = vmul.f32 %v1104_v33, %v1071_v21  ;;  %v1170_v45 = vmul.f32 %v1108_v55, %v1072_v18  ;;  %v1171_v32 = vmul.f32 %v1112_v51, %v1073_v28  ;;  %v1172_v42 = vmul.f32 %v1116_v49, %v1074_v25 }
 0x17d   :  { %v1265_v29 = vadd.f32 %v2078_v26, %v1165_v24  ;;  %v2079_v27 = vrot.slane %v1743_v35, %v1690_v11  ;;  %v2080_v10 = vrot.slane %v1743_v35, %v1693_v12  ;;  %v2081_v17 = vrot.slane %v1743_v35, %v1696_v13  ;;  %v1464_v34 = vpop.eup %1463 }
 0x17e   :  { %v2082_v63 = vrot.slane %v1743_v35, %v1699_v14  ;;  %v2083_v46 = vrot.slane %v1743_v35, %v1710_v19  ;;  %v2084_v28 = vrot.slane %v1743_v35, %v1713_v20  ;;  %v2085_v25 = vrot.slane %v1743_v35, %v1752_v43 }
 0x17f   :  { %v1266_v37 = vadd.f32 %v2079_v27, %v1166_v30  ;;  %v1267_v31 = vadd.f32 %v2080_v10, %v1167_v15  ;;  %v1268_v36 = vadd.f32 %v2081_v17, %v1168_v23  ;;  %v1281_v60 = vmax.f32 %v1265_v29, 0.0 }
 0x180   :  { %v1269_v21 = vadd.f32 %v2082_v63, %v1169_v1  ;;  %v1270_v58 = vadd.f32 %v2083_v46, %v1170_v45  ;;  %v1271_v18 = vadd.f32 %v2084_v28, %v1171_v32  ;;  %v1272_v38 = vadd.f32 %v2085_v25, %v1172_v42  ;;  %v1466_v33 = vpop.eup %1465 }
 0x181   :  { %v1282_v2 = vmax.f32 %v1266_v37, 0.0  ;;  %v1283_v22 = vmax.f32 %v1267_v31, 0.0  ;;  %v1284_v61 = vmax.f32 %v1268_v36, 0.0  ;;  %v1014_v41 = vcombine.low %v1944_v53, %v1464_v34 }
 0x182   :  { %v1285_v55 = vmax.f32 %v1269_v21, 0.0  ;;  %v1286_v51 = vmax.f32 %v1270_v58, 0.0  ;;  %v1287_v49 = vmax.f32 %v1271_v18, 0.0  ;;  %v1288_v16 = vmax.f32 %v1272_v38, 0.0 }
 0x183   :  { %v1313_v24 = vcombine.low %v1281_v60, %v1282_v2  ;;  %v1314_v30 = vcombine.low %v1283_v22, %v1284_v61  ;;  %1467 = vrsqrt.f32 %v928_v48  ;;  %v829_v1 = vadd.f32 %v828_v54, %v1910_v39 }
 0x184   :  { %v1330_v15 = vcombine.low %v1285_v55, %v1286_v51  ;;  %v1331_v23 = vcombine.low %v1287_v49, %v1288_v16  ;;  %v830_v35 = vsel %vm593_vm1, %v736_v59, 0.0  ;;  %v698_v42 = vadd.f32 %v697_v4, %v1907_v44 }
 0x185   :  { %v1321_v45 = vrot.slane %v1313_v24, %v1881_v62  ;;  %v1328_v32 = vrot.slane %v1314_v30, %v1881_v62  ;;  %v699_v26 = vsel %vm593_vm1, %v1794_v57, 0.0  ;;  %v842_v48 = vrot.slane %v1931_v8, 1 }
 0x186   :  { %v1338_v29 = vrot.slane %v1330_v15, %v1881_v62  ;;  %v1345_v53 = vrot.slane %v1331_v23, %v1881_v62  ;;  %v689_v39 = vadd.f32 %v688_v3, %v1919_v52  ;;  %v831_v54 = vrot.slane %v830_v35, 4 }
 0x187   :  { %v1329_v27 = vcombine.low %v1321_v45, %v1328_v32  ;;  %v863_v37 = vmul.f32 0.5, %v829_v1  ;;  %v879_v10 = vmul.f32 %v1927_v6, %v1927_v6  ;;  %v700_v31 = vrot.slane %v699_v26, 4 }
 0x188   :  { %v1346_v59 = vcombine.low %v1338_v29, %v1345_v53  ;;  %v1993_v44 = vmul.f32 0.5, %v698_v42  ;;  %v690_v4 = vrot.slane %v689_v39, 1  ;;  %v832_v17 = vadd.f32 %v831_v54, %v830_v35 }
 0x189   :  { %1385 = vst [vmem:[%s2064_s4] sm:$0xff] %v1329_v27  ;;  %v738_v36 = vmul.f32 %v1794_v57, %v1794_v57  ;;  %v843_v52 = vadd.f32 %v842_v48, %v1931_v8  ;;  %v701_v3 = vadd.f32 %v700_v31, %v699_v26  ;;  %v895_v46 = vsub.f32 %v863_v37, %v879_v10 }
 0x18a   :  { %1386 = vst [vmem:[%s2064_s4 + $0x8] sm:$0xff] %v1346_v59  ;;  %v691_v34 = vadd.f32 %v690_v4, %v689_v39  ;;  %v833_v63 = vrot.slane %v832_v17, 2  ;;  %v1024_v25 = vrot.slane %v1014_v41, %v1682_v9  ;;  %v881_v38 = vmul.f32 %v1993_v44, %v1993_v44 }
 0x18b   :  { %v844_v21 = vsel %vm593_vm1, %v738_v36, 0.0  ;;  %v702_v58 = vrot.slane %v701_v3, 2  ;;  %v865_v61 = vmul.f32 0.5, %v843_v52  ;;  %v911_v30 = vmax.f32 %v895_v46, 0.0 }
 0x18c   :  { %v845_v28 = vrot.slane %v844_v21, 4  ;;  %v2005_v60 = vmul.f32 0.5, %v691_v34  ;;  %v834_v2 = vadd.f32 %v833_v63, %v832_v17 }
 0x18d   :  { %v1468_v18 = vpop.eup %1467  ;;  %v703_v8 = vadd.f32 %v702_v58, %v701_v3  ;;  %v897_v1 = vsub.f32 %v865_v61, %v881_v38  ;;  %v929_v29 = vadd.f32 1e-05, %v911_v30  ;;  %v2086_v38 = vld [vmem:[#allocation16_spill] sm:$0xff]  ;;  %v2088_v61 = vld [vmem:[#allocation13_spill] sm:$0xff] }
 0x18e   :  { %v1015_v22 = vcombine.low %v1466_v33, %v1468_v18  ;;  %v846_v55 = vadd.f32 %v845_v28, %v844_v21  ;;  %v835_v51 = vrot.slane %v834_v2, 1  ;;  %v880_v41 = vmul.f32 %v2005_v60, %v2005_v60 }
 0x18f   :  { %v704_v16 = vrot.slane %v703_v8, 1  ;;  %v913_v48 = vmax.f32 %v897_v1, 0.0  ;;  %1469 = vrsqrt.f32 %v929_v29 }
 0x190   :  { %v1031_v49 = vrot.slane %v1015_v22, %v1682_v9  ;;  %v847_v24 = vrot.slane %v846_v55, 2  ;;  %v836_v15 = vadd.f32 %v835_v51, %v834_v2  ;;  %v2087_v2 = vld [vmem:[#allocation12_spill] sm:$0xff]  ;;  %v2089_v51 = vld [vmem:[#allocation14_spill] sm:$0xff] }
 0x191   :  { %v705_v35 = vadd.f32 %v704_v16, %v703_v8  ;;  %v931_v10 = vadd.f32 1e-05, %v913_v48  ;;  %v1075_v22 = vsub.f32 %v2087_v2, %v2086_v38  ;;  %v1077_v8 = vsub.f32 %v2088_v61, %v1864_v50 }
 0x192   :  { %v1046_v23 = vcombine.low %v1024_v25, %v1031_v49  ;;  %v848_v45 = vadd.f32 %v847_v24, %v846_v55  ;;  %v864_v32 = vmul.f32 0.5, %v836_v15  ;;  %v1182_v25 = vld [vmem:[#allocation7 + $0x8] sm:$0xff]  ;;  %v916_v55 = vld [vmem:[#allocation6 + $0x8] sm:$0xff]  ;;  %v1076_v49 = vsub.f32 %v2089_v51, %v1872_v7 }
 0x193   :  { %v2011_v42 = vmul.f32 0.5, %v705_v35  ;;  %v1078_v16 = vsub.f32 %v1768_v56, %v1897_v5  ;;  %v1079_v24 = vsub.f32 %v1785_v40, %v1927_v6  ;;  %v1228_v50 = vrot.slane %v1182_v25, %v1693_v12 }
 0x194   :  { %v1054_v33 = vrot.slane %v1046_v23, %v1682_v9  ;;  %v849_v26 = vrot.slane %v848_v45, 1  ;;  %v896_v53 = vsub.f32 %v864_v32, %v880_v41  ;;  %v1220_v41 = vrot.slane %v1182_v25, %v1685_v0 }
 0x195   :  { %v882_v39 = vmul.f32 %v2011_v42, %v2011_v42  ;;  %v1224_v23 = vrot.slane %v1182_v25, %v1690_v11  ;;  %v1232_v35 = vrot.slane %v1182_v25, %v1696_v13  ;;  %v1236_v7 = vrot.slane %v1182_v25, %v1699_v14 }
 0x196   :  { %v850_v27 = vadd.f32 %v849_v26, %v848_v45  ;;  %v912_v54 = vmax.f32 %v896_v53, 0.0  ;;  %v1240_v56 = vrot.slane %v1182_v25, %v1710_v19  ;;  %v1080_v40 = vsub.f32 %v1789_v47, %v2005_v60 }
 0x197   :  { %v1082_v5 = vsub.f32 %v1794_v57, %v2011_v42  ;;  %v1244_v6 = vrot.slane %v1182_v25, %v1713_v20 }
 0x198   :  { %v866_v59 = vmul.f32 0.5, %v850_v27  ;;  %v930_v37 = vadd.f32 1e-05, %v912_v54 }
 0x199   :  { %v1470_v36 = vpop.eup %1469 }
 0x19a   :  { %v898_v31 = vsub.f32 %v866_v59, %v882_v39  ;;  %1471 = vrsqrt.f32 %v930_v37 }
 0x19b   :  { %1473 = vrsqrt.f32 %v931_v10 }
 0x19c   :  { %v914_v4 = vmax.f32 %v898_v31, 0.0 }
 0x19e   :  { %v932_v17 = vadd.f32 1e-05, %v914_v4 }
 0x1a0   :  { %1475 = vrsqrt.f32 %v932_v17 }
 0x1a4   :  { %v1472_v52 = vpop.eup %1471 }
 0x1a5   :  { %v1016_v3 = vcombine.low %v1470_v36, %v1472_v52  ;;  %v1474_v34 = vpop.eup %1473 }
 0x1a7   :  { %v1038_v21 = vrot.slane %v1016_v3, %v1682_v9 }
 0x1aa   :  { %v1476_v63 = vpop.eup %1475 }
 0x1ab   :  { %v1017_v46 = vcombine.low %v1474_v34, %v1476_v63 }
 0x1ad   :  { %v1045_v58 = vrot.slane %v1017_v46, %v1682_v9 }
 0x1af   :  { %v1047_v28 = vcombine.low %v1038_v21, %v1045_v58 }
 0x1b1   :  { %v1061_v18 = vrot.slane %v1047_v28, %v1682_v9  ;;  %v2090_v9 = vld [vmem:[#allocation15_spill] sm:$0xff] }
 0x1b2   :  { %v1081_v15 = vsub.f32 %v2090_v9, %v1993_v44  ;;  %v1248_v44 = vrot.slane %v1182_v25, %v1752_v43 }
 0x1b3   :  { %v1062_v30 = vcombine.low %v1054_v33, %v1061_v18 }
 0x1b5   :  { %v1066_v1 = vmul.f32 %v1062_v30, %v916_v55 }
 0x1b7   :  { %v1120_v45 = vrot.slane %v1066_v1, %v1685_v0  ;;  %v1124_v32 = vrot.slane %v1066_v1, %v1690_v11  ;;  %v1128_v33 = vrot.slane %v1066_v1, %v1693_v12  ;;  %v1132_v26 = vrot.slane %v1066_v1, %v1696_v13 }
 0x1b8   :  { %v1136_v29 = vrot.slane %v1066_v1, %v1699_v14  ;;  %v1140_v53 = vrot.slane %v1066_v1, %v1710_v19  ;;  %v1144_v47 = vrot.slane %v1066_v1, %v1713_v20  ;;  %v1148_v57 = vrot.slane %v1066_v1, %v1752_v43 }
 0x1b9   :  { %v1173_v60 = vmul.f32 %v1120_v45, %v1075_v22  ;;  %v1174_v42 = vmul.f32 %v1124_v32, %v1076_v49  ;;  %v1175_v48 = vmul.f32 %v1128_v33, %v1077_v8  ;;  %v1176_v27 = vmul.f32 %v1132_v26, %v1078_v16 }
 0x1ba   :  { %v1177_v39 = vmul.f32 %v1136_v29, %v1079_v24  ;;  %v1178_v0 = vmul.f32 %v1140_v53, %v1080_v40  ;;  %v1179_v54 = vmul.f32 %v1144_v47, %v1081_v15  ;;  %v1180_v11 = vmul.f32 %v1148_v57, %v1082_v5 }
 0x1bb   :  { %v1273_v59 = vadd.f32 %v1220_v41, %v1173_v60  ;;  %v1274_v12 = vadd.f32 %v1224_v23, %v1174_v42  ;;  %v1275_v37 = vadd.f32 %v1228_v50, %v1175_v48  ;;  %v1276_v13 = vadd.f32 %v1232_v35, %v1176_v27 }
 0x1bc   :  { %v1277_v10 = vadd.f32 %v1236_v7, %v1177_v39  ;;  %v1278_v14 = vadd.f32 %v1240_v56, %v1178_v0  ;;  %v1279_v31 = vadd.f32 %v1244_v6, %v1179_v54  ;;  %v1280_v19 = vadd.f32 %v1248_v44, %v1180_v11 }
 0x1bd   :  { %v1289_v4 = vmax.f32 %v1273_v59, 0.0  ;;  %v1290_v20 = vmax.f32 %v1274_v12, 0.0  ;;  %v1291_v17 = vmax.f32 %v1275_v37, 0.0  ;;  %v1292_v43 = vmax.f32 %v1276_v13, 0.0 }
 0x1be   :  { %v1293_v36 = vmax.f32 %v1277_v10, 0.0  ;;  %v1294_v52 = vmax.f32 %v1278_v14, 0.0  ;;  %v1295_v3 = vmax.f32 %v1279_v31, 0.0  ;;  %v1296_v34 = vmax.f32 %v1280_v19, 0.0 }
 0x1bf   :  { %v1347_v63 = vcombine.low %v1289_v4, %v1290_v20  ;;  %v1348_v21 = vcombine.low %v1291_v17, %v1292_v43 }
 0x1c0   :  { %v1364_v46 = vcombine.low %v1293_v36, %v1294_v52  ;;  %v1365_v58 = vcombine.low %v1295_v3, %v1296_v34 }
 0x1c1   :  { %v1355_v28 = vrot.slane %v1347_v63, %v1881_v62  ;;  %v1362_v18 = vrot.slane %v1348_v21, %v1881_v62 }
 0x1c2   :  { %v1372_v25 = vrot.slane %v1364_v46, %v1881_v62  ;;  %v1379_v38 = vrot.slane %v1365_v58, %v1881_v62 }
 0x1c3   :  { %v1363_v2 = vcombine.low %v1355_v28, %v1362_v18 }
 0x1c4   :  { %v1380_v22 = vcombine.low %v1372_v25, %v1379_v38 }
 0x1c5   :  { %1387 = vst [vmem:[%s2064_s4 + $0x10] sm:$0xff] %v1363_v2 }
 0x1c6   :  { %1388 = vst [vmem:[%s2064_s4 + $0x18] sm:$0xff] %v1380_v22 }
 0x1c7   :  { %1393 = vsyncpa [#allocation3], 1 }
 0x1c8   :  { %1394 = vsyncpa [#allocation5], 1 }
 0x1c9   :  { %1395 = vsyncpa [#allocation8], 1 }

// kernel: generator_forward.6
= control target key start
LH: loop header
LB: loop body
LE: loop exit
PB: predicated region body
PF: predicated region fallthrough
CT: control target
= control target key end

     0   :  { %13 = vsyncpa [#allocation3], 0  ;;  %s4424_s24 = smov 0   ;;  %s4693_s0 = inlined_call_operand.vmem [shape: f32[2,38,128], index: 0, kind: input, shape index: {}]   ;;  %s4694_s1 = inlined_call_operand.vmem [shape: f32[1,128], index: 1, kind: input, shape index: {}]   ;;  %s4695_s2 = inlined_call_operand.vmem [shape: f32[1,128], index: 2, kind: input, shape index: {}]   ;;  %s4696_s3 = inlined_call_operand.vmem [shape: f32[38,1], index: 3, kind: input, shape index: {}]   ;;  %s4697_s4 = inlined_call_operand.vmem [shape: f32[24,1], index: 4, kind: input, shape index: {}]   ;;  %s4698_s5 = inlined_call_operand.hbm [shape: bf16[9,128,512], index: 5, kind: input, shape index: {}]   ;;  %s4699_s6 = inlined_call_operand.vmem [shape: f32[2,24,512], index: 6, kind: output, shape index: {0}]   ;;  %s4700_s7 = inlined_call_operand.vmem [shape: f32[2,2,512], index: 7, kind: output, shape index: {1}]  }
   0x1 LB: > { %s4430_s25 = sadd.s32 4294967295, %s4377_s24   ;;  %p3450_p0 = scmp.ge.s32.totalorder %s4377_s24, 1  ;;  %s4377_s24 = sphi %s4424_s24, %s19_s24  }
   0x2   : > { %p207_p1 = scmp.lt.s32.totalorder %s4377_s24, 3  ;;  %s4379_s26 = smov [#allocation2]  }
   0x3   : > { %s231_s27 = sshll.u32 %s4379_s26, 4  ;;  %p4701_p3 = scmp.eq.s32.totalorder %s4430_s25, 0  ;;  %s232_s27 = int_to_ptr.vmem [resolvable:$true] %s231_s27 }
   0x4   : > { %p4434_p2 = pnand %p3450_p0, %p207_p1  ;;  %s4339_s9 = scalar_lea.hbm %s4698_s5, 36864 }
   0x5   : > { %p4340_p6 = scmp.ne.s32.totalorder %s4698_s5, %s4339_s9  ;;  %p4346_p10 = scmp.lt.u32.totalorder %s4339_s9, %s4698_s5 }
   0x6   : > { %s4703_s28 = scalar_select %p4434_p2, 1, 0 }
   0x7   : > { %p3886_p4 = pneg %p4434_p2 }
   0x9   : > { %p4443_p5 = pnand %p4701_p3, %p3886_p4 }
   0xb   : > { %p4341_p7 = pneg %p4443_p5 }
   0xd   : > { %p4342_p8 = pnand %p4341_p7, %p4340_p6 }
   0xf   : > { %p4343_p9 = pneg %p4342_p8 }
  0x11   : > { %p4348_p11 = pnand %p4346_p10, %p4343_p9 }
  0x13   : > { %4351 = shalt.err (!%p4348_p11)
}
  0x14   : > { %s4352_s14 = scalar_lea.vmem %s232_s27, 36864  ;;  %p4360_p1 = scmp.lt.s32.totalorder %s232_s27, %s232_s27 }
  0x15   : > { %p4353_p12 = scmp.ne.s32.totalorder %s232_s27, %s4352_s14  ;;  %p4361_p4 = scmp.lt.s32.totalorder %s4352_s14, %s4352_s14 }
  0x17   : > { %p4355_p13 = pnand %p4353_p12, %p4341_p7  ;;  %p4362_p3 = por %p4361_p4, %p4360_p1 }
  0x19   : > { %p4356_p0 = pneg %p4355_p13 }
  0x1b   : > { %p4363_p2 = pnand %p4362_p3, %p4356_p0 }
  0x1d   : > { %4366 = shalt.err (!%p4363_p2)
}
  0x1e   : > { %s4380_s15 = smov 256   ;;  %s4381_s16 = smov 16  }
  0x1f   : > { %3889 = dma.hbm_to_vmem [thread:$0]  (!%p4443_p5), %s4698_s5, 36864, %s232_s27, [#allocation3], %s4380_s15, %s4380_s15, %s4381_s16  }
  0x20   : > { %p4705_p6 = scmp.ne.s32.totalorder %s4703_s28, 0 }
  0x21   : > { %p4706_p8 = scmp.eq.s32.totalorder (!%p4705_p6), %s4430_s25, 0 }
  0x22   : > { %255 = sbr.rel (%p4705_p6) target bundleno = 692 (0x2b4), region = 44 }
  0x29   : > { %4372 = dma.done.wait (%p4706_p8), [#allocation3], 36864   ;;  %p4707_p7 = pmov %p4706_p8 }
  0x2a   : > { %v4382_v0 = vmov 0   ;;  %v344_v1 = vld [vmem:[%s4696_s3 + $0x10] sm:$0xff]  ;;  %v342_v2 = vld [vmem:[%s4696_s3] sm:$0xff]  ;;  %v345_v3 = vld [vmem:[%s4696_s3 + $0x18] sm:$0xff]  ;;  %p292_p2 = scmp.lt.s32.totalorder %s4430_s25, 1  ;;  %vm1022_vm0 = vcmask 1046528  }
  0x2b   : > { %4374 = vsyncadd (%p4707_p7), [#allocation3], 4294930432  ;;  %3906 = vset.pattern.permute.xlu1 %v4382_v0  ;;  %3905 = vset.pattern.permute.xlu0 %v4382_v0  ;;  %v343_v4 = vld [vmem:[%s4696_s3 + $0x8] sm:$0xff]  ;;  %v3907_v5 = vld [vmem:[#allocation2 + $0x104] ss:$16 sps:$4 sm:$0xff]   ;;  %vm1335_vm2 = vcmask 1044480  }
  0x2c   : > { %655 = vmatprep.mubr.bf16.mxu0 %v4382_v0  ;;  %706 = vmatprep.mubr.bf16.mxu1 %v4382_v0  ;;  %v3202_v6 = vld [vmem:[%s4697_s4] sm:$0xff]  ;;  %v3909_v8 = vld [vmem:[#allocation2 + $0x10c] ss:$16 sps:$4 sm:$0xff]   ;;  %v3912_v10 = vld [vmem:[#allocation2 + $0x108] ss:$16 sps:$4 sm:$0xff]   ;;  %s4709_s25 = smov (!%p292_p2, %s4430_s25), 1 }
  0x2d   : > { %359 = vperm.xlu1 %3906, %v344_v1   ;;  %349 = vperm.xlu0 %3905, %v342_v2   ;;  %v346_v7 = vld [vmem:[%s4696_s3 + $0x20] sm:$0x3f]  ;;  %v3915_v12 = vld [vmem:[#allocation2 + $0x12c] ss:$16 sps:$4 sm:$0xff]   ;;  %v3918_v14 = vld [vmem:[#allocation2 + $0x128] ss:$16 sps:$4 sm:$0xff]  }
  0x2e   : > { %v3911_v9 = vld [vmem:[#allocation2 + $0x100] ss:$16 sps:$4 sm:$0xff]   ;;  %623 = vmatprep.subr.bf16.mxu0 %v3907_v5  ;;  %674 = vmatprep.subr.bf16.mxu1 %v3909_v8  ;;  %v3913_v11 = vld [vmem:[#allocation2 + $0x124] ss:$16 sps:$4 sm:$0xff]   ;;  %v3921_v17 = vld [vmem:[#allocation2 + $0x14c] ss:$16 sps:$4 sm:$0xff]  }
  0x2f   : > { %624 = vmatpush1.bf16.msra.mxu0 %v3911_v9  ;;  %675 = vmatpush1.bf16.msra.mxu1 %v3912_v10  ;;  %v3917_v13 = vld [vmem:[#allocation2 + $0x120] ss:$16 sps:$4 sm:$0xff]   ;;  %v3919_v16 = vld [vmem:[#allocation2 + $0x144] ss:$16 sps:$4 sm:$0xff]   ;;  %v3203_v18 = vld [vmem:[%s4697_s4 + $0x8] sm:$0xff]  ;;  %s3880_s14 = smul.u32 40, %s4709_s25 }
  0x30   : > { %v3204_v15 = vld [vmem:[%s4697_s4 + $0x10] sm:$0xff]  ;;  %625 = vmatprep.subr.bf16.mxu0 %v3913_v11  ;;  %676 = vmatprep.subr.bf16.mxu1 %v3915_v12  ;;  %v3924_v20 = vld [vmem:[#allocation2 + $0x148] ss:$16 sps:$4 sm:$0xff]   ;;  %v3927_v22 = vld [vmem:[#allocation2 + $0x16c] ss:$16 sps:$4 sm:$0xff]   ;;  %vm1965_vm4 = vcmask 1043456  }
  0x31   : > { %364 = vperm.xlu1 %3906, %v345_v3   ;;  %354 = vperm.xlu0 %3905, %v343_v4   ;;  %v3923_v19 = vld [vmem:[#allocation2 + $0x140] ss:$16 sps:$4 sm:$0xff]   ;;  %v3925_v21 = vld [vmem:[#allocation2 + $0x164] ss:$16 sps:$4 sm:$0xff]   ;;  %v3930_v24 = vld [vmem:[#allocation2 + $0x168] ss:$16 sps:$4 sm:$0xff]   ;;  %s4508_s19 = scalar_lea.vmem %s4693_s0, %s3880_s14 }
  0x32   : > { %v3929_v23 = vld [vmem:[#allocation2 + $0x160] ss:$16 sps:$4 sm:$0xff]   ;;  %v3931_v25 = vld [vmem:[#allocation2 + $0x184] ss:$16 sps:$4 sm:$0xff]   ;;  %v3933_v26 = vld [vmem:[#allocation2 + $0x18c] ss:$16 sps:$4 sm:$0xff]  }
  0x33   : > { %626 = vmatpush1.bf16.msra.mxu0 %v3917_v13  ;;  %677 = vmatpush1.bf16.msra.mxu1 %v3918_v14  ;;  %v3935_v27 = vld [vmem:[#allocation2 + $0x180] ss:$16 sps:$4 sm:$0xff]   ;;  %v3936_v28 = vld [vmem:[#allocation2 + $0x188] ss:$16 sps:$4 sm:$0xff]   ;;  %v3937_v29 = vld [vmem:[#allocation2 + $0x1a4] ss:$16 sps:$4 sm:$0xff]  }
  0x34   : > { %627 = vmatprep.subr.bf16.mxu0 %v3919_v16  ;;  %678 = vmatprep.subr.bf16.mxu1 %v3921_v17  ;;  %v3939_v30 = vld [vmem:[#allocation2 + $0x1ac] ss:$16 sps:$4 sm:$0xff]   ;;  %v3459_v31 = vld [vmem:[%s4694_s1] ss:$0 sm:$0xff]  ;;  %v3942_v33 = vld [vmem:[#allocation2 + $0x1a8] ss:$16 sps:$4 sm:$0xff]  }
  0x35   : > { %3207 = vperm.xlu1 %3906, %v3202_v6   ;;  %369 = vperm.xlu0 %3905, %v346_v7   ;;  %v3941_v32 = vld [vmem:[#allocation2 + $0x1a0] ss:$16 sps:$4 sm:$0xff]   ;;  %v3943_v34 = vld [vmem:[#allocation2 + $0x1c4] ss:$16 sps:$4 sm:$0xff]   ;;  %v3945_v36 = vld [vmem:[#allocation2 + $0x1cc] ss:$16 sps:$4 sm:$0xff]  }
  0x36   : > { %v312_v35 = vld [vmem:[%s4508_s19 + $0x20] sm:$0x3f]  ;;  %v3948_v41 = vld [vmem:[#allocation2 + $0x1c8] ss:$16 sps:$4 sm:$0xff]   ;;  %v3951_v43 = vld [vmem:[#allocation2 + $0x1ec] ss:$16 sps:$4 sm:$0xff]  }
  0x37   : > { %628 = vmatpush1.bf16.msra.mxu0 %v3923_v19  ;;  %679 = vmatpush1.bf16.msra.mxu1 %v3924_v20  ;;  %v324_v37 = vmul.f32 %v3459_v31, %v312_v35  ;;  %v3460_v38 = vld [vmem:[%s4695_s2] ss:$0 sm:$0xff]  ;;  %v3949_v42 = vld [vmem:[#allocation2 + $0x1e4] ss:$16 sps:$4 sm:$0xff]   ;;  %v3954_v45 = vld [vmem:[#allocation2 + $0x1e8] ss:$16 sps:$4 sm:$0xff]  }
  0x38   : > { %629 = vmatprep.subr.bf16.mxu0 %v3925_v21  ;;  %680 = vmatprep.subr.bf16.mxu1 %v3927_v22  ;;  %v3947_v40 = vld [vmem:[#allocation2 + $0x1c0] ss:$16 sps:$4 sm:$0xff]   ;;  %v3957_v46 = vld [vmem:[#allocation2 + $0x4] ss:$16 sps:$4 sm:$0xff]   ;;  %v3960_v47 = vld [vmem:[#allocation2 + $0xc] ss:$16 sps:$4 sm:$0xff]  }
  0x39   : > { %3217 = vperm.xlu1 %3906, %v3204_v15   ;;  %3212 = vperm.xlu0 %3905, %v3203_v18   ;;  %v336_v39 = vadd.f32 %v3460_v38, %v324_v37  ;;  %v3953_v44 = vld [vmem:[#allocation2 + $0x1e0] ss:$16 sps:$4 sm:$0xff]   ;;  %v311_v50 = vld [vmem:[%s4508_s19 + $0x18] sm:$0xff]  ;;  %v309_v51 = vld [vmem:[%s4508_s19 + $0x8] sm:$0xff]  ;;  %vm445_vm1 = vsmask.f32 7424 }
  0x3a   : > { %v310_v48 = vld [vmem:[%s4508_s19 + $0x10] sm:$0xff]  ;;  %v308_v49 = vld [vmem:[%s4508_s19] sm:$0xff]  ;;  %v323_v54 = vmul.f32 %v3459_v31, %v311_v50  ;;  %v321_v55 = vmul.f32 %v3459_v31, %v309_v51  ;;  %vm1648_vm3 = vsmask.f32 4352  ;;  %vm2279_vm5 = vcmask 1041408   ;;  %s3881_s22 = smul.u32 96, %s4709_s25 }
  0x3b   : > { %630 = vmatpush1.bf16.msra.mxu0 %v3929_v23  ;;  %681 = vmatpush1.bf16.msra.mxu1 %v3930_v24  ;;  %v322_v52 = vmul.f32 %v3459_v31, %v310_v48  ;;  %v320_v53 = vmul.f32 %v3459_v31, %v308_v49  ;;  %v341_v5 = vmax.f32 %v336_v39, 0.0  ;;  %v3955_v22 = vld [vmem:[#allocation2] ss:$16 sps:$4 sm:$0xff]   ;;  %v3958_v23 = vld [vmem:[#allocation2 + $0x8] ss:$16 sps:$4 sm:$0xff]   ;;  %vm2920_vm7 = vcmask 1040384  }
  0x3c   : > { %631 = vmatprep.subr.bf16.mxu0 %v3931_v25  ;;  %682 = vmatprep.subr.bf16.mxu1 %v3933_v26  ;;  %v335_v58 = vadd.f32 %v3460_v38, %v323_v54  ;;  %v333_v59 = vadd.f32 %v3460_v38, %v321_v55  ;;  %v3963_v26 = vld [vmem:[#allocation2 + $0x24] ss:$16 sps:$4 sm:$0xff]   ;;  %vm2594_vm6 = vsmask.f32 1280  ;;  %v3967_v55 = vld [vmem:[#allocation2 + $0x40] ss:$16 sps:$4 sm:$0xff]   ;;  %s4665_s27 = scalar_lea.vmem %s4699_s6, %s3881_s22 }
  0x3d   : > { %v334_v56 = vadd.f32 %v3460_v38, %v322_v52  ;;  %v332_v57 = vadd.f32 %v3460_v38, %v320_v53  ;;  %v3969_v52 = vld [vmem:[#allocation2 + $0x44] ss:$16 sps:$4 sm:$0xff]   ;;  %v3972_v53 = vld [vmem:[#allocation2 + $0x4c] ss:$16 sps:$4 sm:$0xff]   ;;  %s3751_s28 = sshll.u32 %s4709_s25, 3 }
  0x3e   : > { %v340_v1 = vmax.f32 %v335_v58, 0.0  ;;  %v338_v2 = vmax.f32 %v333_v59, 0.0  ;;  %s306_s8 = scalar_lea.vmem %s4700_s7, %s3751_s28 }
  0x3f   : > { %632 = vmatpush1.bf16.msra.mxu0 %v3935_v27  ;;  %683 = vmatpush1.bf16.msra.mxu1 %v3936_v28  ;;  %v339_v62 = vmax.f32 %v334_v56, 0.0  ;;  %v337_v63 = vmax.f32 %v332_v57, 0.0  ;;  %v3966_v27 = vld [vmem:[#allocation2 + $0x2c] ss:$16 sps:$4 sm:$0xff]   ;;  %v3970_v56 = vld [vmem:[#allocation2 + $0x48] ss:$16 sps:$4 sm:$0xff]  }
  0x40   : > { %633 = vmatprep.subr.bf16.mxu0 %v3937_v29  ;;  %684 = vmatprep.subr.bf16.mxu1 %v3939_v30 }
  0x43   : > { %634 = vmatpush1.bf16.msra.mxu0 %v3941_v32  ;;  %685 = vmatpush1.bf16.msra.mxu1 %v3942_v33 }
  0x44   : > { %635 = vmatprep.subr.bf16.mxu0 %v3943_v34  ;;  %686 = vmatprep.subr.bf16.mxu1 %v3945_v36 }
  0x47   : > { %636 = vmatpush1.bf16.msra.mxu0 %v3947_v40  ;;  %687 = vmatpush1.bf16.msra.mxu1 %v3948_v41 }
  0x48   : > { %637 = vmatprep.subr.bf16.mxu0 %v3949_v42  ;;  %688 = vmatprep.subr.bf16.mxu1 %v3951_v43 }
  0x4b   : > { %638 = vmatpush1.bf16.msra.mxu0 %v3953_v44  ;;  %689 = vmatpush1.bf16.msra.mxu1 %v3954_v45 }
  0x4c   : > { %885 = vmatprep.subr.bf16.mxu0 %v3957_v46  ;;  %936 = vmatprep.subr.bf16.mxu1 %v3960_v47  ;;  %v3961_v46 = vld [vmem:[#allocation2 + $0x20] ss:$16 sps:$4 sm:$0xff]   ;;  %v3964_v47 = vld [vmem:[#allocation2 + $0x28] ss:$16 sps:$4 sm:$0xff]  }
  0xac   : > { %v360_v60 = vpop.permute.xlu1 %359  ;;  %v350_v61 = vpop.permute.xlu0 %349 }
  0xad   : > { %v374_v6 = vmul.f32 %v360_v60, %v339_v62  ;;  %v372_v7 = vmul.f32 %v350_v61, %v337_v63  ;;  %v3975_v61 = vld [vmem:[#allocation2 + $0x64] ss:$16 sps:$4 sm:$0xff]   ;;  %v3978_v62 = vld [vmem:[#allocation2 + $0x6c] ss:$16 sps:$4 sm:$0xff]  }
  0xb0   : > { %v365_v3 = vpop.permute.xlu1 %364  ;;  %v355_v4 = vpop.permute.xlu0 %354 }
  0xb1   : > { %v375_v8 = vmul.f32 %v365_v3, %v340_v1  ;;  %v373_v9 = vmul.f32 %v355_v4, %v338_v2 }
  0xb3   : > { %v4518_v10 = vpack.c.bf16 %v375_v8, %v374_v6  ;;  %v4520_v11 = vpack.c.bf16 %v373_v9, %v372_v7 }
  0xb4   : > { %v370_v12 = vpop.permute.xlu0 %369 }
  0xb5   : > { %v376_v13 = vmul.f32 %v370_v12, %v341_v5  ;;  %v447_v14 = vshrl.u32 %v4520_v11, 16  ;;  %v449_v15 = vshll.u32 %v4520_v11, 16  ;;  %v4525_v16 = vshll.u32 %v4518_v10, 16 }
  0xb6   : > { %v4528_v17 = vshrl.u32 %v4518_v10, 16  ;;  %v1023_v18 = vrot.slane %v4520_v11, 1  ;;  %v4532_v19 = vrot.slane %v4518_v10, 1  ;;  %v1336_v20 = vrot.slane %v4520_v11, 3 }
  0xb7   : > { %v4535_v21 = vpack.c.bf16 %v376_v13, %v376_v13  ;;  %v451_v24 = vrot.slane %v449_v15, 1  ;;  %v4538_v25 = vrot.slane %v4518_v10, 3  ;;  %v1649_v29 = vrot.slane %v447_v14, 3  ;;  %v3973_v13 = vld [vmem:[#allocation2 + $0x60] ss:$16 sps:$4 sm:$0xff]  }
  0xb8   : > { %v4542_v28 = vsel %vm1022_vm0, %v1023_v18, %v4532_v19  ;;  %v1650_v30 = vrot.slane %v449_v15, 4  ;;  %v1652_v31 = vrot.slane %v4528_v17, 3  ;;  %v456_v33 = vrot.slane %v4525_v16, 1  ;;  %v3979_v18 = vld [vmem:[#allocation2 + $0x80] ss:$16 sps:$4 sm:$0xff]  }
  0xb9   : > { %v452_v32 = vor.u32 %v451_v24, %v447_v14  ;;  %v4548_v34 = vsel %vm1335_vm2, %v1336_v20, %v4538_v25  ;;  %v1653_v35 = vrot.slane %v4525_v16, 4  ;;  %v1966_v37 = vrot.slane %v4520_v11, 4  ;;  %v3982_v20 = vld [vmem:[#allocation2 + $0x88] ss:$16 sps:$4 sm:$0xff]  }
  0xba   : > { %v1651_v36 = vor.u32 %v1650_v30, %v1649_v29  ;;  %v4553_v38 = vrot.slane %v4518_v10, 4  ;;  %v2280_v39 = vrot.slane %v4520_v11, 6  ;;  %v2281_v42 = vrot.slane %v4518_v10, 6  ;;  %v3988_v24 = vld [vmem:[#allocation2 + $0xa8] ss:$16 sps:$4 sm:$0xff]  }
  0xbb   : > { %v457_v40 = vsel %vm445_vm1, %v452_v32, %v456_v33  ;;  %v4557_v41 = vor.u32 %v1653_v35, %v1652_v31  ;;  %v2283_v43 = vrot.slane %v4535_v21, 6  ;;  %v2595_v45 = vrot.slane %v447_v14, 6  ;;  %v3976_v14 = vld [vmem:[#allocation2 + $0x68] ss:$16 sps:$4 sm:$0xff]   ;;  %v3991_v29 = vld [vmem:[#allocation2 + $0xc0] ss:$16 sps:$4 sm:$0xff]  }
  0xbc   : > { %656 = vmatmul.mubr.bf16.vlgmr.msra.gmra.mrb[0].mxu0 %v457_v40  ;;  %707 = vmatmul.mubr.bf16.vlgmr.msra.gmra.mrb[0].mxu1 %v457_v40  ;;  %v4563_v44 = vsel %vm1965_vm4, %v1966_v37, %v4553_v38  ;;  %v4570_v49 = vsel %vm2279_vm5, %v2280_v39, %v2281_v42  ;;  %v2596_v51 = vrot.slane %v449_v15, 7  ;;  %v2598_v54 = vrot.slane %v4528_v17, 6  ;;  %v3994_v30 = vld [vmem:[#allocation2 + $0xc8] ss:$16 sps:$4 sm:$0xff]   ;;  %v3999_v31 = vld [vmem:[#allocation2 + $0xe4] ss:$16 sps:$4 sm:$0xff]  }
  0xbd   : > { %886 = vmatpush1.bf16.msra.mxu0 %v3955_v22  ;;  %937 = vmatpush1.bf16.msra.mxu1 %v3958_v23  ;;  %v4567_v48 = vsel %vm1648_vm3, %v1651_v36, %v4557_v41  ;;  %v4573_v50 = vsel %vm2279_vm5, %v2281_v42, %v2283_v43  ;;  %v2599_v58 = vrot.slane %v4525_v16, 7  ;;  %v2603_v59 = vshrl.u32 %v4535_v21, 16  ;;  %v3981_v16 = vld [vmem:[#allocation2 + $0x84] ss:$16 sps:$4 sm:$0xff]   ;;  %v3990_v22 = vld [vmem:[#allocation2 + $0xac] ss:$16 sps:$4 sm:$0xff]  }
  0xbe   : > { %887 = vmatprep.subr.bf16.mxu0 %v3963_v26  ;;  %938 = vmatprep.subr.bf16.mxu1 %v3966_v27  ;;  %v2597_v57 = vor.u32 %v2596_v51, %v2595_v45  ;;  %v2606_v60 = vshll.u32 %v4535_v21, 16  ;;  %v2921_v63 = vrot.slane %v4520_v11, 7  ;;  %v2922_v1 = vrot.slane %v4518_v10, 7  ;;  %v3985_v23 = vld [vmem:[#allocation2 + $0xa0] ss:$16 sps:$4 sm:$0xff]  }
  0xbf   : > { %665 = vmatprep.mubr.bf16.mxu0 %v4382_v0  ;;  %716 = vmatprep.mubr.bf16.mxu1 %v4382_v0  ;;  %v2924_v2 = vrot.slane %v4535_v21, 7  ;;  %v2600_v3 = vor.u32 %v2599_v58, %v2598_v54  ;;  %v2605_v4 = vrot.slane %v2603_v59, 6  ;;  %v460_v6 = vor.u32 %v4528_v17, %v456_v33  ;;  %v3984_v17 = vld [vmem:[#allocation2 + $0x8c] ss:$16 sps:$4 sm:$0xff]   ;;  %v3987_v21 = vld [vmem:[#allocation2 + $0xa4] ss:$16 sps:$4 sm:$0xff]  }
  0xc0   : > { %v2608_v5 = vrot.slane %v2606_v60, 7  ;;  %v4586_v7 = vsel %vm2920_vm7, %v2921_v63, %v2922_v1  ;;  %v3993_v26 = vld [vmem:[#allocation2 + $0xc4] ss:$16 sps:$4 sm:$0xff]   ;;  %v3996_v27 = vld [vmem:[#allocation2 + $0xcc] ss:$16 sps:$4 sm:$0xff]  }
  0xc1   : > { %888 = vmatpush1.bf16.msra.mxu0 %v3961_v46  ;;  %939 = vmatpush1.bf16.msra.mxu1 %v3964_v47  ;;  %v4589_v8 = vsel %vm2920_vm7, %v2922_v1, %v2924_v2  ;;  %v4592_v9 = vsel %vm2594_vm6, %v2597_v57, %v2600_v3  ;;  %v4002_v32 = vld [vmem:[#allocation2 + $0xec] ss:$16 sps:$4 sm:$0xff]   ;;  %v3997_v33 = vld [vmem:[#allocation2 + $0xe0] ss:$16 sps:$4 sm:$0xff]   ;;  %v4000_v35 = vld [vmem:[#allocation2 + $0xe8] ss:$16 sps:$4 sm:$0xff]  }
  0xc2   : > { %889 = vmatprep.subr.bf16.mxu0 %v3969_v52  ;;  %940 = vmatprep.subr.bf16.mxu1 %v3972_v53  ;;  %v2609_v12 = vor.u32 %v2608_v5, %v2605_v4  ;;  %v4005_v36 = vld [vmem:[#allocation2 + $0x204] ss:$16 sps:$4 sm:$0xff]   ;;  %v4008_v37 = vld [vmem:[#allocation2 + $0x20c] ss:$16 sps:$4 sm:$0xff]   ;;  %v4003_v39 = vld [vmem:[#allocation2 + $0x200] ss:$16 sps:$4 sm:$0xff]  }
  0xc3   : > { %v4006_v40 = vld [vmem:[#allocation2 + $0x208] ss:$16 sps:$4 sm:$0xff]   ;;  %v4011_v42 = vld [vmem:[#allocation2 + $0x224] ss:$16 sps:$4 sm:$0xff]   ;;  %v4014_v43 = vld [vmem:[#allocation2 + $0x22c] ss:$16 sps:$4 sm:$0xff]  }
  0xc4   : > { %666 = vmatmul.mubr.bf16.gmra.mrb[4].mxu0 %v460_v6  ;;  %717 = vmatmul.mubr.bf16.gmra.mrb[4].mxu1 %v460_v6  ;;  %v4595_v15 = vsel %vm2594_vm6, %v2600_v3, %v2609_v12  ;;  %v4009_v45 = vld [vmem:[#allocation2 + $0x220] ss:$16 sps:$4 sm:$0xff]   ;;  %v4012_v46 = vld [vmem:[#allocation2 + $0x228] ss:$16 sps:$4 sm:$0xff]   ;;  %v4017_v47 = vld [vmem:[#allocation2 + $0x244] ss:$16 sps:$4 sm:$0xff]  }
  0xc5   : > { %890 = vmatpush1.bf16.msra.mxu0 %v3967_v55  ;;  %941 = vmatpush1.bf16.msra.mxu1 %v3970_v56  ;;  %v4020_v51 = vld [vmem:[#allocation2 + $0x24c] ss:$16 sps:$4 sm:$0xff]   ;;  %v4015_v52 = vld [vmem:[#allocation2 + $0x240] ss:$16 sps:$4 sm:$0xff]   ;;  %v4018_v53 = vld [vmem:[#allocation2 + $0x248] ss:$16 sps:$4 sm:$0xff]  }
  0xc6   : > { %891 = vmatprep.subr.bf16.mxu0 %v3975_v61  ;;  %942 = vmatprep.subr.bf16.mxu1 %v3978_v62  ;;  %v4023_v54 = vld [vmem:[#allocation2 + $0x264] ss:$16 sps:$4 sm:$0xff]   ;;  %v4021_v55 = vld [vmem:[#allocation2 + $0x260] ss:$16 sps:$4 sm:$0xff]   ;;  %v4024_v56 = vld [vmem:[#allocation2 + $0x268] ss:$16 sps:$4 sm:$0xff]  }
  0xc7   : > { %917 = vmatprep.mubr.bf16.mxu0 %v4382_v0  ;;  %968 = vmatprep.mubr.bf16.mxu1 %v4382_v0  ;;  %v4029_v57 = vld [vmem:[#allocation2 + $0x284] ss:$16 sps:$4 sm:$0xff]   ;;  %v4032_v58 = vld [vmem:[#allocation2 + $0x28c] ss:$16 sps:$4 sm:$0xff]   ;;  %v4027_v59 = vld [vmem:[#allocation2 + $0x280] ss:$16 sps:$4 sm:$0xff]  }
  0xc8   : > { %v4030_v60 = vld [vmem:[#allocation2 + $0x288] ss:$16 sps:$4 sm:$0xff]   ;;  %v4035_v61 = vld [vmem:[#allocation2 + $0x2a4] ss:$16 sps:$4 sm:$0xff]   ;;  %v4033_v62 = vld [vmem:[#allocation2 + $0x2a0] ss:$16 sps:$4 sm:$0xff]  }
  0xc9   : > { %892 = vmatpush1.bf16.msra.mxu0 %v3973_v13  ;;  %943 = vmatpush1.bf16.msra.mxu1 %v3976_v14  ;;  %v4036_v63 = vld [vmem:[#allocation2 + $0x2a8] ss:$16 sps:$4 sm:$0xff]   ;;  %v4041_v1 = vld [vmem:[#allocation2 + $0x2c4] ss:$16 sps:$4 sm:$0xff]   ;;  %v4044_v2 = vld [vmem:[#allocation2 + $0x2cc] ss:$16 sps:$4 sm:$0xff]  }
  0xca   : > { %893 = vmatprep.subr.bf16.mxu0 %v3981_v16  ;;  %944 = vmatprep.subr.bf16.mxu1 %v3984_v17  ;;  %v4039_v3 = vld [vmem:[#allocation2 + $0x2c0] ss:$16 sps:$4 sm:$0xff]   ;;  %v4042_v4 = vld [vmem:[#allocation2 + $0x2c8] ss:$16 sps:$4 sm:$0xff]   ;;  %v4047_v5 = vld [vmem:[#allocation2 + $0x2e4] ss:$16 sps:$4 sm:$0xff]  }
  0xcb   : > { %v4050_v6 = vld [vmem:[#allocation2 + $0x2ec] ss:$16 sps:$4 sm:$0xff]   ;;  %v4045_v12 = vld [vmem:[#allocation2 + $0x2e0] ss:$16 sps:$4 sm:$0xff]   ;;  %v4048_v13 = vld [vmem:[#allocation2 + $0x2e8] ss:$16 sps:$4 sm:$0xff]  }
  0xcc   : > { %v4053_v14 = vld [vmem:[#allocation2 + $0x304] ss:$16 sps:$4 sm:$0xff]   ;;  %v4056_v16 = vld [vmem:[#allocation2 + $0x30c] ss:$16 sps:$4 sm:$0xff]   ;;  %v4051_v17 = vld [vmem:[#allocation2 + $0x300] ss:$16 sps:$4 sm:$0xff]  }
  0xcd   : > { %894 = vmatpush1.bf16.msra.mxu0 %v3979_v18  ;;  %945 = vmatpush1.bf16.msra.mxu1 %v3982_v20  ;;  %v4054_v18 = vld [vmem:[#allocation2 + $0x308] ss:$16 sps:$4 sm:$0xff]   ;;  %v4059_v20 = vld [vmem:[#allocation2 + $0x324] ss:$16 sps:$4 sm:$0xff]  }
  0xce   : > { %895 = vmatprep.subr.bf16.mxu0 %v3987_v21  ;;  %946 = vmatprep.subr.bf16.mxu1 %v3990_v22  ;;  %v4062_v21 = vld [vmem:[#allocation2 + $0x32c] ss:$16 sps:$4 sm:$0xff]   ;;  %v4057_v22 = vld [vmem:[#allocation2 + $0x320] ss:$16 sps:$4 sm:$0xff]  }
  0xd1   : > { %896 = vmatpush1.bf16.msra.mxu0 %v3985_v23  ;;  %947 = vmatpush1.bf16.msra.mxu1 %v3988_v24  ;;  %v4060_v23 = vld [vmem:[#allocation2 + $0x328] ss:$16 sps:$4 sm:$0xff]   ;;  %v4065_v24 = vld [vmem:[#allocation2 + $0x344] ss:$16 sps:$4 sm:$0xff]  }
  0xd2   : > { %897 = vmatprep.subr.bf16.mxu0 %v3993_v26  ;;  %948 = vmatprep.subr.bf16.mxu1 %v3996_v27  ;;  %v4068_v26 = vld [vmem:[#allocation2 + $0x34c] ss:$16 sps:$4 sm:$0xff]   ;;  %v4063_v27 = vld [vmem:[#allocation2 + $0x340] ss:$16 sps:$4 sm:$0xff]  }
  0xd5   : > { %898 = vmatpush1.bf16.msra.mxu0 %v3991_v29  ;;  %949 = vmatpush1.bf16.msra.mxu1 %v3994_v30  ;;  %v4066_v29 = vld [vmem:[#allocation2 + $0x348] ss:$16 sps:$4 sm:$0xff]   ;;  %v4071_v30 = vld [vmem:[#allocation2 + $0x364] ss:$16 sps:$4 sm:$0xff]  }
  0xd6   : > { %899 = vmatprep.subr.bf16.mxu0 %v3999_v31  ;;  %950 = vmatprep.subr.bf16.mxu1 %v4002_v32  ;;  %v4069_v31 = vld [vmem:[#allocation2 + $0x360] ss:$16 sps:$4 sm:$0xff]   ;;  %v4072_v32 = vld [vmem:[#allocation2 + $0x368] ss:$16 sps:$4 sm:$0xff]  }
  0xd9   : > { %900 = vmatpush1.bf16.msra.mxu0 %v3997_v33  ;;  %951 = vmatpush1.bf16.msra.mxu1 %v4000_v35  ;;  %v4077_v33 = vld [vmem:[#allocation2 + $0x384] ss:$16 sps:$4 sm:$0xff]   ;;  %v4080_v35 = vld [vmem:[#allocation2 + $0x38c] ss:$16 sps:$4 sm:$0xff]  }
  0xda   : > { %1188 = vmatprep.subr.bf16.mxu0 %v4005_v36  ;;  %1239 = vmatprep.subr.bf16.mxu1 %v4008_v37  ;;  %v4075_v36 = vld [vmem:[#allocation2 + $0x380] ss:$16 sps:$4 sm:$0xff]   ;;  %v4078_v37 = vld [vmem:[#allocation2 + $0x388] ss:$16 sps:$4 sm:$0xff]  }
  0xdc   : > { %918 = vmatmul.mubr.bf16.vlgmr.msra.gmra.mrb[0].mxu0 %v4520_v11  ;;  %969 = vmatmul.mubr.bf16.vlgmr.msra.gmra.mrb[0].mxu1 %v4520_v11  ;;  %v4026_v11 = vld [vmem:[#allocation2 + $0x26c] ss:$16 sps:$4 sm:$0xff]  }
  0xdd   : > { %1189 = vmatpush1.bf16.msra.mxu0 %v4003_v39  ;;  %1240 = vmatpush1.bf16.msra.mxu1 %v4006_v40  ;;  %v4083_v39 = vld [vmem:[#allocation2 + $0x3a4] ss:$16 sps:$4 sm:$0xff]   ;;  %v4081_v40 = vld [vmem:[#allocation2 + $0x3a0] ss:$16 sps:$4 sm:$0xff]  }
  0xde   : > { %1190 = vmatprep.subr.bf16.mxu0 %v4011_v42  ;;  %1241 = vmatprep.subr.bf16.mxu1 %v4014_v43  ;;  %v4084_v42 = vld [vmem:[#allocation2 + $0x3a8] ss:$16 sps:$4 sm:$0xff]   ;;  %v4089_v43 = vld [vmem:[#allocation2 + $0x3c4] ss:$16 sps:$4 sm:$0xff]  }
  0xdf   : > { %927 = vmatprep.mubr.bf16.mxu0 %v4382_v0  ;;  %978 = vmatprep.mubr.bf16.mxu1 %v4382_v0 }
  0xe1   : > { %1191 = vmatpush1.bf16.msra.mxu0 %v4009_v45  ;;  %1242 = vmatpush1.bf16.msra.mxu1 %v4012_v46  ;;  %v4092_v45 = vld [vmem:[#allocation2 + $0x3cc] ss:$16 sps:$4 sm:$0xff]   ;;  %v4087_v46 = vld [vmem:[#allocation2 + $0x3c0] ss:$16 sps:$4 sm:$0xff]  }
  0xe2   : > { %1192 = vmatprep.subr.bf16.mxu0 %v4017_v47  ;;  %1243 = vmatprep.subr.bf16.mxu1 %v4020_v51  ;;  %v4090_v47 = vld [vmem:[#allocation2 + $0x3c8] ss:$16 sps:$4 sm:$0xff]   ;;  %v4095_v51 = vld [vmem:[#allocation2 + $0x3e4] ss:$16 sps:$4 sm:$0xff]  }
  0xe4   : > { %928 = vmatmul.mubr.bf16.gmra.mrb[4].mxu0 %v4518_v10  ;;  %979 = vmatmul.mubr.bf16.gmra.mrb[4].mxu1 %v4518_v10  ;;  %v4038_v10 = vld [vmem:[#allocation2 + $0x2ac] ss:$16 sps:$4 sm:$0xff]  }
  0xe5   : > { %1193 = vmatpush1.bf16.msra.mxu0 %v4015_v52  ;;  %1244 = vmatpush1.bf16.msra.mxu1 %v4018_v53  ;;  %v4098_v52 = vld [vmem:[#allocation2 + $0x3ec] ss:$16 sps:$4 sm:$0xff]   ;;  %v4093_v53 = vld [vmem:[#allocation2 + $0x3e0] ss:$16 sps:$4 sm:$0xff]  }
  0xe6   : > { %1194 = vmatprep.subr.bf16.mxu0 %v4023_v54  ;;  %1245 = vmatprep.subr.bf16.mxu1 %v4026_v11  ;;  %v4096_v54 = vld [vmem:[#allocation2 + $0x3e8] ss:$16 sps:$4 sm:$0xff]   ;;  %v4101_v11 = vld [vmem:[#allocation2 + $0x404] ss:$16 sps:$4 sm:$0xff]  }
  0xe7   : > { %1220 = vmatprep.mubr.bf16.mxu0 %v4382_v0  ;;  %1271 = vmatprep.mubr.bf16.mxu1 %v4382_v0 }
  0xe9   : > { %1195 = vmatpush1.bf16.msra.mxu0 %v4021_v55  ;;  %1246 = vmatpush1.bf16.msra.mxu1 %v4024_v56  ;;  %v4104_v55 = vld [vmem:[#allocation2 + $0x40c] ss:$16 sps:$4 sm:$0xff]   ;;  %v4099_v56 = vld [vmem:[#allocation2 + $0x400] ss:$16 sps:$4 sm:$0xff]  }
  0xea   : > { %1196 = vmatprep.subr.bf16.mxu0 %v4029_v57  ;;  %1247 = vmatprep.subr.bf16.mxu1 %v4032_v58  ;;  %v4102_v57 = vld [vmem:[#allocation2 + $0x408] ss:$16 sps:$4 sm:$0xff]   ;;  %v4107_v58 = vld [vmem:[#allocation2 + $0x424] ss:$16 sps:$4 sm:$0xff]  }
  0xed   : > { %1197 = vmatpush1.bf16.msra.mxu0 %v4027_v59  ;;  %1248 = vmatpush1.bf16.msra.mxu1 %v4030_v60  ;;  %v4110_v59 = vld [vmem:[#allocation2 + $0x42c] ss:$16 sps:$4 sm:$0xff]   ;;  %v4105_v60 = vld [vmem:[#allocation2 + $0x420] ss:$16 sps:$4 sm:$0xff]  }
  0xee   : > { %1198 = vmatprep.subr.bf16.mxu0 %v4035_v61  ;;  %1249 = vmatprep.subr.bf16.mxu1 %v4038_v10  ;;  %v4108_v61 = vld [vmem:[#allocation2 + $0x428] ss:$16 sps:$4 sm:$0xff]   ;;  %v4113_v10 = vld [vmem:[#allocation2 + $0x444] ss:$16 sps:$4 sm:$0xff]  }
  0xf1   : > { %1199 = vmatpush1.bf16.msra.mxu0 %v4033_v62  ;;  %1250 = vmatpush1.bf16.msra.mxu1 %v4036_v63  ;;  %v4116_v62 = vld [vmem:[#allocation2 + $0x44c] ss:$16 sps:$4 sm:$0xff]   ;;  %v4111_v63 = vld [vmem:[#allocation2 + $0x440] ss:$16 sps:$4 sm:$0xff]  }
  0xf2   : > { %1200 = vmatprep.subr.bf16.mxu0 %v4041_v1  ;;  %1251 = vmatprep.subr.bf16.mxu1 %v4044_v2  ;;  %v4114_v1 = vld [vmem:[#allocation2 + $0x448] ss:$16 sps:$4 sm:$0xff]   ;;  %v4119_v2 = vld [vmem:[#allocation2 + $0x464] ss:$16 sps:$4 sm:$0xff]  }
  0xf5   : > { %1201 = vmatpush1.bf16.msra.mxu0 %v4039_v3  ;;  %1252 = vmatpush1.bf16.msra.mxu1 %v4042_v4  ;;  %v4117_v3 = vld [vmem:[#allocation2 + $0x460] ss:$16 sps:$4 sm:$0xff]   ;;  %v4120_v4 = vld [vmem:[#allocation2 + $0x468] ss:$16 sps:$4 sm:$0xff]  }
  0xf6   : > { %1202 = vmatprep.subr.bf16.mxu0 %v4047_v5  ;;  %1253 = vmatprep.subr.bf16.mxu1 %v4050_v6  ;;  %v4125_v5 = vld [vmem:[#allocation2 + $0x484] ss:$16 sps:$4 sm:$0xff]   ;;  %v4128_v6 = vld [vmem:[#allocation2 + $0x48c] ss:$16 sps:$4 sm:$0xff]  }
  0xf9   : > { %1203 = vmatpush1.bf16.msra.mxu0 %v4045_v12  ;;  %1254 = vmatpush1.bf16.msra.mxu1 %v4048_v13  ;;  %v4123_v12 = vld [vmem:[#allocation2 + $0x480] ss:$16 sps:$4 sm:$0xff]   ;;  %v4126_v13 = vld [vmem:[#allocation2 + $0x488] ss:$16 sps:$4 sm:$0xff]  }
  0xfa   : > { %1501 = vmatprep.subr.bf16.mxu0 %v4053_v14  ;;  %1552 = vmatprep.subr.bf16.mxu1 %v4056_v16  ;;  %v4131_v14 = vld [vmem:[#allocation2 + $0x4a4] ss:$16 sps:$4 sm:$0xff]   ;;  %v4129_v16 = vld [vmem:[#allocation2 + $0x4a0] ss:$16 sps:$4 sm:$0xff]  }
  0xfc   : > { %1221 = vmatmul.mubr.bf16.vlgmr.msra.gmra.mrb[0].mxu0 %v4542_v28  ;;  %1272 = vmatmul.mubr.bf16.vlgmr.msra.gmra.mrb[0].mxu1 %v4542_v28  ;;  %v4074_v28 = vld [vmem:[#allocation2 + $0x36c] ss:$16 sps:$4 sm:$0xff]  }
  0xfd   : > { %1502 = vmatpush1.bf16.msra.mxu0 %v4051_v17  ;;  %1553 = vmatpush1.bf16.msra.mxu1 %v4054_v18  ;;  %v4132_v17 = vld [vmem:[#allocation2 + $0x4a8] ss:$16 sps:$4 sm:$0xff]   ;;  %v4137_v18 = vld [vmem:[#allocation2 + $0x4c4] ss:$16 sps:$4 sm:$0xff]  }
  0xfe   : > { %1503 = vmatprep.subr.bf16.mxu0 %v4059_v20  ;;  %1554 = vmatprep.subr.bf16.mxu1 %v4062_v21  ;;  %v4140_v20 = vld [vmem:[#allocation2 + $0x4cc] ss:$16 sps:$4 sm:$0xff]   ;;  %v4135_v21 = vld [vmem:[#allocation2 + $0x4c0] ss:$16 sps:$4 sm:$0xff]  }
  0xff   : > { %1230 = vmatprep.mubr.bf16.mxu0 %v4382_v0  ;;  %1281 = vmatprep.mubr.bf16.mxu1 %v4382_v0 }
 0x101   : > { %1504 = vmatpush1.bf16.msra.mxu0 %v4057_v22  ;;  %1555 = vmatpush1.bf16.msra.mxu1 %v4060_v23  ;;  %v4138_v22 = vld [vmem:[#allocation2 + $0x4c8] ss:$16 sps:$4 sm:$0xff]   ;;  %v4143_v23 = vld [vmem:[#allocation2 + $0x4e4] ss:$16 sps:$4 sm:$0xff]  }
 0x102   : > { %1505 = vmatprep.subr.bf16.mxu0 %v4065_v24  ;;  %1556 = vmatprep.subr.bf16.mxu1 %v4068_v26  ;;  %v4146_v24 = vld [vmem:[#allocation2 + $0x4ec] ss:$16 sps:$4 sm:$0xff]   ;;  %v4141_v26 = vld [vmem:[#allocation2 + $0x4e0] ss:$16 sps:$4 sm:$0xff]  }
 0x104   : > { %1231 = vmatmul.mubr.bf16.gmra.mrb[4].mxu0 %v4532_v19  ;;  %1282 = vmatmul.mubr.bf16.gmra.mrb[4].mxu1 %v4532_v19  ;;  %v4086_v19 = vld [vmem:[#allocation2 + $0x3ac] ss:$16 sps:$4 sm:$0xff]  }
 0x105   : > { %1506 = vmatpush1.bf16.msra.mxu0 %v4063_v27  ;;  %1557 = vmatpush1.bf16.msra.mxu1 %v4066_v29  ;;  %v4144_v27 = vld [vmem:[#allocation2 + $0x4e8] ss:$16 sps:$4 sm:$0xff]   ;;  %v4149_v29 = vld [vmem:[#allocation2 + $0x504] ss:$16 sps:$4 sm:$0xff]  }
 0x106   : > { %1507 = vmatprep.subr.bf16.mxu0 %v4071_v30  ;;  %1558 = vmatprep.subr.bf16.mxu1 %v4074_v28  ;;  %v4152_v30 = vld [vmem:[#allocation2 + $0x50c] ss:$16 sps:$4 sm:$0xff]   ;;  %v4147_v28 = vld [vmem:[#allocation2 + $0x500] ss:$16 sps:$4 sm:$0xff]  }
 0x107   : > { %1533 = vmatprep.mubr.bf16.mxu0 %v4382_v0  ;;  %1584 = vmatprep.mubr.bf16.mxu1 %v4382_v0 }
 0x109   : > { %1508 = vmatpush1.bf16.msra.mxu0 %v4069_v31  ;;  %1559 = vmatpush1.bf16.msra.mxu1 %v4072_v32  ;;  %v4150_v31 = vld [vmem:[#allocation2 + $0x508] ss:$16 sps:$4 sm:$0xff]   ;;  %v4155_v32 = vld [vmem:[#allocation2 + $0x524] ss:$16 sps:$4 sm:$0xff]  }
 0x10a   : > { %1509 = vmatprep.subr.bf16.mxu0 %v4077_v33  ;;  %1560 = vmatprep.subr.bf16.mxu1 %v4080_v35  ;;  %v4158_v33 = vld [vmem:[#allocation2 + $0x52c] ss:$16 sps:$4 sm:$0xff]   ;;  %v4153_v35 = vld [vmem:[#allocation2 + $0x520] ss:$16 sps:$4 sm:$0xff]  }
 0x10d   : > { %1510 = vmatpush1.bf16.msra.mxu0 %v4075_v36  ;;  %1561 = vmatpush1.bf16.msra.mxu1 %v4078_v37  ;;  %v4156_v36 = vld [vmem:[#allocation2 + $0x528] ss:$16 sps:$4 sm:$0xff]   ;;  %v4161_v37 = vld [vmem:[#allocation2 + $0x544] ss:$16 sps:$4 sm:$0xff]  }
 0x10e   : > { %1511 = vmatprep.subr.bf16.mxu0 %v4083_v39  ;;  %1562 = vmatprep.subr.bf16.mxu1 %v4086_v19  ;;  %v4164_v39 = vld [vmem:[#allocation2 + $0x54c] ss:$16 sps:$4 sm:$0xff]   ;;  %v4159_v19 = vld [vmem:[#allocation2 + $0x540] ss:$16 sps:$4 sm:$0xff]  }
 0x111   : > { %1512 = vmatpush1.bf16.msra.mxu0 %v4081_v40  ;;  %1563 = vmatpush1.bf16.msra.mxu1 %v4084_v42  ;;  %v4162_v40 = vld [vmem:[#allocation2 + $0x548] ss:$16 sps:$4 sm:$0xff]   ;;  %v4167_v42 = vld [vmem:[#allocation2 + $0x564] ss:$16 sps:$4 sm:$0xff]  }
 0x112   : > { %1513 = vmatprep.subr.bf16.mxu0 %v4089_v43  ;;  %1564 = vmatprep.subr.bf16.mxu1 %v4092_v45  ;;  %v4165_v43 = vld [vmem:[#allocation2 + $0x560] ss:$16 sps:$4 sm:$0xff]   ;;  %v4168_v45 = vld [vmem:[#allocation2 + $0x568] ss:$16 sps:$4 sm:$0xff]  }
 0x115   : > { %1514 = vmatpush1.bf16.msra.mxu0 %v4087_v46  ;;  %1565 = vmatpush1.bf16.msra.mxu1 %v4090_v47  ;;  %v4173_v46 = vld [vmem:[#allocation2 + $0x584] ss:$16 sps:$4 sm:$0xff]   ;;  %v4176_v47 = vld [vmem:[#allocation2 + $0x58c] ss:$16 sps:$4 sm:$0xff]  }
 0x116   : > { %1515 = vmatprep.subr.bf16.mxu0 %v4095_v51  ;;  %1566 = vmatprep.subr.bf16.mxu1 %v4098_v52  ;;  %v4171_v51 = vld [vmem:[#allocation2 + $0x580] ss:$16 sps:$4 sm:$0xff]   ;;  %v4174_v52 = vld [vmem:[#allocation2 + $0x588] ss:$16 sps:$4 sm:$0xff]  }
 0x119   : > { %1516 = vmatpush1.bf16.msra.mxu0 %v4093_v53  ;;  %1567 = vmatpush1.bf16.msra.mxu1 %v4096_v54  ;;  %v4179_v53 = vld [vmem:[#allocation2 + $0x5a4] ss:$16 sps:$4 sm:$0xff]   ;;  %v4177_v54 = vld [vmem:[#allocation2 + $0x5a0] ss:$16 sps:$4 sm:$0xff]  }
 0x11a   : > { %1818 = vmatprep.subr.bf16.mxu0 %v4101_v11  ;;  %1869 = vmatprep.subr.bf16.mxu1 %v4104_v55  ;;  %v4180_v11 = vld [vmem:[#allocation2 + $0x5a8] ss:$16 sps:$4 sm:$0xff]   ;;  %v4185_v55 = vld [vmem:[#allocation2 + $0x5c4] ss:$16 sps:$4 sm:$0xff]  }
 0x11c   : > { %1534 = vmatmul.mubr.bf16.vlgmr.msra.gmra.mrb[0].mxu0 %v4548_v34  ;;  %1585 = vmatmul.mubr.bf16.vlgmr.msra.gmra.mrb[0].mxu1 %v4548_v34  ;;  %v4122_v34 = vld [vmem:[#allocation2 + $0x46c] ss:$16 sps:$4 sm:$0xff]  }
 0x11d   : > { %1819 = vmatpush1.bf16.msra.mxu0 %v4099_v56  ;;  %1870 = vmatpush1.bf16.msra.mxu1 %v4102_v57  ;;  %v4188_v56 = vld [vmem:[#allocation2 + $0x5cc] ss:$16 sps:$4 sm:$0xff]   ;;  %v4183_v57 = vld [vmem:[#allocation2 + $0x5c0] ss:$16 sps:$4 sm:$0xff]  }
 0x11e   : > { %1820 = vmatprep.subr.bf16.mxu0 %v4107_v58  ;;  %1871 = vmatprep.subr.bf16.mxu1 %v4110_v59  ;;  %v4186_v58 = vld [vmem:[#allocation2 + $0x5c8] ss:$16 sps:$4 sm:$0xff]   ;;  %v4191_v59 = vld [vmem:[#allocation2 + $0x5e4] ss:$16 sps:$4 sm:$0xff]  }
 0x11f   : > { %1543 = vmatprep.mubr.bf16.mxu0 %v4382_v0  ;;  %1594 = vmatprep.mubr.bf16.mxu1 %v4382_v0 }
 0x121   : > { %1821 = vmatpush1.bf16.msra.mxu0 %v4105_v60  ;;  %1872 = vmatpush1.bf16.msra.mxu1 %v4108_v61  ;;  %v4194_v60 = vld [vmem:[#allocation2 + $0x5ec] ss:$16 sps:$4 sm:$0xff]   ;;  %v4189_v61 = vld [vmem:[#allocation2 + $0x5e0] ss:$16 sps:$4 sm:$0xff]  }
 0x122   : > { %1822 = vmatprep.subr.bf16.mxu0 %v4113_v10  ;;  %1873 = vmatprep.subr.bf16.mxu1 %v4116_v62  ;;  %v4192_v10 = vld [vmem:[#allocation2 + $0x5e8] ss:$16 sps:$4 sm:$0xff]   ;;  %v4197_v62 = vld [vmem:[#allocation2 + $0x604] ss:$16 sps:$4 sm:$0xff]  }
 0x124   : > { %1544 = vmatmul.mubr.bf16.gmra.mrb[4].mxu0 %v4538_v25  ;;  %1595 = vmatmul.mubr.bf16.gmra.mrb[4].mxu1 %v4538_v25  ;;  %v4134_v25 = vld [vmem:[#allocation2 + $0x4ac] ss:$16 sps:$4 sm:$0xff]  }
 0x125   : > { %1823 = vmatpush1.bf16.msra.mxu0 %v4111_v63  ;;  %1874 = vmatpush1.bf16.msra.mxu1 %v4114_v1  ;;  %v4200_v63 = vld [vmem:[#allocation2 + $0x60c] ss:$16 sps:$4 sm:$0xff]   ;;  %v4195_v1 = vld [vmem:[#allocation2 + $0x600] ss:$16 sps:$4 sm:$0xff]  }
 0x126   : > { %1824 = vmatprep.subr.bf16.mxu0 %v4119_v2  ;;  %1875 = vmatprep.subr.bf16.mxu1 %v4122_v34  ;;  %v4198_v2 = vld [vmem:[#allocation2 + $0x608] ss:$16 sps:$4 sm:$0xff]   ;;  %v4203_v34 = vld [vmem:[#allocation2 + $0x624] ss:$16 sps:$4 sm:$0xff]  }
 0x127   : > { %1850 = vmatprep.mubr.bf16.mxu0 %v4382_v0  ;;  %1901 = vmatprep.mubr.bf16.mxu1 %v4382_v0 }
 0x129   : > { %1825 = vmatpush1.bf16.msra.mxu0 %v4117_v3  ;;  %1876 = vmatpush1.bf16.msra.mxu1 %v4120_v4  ;;  %v4206_v3 = vld [vmem:[#allocation2 + $0x62c] ss:$16 sps:$4 sm:$0xff]   ;;  %v4201_v4 = vld [vmem:[#allocation2 + $0x620] ss:$16 sps:$4 sm:$0xff]  }
 0x12a   : > { %1826 = vmatprep.subr.bf16.mxu0 %v4125_v5  ;;  %1877 = vmatprep.subr.bf16.mxu1 %v4128_v6  ;;  %v4204_v5 = vld [vmem:[#allocation2 + $0x628] ss:$16 sps:$4 sm:$0xff]   ;;  %v4209_v6 = vld [vmem:[#allocation2 + $0x644] ss:$16 sps:$4 sm:$0xff]  }
 0x12d   : > { %1827 = vmatpush1.bf16.msra.mxu0 %v4123_v12  ;;  %1878 = vmatpush1.bf16.msra.mxu1 %v4126_v13  ;;  %v4212_v12 = vld [vmem:[#allocation2 + $0x64c] ss:$16 sps:$4 sm:$0xff]   ;;  %v4207_v13 = vld [vmem:[#allocation2 + $0x640] ss:$16 sps:$4 sm:$0xff]  }
 0x12e   : > { %1828 = vmatprep.subr.bf16.mxu0 %v4131_v14  ;;  %1879 = vmatprep.subr.bf16.mxu1 %v4134_v25  ;;  %v4210_v14 = vld [vmem:[#allocation2 + $0x648] ss:$16 sps:$4 sm:$0xff]   ;;  %v4215_v25 = vld [vmem:[#allocation2 + $0x664] ss:$16 sps:$4 sm:$0xff]  }
 0x131   : > { %1829 = vmatpush1.bf16.msra.mxu0 %v4129_v16  ;;  %1880 = vmatpush1.bf16.msra.mxu1 %v4132_v17  ;;  %v4213_v16 = vld [vmem:[#allocation2 + $0x660] ss:$16 sps:$4 sm:$0xff]   ;;  %v4216_v17 = vld [vmem:[#allocation2 + $0x668] ss:$16 sps:$4 sm:$0xff]  }
 0x132   : > { %1830 = vmatprep.subr.bf16.mxu0 %v4137_v18  ;;  %1881 = vmatprep.subr.bf16.mxu1 %v4140_v20  ;;  %v4221_v18 = vld [vmem:[#allocation2 + $0x684] ss:$16 sps:$4 sm:$0xff]   ;;  %v4224_v20 = vld [vmem:[#allocation2 + $0x68c] ss:$16 sps:$4 sm:$0xff]  }
 0x135   : > { %1831 = vmatpush1.bf16.msra.mxu0 %v4135_v21  ;;  %1882 = vmatpush1.bf16.msra.mxu1 %v4138_v22  ;;  %v4219_v21 = vld [vmem:[#allocation2 + $0x680] ss:$16 sps:$4 sm:$0xff]   ;;  %v4222_v22 = vld [vmem:[#allocation2 + $0x688] ss:$16 sps:$4 sm:$0xff]  }
 0x136   : > { %1832 = vmatprep.subr.bf16.mxu0 %v4143_v23  ;;  %1883 = vmatprep.subr.bf16.mxu1 %v4146_v24  ;;  %v4227_v23 = vld [vmem:[#allocation2 + $0x6a4] ss:$16 sps:$4 sm:$0xff]   ;;  %v4225_v24 = vld [vmem:[#allocation2 + $0x6a0] ss:$16 sps:$4 sm:$0xff]  }
 0x139   : > { %1833 = vmatpush1.bf16.msra.mxu0 %v4141_v26  ;;  %1884 = vmatpush1.bf16.msra.mxu1 %v4144_v27  ;;  %v4228_v26 = vld [vmem:[#allocation2 + $0x6a8] ss:$16 sps:$4 sm:$0xff]   ;;  %v4233_v27 = vld [vmem:[#allocation2 + $0x6c4] ss:$16 sps:$4 sm:$0xff]  }
 0x13a   : > { %2131 = vmatprep.subr.bf16.mxu0 %v4149_v29  ;;  %2182 = vmatprep.subr.bf16.mxu1 %v4152_v30  ;;  %v4236_v29 = vld [vmem:[#allocation2 + $0x6cc] ss:$16 sps:$4 sm:$0xff]   ;;  %v4231_v30 = vld [vmem:[#allocation2 + $0x6c0] ss:$16 sps:$4 sm:$0xff]  }
 0x13c   : > { %1851 = vmatmul.mubr.bf16.vlgmr.msra.gmra.mrb[0].mxu0 %v4567_v48  ;;  %1902 = vmatmul.mubr.bf16.vlgmr.msra.gmra.mrb[0].mxu1 %v4567_v48  ;;  %v4170_v48 = vld [vmem:[#allocation2 + $0x56c] ss:$16 sps:$4 sm:$0xff]  }
 0x13d   : > { %2132 = vmatpush1.bf16.msra.mxu0 %v4147_v28  ;;  %2183 = vmatpush1.bf16.msra.mxu1 %v4150_v31  ;;  %v4234_v28 = vld [vmem:[#allocation2 + $0x6c8] ss:$16 sps:$4 sm:$0xff]   ;;  %v4239_v31 = vld [vmem:[#allocation2 + $0x6e4] ss:$16 sps:$4 sm:$0xff]  }
 0x13e   : > { %2133 = vmatprep.subr.bf16.mxu0 %v4155_v32  ;;  %2184 = vmatprep.subr.bf16.mxu1 %v4158_v33  ;;  %v4242_v32 = vld [vmem:[#allocation2 + $0x6ec] ss:$16 sps:$4 sm:$0xff]   ;;  %v4237_v33 = vld [vmem:[#allocation2 + $0x6e0] ss:$16 sps:$4 sm:$0xff]  }
 0x13f   : > { %1860 = vmatprep.mubr.bf16.mxu0 %v4382_v0  ;;  %1911 = vmatprep.mubr.bf16.mxu1 %v4382_v0 }
 0x141   : > { %2134 = vmatpush1.bf16.msra.mxu0 %v4153_v35  ;;  %2185 = vmatpush1.bf16.msra.mxu1 %v4156_v36  ;;  %v4240_v35 = vld [vmem:[#allocation2 + $0x6e8] ss:$16 sps:$4 sm:$0xff]   ;;  %v4245_v36 = vld [vmem:[#allocation2 + $0x704] ss:$16 sps:$4 sm:$0xff]  }
 0x142   : > { %2135 = vmatprep.subr.bf16.mxu0 %v4161_v37  ;;  %2186 = vmatprep.subr.bf16.mxu1 %v4164_v39  ;;  %v4248_v37 = vld [vmem:[#allocation2 + $0x70c] ss:$16 sps:$4 sm:$0xff]   ;;  %v4243_v39 = vld [vmem:[#allocation2 + $0x700] ss:$16 sps:$4 sm:$0xff]  }
 0x144   : > { %1861 = vmatmul.mubr.bf16.gmra.mrb[4].mxu0 %v4557_v41  ;;  %1912 = vmatmul.mubr.bf16.gmra.mrb[4].mxu1 %v4557_v41  ;;  %v4182_v41 = vld [vmem:[#allocation2 + $0x5ac] ss:$16 sps:$4 sm:$0xff]  }
 0x145   : > { %2136 = vmatpush1.bf16.msra.mxu0 %v4159_v19  ;;  %2187 = vmatpush1.bf16.msra.mxu1 %v4162_v40  ;;  %v4246_v19 = vld [vmem:[#allocation2 + $0x708] ss:$16 sps:$4 sm:$0xff]   ;;  %v4251_v40 = vld [vmem:[#allocation2 + $0x724] ss:$16 sps:$4 sm:$0xff]  }
 0x146   : > { %2137 = vmatprep.subr.bf16.mxu0 %v4167_v42  ;;  %2188 = vmatprep.subr.bf16.mxu1 %v4170_v48  ;;  %v4254_v42 = vld [vmem:[#allocation2 + $0x72c] ss:$16 sps:$4 sm:$0xff]   ;;  %v4249_v48 = vld [vmem:[#allocation2 + $0x720] ss:$16 sps:$4 sm:$0xff]  }
 0x147   : > { %2163 = vmatprep.mubr.bf16.mxu0 %v4382_v0  ;;  %2214 = vmatprep.mubr.bf16.mxu1 %v4382_v0 }
 0x149   : > { %2138 = vmatpush1.bf16.msra.mxu0 %v4165_v43  ;;  %2189 = vmatpush1.bf16.msra.mxu1 %v4168_v45  ;;  %v4252_v43 = vld [vmem:[#allocation2 + $0x728] ss:$16 sps:$4 sm:$0xff]   ;;  %v4257_v45 = vld [vmem:[#allocation2 + $0x744] ss:$16 sps:$4 sm:$0xff]  }
 0x14a   : > { %2139 = vmatprep.subr.bf16.mxu0 %v4173_v46  ;;  %2190 = vmatprep.subr.bf16.mxu1 %v4176_v47  ;;  %v4260_v46 = vld [vmem:[#allocation2 + $0x74c] ss:$16 sps:$4 sm:$0xff]   ;;  %v4255_v47 = vld [vmem:[#allocation2 + $0x740] ss:$16 sps:$4 sm:$0xff]  }
 0x14d   : > { %2140 = vmatpush1.bf16.msra.mxu0 %v4171_v51  ;;  %2191 = vmatpush1.bf16.msra.mxu1 %v4174_v52  ;;  %v4258_v51 = vld [vmem:[#allocation2 + $0x748] ss:$16 sps:$4 sm:$0xff]   ;;  %v4263_v52 = vld [vmem:[#allocation2 + $0x764] ss:$16 sps:$4 sm:$0xff]  }
 0x14e   : > { %2141 = vmatprep.subr.bf16.mxu0 %v4179_v53  ;;  %2192 = vmatprep.subr.bf16.mxu1 %v4182_v41  ;;  %v4261_v53 = vld [vmem:[#allocation2 + $0x760] ss:$16 sps:$4 sm:$0xff]   ;;  %v4264_v41 = vld [vmem:[#allocation2 + $0x768] ss:$16 sps:$4 sm:$0xff]  }
 0x151   : > { %2142 = vmatpush1.bf16.msra.mxu0 %v4177_v54  ;;  %2193 = vmatpush1.bf16.msra.mxu1 %v4180_v11  ;;  %v4269_v54 = vld [vmem:[#allocation2 + $0x784] ss:$16 sps:$4 sm:$0xff]   ;;  %v4272_v11 = vld [vmem:[#allocation2 + $0x78c] ss:$16 sps:$4 sm:$0xff]  }
 0x152   : > { %2143 = vmatprep.subr.bf16.mxu0 %v4185_v55  ;;  %2194 = vmatprep.subr.bf16.mxu1 %v4188_v56  ;;  %v4267_v55 = vld [vmem:[#allocation2 + $0x780] ss:$16 sps:$4 sm:$0xff]   ;;  %v4270_v56 = vld [vmem:[#allocation2 + $0x788] ss:$16 sps:$4 sm:$0xff]  }
 0x155   : > { %2144 = vmatpush1.bf16.msra.mxu0 %v4183_v57  ;;  %2195 = vmatpush1.bf16.msra.mxu1 %v4186_v58  ;;  %v4275_v57 = vld [vmem:[#allocation2 + $0x7a4] ss:$16 sps:$4 sm:$0xff]   ;;  %v4273_v58 = vld [vmem:[#allocation2 + $0x7a0] ss:$16 sps:$4 sm:$0xff]  }
 0x156   : > { %2145 = vmatprep.subr.bf16.mxu0 %v4191_v59  ;;  %2196 = vmatprep.subr.bf16.mxu1 %v4194_v60  ;;  %v4276_v59 = vld [vmem:[#allocation2 + $0x7a8] ss:$16 sps:$4 sm:$0xff]   ;;  %v4281_v60 = vld [vmem:[#allocation2 + $0x7c4] ss:$16 sps:$4 sm:$0xff]  }
 0x159   : > { %2146 = vmatpush1.bf16.msra.mxu0 %v4189_v61  ;;  %2197 = vmatpush1.bf16.msra.mxu1 %v4192_v10  ;;  %v4284_v61 = vld [vmem:[#allocation2 + $0x7cc] ss:$16 sps:$4 sm:$0xff]   ;;  %v4279_v10 = vld [vmem:[#allocation2 + $0x7c0] ss:$16 sps:$4 sm:$0xff]  }
 0x15a   : > { %2447 = vmatprep.subr.bf16.mxu0 %v4197_v62  ;;  %2498 = vmatprep.subr.bf16.mxu1 %v4200_v63  ;;  %v4282_v62 = vld [vmem:[#allocation2 + $0x7c8] ss:$16 sps:$4 sm:$0xff]   ;;  %v4287_v63 = vld [vmem:[#allocation2 + $0x7e4] ss:$16 sps:$4 sm:$0xff]  }
 0x15c   : > { %2164 = vmatmul.mubr.bf16.vlgmr.msra.gmra.mrb[0].mxu0 %v4563_v44  ;;  %2215 = vmatmul.mubr.bf16.vlgmr.msra.gmra.mrb[0].mxu1 %v4563_v44  ;;  %v4218_v44 = vld [vmem:[#allocation2 + $0x66c] ss:$16 sps:$4 sm:$0xff]  }
 0x15d   : > { %2448 = vmatpush1.bf16.msra.mxu0 %v4195_v1  ;;  %2499 = vmatpush1.bf16.msra.mxu1 %v4198_v2  ;;  %v4290_v1 = vld [vmem:[#allocation2 + $0x7ec] ss:$16 sps:$4 sm:$0xff]   ;;  %v4285_v2 = vld [vmem:[#allocation2 + $0x7e0] ss:$16 sps:$4 sm:$0xff]  }
 0x15e   : > { %2449 = vmatprep.subr.bf16.mxu0 %v4203_v34  ;;  %2500 = vmatprep.subr.bf16.mxu1 %v4206_v3  ;;  %v4288_v34 = vld [vmem:[#allocation2 + $0x7e8] ss:$16 sps:$4 sm:$0xff]   ;;  %v4293_v3 = vld [vmem:[#allocation2 + $0x804] ss:$16 sps:$4 sm:$0xff]  }
 0x15f   : > { %2173 = vmatprep.mubr.bf16.mxu0 %v4382_v0  ;;  %2224 = vmatprep.mubr.bf16.mxu1 %v4382_v0 }
 0x161   : > { %2450 = vmatpush1.bf16.msra.mxu0 %v4201_v4  ;;  %2501 = vmatpush1.bf16.msra.mxu1 %v4204_v5  ;;  %v4296_v4 = vld [vmem:[#allocation2 + $0x80c] ss:$16 sps:$4 sm:$0xff]   ;;  %v4291_v5 = vld [vmem:[#allocation2 + $0x800] ss:$16 sps:$4 sm:$0xff]  }
 0x162   : > { %2451 = vmatprep.subr.bf16.mxu0 %v4209_v6  ;;  %2502 = vmatprep.subr.bf16.mxu1 %v4212_v12  ;;  %v4294_v6 = vld [vmem:[#allocation2 + $0x808] ss:$16 sps:$4 sm:$0xff]   ;;  %v4299_v12 = vld [vmem:[#allocation2 + $0x824] ss:$16 sps:$4 sm:$0xff]  }
 0x164   : > { %2174 = vmatmul.mubr.bf16.gmra.mrb[4].mxu0 %v4553_v38  ;;  %2225 = vmatmul.mubr.bf16.gmra.mrb[4].mxu1 %v4553_v38  ;;  %v4230_v38 = vld [vmem:[#allocation2 + $0x6ac] ss:$16 sps:$4 sm:$0xff]  }
 0x165   : > { %2452 = vmatpush1.bf16.msra.mxu0 %v4207_v13  ;;  %2503 = vmatpush1.bf16.msra.mxu1 %v4210_v14  ;;  %v4302_v13 = vld [vmem:[#allocation2 + $0x82c] ss:$16 sps:$4 sm:$0xff]   ;;  %v4297_v14 = vld [vmem:[#allocation2 + $0x820] ss:$16 sps:$4 sm:$0xff]  }
 0x166   : > { %2453 = vmatprep.subr.bf16.mxu0 %v4215_v25  ;;  %2504 = vmatprep.subr.bf16.mxu1 %v4218_v44  ;;  %v4300_v25 = vld [vmem:[#allocation2 + $0x828] ss:$16 sps:$4 sm:$0xff]   ;;  %v4305_v44 = vld [vmem:[#allocation2 + $0x844] ss:$16 sps:$4 sm:$0xff]  }
 0x167   : > { %2479 = vmatprep.mubr.bf16.mxu0 %v4382_v0  ;;  %2530 = vmatprep.mubr.bf16.mxu1 %v4382_v0 }
 0x169   : > { %2454 = vmatpush1.bf16.msra.mxu0 %v4213_v16  ;;  %2505 = vmatpush1.bf16.msra.mxu1 %v4216_v17  ;;  %v4308_v16 = vld [vmem:[#allocation2 + $0x84c] ss:$16 sps:$4 sm:$0xff]   ;;  %v4303_v17 = vld [vmem:[#allocation2 + $0x840] ss:$16 sps:$4 sm:$0xff]  }
 0x16a   : > { %2455 = vmatprep.subr.bf16.mxu0 %v4221_v18  ;;  %2506 = vmatprep.subr.bf16.mxu1 %v4224_v20  ;;  %v4306_v18 = vld [vmem:[#allocation2 + $0x848] ss:$16 sps:$4 sm:$0xff]   ;;  %v4311_v20 = vld [vmem:[#allocation2 + $0x864] ss:$16 sps:$4 sm:$0xff]  }
 0x16d   : > { %2456 = vmatpush1.bf16.msra.mxu0 %v4219_v21  ;;  %2507 = vmatpush1.bf16.msra.mxu1 %v4222_v22  ;;  %v4309_v21 = vld [vmem:[#allocation2 + $0x860] ss:$16 sps:$4 sm:$0xff]   ;;  %v4312_v22 = vld [vmem:[#allocation2 + $0x868] ss:$16 sps:$4 sm:$0xff]  }
 0x16e   : > { %2457 = vmatprep.subr.bf16.mxu0 %v4227_v23  ;;  %2508 = vmatprep.subr.bf16.mxu1 %v4230_v38  ;;  %v4317_v23 = vld [vmem:[#allocation2 + $0x884] ss:$16 sps:$4 sm:$0xff]   ;;  %v4320_v38 = vld [vmem:[#allocation2 + $0x88c] ss:$16 sps:$4 sm:$0xff]  }
 0x171   : > { %2458 = vmatpush1.bf16.msra.mxu0 %v4225_v24  ;;  %2509 = vmatpush1.bf16.msra.mxu1 %v4228_v26  ;;  %v4315_v24 = vld [vmem:[#allocation2 + $0x880] ss:$16 sps:$4 sm:$0xff]   ;;  %v4318_v26 = vld [vmem:[#allocation2 + $0x888] ss:$16 sps:$4 sm:$0xff]  }
 0x172   : > { %2459 = vmatprep.subr.bf16.mxu0 %v4233_v27  ;;  %2510 = vmatprep.subr.bf16.mxu1 %v4236_v29  ;;  %v4323_v27 = vld [vmem:[#allocation2 + $0x8a4] ss:$16 sps:$4 sm:$0xff]   ;;  %v4321_v29 = vld [vmem:[#allocation2 + $0x8a0] ss:$16 sps:$4 sm:$0xff]  }
 0x175   : > { %2460 = vmatpush1.bf16.msra.mxu0 %v4231_v30  ;;  %2511 = vmatpush1.bf16.msra.mxu1 %v4234_v28  ;;  %v4324_v30 = vld [vmem:[#allocation2 + $0x8a8] ss:$16 sps:$4 sm:$0xff]   ;;  %v4329_v28 = vld [vmem:[#allocation2 + $0x8c4] ss:$16 sps:$4 sm:$0xff]  }
 0x176   : > { %2461 = vmatprep.subr.bf16.mxu0 %v4239_v31  ;;  %2512 = vmatprep.subr.bf16.mxu1 %v4242_v32  ;;  %v4332_v31 = vld [vmem:[#allocation2 + $0x8cc] ss:$16 sps:$4 sm:$0xff]   ;;  %v4327_v32 = vld [vmem:[#allocation2 + $0x8c0] ss:$16 sps:$4 sm:$0xff]  }
 0x179   : > { %2462 = vmatpush1.bf16.msra.mxu0 %v4237_v33  ;;  %2513 = vmatpush1.bf16.msra.mxu1 %v4240_v35  ;;  %v4330_v33 = vld [vmem:[#allocation2 + $0x8c8] ss:$16 sps:$4 sm:$0xff]   ;;  %v4335_v35 = vld [vmem:[#allocation2 + $0x8e4] ss:$16 sps:$4 sm:$0xff]  }
 0x17a   : > { %2773 = vmatprep.subr.bf16.mxu0 %v4245_v36  ;;  %2824 = vmatprep.subr.bf16.mxu1 %v4248_v37  ;;  %v4338_v36 = vld [vmem:[#allocation2 + $0x8ec] ss:$16 sps:$4 sm:$0xff]   ;;  %v4333_v37 = vld [vmem:[#allocation2 + $0x8e0] ss:$16 sps:$4 sm:$0xff]  }
 0x17c   : > { %2480 = vmatmul.mubr.bf16.vlgmr.msra.gmra.mrb[0].mxu0 %v4570_v49  ;;  %2531 = vmatmul.mubr.bf16.vlgmr.msra.gmra.mrb[0].mxu1 %v4570_v49  ;;  %v4266_v49 = vld [vmem:[#allocation2 + $0x76c] ss:$16 sps:$4 sm:$0xff]  }
 0x17d   : > { %2774 = vmatpush1.bf16.msra.mxu0 %v4243_v39  ;;  %2825 = vmatpush1.bf16.msra.mxu1 %v4246_v19  ;;  %v4336_v39 = vld [vmem:[#allocation2 + $0x8e8] ss:$16 sps:$4 sm:$0xff]   ;;  %v3208_v19 = vpop.permute.xlu1 %3207 }
 0x17e   : > { %2775 = vmatprep.subr.bf16.mxu0 %v4251_v40  ;;  %2826 = vmatprep.subr.bf16.mxu1 %v4254_v42  ;;  %v3213_v40 = vpop.permute.xlu0 %3212 }
 0x17f   : > { %2489 = vmatprep.mubr.bf16.mxu0 %v4382_v0  ;;  %2540 = vmatprep.mubr.bf16.mxu1 %v4382_v0 }
 0x181   : > { %2776 = vmatpush1.bf16.msra.mxu0 %v4249_v48  ;;  %2827 = vmatpush1.bf16.msra.mxu1 %v4252_v43 }
 0x182   : > { %2777 = vmatprep.subr.bf16.mxu0 %v4257_v45  ;;  %2828 = vmatprep.subr.bf16.mxu1 %v4260_v46 }
 0x184   : > { %2490 = vmatmul.mubr.bf16.gmra.mrb[4].mxu0 %v4573_v50  ;;  %2541 = vmatmul.mubr.bf16.gmra.mrb[4].mxu1 %v4573_v50  ;;  %v4278_v50 = vld [vmem:[#allocation2 + $0x7ac] ss:$16 sps:$4 sm:$0xff]  }
 0x185   : > { %2778 = vmatpush1.bf16.msra.mxu0 %v4255_v47  ;;  %2829 = vmatpush1.bf16.msra.mxu1 %v4258_v51 }
 0x186   : > { %2779 = vmatprep.subr.bf16.mxu0 %v4263_v52  ;;  %2830 = vmatprep.subr.bf16.mxu1 %v4266_v49 }
 0x187   : > { %2805 = vmatprep.mubr.bf16.mxu0 %v4382_v0  ;;  %2856 = vmatprep.mubr.bf16.mxu1 %v4382_v0 }
 0x189   : > { %2780 = vmatpush1.bf16.msra.mxu0 %v4261_v53  ;;  %2831 = vmatpush1.bf16.msra.mxu1 %v4264_v41 }
 0x18a   : > { %2781 = vmatprep.subr.bf16.mxu0 %v4269_v54  ;;  %2832 = vmatprep.subr.bf16.mxu1 %v4272_v11 }
 0x18d   : > { %2782 = vmatpush1.bf16.msra.mxu0 %v4267_v55  ;;  %2833 = vmatpush1.bf16.msra.mxu1 %v4270_v56 }
 0x18e   : > { %2783 = vmatprep.subr.bf16.mxu0 %v4275_v57  ;;  %2834 = vmatprep.subr.bf16.mxu1 %v4278_v50 }
 0x191   : > { %2784 = vmatpush1.bf16.msra.mxu0 %v4273_v58  ;;  %2835 = vmatpush1.bf16.msra.mxu1 %v4276_v59 }
 0x192   : > { %2785 = vmatprep.subr.bf16.mxu0 %v4281_v60  ;;  %2836 = vmatprep.subr.bf16.mxu1 %v4284_v61 }
 0x195   : > { %2786 = vmatpush1.bf16.msra.mxu0 %v4279_v10  ;;  %2837 = vmatpush1.bf16.msra.mxu1 %v4282_v62 }
 0x196   : > { %2787 = vmatprep.subr.bf16.mxu0 %v4287_v63  ;;  %2838 = vmatprep.subr.bf16.mxu1 %v4290_v1 }
 0x199   : > { %2788 = vmatpush1.bf16.msra.mxu0 %v4285_v2  ;;  %2839 = vmatpush1.bf16.msra.mxu1 %v4288_v34  ;;  %v3218_v2 = vpop.permute.xlu1 %3217 }
 0x19a   : > { %3088 = vmatprep.subr.bf16.mxu0 %v4293_v3  ;;  %3139 = vmatprep.subr.bf16.mxu1 %v4296_v4 }
 0x19c   : > { %2806 = vmatmul.mubr.bf16.vlgmr.msra.gmra.mrb[0].mxu0 %v4592_v9  ;;  %2857 = vmatmul.mubr.bf16.vlgmr.msra.gmra.mrb[0].mxu1 %v4592_v9  ;;  %v4314_v9 = vld [vmem:[#allocation2 + $0x86c] ss:$16 sps:$4 sm:$0xff]  }
 0x19d   : > { %3089 = vmatpush1.bf16.msra.mxu0 %v4291_v5  ;;  %3140 = vmatpush1.bf16.msra.mxu1 %v4294_v6 }
 0x19e   : > { %3090 = vmatprep.subr.bf16.mxu0 %v4299_v12  ;;  %3141 = vmatprep.subr.bf16.mxu1 %v4302_v13 }
 0x19f   : > { %2815 = vmatprep.mubr.bf16.mxu0 %v4382_v0  ;;  %2866 = vmatprep.mubr.bf16.mxu1 %v4382_v0 }
 0x1a1   : > { %3091 = vmatpush1.bf16.msra.mxu0 %v4297_v14  ;;  %3142 = vmatpush1.bf16.msra.mxu1 %v4300_v25 }
 0x1a2   : > { %3092 = vmatprep.subr.bf16.mxu0 %v4305_v44  ;;  %3143 = vmatprep.subr.bf16.mxu1 %v4308_v16 }
 0x1a4   : > { %2816 = vmatmul.mubr.bf16.gmra.mrb[4].mxu0 %v4595_v15  ;;  %2867 = vmatmul.mubr.bf16.gmra.mrb[4].mxu1 %v4595_v15  ;;  %v4326_v15 = vld [vmem:[#allocation2 + $0x8ac] ss:$16 sps:$4 sm:$0xff]  }
 0x1a5   : > { %3093 = vmatpush1.bf16.msra.mxu0 %v4303_v17  ;;  %3144 = vmatpush1.bf16.msra.mxu1 %v4306_v18  ;;  %v4383_v17 = vmov 1983009808  }
 0x1a6   : > { %3094 = vmatprep.subr.bf16.mxu0 %v4311_v20  ;;  %3145 = vmatprep.subr.bf16.mxu1 %v4314_v9  ;;  %v4675_v18 = vunpack.c.l.s4 %v4383_v17  ;;  %v3334_v20 = vlaneseq }
 0x1a7   : > { %3120 = vmatprep.mubr.bf16.mxu0 %v4382_v0  ;;  %3171 = vmatprep.mubr.bf16.mxu1 %v4382_v0 }
 0x1a9   : > { %3095 = vmatpush1.bf16.msra.mxu0 %v4309_v21  ;;  %3146 = vmatpush1.bf16.msra.mxu1 %v4312_v22 }
 0x1aa   : > { %3096 = vmatprep.subr.bf16.mxu0 %v4317_v23  ;;  %3147 = vmatprep.subr.bf16.mxu1 %v4320_v38 }
 0x1ad   : > { %3097 = vmatpush1.bf16.msra.mxu0 %v4315_v24  ;;  %3148 = vmatpush1.bf16.msra.mxu1 %v4318_v26 }
 0x1ae   : > { %3098 = vmatprep.subr.bf16.mxu0 %v4323_v27  ;;  %3149 = vmatprep.subr.bf16.mxu1 %v4326_v15 }
 0x1b1   : > { %3099 = vmatpush1.bf16.msra.mxu0 %v4321_v29  ;;  %3150 = vmatpush1.bf16.msra.mxu1 %v4324_v30 }
 0x1b2   : > { %3100 = vmatprep.subr.bf16.mxu0 %v4329_v28  ;;  %3151 = vmatprep.subr.bf16.mxu1 %v4332_v31 }
 0x1b5   : > { %3101 = vmatpush1.bf16.msra.mxu0 %v4327_v32  ;;  %3152 = vmatpush1.bf16.msra.mxu1 %v4330_v33 }
 0x1b6   : > { %3102 = vmatprep.subr.bf16.mxu0 %v4335_v35  ;;  %3153 = vmatprep.subr.bf16.mxu1 %v4338_v36 }
 0x1b9   : > { %3103 = vmatpush1.bf16.msra.mxu0 %v4333_v37  ;;  %3154 = vmatpush1.bf16.msra.mxu1 %v4336_v39 }
 0x1bc   : > { %3121 = vmatmul.mubr.bf16.vlgmr.msra.gmra.mrb[0].mxu0 %v4586_v7  ;;  %3172 = vmatmul.mubr.bf16.vlgmr.msra.gmra.mrb[0].mxu1 %v4586_v7 }
 0x1bd   : > { %3130 = vmatprep.mubr.bf16.mxu0 %v4382_v0  ;;  %3181 = vmatprep.mubr.bf16.mxu1 %v4382_v0 }
 0x1c4   : > { %3131 = vmatmul.mubr.bf16.gmra.mrb[4].mxu0 %v4589_v8  ;;  %3182 = vmatmul.mubr.bf16.gmra.mrb[4].mxu1 %v4589_v8 }
 0x28f   : > { %v3122_v42 = vpop.f32.mrb[0].mxu0  ;;  %v3173_v7 = vpop.f32.mrb[0].mxu1 }
 0x290   : > { %v3220_v48 = vmul.f32 %v3208_v19, %v3122_v42  ;;  %v3222_v43 = vmul.f32 %v3208_v19, %v3173_v7  ;;  %v3124_v0 = vpop.f32.mrb[1].mxu0  ;;  %v3175_v45 = vpop.f32.mrb[1].mxu1 }
 0x291   : > { %v3221_v46 = vmul.f32 %v3208_v19, %v3124_v0  ;;  %v3223_v8 = vmul.f32 %v3208_v19, %v3175_v45  ;;  %v3126_v47 = vpop.f32.mrb[2].mxu0  ;;  %v3177_v51 = vpop.f32.mrb[2].mxu1 }
 0x292   : > { %3232 = vst [vmem:[%s4665_s27] sm:$0xff] %v3220_v48  ;;  %v3276_v52 = vmul.f32 %v3220_v48, %v3220_v48  ;;  %3234 = vst [vmem:[%s4665_s27 + $0x10] sm:$0xff] %v3222_v43  ;;  %v3278_v49 = vmul.f32 %v3222_v43, %v3222_v43  ;;  %v3224_v53 = vmul.f32 %v3213_v40, %v3126_v47  ;;  %v3128_v54 = vpop.f32.mrb[3].mxu0  ;;  %v3179_v11 = vpop.f32.mrb[3].mxu1 }
 0x293   : > { %v3226_v41 = vmul.f32 %v3213_v40, %v3177_v51  ;;  %3233 = vst [vmem:[%s4665_s27 + $0x8] sm:$0xff] %v3221_v46  ;;  %v3277_v55 = vmul.f32 %v3221_v46, %v3221_v46  ;;  %3235 = vst [vmem:[%s4665_s27 + $0x18] sm:$0xff] %v3223_v8  ;;  %v3279_v56 = vmul.f32 %v3223_v8, %v3223_v8 }
 0x294   : > { %v3225_v57 = vmul.f32 %v3213_v40, %v3128_v54  ;;  %v3227_v50 = vmul.f32 %v3213_v40, %v3179_v11  ;;  %3236 = vst [vmem:[%s4665_s27 + $0x20] sm:$0xff] %v3224_v53  ;;  %v3244_v58 = vadd.f32 %v3224_v53, %v3220_v48  ;;  %v3280_v59 = vmul.f32 %v3224_v53, %v3224_v53 }
 0x295   : > { %3238 = vst [vmem:[%s4665_s27 + $0x30] sm:$0xff] %v3226_v41  ;;  %v3260_v60 = vadd.f32 %v3226_v41, %v3222_v43  ;;  %v3282_v61 = vmul.f32 %v3226_v41, %v3226_v41 }
 0x296   : > { %3237 = vst [vmem:[%s4665_s27 + $0x28] sm:$0xff] %v3225_v57  ;;  %v3252_v10 = vadd.f32 %v3225_v57, %v3221_v46  ;;  %v3281_v62 = vmul.f32 %v3225_v57, %v3225_v57  ;;  %3239 = vst [vmem:[%s4665_s27 + $0x38] sm:$0xff] %v3227_v50  ;;  %v3268_v63 = vadd.f32 %v3227_v50, %v3223_v8 }
 0x297   : > { %v3283_v1 = vmul.f32 %v3227_v50, %v3227_v50  ;;  %v3288_v34 = vadd.f32 %v3280_v59, %v3276_v52  ;;  %v3304_v3 = vadd.f32 %v3282_v61, %v3278_v49  ;;  %v3132_v6 = vpop.f32.mrb[4].mxu0  ;;  %v3183_v12 = vpop.f32.mrb[4].mxu1 }
 0x298   : > { %v3296_v4 = vadd.f32 %v3281_v62, %v3277_v55  ;;  %v3228_v13 = vmul.f32 %v3218_v2, %v3132_v6  ;;  %v3230_v14 = vmul.f32 %v3218_v2, %v3183_v12  ;;  %v3134_v25 = vpop.f32.mrb[5].mxu0  ;;  %v3185_v44 = vpop.f32.mrb[5].mxu1  ;;  %v3333_v12 = vunpack.c.0.s8 %v4675_v18 }
 0x299   : > { %v3312_v5 = vadd.f32 %v3283_v1, %v3279_v56  ;;  %v3229_v16 = vmul.f32 %v3218_v2, %v3134_v25  ;;  %v3231_v9 = vmul.f32 %v3218_v2, %v3185_v44  ;;  %v3136_v21 = vpop.f32.mrb[6].mxu0  ;;  %v3187_v22 = vpop.f32.mrb[6].mxu1 }
 0x29a   : > { %3240 = vst [vmem:[%s4665_s27 + $0x40] sm:$0xff] %v3228_v13  ;;  %v3245_v23 = vadd.f32 %v3244_v58, %v3228_v13  ;;  %v3284_v38 = vmul.f32 %v3228_v13, %v3228_v13  ;;  %3242 = vst [vmem:[%s4665_s27 + $0x50] sm:$0xff] %v3230_v14  ;;  %v3261_v24 = vadd.f32 %v3260_v60, %v3230_v14  ;;  %v3137_v27 = vpop.f32.mrb[7].mxu0  ;;  %v3188_v15 = vpop.f32.mrb[7].mxu1  ;;  %v3335_v13 = vshrl.u32 %v3334_v20, 7 }
 0x29b   : > { %v3286_v26 = vmul.f32 %v3230_v14, %v3230_v14  ;;  %3241 = vst [vmem:[%s4665_s27 + $0x48] sm:$0xff] %v3229_v16  ;;  %v3253_v29 = vadd.f32 %v3252_v10, %v3229_v16  ;;  %v3285_v30 = vmul.f32 %v3229_v16, %v3229_v16  ;;  %3243 = vst [vmem:[%s4665_s27 + $0x58] sm:$0xff] %v3231_v9 }
 0x29c   : > { %v3269_v28 = vadd.f32 %v3268_v63, %v3231_v9  ;;  %v3287_v31 = vmul.f32 %v3231_v9, %v3231_v9  ;;  %v3246_v32 = vrot.slane %v3245_v23, 4  ;;  %v3289_v33 = vadd.f32 %v3288_v34, %v3284_v38 }
 0x29d   : > { %v3262_v35 = vrot.slane %v3261_v24, 4  ;;  %v3305_v36 = vadd.f32 %v3304_v3, %v3286_v26  ;;  %v3254_v37 = vrot.slane %v3253_v29, 4  ;;  %v3297_v39 = vadd.f32 %v3296_v4, %v3285_v30 }
 0x29e   : > { %v3270_v19 = vrot.slane %v3269_v28, 4  ;;  %v3313_v40 = vadd.f32 %v3312_v5, %v3287_v31  ;;  %v3247_v42 = vadd.f32 %v3246_v32, %v3245_v23  ;;  %v3290_v7 = vrot.slane %v3289_v33, 4 }
 0x29f   : > { %v3263_v48 = vadd.f32 %v3262_v35, %v3261_v24  ;;  %v3306_v43 = vrot.slane %v3305_v36, 4  ;;  %v3255_v0 = vadd.f32 %v3254_v37, %v3253_v29  ;;  %v3298_v45 = vrot.slane %v3297_v39, 4 }
 0x2a0   : > { %v3271_v46 = vadd.f32 %v3270_v19, %v3269_v28  ;;  %v3314_v8 = vrot.slane %v3313_v40, 4  ;;  %v3248_v47 = vrot.slane %v3247_v42, 2  ;;  %v3291_v51 = vadd.f32 %v3290_v7, %v3289_v33 }
 0x2a1   : > { %v3264_v52 = vrot.slane %v3263_v48, 2  ;;  %v3307_v49 = vadd.f32 %v3306_v43, %v3305_v36  ;;  %v3256_v53 = vrot.slane %v3255_v0, 2  ;;  %v3299_v41 = vadd.f32 %v3298_v45, %v3297_v39 }
 0x2a2   : > { %v3272_v54 = vrot.slane %v3271_v46, 2  ;;  %v3315_v11 = vadd.f32 %v3314_v8, %v3313_v40  ;;  %v3249_v55 = vadd.f32 %v3248_v47, %v3247_v42  ;;  %v3292_v56 = vrot.slane %v3291_v51, 2 }
 0x2a3   : > { %v3265_v57 = vadd.f32 %v3264_v52, %v3263_v48  ;;  %v3308_v50 = vrot.slane %v3307_v49, 2  ;;  %v3257_v58 = vadd.f32 %v3256_v53, %v3255_v0  ;;  %v3300_v59 = vrot.slane %v3299_v41, 2 }
 0x2a4   : > { %v3273_v60 = vadd.f32 %v3272_v54, %v3271_v46  ;;  %v3316_v61 = vrot.slane %v3315_v11, 2  ;;  %v3250_v10 = vrot.slane %v3249_v55, 1  ;;  %v3293_v62 = vadd.f32 %v3292_v56, %v3291_v51 }
 0x2a5   : > { %v3266_v63 = vrot.slane %v3265_v57, 1  ;;  %v3309_v1 = vadd.f32 %v3308_v50, %v3307_v49  ;;  %v3258_v2 = vrot.slane %v3257_v58, 1  ;;  %v3301_v34 = vadd.f32 %v3300_v59, %v3299_v41 }
 0x2a6   : > { %v3274_v3 = vrot.slane %v3273_v60, 1  ;;  %v3317_v4 = vadd.f32 %v3316_v61, %v3315_v11  ;;  %v3294_v5 = vrot.slane %v3293_v62, 1  ;;  %v3251_v44 = vadd.f32 %v3250_v10, %v3249_v55 }
 0x2a7   : > { %v3310_v6 = vrot.slane %v3309_v1, 1  ;;  %v3302_v14 = vrot.slane %v3301_v34, 1  ;;  %v3267_v17 = vadd.f32 %v3266_v63, %v3265_v57  ;;  %v3259_v21 = vadd.f32 %v3258_v2, %v3257_v58 }
 0x2a8   : > { %v3318_v25 = vrot.slane %v3317_v4, 1  ;;  %v3295_v16 = vadd.f32 %v3294_v5, %v3293_v62  ;;  %v3275_v23 = vadd.f32 %v3274_v3, %v3273_v60  ;;  %v3336_v27 = vsub.s32 %v3333_v12, %v3335_v13 }
 0x2a9   : > { %v3311_v9 = vadd.f32 %v3310_v6, %v3309_v1  ;;  %v3303_v22 = vadd.f32 %v3302_v14, %v3301_v34 }
 0x2aa   : > { %v3319_v38 = vadd.f32 %v3318_v25, %v3317_v4  ;;  %v3321_v24 = vsel %vm2920_vm7, %v3251_v44, %v3295_v16 }
 0x2ab   : > { %v3323_v26 = vsel %vm2920_vm7, %v3267_v17, %v3311_v9  ;;  %v3322_v15 = vsel %vm2920_vm7, %v3259_v21, %v3303_v22 }
 0x2ac   : > { %v3324_v18 = vsel %vm2920_vm7, %v3275_v23, %v3319_v38  ;;  %v3329_v20 = vcombine.low %v3321_v24, %v3322_v15 }
 0x2ad   : > { %v3330_v29 = vcombine.low %v3323_v26, %v3324_v18 }
 0x2ae   : > { %v3337_v30 = vrot.slane %v3329_v20, %v3336_v27 }
 0x2af   : > { %v3344_v28 = vrot.slane %v3330_v29, %v3336_v27 }
 0x2b1   : > { %v3345_v31 = vcombine.low %v3337_v30, %v3344_v28 }
 0x2b3   : > { %3347 = vst [vmem:[%s306_s8] sm:$0xff] %v3345_v31 }
 0x2b4 PF: > { %s19_s24 = sadd.s32 1, %s4377_s24  }
 0x2b5   : > { %p16_p3 = scmp.ge.s32.totalorder %s19_s24, 4  }
 0x2b7   :  { %18 = sbr.rel (!%p16_p3) target bundleno = 1 (0x1), region = 99 }
 0x2be   :  { %3385 = vsyncpa [#allocation3], 1 }
 0x2bf   :  { %3387 = vsyncpa [#allocation3 + $0x1], 1 }

// kernel: generator_forward.7
= control target key start
LH: loop header
LB: loop body
LE: loop exit
PB: predicated region body
PF: predicated region fallthrough
CT: control target
= control target key end

     0   :  { %s5964_s24 = smov 0   ;;  %s7400_s0 = inlined_call_operand.vmem [shape: f32[2,102,128], index: 0, kind: input, shape index: {}]   ;;  %s7401_s1 = inlined_call_operand.vmem [shape: f32[1,128], index: 1, kind: input, shape index: {}]   ;;  %s7402_s2 = inlined_call_operand.vmem [shape: f32[1,128], index: 2, kind: input, shape index: {}]   ;;  %s7403_s3 = inlined_call_operand.vmem [shape: f32[102,1], index: 3, kind: input, shape index: {}]   ;;  %s7404_s4 = inlined_call_operand.vmem [shape: f32[80,1], index: 4, kind: input, shape index: {}]   ;;  %s7405_s5 = inlined_call_operand.vmem [shape: bf16[9,128,512], index: 5, kind: input, shape index: {}]   ;;  %s7406_s6 = inlined_call_operand.vmem [shape: f32[2,80,512], index: 6, kind: output, shape index: {0}]   ;;  %s7407_s7 = inlined_call_operand.vmem [shape: f32[2,2,512], index: 7, kind: output, shape index: {1}]  }
   0x1 LB: > { %s4590_s25 = sadd.s32 4294967295, %s5920_s24   ;;  %p4594_p0 = scmp.ge.s32.totalorder %s5920_s24, 1  ;;  %s5920_s24 = sphi %s5964_s24, %s18_s24  }
   0x2   : > { %p240_p1 = scmp.lt.s32.totalorder %s5920_s24, 3 }
   0x4   : > { %p241_p2 = pnand %p4594_p0, %p240_p1 }
   0x5   : > { %v361_v0 = vld [vmem:[%s7403_s3 + $0x10] sm:$0xff] (!%p241_p2)  ;;  %v359_v1 = vld [vmem:[%s7403_s3] sm:$0xff] (!%p241_p2)  ;;  %v5922_v2 = vmov (!%p241_p2), 0   ;;  %v362_v3 = vld [vmem:[%s7403_s3 + $0x18] sm:$0xff] (!%p241_p2)  ;;  %p277_p3 = scmp.lt.s32.totalorder (!%p241_p2), %s4590_s25, 1  ;;  %vm1263_vm0 = vcmask (!%p241_p2), 1046528  }
   0x6   : > { %244 = sbr.rel (%p241_p2) target bundleno = 749 (0x2ed), region = 44  ;;  %5481 = vset.pattern.permute.xlu1 (!%p241_p2), %v5922_v2  ;;  %5480 = vset.pattern.permute.xlu0 (!%p241_p2), %v5922_v2  ;;  %v360_v4 = vld [vmem:[%s7403_s3 + $0x8] sm:$0xff] (!%p241_p2)  ;;  %v363_v6 = vld [vmem:[%s7403_s3 + $0x20] sm:$0xff] (!%p241_p2)  ;;  %v366_v8 = vld [vmem:[%s7403_s3 + $0x38] sm:$0xff] (!%p241_p2)  ;;  %vm1679_vm1 = vcmask (!%p241_p2), 1042432   ;;  %vm2525_vm4 = vcmask (!%p241_p2), 1041408  }
   0x7   : > { %384 = vperm.xlu1 (!%p241_p2), %5481, %v361_v0   ;;  %374 = vperm.xlu0 (!%p241_p2), %5480, %v359_v1   ;;  %v364_v5 = vld [vmem:[%s7403_s3 + $0x28] sm:$0xff] (!%p241_p2)  ;;  %v5482_v7 = vld [vmem:[%s7405_s5 + $0x104] ss:$16 sps:$4 sm:$0xff] (!%p241_p2)   ;;  %v5486_v11 = vld [vmem:[%s7405_s5 + $0x100] ss:$16 sps:$4 sm:$0xff] (!%p241_p2)   ;;  %vm2942_vm5 = vcmask (!%p241_p2), 1045504  }
   0x8   : > { %764 = vmatprep.mubr.bf16.mxu0 (!%p241_p2), %v5922_v2  ;;  %847 = vmatprep.mubr.bf16.mxu1 (!%p241_p2), %v5922_v2  ;;  %v365_v9 = vld [vmem:[%s7403_s3 + $0x30] sm:$0xff] (!%p241_p2)  ;;  %v5484_v10 = vld [vmem:[%s7405_s5 + $0x10c] ss:$16 sps:$4 sm:$0xff] (!%p241_p2)   ;;  %v5487_v12 = vld [vmem:[%s7405_s5 + $0x108] ss:$16 sps:$4 sm:$0xff] (!%p241_p2)   ;;  %vm3791_vm7 = vcmask (!%p241_p2), 1044480  }
   0x9   : > { %732 = vmatprep.subr.bf16.mxu0 (!%p241_p2), %v5482_v7  ;;  %815 = vmatprep.subr.bf16.mxu1 (!%p241_p2), %v5484_v10  ;;  %v5488_v13 = vld [vmem:[%s7405_s5 + $0x124] ss:$16 sps:$4 sm:$0xff] (!%p241_p2)   ;;  %v5490_v14 = vld [vmem:[%s7405_s5 + $0x12c] ss:$16 sps:$4 sm:$0xff] (!%p241_p2)   ;;  %v5492_v15 = vld [vmem:[%s7405_s5 + $0x120] ss:$16 sps:$4 sm:$0xff] (!%p241_p2)  }
   0xa   : > { %733 = vmatpush1.bf16.msra.mxu0 (!%p241_p2), %v5486_v11  ;;  %816 = vmatpush1.bf16.msra.mxu1 (!%p241_p2), %v5487_v12  ;;  %v5493_v16 = vld [vmem:[%s7405_s5 + $0x128] ss:$16 sps:$4 sm:$0xff] (!%p241_p2)   ;;  %v5494_v18 = vld [vmem:[%s7405_s5 + $0x144] ss:$16 sps:$4 sm:$0xff] (!%p241_p2)   ;;  %v5496_v19 = vld [vmem:[%s7405_s5 + $0x14c] ss:$16 sps:$4 sm:$0xff] (!%p241_p2)  }
   0xb   : > { %389 = vperm.xlu1 (!%p241_p2), %5481, %v362_v3   ;;  %379 = vperm.xlu0 (!%p241_p2), %5480, %v360_v4   ;;  %v368_v17 = vld [vmem:[%s7403_s3 + $0x48] sm:$0xff] (!%p241_p2)  ;;  %v367_v20 = vld [vmem:[%s7403_s3 + $0x40] sm:$0xff] (!%p241_p2)  ;;  %v370_v25 = vld [vmem:[%s7403_s3 + $0x58] sm:$0xff] (!%p241_p2)  ;;  %vm522_vm2 = vsmask.f32 (!%p241_p2), 7424  ;;  %vm4474_vm8 = vcmask (!%p241_p2), 1040384  }
   0xc   : > { %734 = vmatprep.subr.bf16.mxu0 (!%p241_p2), %v5488_v13  ;;  %817 = vmatprep.subr.bf16.mxu1 (!%p241_p2), %v5490_v14  ;;  %v5498_v21 = vld [vmem:[%s7405_s5 + $0x140] ss:$16 sps:$4 sm:$0xff] (!%p241_p2)   ;;  %v5499_v22 = vld [vmem:[%s7405_s5 + $0x148] ss:$16 sps:$4 sm:$0xff] (!%p241_p2)   ;;  %v5500_v23 = vld [vmem:[%s7405_s5 + $0x164] ss:$16 sps:$4 sm:$0xff] (!%p241_p2)  }
   0xd   : > { %v5502_v24 = vld [vmem:[%s7405_s5 + $0x16c] ss:$16 sps:$4 sm:$0xff]   ;;  %v369_v26 = vld [vmem:[%s7403_s3 + $0x50] sm:$0xff]  ;;  %v5505_v28 = vld [vmem:[%s7405_s5 + $0x168] ss:$16 sps:$4 sm:$0xff]   ;;  %s7409_s25 = smov (!%p277_p3, %s4590_s25), 1 }
   0xe   : > { %735 = vmatpush1.bf16.msra.mxu0 %v5492_v15  ;;  %818 = vmatpush1.bf16.msra.mxu1 %v5493_v16  ;;  %v5504_v27 = vld [vmem:[%s7405_s5 + $0x160] ss:$16 sps:$4 sm:$0xff]   ;;  %v5506_v29 = vld [vmem:[%s7405_s5 + $0x184] ss:$16 sps:$4 sm:$0xff]   ;;  %v5508_v30 = vld [vmem:[%s7405_s5 + $0x18c] ss:$16 sps:$4 sm:$0xff]  }
   0xf   : > { %399 = vperm.xlu1 %5481, %v364_v5   ;;  %394 = vperm.xlu0 %5480, %v363_v6   ;;  %v4174_v31 = vld [vmem:[%s7404_s4] sm:$0xff]  ;;  %v5511_v34 = vld [vmem:[%s7405_s5 + $0x188] ss:$16 sps:$4 sm:$0xff]   ;;  %v5514_v36 = vld [vmem:[%s7405_s5 + $0x1ac] ss:$16 sps:$4 sm:$0xff]   ;;  %s5468_s15 = smul.u32 104, %s7409_s25 }
  0x10   : > { %736 = vmatprep.subr.bf16.mxu0 %v5494_v18  ;;  %819 = vmatprep.subr.bf16.mxu1 %v5496_v19  ;;  %v371_v32 = vld [vmem:[%s7403_s3 + $0x60] sm:$0x3f]  ;;  %v4176_v37 = vld [vmem:[%s7404_s4 + $0x10] sm:$0xff]  ;;  %v4175_v38 = vld [vmem:[%s7404_s4 + $0x8] sm:$0xff]  ;;  %vm2095_vm3 = vsmask.f32 2304 }
  0x11   : > { %v5510_v33 = vld [vmem:[%s7405_s5 + $0x180] ss:$16 sps:$4 sm:$0xff]   ;;  %v5512_v35 = vld [vmem:[%s7405_s5 + $0x1a4] ss:$16 sps:$4 sm:$0xff]   ;;  %v5517_v40 = vld [vmem:[%s7405_s5 + $0x1a8] ss:$16 sps:$4 sm:$0xff]   ;;  %s6154_s13 = scalar_lea.vmem %s7400_s0, %s5468_s15 }
  0x12   : > { %737 = vmatpush1.bf16.msra.mxu0 %v5498_v21  ;;  %820 = vmatpush1.bf16.msra.mxu1 %v5499_v22  ;;  %v5516_v39 = vld [vmem:[%s7405_s5 + $0x1a0] ss:$16 sps:$4 sm:$0xff]   ;;  %v5518_v41 = vld [vmem:[%s7405_s5 + $0x1c4] ss:$16 sps:$4 sm:$0xff]   ;;  %v5520_v42 = vld [vmem:[%s7405_s5 + $0x1cc] ss:$16 sps:$4 sm:$0xff]  }
  0x13   : > { %409 = vperm.xlu1 %5481, %v366_v8   ;;  %404 = vperm.xlu0 %5480, %v365_v9   ;;  %v4178_v43 = vld [vmem:[%s7404_s4 + $0x20] sm:$0xff]  ;;  %v4177_v44 = vld [vmem:[%s7404_s4 + $0x18] sm:$0xff]  ;;  %v4180_v49 = vld [vmem:[%s7404_s4 + $0x30] sm:$0xff]  ;;  %vm3358_vm6 = vsmask.f32 5376  ;;  %s5469_s26 = smul.u32 320, %s7409_s25 }
  0x14   : > { %738 = vmatprep.subr.bf16.mxu0 %v5500_v23  ;;  %821 = vmatprep.subr.bf16.mxu1 %v5502_v24  ;;  %v5522_v45 = vld [vmem:[%s7405_s5 + $0x1c0] ss:$16 sps:$4 sm:$0xff]   ;;  %v5523_v46 = vld [vmem:[%s7405_s5 + $0x1c8] ss:$16 sps:$4 sm:$0xff]   ;;  %v5524_v47 = vld [vmem:[%s7405_s5 + $0x1e4] ss:$16 sps:$4 sm:$0xff]  }
  0x15   : > { %v5526_v48 = vld [vmem:[%s7405_s5 + $0x1ec] ss:$16 sps:$4 sm:$0xff]   ;;  %v5528_v51 = vld [vmem:[%s7405_s5 + $0x1e0] ss:$16 sps:$4 sm:$0xff]   ;;  %v5529_v52 = vld [vmem:[%s7405_s5 + $0x1e8] ss:$16 sps:$4 sm:$0xff]   ;;  %s7347_s29 = scalar_lea.vmem %s7406_s6, %s5469_s26 }
  0x16   : > { %739 = vmatpush1.bf16.msra.mxu0 %v5504_v27  ;;  %822 = vmatpush1.bf16.msra.mxu1 %v5505_v28  ;;  %v4179_v50 = vld [vmem:[%s7404_s4 + $0x28] sm:$0xff]  ;;  %v4182_v53 = vld [vmem:[%s7404_s4 + $0x40] sm:$0xff]  ;;  %v4181_v56 = vld [vmem:[%s7404_s4 + $0x38] sm:$0xff]  ;;  %s5147_s30 = sshll.u32 %s7409_s25, 3 }
  0x17   : > { %419 = vperm.xlu1 %5481, %v368_v17   ;;  %414 = vperm.xlu0 %5480, %v367_v20   ;;  %v5532_v54 = vld [vmem:[%s7405_s5 + $0x4] ss:$16 sps:$4 sm:$0xff]   ;;  %v5535_v55 = vld [vmem:[%s7405_s5 + $0xc] ss:$16 sps:$4 sm:$0xff]   ;;  %v4599_v57 = vld [vmem:[%s7401_s1] ss:$0 sm:$0xff]  ;;  %s291_s10 = scalar_lea.vmem %s7407_s7, %s5147_s30 }
  0x18   : > { %740 = vmatprep.subr.bf16.mxu0 %v5506_v29  ;;  %823 = vmatprep.subr.bf16.mxu1 %v5508_v30  ;;  %v305_v58 = vld [vmem:[%s6154_s13 + $0x60] sm:$0x3f]  ;;  %v4183_v62 = vld [vmem:[%s7404_s4 + $0x48] sm:$0xff]  ;;  %v295_v63 = vld [vmem:[%s6154_s13 + $0x10] sm:$0xff] }
  0x19   : > { %v325_v59 = vmul.f32 %v4599_v57, %v305_v58  ;;  %v6163_v60 = vld [vmem:[%s7402_s2] ss:$0 sm:$0xff]  ;;  %v296_v1 = vld [vmem:[%s6154_s13 + $0x18] sm:$0xff]  ;;  %v294_v3 = vld [vmem:[%s6154_s13 + $0x8] sm:$0xff]  ;;  %v315_v6 = vmul.f32 %v4599_v57, %v295_v63 }
  0x1a   : > { %741 = vmatpush1.bf16.msra.mxu0 %v5510_v33  ;;  %824 = vmatpush1.bf16.msra.mxu1 %v5511_v34  ;;  %v293_v0 = vld [vmem:[%s6154_s13] sm:$0xff]  ;;  %v298_v4 = vld [vmem:[%s6154_s13 + $0x28] sm:$0xff]  ;;  %v316_v8 = vmul.f32 %v4599_v57, %v296_v1  ;;  %v314_v9 = vmul.f32 %v4599_v57, %v294_v3  ;;  %v300_v12 = vld [vmem:[%s6154_s13 + $0x38] sm:$0xff] }
  0x1b   : > { %429 = vperm.xlu1 %5481, %v370_v25   ;;  %424 = vperm.xlu0 %5480, %v369_v26   ;;  %v6166_v61 = vadd.f32 %v6163_v60, %v325_v59  ;;  %v297_v5 = vld [vmem:[%s6154_s13 + $0x20] sm:$0xff]  ;;  %v313_v7 = vmul.f32 %v4599_v57, %v293_v0  ;;  %v318_v10 = vmul.f32 %v4599_v57, %v298_v4  ;;  %v299_v13 = vld [vmem:[%s6154_s13 + $0x30] sm:$0xff]  ;;  %v302_v18 = vld [vmem:[%s6154_s13 + $0x48] sm:$0xff] }
  0x1c   : > { %742 = vmatprep.subr.bf16.mxu0 %v5512_v35  ;;  %825 = vmatprep.subr.bf16.mxu1 %v5514_v36  ;;  %v317_v11 = vmul.f32 %v4599_v57, %v297_v5  ;;  %v335_v14 = vadd.f32 %v6163_v60, %v315_v6  ;;  %v336_v16 = vadd.f32 %v6163_v60, %v316_v8  ;;  %v301_v25 = vld [vmem:[%s6154_s13 + $0x40] sm:$0xff]  ;;  %v304_v30 = vld [vmem:[%s6154_s13 + $0x58] sm:$0xff] }
  0x1d   : > { %v333_v15 = vadd.f32 %v6163_v60, %v313_v7  ;;  %v334_v17 = vadd.f32 %v6163_v60, %v314_v9  ;;  %v338_v19 = vadd.f32 %v6163_v60, %v318_v10  ;;  %v320_v23 = vmul.f32 %v4599_v57, %v300_v12  ;;  %v5533_v4 = vld [vmem:[%s7405_s5 + $0x8] ss:$16 sps:$4 sm:$0xff]   ;;  %v5541_v12 = vld [vmem:[%s7405_s5 + $0x2c] ss:$16 sps:$4 sm:$0xff]  }
  0x1e   : > { %743 = vmatpush1.bf16.msra.mxu0 %v5516_v39  ;;  %826 = vmatpush1.bf16.msra.mxu1 %v5517_v40  ;;  %v337_v20 = vadd.f32 %v6163_v60, %v317_v11  ;;  %v319_v24 = vmul.f32 %v4599_v57, %v299_v13  ;;  %v348_v26 = vmax.f32 %v335_v14, 0.0  ;;  %v349_v28 = vmax.f32 %v336_v16, 0.0  ;;  %v5538_v11 = vld [vmem:[%s7405_s5 + $0x24] ss:$16 sps:$4 sm:$0xff]  }
  0x1f   : > { %4186 = vperm.xlu1 %5481, %v4174_v31   ;;  %434 = vperm.xlu0 %5480, %v371_v32   ;;  %v346_v27 = vmax.f32 %v333_v15, 0.0  ;;  %v347_v29 = vmax.f32 %v334_v17, 0.0  ;;  %v303_v31 = vld [vmem:[%s6154_s13 + $0x50] sm:$0xff]  ;;  %v322_v32 = vmul.f32 %v4599_v57, %v302_v18  ;;  %v351_v33 = vmax.f32 %v338_v19, 0.0 }
  0x20   : > { %744 = vmatprep.subr.bf16.mxu0 %v5518_v41  ;;  %827 = vmatprep.subr.bf16.mxu1 %v5520_v42  ;;  %v350_v34 = vmax.f32 %v337_v20, 0.0  ;;  %v321_v35 = vmul.f32 %v4599_v57, %v301_v25  ;;  %v339_v39 = vadd.f32 %v6163_v60, %v319_v24  ;;  %v324_v40 = vmul.f32 %v4599_v57, %v304_v30 }
  0x21   : > { %v323_v41 = vmul.f32 %v4599_v57, %v303_v31 }
  0x22   : > { %745 = vmatpush1.bf16.msra.mxu0 %v5522_v45  ;;  %828 = vmatpush1.bf16.msra.mxu1 %v5523_v46  ;;  %v342_v46 = vadd.f32 %v6163_v60, %v322_v32 }
  0x23   : > { %4196 = vperm.xlu1 %5481, %v4176_v37   ;;  %4191 = vperm.xlu0 %5480, %v4175_v38   ;;  %v340_v38 = vadd.f32 %v6163_v60, %v320_v23 }
  0x24   : > { %746 = vmatprep.subr.bf16.mxu0 %v5524_v47  ;;  %829 = vmatprep.subr.bf16.mxu1 %v5526_v48 }
  0x26   : > { %747 = vmatpush1.bf16.msra.mxu0 %v5528_v51  ;;  %830 = vmatpush1.bf16.msra.mxu1 %v5529_v52  ;;  %v353_v52 = vmax.f32 %v340_v38, 0.0  ;;  %v5544_v38 = vld [vmem:[%s7405_s5 + $0x44] ss:$16 sps:$4 sm:$0xff]  }
  0x27   : > { %4206 = vperm.xlu1 %5481, %v4178_v43   ;;  %4201 = vperm.xlu0 %5480, %v4177_v44  }
  0x28   : > { %1058 = vmatprep.subr.bf16.mxu0 %v5532_v54  ;;  %1141 = vmatprep.subr.bf16.mxu1 %v5535_v55  ;;  %v6198_v54 = vadd.f32 %v6163_v60, %v324_v40  ;;  %v6201_v55 = vadd.f32 %v6163_v60, %v323_v41 }
  0x2b   : > { %4216 = vperm.xlu1 %5481, %v4180_v49   ;;  %4211 = vperm.xlu0 %5480, %v4179_v50   ;;  %v341_v49 = vadd.f32 %v6163_v60, %v321_v35  ;;  %v5530_v60 = vld [vmem:[%s7405_s5] ss:$16 sps:$4 sm:$0xff]   ;;  %v357_v35 = vmax.f32 %v6198_v54, 0.0 }
  0x2d   : > { %v354_v5 = vmax.f32 %v341_v49, 0.0 }
  0x2f   : > { %4226 = vperm.xlu1 %5481, %v4182_v53   ;;  %4221 = vperm.xlu0 %5480, %v4181_v56   ;;  %v352_v53 = vmax.f32 %v339_v39, 0.0  ;;  %v5547_v39 = vld [vmem:[%s7405_s5 + $0x4c] ss:$16 sps:$4 sm:$0xff]  }
  0x33   : > { %4231 = vperm.xlu0 %5480, %v4183_v62   ;;  %v355_v62 = vmax.f32 %v342_v46, 0.0 }
  0x86   : > { %v385_v21 = vpop.permute.xlu1 %384  ;;  %v375_v22 = vpop.permute.xlu0 %374 }
  0x87   : > { %v439_v42 = vmul.f32 %v385_v21, %v348_v26  ;;  %v437_v43 = vmul.f32 %v375_v22, %v346_v27 }
  0x8a   : > { %v390_v36 = vpop.permute.xlu1 %389  ;;  %v380_v37 = vpop.permute.xlu0 %379 }
  0x8b   : > { %v440_v44 = vmul.f32 %v390_v36, %v349_v28  ;;  %v438_v45 = vmul.f32 %v380_v37, %v347_v29  ;;  %v5536_v29 = vld [vmem:[%s7405_s5 + $0x20] ss:$16 sps:$4 sm:$0xff]   ;;  %v356_v36 = vmax.f32 %v6201_v55, 0.0  ;;  %v5539_v37 = vld [vmem:[%s7405_s5 + $0x28] ss:$16 sps:$4 sm:$0xff]  }
  0x8d   : > { %v6192_v47 = vpack.c.bf16 %v440_v44, %v439_v42  ;;  %v6194_v48 = vpack.c.bf16 %v438_v45, %v437_v43  ;;  %v5542_v44 = vld [vmem:[%s7405_s5 + $0x40] ss:$16 sps:$4 sm:$0xff]   ;;  %v5545_v45 = vld [vmem:[%s7405_s5 + $0x48] ss:$16 sps:$4 sm:$0xff]  }
  0x8e   : > { %v400_v50 = vpop.permute.xlu1 %399  ;;  %v395_v51 = vpop.permute.xlu0 %394 }
  0x8f   : > { %v442_v56 = vmul.f32 %v400_v50, %v351_v33  ;;  %v441_v57 = vmul.f32 %v395_v51, %v350_v34  ;;  %v524_v58 = vshrl.u32 %v6194_v48, 16  ;;  %v526_v59 = vshll.u32 %v6194_v48, 16 }
  0x90   : > { %v6206_v63 = vshll.u32 %v6192_v47, 16  ;;  %v1264_v0 = vrot.slane %v6194_v48, 1  ;;  %v1265_v1 = vrot.slane %v6192_v47, 1  ;;  %v1680_v7 = vrot.slane %v6194_v48, 5 }
  0x91   : > { %v6210_v3 = vpack.c.bf16 %v442_v56, %v441_v57  ;;  %v528_v6 = vrot.slane %v526_v59, 1  ;;  %v6219_v10 = vrot.slane %v524_v58, 5  ;;  %v1681_v14 = vrot.slane %v6192_v47, 5 }
  0x92   : > { %v410_v8 = vpop.permute.xlu1 %409  ;;  %v405_v9 = vpop.permute.xlu0 %404  ;;  %v6228_v13 = vsel %vm1263_vm0, %v1264_v0, %v1265_v1  ;;  %v6231_v15 = vrot.slane %v526_v59, 6  ;;  %v533_v19 = vrot.slane %v6206_v63, 1  ;;  %v6235_v20 = vshrl.u32 %v6192_v47, 16 }
  0x93   : > { %v444_v16 = vmul.f32 %v410_v8, %v353_v52  ;;  %v443_v17 = vmul.f32 %v405_v9, %v352_v53  ;;  %v529_v18 = vor.u32 %v528_v6, %v524_v58  ;;  %v1267_v21 = vrot.slane %v6210_v3, 1  ;;  %v5550_v52 = vld [vmem:[%s7405_s5 + $0x64] ss:$16 sps:$4 sm:$0xff]   ;;  %v5553_v53 = vld [vmem:[%s7405_s5 + $0x6c] ss:$16 sps:$4 sm:$0xff]  }
  0x94   : > { %v6239_v22 = vsel %vm1679_vm1, %v1680_v7, %v1681_v14  ;;  %v6245_v25 = vshll.u32 %v6210_v3, 16  ;;  %v1683_v26 = vrot.slane %v6210_v3, 5  ;;  %v6252_v30 = vshrl.u32 %v6210_v3, 16  ;;  %v5548_v6 = vld [vmem:[%s7405_s5 + $0x60] ss:$16 sps:$4 sm:$0xff]  }
  0x95   : > { %v6241_v23 = vpack.c.bf16 %v444_v16, %v443_v17  ;;  %v534_v24 = vsel %vm522_vm2, %v529_v18, %v533_v19  ;;  %v6255_v31 = vsel %vm1263_vm0, %v1265_v1, %v1267_v21  ;;  %v2098_v32 = vor.u32 %v6231_v15, %v6219_v10  ;;  %v5556_v10 = vld [vmem:[%s7405_s5 + $0x84] ss:$16 sps:$4 sm:$0xff]  }
  0x96   : > { %v420_v27 = vpop.permute.xlu1 %419  ;;  %v415_v28 = vpop.permute.xlu0 %414  ;;  %765 = vmatmul.mubr.bf16.vlgmr.msra.gmra.mrb[0].mxu0 %v534_v24  ;;  %848 = vmatmul.mubr.bf16.vlgmr.msra.gmra.mrb[0].mxu1 %v534_v24  ;;  %v6272_v41 = vsel %vm1679_vm1, %v1681_v14, %v1683_v26  ;;  %v541_v43 = vrot.slane %v6245_v25, 1  ;;  %v2099_v49 = vrot.slane %v6235_v20, 5  ;;  %v2100_v55 = vrot.slane %v6206_v63, 6  ;;  %v5554_v24 = vld [vmem:[%s7405_s5 + $0x80] ss:$16 sps:$4 sm:$0xff]  }
  0x97   : > { %v446_v33 = vmul.f32 %v420_v27, %v355_v62  ;;  %v445_v34 = vmul.f32 %v415_v28, %v354_v5  ;;  %1059 = vmatpush1.bf16.msra.mxu0 %v5530_v60  ;;  %1142 = vmatpush1.bf16.msra.mxu1 %v5533_v4  ;;  %v1269_v40 = vrot.slane %v6241_v23, 1  ;;  %v1685_v46 = vrot.slane %v6241_v23, 5 }
  0x98   : > { %1060 = vmatprep.subr.bf16.mxu0 %v5538_v11  ;;  %1143 = vmatprep.subr.bf16.mxu1 %v5541_v12  ;;  %v2103_v56 = vrot.slane %v6252_v30, 5  ;;  %v2104_v57 = vrot.slane %v6245_v25, 6  ;;  %v537_v62 = vor.u32 %v6235_v20, %v533_v19  ;;  %v6303_v0 = vshll.u32 %v6241_v23, 16  ;;  %v5559_v11 = vld [vmem:[%s7405_s5 + $0x8c] ss:$16 sps:$4 sm:$0xff]  }
  0x99   : > { %v6274_v42 = vpack.c.bf16 %v446_v33, %v445_v34  ;;  %774 = vmatprep.mubr.bf16.mxu0 %v5922_v2  ;;  %857 = vmatprep.mubr.bf16.mxu1 %v5922_v2  ;;  %v6296_v54 = vsel %vm1263_vm0, %v1267_v21, %v1269_v40  ;;  %v358_v1 = vmax.f32 %v6166_v61, 0.0  ;;  %v6309_v60 = vsel %vm1679_vm1, %v1683_v26, %v1685_v46  ;;  %v5551_v61 = vld [vmem:[%s7405_s5 + $0x68] ss:$16 sps:$4 sm:$0xff]   ;;  %v5562_v34 = vld [vmem:[%s7405_s5 + $0xa4] ss:$16 sps:$4 sm:$0xff]  }
  0x9a   : > { %v430_v50 = vpop.permute.xlu1 %429  ;;  %v425_v51 = vpop.permute.xlu0 %424  ;;  %v542_v5 = vsel %vm522_vm2, %v537_v62, %v541_v43  ;;  %v6321_v7 = vshrl.u32 %v6241_v23, 16  ;;  %v2101_v8 = vor.u32 %v2100_v55, %v2099_v49  ;;  %v2105_v14 = vor.u32 %v2104_v57, %v2103_v56  ;;  %v5557_v26 = vld [vmem:[%s7405_s5 + $0x88] ss:$16 sps:$4 sm:$0xff]   ;;  %v5565_v49 = vld [vmem:[%s7405_s5 + $0xac] ss:$16 sps:$4 sm:$0xff]  }
  0x9b   : > { %v448_v58 = vmul.f32 %v430_v50, %v357_v35  ;;  %v447_v59 = vmul.f32 %v425_v51, %v356_v36  ;;  %1061 = vmatpush1.bf16.msra.mxu0 %v5536_v29  ;;  %1144 = vmatpush1.bf16.msra.mxu1 %v5539_v37  ;;  %v6330_v12 = vshrl.u32 %v6274_v42, 16  ;;  %v549_v15 = vrot.slane %v6303_v0, 1  ;;  %v5560_v57 = vld [vmem:[%s7405_s5 + $0xa0] ss:$16 sps:$4 sm:$0xff]  }
  0x9c   : > { %1062 = vmatprep.subr.bf16.mxu0 %v5544_v38  ;;  %1145 = vmatprep.subr.bf16.mxu1 %v5547_v39  ;;  %v6334_v16 = vshll.u32 %v6274_v42, 16  ;;  %v6340_v18 = vsel %vm2095_vm3, %v2098_v32, %v2101_v8  ;;  %v545_v21 = vor.u32 %v6252_v30, %v541_v43  ;;  %v6352_v27 = vsel %vm2095_vm3, %v2101_v8, %v2105_v14 }
  0x9d   : > { %v6311_v4 = vpack.c.bf16 %v448_v58, %v447_v59  ;;  %v2107_v28 = vrot.slane %v6321_v7, 5  ;;  %v2108_v29 = vrot.slane %v6303_v0, 6  ;;  %v2111_v32 = vrot.slane %v6330_v12, 5  ;;  %v5563_v58 = vld [vmem:[%s7405_s5 + $0xa8] ss:$16 sps:$4 sm:$0xff]  }
  0x9e   : > { %v435_v9 = vpop.permute.xlu0 %434  ;;  %775 = vmatmul.mubr.bf16.gmra.mrb[4].mxu0 %v542_v5  ;;  %858 = vmatmul.mubr.bf16.gmra.mrb[4].mxu1 %v542_v5  ;;  %v550_v33 = vsel %vm522_vm2, %v545_v21, %v549_v15  ;;  %v2112_v35 = vrot.slane %v6334_v16, 6  ;;  %v2526_v39 = vrot.slane %v6194_v48, 6  ;;  %v2527_v43 = vrot.slane %v6192_v47, 6 }
  0x9f   : > { %1063 = vmatpush1.bf16.msra.mxu0 %v5542_v44  ;;  %1146 = vmatpush1.bf16.msra.mxu1 %v5545_v45  ;;  %v6337_v17 = vshll.u32 %v6311_v4, 16  ;;  %v449_v19 = vmul.f32 %v435_v9, %v358_v1  ;;  %v2115_v36 = vshrl.u32 %v6311_v4, 16  ;;  %v2109_v38 = vor.u32 %v2108_v29, %v2107_v28  ;;  %v5569_v28 = vld [vmem:[%s7405_s5 + $0xc8] ss:$16 sps:$4 sm:$0xff]  }
  0xa0   : > { %1064 = vmatprep.subr.bf16.mxu0 %v5550_v52  ;;  %1147 = vmatprep.subr.bf16.mxu1 %v5553_v53  ;;  %v2529_v44 = vrot.slane %v6210_v3, 6  ;;  %v2113_v50 = vor.u32 %v2112_v35, %v2111_v32  ;;  %v2531_v52 = vrot.slane %v6241_v23, 6  ;;  %v6379_v55 = vsel %vm2525_vm4, %v2526_v39, %v2527_v43 }
  0xa1   : > { %784 = vmatprep.mubr.bf16.mxu0 %v5922_v2  ;;  %867 = vmatprep.mubr.bf16.mxu1 %v5922_v2  ;;  %v2118_v37 = vrot.slane %v6337_v17, 6  ;;  %v6367_v45 = vpack.c.bf16 %v449_v19, %v449_v19  ;;  %v2117_v51 = vrot.slane %v2115_v36, 5  ;;  %v6376_v53 = vsel %vm2095_vm3, %v2105_v14, %v2109_v38 }
  0xa2   : > { %v6382_v56 = vsel %vm2525_vm4, %v2527_v43, %v2529_v44  ;;  %v6391_v59 = vsel %vm2095_vm3, %v2109_v38, %v2113_v50  ;;  %v6396_v1 = vsel %vm2525_vm4, %v2529_v44, %v2531_v52  ;;  %v557_v5 = vrot.slane %v6334_v16, 1 }
  0xa3   : > { %1065 = vmatpush1.bf16.msra.mxu0 %v5548_v6  ;;  %1148 = vmatpush1.bf16.msra.mxu1 %v5551_v61  ;;  %v2119_v62 = vor.u32 %v2118_v37, %v2117_v51  ;;  %v5568_v6 = vld [vmem:[%s7405_s5 + $0xc4] ss:$16 sps:$4 sm:$0xff]   ;;  %v5571_v61 = vld [vmem:[%s7405_s5 + $0xcc] ss:$16 sps:$4 sm:$0xff]   ;;  %v2943_v9 = vrot.slane %v6192_v47, 2  ;;  %v2950_v14 = vrot.slane %v6311_v4, 2 }
  0xa4   : > { %1066 = vmatprep.subr.bf16.mxu0 %v5556_v10  ;;  %1149 = vmatprep.subr.bf16.mxu1 %v5559_v11  ;;  %v2944_v10 = vrot.slane %v6210_v3, 2  ;;  %v2946_v11 = vrot.slane %v6241_v23, 2  ;;  %v2952_v19 = vrot.slane %v6367_v45, 2  ;;  %v3359_v21 = vrot.slane %v6235_v20, 2  ;;  %v5574_v37 = vld [vmem:[%s7405_s5 + $0xe4] ss:$16 sps:$4 sm:$0xff]  }
  0xa5   : > { %v6408_v8 = vsel %vm2095_vm3, %v2113_v50, %v2119_v62  ;;  %v3360_v20 = vrot.slane %v6206_v63, 3  ;;  %v5577_v63 = vld [vmem:[%s7405_s5 + $0xec] ss:$16 sps:$4 sm:$0xff]   ;;  %v3366_v39 = vrot.slane %v6321_v7, 2  ;;  %v3367_v43 = vrot.slane %v6303_v0, 3 }
  0xa6   : > { %785 = vmatmul.mubr.bf16.gmra.mrb[8].mxu0 %v550_v33  ;;  %868 = vmatmul.mubr.bf16.gmra.mrb[8].mxu1 %v550_v33  ;;  %v6424_v29 = vsel %vm2942_vm5, %v2943_v9, %v2944_v10  ;;  %v6429_v32 = vsel %vm2942_vm5, %v2944_v10, %v2946_v11  ;;  %v3362_v33 = vrot.slane %v6252_v30, 2  ;;  %v565_v44 = vrot.slane %v6337_v17, 1  ;;  %v5575_v50 = vld [vmem:[%s7405_s5 + $0xe8] ss:$16 sps:$4 sm:$0xff]   ;;  %v5580_v51 = vld [vmem:[%s7405_s5 + $0x204] ss:$16 sps:$4 sm:$0xff]  }
  0xa7   : > { %1067 = vmatpush1.bf16.msra.mxu0 %v5554_v24  ;;  %1150 = vmatpush1.bf16.msra.mxu1 %v5557_v26  ;;  %v553_v24 = vor.u32 %v6321_v7, %v549_v15  ;;  %v5566_v26 = vld [vmem:[%s7405_s5 + $0xc0] ss:$16 sps:$4 sm:$0xff]   ;;  %v6435_v15 = vsel %vm2942_vm5, %v2950_v14, %v2952_v19  ;;  %v3361_v38 = vor.u32 %v3360_v20, %v3359_v21  ;;  %v3371_v62 = vrot.slane %v6334_v16, 3 }
  0xa8   : > { %794 = vmatprep.mubr.bf16.mxu0 %v5922_v2  ;;  %877 = vmatprep.mubr.bf16.mxu1 %v5922_v2  ;;  %v3368_v7 = vor.u32 %v3367_v43, %v3366_v39  ;;  %v561_v0 = vor.u32 %v6330_v12, %v557_v5  ;;  %v3382_v9 = vshll.u32 %v6367_v45, 16  ;;  %v3792_v19 = vrot.slane %v6192_v47, 3  ;;  %v5578_v43 = vld [vmem:[%s7405_s5 + $0x200] ss:$16 sps:$4 sm:$0xff]  }
  0xa9   : > { %1068 = vmatprep.subr.bf16.mxu0 %v5562_v34  ;;  %1151 = vmatprep.subr.bf16.mxu1 %v5565_v49  ;;  %v3363_v34 = vrot.slane %v6245_v25, 3  ;;  %v558_v35 = vsel %vm522_vm2, %v553_v24, %v557_v5  ;;  %v3370_v25 = vrot.slane %v6330_v12, 2  ;;  %v5572_v49 = vld [vmem:[%s7405_s5 + $0xe0] ss:$16 sps:$4 sm:$0xff]   ;;  %v3375_v5 = vrot.slane %v6337_v17, 3 }
  0xaa   : > { %v3793_v21 = vrot.slane %v6210_v3, 3  ;;  %v3795_v16 = vrot.slane %v6241_v23, 3 }
  0xab   : > { %1069 = vmatpush1.bf16.msra.mxu0 %v5560_v57  ;;  %1152 = vmatpush1.bf16.msra.mxu1 %v5563_v58  ;;  %v3364_v30 = vor.u32 %v3363_v34, %v3362_v33  ;;  %v5583_v57 = vld [vmem:[%s7405_s5 + $0x20c] ss:$16 sps:$4 sm:$0xff]   ;;  %v3372_v10 = vor.u32 %v3371_v62, %v3370_v25  ;;  %v5596_v62 = vld [vmem:[%s7405_s5 + $0x260] ss:$16 sps:$4 sm:$0xff]  }
  0xac   : > { %1070 = vmatprep.subr.bf16.mxu0 %v5568_v6  ;;  %1153 = vmatprep.subr.bf16.mxu1 %v5571_v61  ;;  %v3374_v6 = vrot.slane %v2115_v36, 2  ;;  %v3379_v61 = vshrl.u32 %v6367_v45, 16  ;;  %v566_v36 = vsel %vm522_vm2, %v561_v0, %v565_v44  ;;  %v6485_v20 = vsel %vm3791_vm7, %v3792_v19, %v3793_v21  ;;  %v5589_v25 = vld [vmem:[%s7405_s5 + $0x22c] ss:$16 sps:$4 sm:$0xff]   ;;  %v5584_v44 = vld [vmem:[%s7405_s5 + $0x220] ss:$16 sps:$4 sm:$0xff]  }
  0xad   : > { %v6466_v58 = vsel %vm3358_vm6, %v3361_v38, %v3364_v30  ;;  %v6472_v12 = vsel %vm3358_vm6, %v3364_v30, %v3368_v7  ;;  %v6482_v17 = vsel %vm3358_vm6, %v3368_v7, %v3372_v10  ;;  %v6490_v33 = vsel %vm3791_vm7, %v3793_v21, %v3795_v16  ;;  %v5586_v30 = vld [vmem:[%s7405_s5 + $0x224] ss:$16 sps:$4 sm:$0xff]   ;;  %v5590_v7 = vld [vmem:[%s7405_s5 + $0x240] ss:$16 sps:$4 sm:$0xff]   ;;  %v5593_v0 = vld [vmem:[%s7405_s5 + $0x248] ss:$16 sps:$4 sm:$0xff]  }
  0xae   : > { %795 = vmatmul.mubr.bf16.gmra.mrb[12].mxu0 %v558_v35  ;;  %878 = vmatmul.mubr.bf16.gmra.mrb[12].mxu1 %v558_v35  ;;  %v3376_v24 = vor.u32 %v3375_v5, %v3374_v6  ;;  %v5599_v6 = vld [vmem:[%s7405_s5 + $0x268] ss:$16 sps:$4 sm:$0xff]   ;;  %v5604_v5 = vld [vmem:[%s7405_s5 + $0x284] ss:$16 sps:$4 sm:$0xff]   ;;  %v5613_v19 = vld [vmem:[%s7405_s5 + $0x2ac] ss:$16 sps:$4 sm:$0xff]  }
  0xaf   : > { %1071 = vmatpush1.bf16.msra.mxu0 %v5566_v26  ;;  %1154 = vmatpush1.bf16.msra.mxu1 %v5569_v28  ;;  %v3381_v26 = vrot.slane %v3379_v61, 2  ;;  %v3384_v28 = vrot.slane %v3382_v9, 3  ;;  %v5602_v61 = vld [vmem:[%s7405_s5 + $0x280] ss:$16 sps:$4 sm:$0xff]   ;;  %v5605_v9 = vld [vmem:[%s7405_s5 + $0x288] ss:$16 sps:$4 sm:$0xff]  }
  0xb0   : > { %804 = vmatprep.mubr.bf16.mxu0 %v5922_v2  ;;  %887 = vmatprep.mubr.bf16.mxu1 %v5922_v2  ;;  %v6493_v34 = vsel %vm3358_vm6, %v3372_v10, %v3376_v24  ;;  %v5610_v10 = vld [vmem:[%s7405_s5 + $0x2a4] ss:$16 sps:$4 sm:$0xff]   ;;  %v5608_v21 = vld [vmem:[%s7405_s5 + $0x2a0] ss:$16 sps:$4 sm:$0xff]  }
  0xb1   : > { %1072 = vmatprep.subr.bf16.mxu0 %v5574_v37  ;;  %1155 = vmatprep.subr.bf16.mxu1 %v5577_v63  ;;  %v3385_v35 = vor.u32 %v3384_v28, %v3381_v26  ;;  %v3799_v37 = vrot.slane %v6311_v4, 3  ;;  %v3801_v63 = vrot.slane %v6367_v45, 3  ;;  %v5581_v45 = vld [vmem:[%s7405_s5 + $0x208] ss:$16 sps:$4 sm:$0xff]   ;;  %v5614_v26 = vld [vmem:[%s7405_s5 + $0x2c0] ss:$16 sps:$4 sm:$0xff]  }
  0xb2   : > { %v5617_v28 = vld [vmem:[%s7405_s5 + $0x2c8] ss:$16 sps:$4 sm:$0xff]  }
  0xb3   : > { %1073 = vmatpush1.bf16.msra.mxu0 %v5572_v49  ;;  %1156 = vmatpush1.bf16.msra.mxu1 %v5575_v50  ;;  %v6500_v38 = vsel %vm3358_vm6, %v3376_v24, %v3385_v35  ;;  %v6505_v39 = vsel %vm3791_vm7, %v3799_v37, %v3801_v63  ;;  %v5587_v49 = vld [vmem:[%s7405_s5 + $0x228] ss:$16 sps:$4 sm:$0xff]   ;;  %v5592_v50 = vld [vmem:[%s7405_s5 + $0x244] ss:$16 sps:$4 sm:$0xff]   ;;  %v5625_v63 = vld [vmem:[%s7405_s5 + $0x2ec] ss:$16 sps:$4 sm:$0xff]  }
  0xb4   : > { %1440 = vmatprep.subr.bf16.mxu0 %v5580_v51  ;;  %1523 = vmatprep.subr.bf16.mxu1 %v5583_v57  ;;  %v5598_v51 = vld [vmem:[%s7405_s5 + $0x264] ss:$16 sps:$4 sm:$0xff]   ;;  %v5601_v57 = vld [vmem:[%s7405_s5 + $0x26c] ss:$16 sps:$4 sm:$0xff]  }
  0xb5   : > { %v5616_v24 = vld [vmem:[%s7405_s5 + $0x2c4] ss:$16 sps:$4 sm:$0xff]  }
  0xb6   : > { %805 = vmatmul.mubr.bf16.gmra.mrb[16].mxu0 %v566_v36  ;;  %888 = vmatmul.mubr.bf16.gmra.mrb[16].mxu1 %v566_v36  ;;  %v5611_v36 = vld [vmem:[%s7405_s5 + $0x2a8] ss:$16 sps:$4 sm:$0xff]   ;;  %v5622_v35 = vld [vmem:[%s7405_s5 + $0x2e4] ss:$16 sps:$4 sm:$0xff]  }
  0xb7   : > { %1090 = vmatprep.mubr.bf16.mxu0 %v5922_v2  ;;  %1173 = vmatprep.mubr.bf16.mxu1 %v5922_v2 }
  0xbe   : > { %1091 = vmatmul.mubr.bf16.vlgmr.msra.gmra.mrb[0].mxu0 %v6194_v48  ;;  %1174 = vmatmul.mubr.bf16.vlgmr.msra.gmra.mrb[0].mxu1 %v6194_v48  ;;  %v5595_v48 = vld [vmem:[%s7405_s5 + $0x24c] ss:$16 sps:$4 sm:$0xff]  }
  0xbf   : > { %1441 = vmatpush1.bf16.msra.mxu0 %v5578_v43  ;;  %1524 = vmatpush1.bf16.msra.mxu1 %v5581_v45  ;;  %v5620_v43 = vld [vmem:[%s7405_s5 + $0x2e0] ss:$16 sps:$4 sm:$0xff]   ;;  %v5623_v45 = vld [vmem:[%s7405_s5 + $0x2e8] ss:$16 sps:$4 sm:$0xff]  }
  0xc0   : > { %1442 = vmatprep.subr.bf16.mxu0 %v5586_v30  ;;  %1525 = vmatprep.subr.bf16.mxu1 %v5589_v25  ;;  %v5628_v30 = vld [vmem:[%s7405_s5 + $0x304] ss:$16 sps:$4 sm:$0xff]   ;;  %v5631_v25 = vld [vmem:[%s7405_s5 + $0x30c] ss:$16 sps:$4 sm:$0xff]  }
  0xc1   : > { %1100 = vmatprep.mubr.bf16.mxu0 %v5922_v2  ;;  %1183 = vmatprep.mubr.bf16.mxu1 %v5922_v2 }
  0xc3   : > { %1443 = vmatpush1.bf16.msra.mxu0 %v5584_v44  ;;  %1526 = vmatpush1.bf16.msra.mxu1 %v5587_v49  ;;  %v5626_v44 = vld [vmem:[%s7405_s5 + $0x300] ss:$16 sps:$4 sm:$0xff]   ;;  %v5629_v49 = vld [vmem:[%s7405_s5 + $0x308] ss:$16 sps:$4 sm:$0xff]  }
  0xc4   : > { %1444 = vmatprep.subr.bf16.mxu0 %v5592_v50  ;;  %1527 = vmatprep.subr.bf16.mxu1 %v5595_v48  ;;  %v5634_v50 = vld [vmem:[%s7405_s5 + $0x324] ss:$16 sps:$4 sm:$0xff]   ;;  %v5637_v48 = vld [vmem:[%s7405_s5 + $0x32c] ss:$16 sps:$4 sm:$0xff]  }
  0xc6   : > { %1101 = vmatmul.mubr.bf16.gmra.mrb[4].mxu0 %v6192_v47  ;;  %1184 = vmatmul.mubr.bf16.gmra.mrb[4].mxu1 %v6192_v47  ;;  %v5607_v47 = vld [vmem:[%s7405_s5 + $0x28c] ss:$16 sps:$4 sm:$0xff]  }
  0xc7   : > { %1445 = vmatpush1.bf16.msra.mxu0 %v5590_v7  ;;  %1528 = vmatpush1.bf16.msra.mxu1 %v5593_v0  ;;  %v5632_v7 = vld [vmem:[%s7405_s5 + $0x320] ss:$16 sps:$4 sm:$0xff]   ;;  %v5635_v0 = vld [vmem:[%s7405_s5 + $0x328] ss:$16 sps:$4 sm:$0xff]  }
  0xc8   : > { %1446 = vmatprep.subr.bf16.mxu0 %v5598_v51  ;;  %1529 = vmatprep.subr.bf16.mxu1 %v5601_v57  ;;  %v5640_v51 = vld [vmem:[%s7405_s5 + $0x344] ss:$16 sps:$4 sm:$0xff]   ;;  %v5638_v57 = vld [vmem:[%s7405_s5 + $0x340] ss:$16 sps:$4 sm:$0xff]  }
  0xc9   : > { %1110 = vmatprep.mubr.bf16.mxu0 %v5922_v2  ;;  %1193 = vmatprep.mubr.bf16.mxu1 %v5922_v2 }
  0xcb   : > { %1447 = vmatpush1.bf16.msra.mxu0 %v5596_v62  ;;  %1530 = vmatpush1.bf16.msra.mxu1 %v5599_v6  ;;  %v5641_v62 = vld [vmem:[%s7405_s5 + $0x348] ss:$16 sps:$4 sm:$0xff]   ;;  %v5646_v6 = vld [vmem:[%s7405_s5 + $0x364] ss:$16 sps:$4 sm:$0xff]  }
  0xcc   : > { %1448 = vmatprep.subr.bf16.mxu0 %v5604_v5  ;;  %1531 = vmatprep.subr.bf16.mxu1 %v5607_v47  ;;  %v5649_v5 = vld [vmem:[%s7405_s5 + $0x36c] ss:$16 sps:$4 sm:$0xff]   ;;  %v5644_v47 = vld [vmem:[%s7405_s5 + $0x360] ss:$16 sps:$4 sm:$0xff]  }
  0xce   : > { %1111 = vmatmul.mubr.bf16.gmra.mrb[8].mxu0 %v6210_v3  ;;  %1194 = vmatmul.mubr.bf16.gmra.mrb[8].mxu1 %v6210_v3  ;;  %v5619_v3 = vld [vmem:[%s7405_s5 + $0x2cc] ss:$16 sps:$4 sm:$0xff]  }
  0xcf   : > { %1449 = vmatpush1.bf16.msra.mxu0 %v5602_v61  ;;  %1532 = vmatpush1.bf16.msra.mxu1 %v5605_v9  ;;  %v5647_v61 = vld [vmem:[%s7405_s5 + $0x368] ss:$16 sps:$4 sm:$0xff]   ;;  %v5652_v9 = vld [vmem:[%s7405_s5 + $0x384] ss:$16 sps:$4 sm:$0xff]  }
  0xd0   : > { %1120 = vmatprep.mubr.bf16.mxu0 %v5922_v2  ;;  %1203 = vmatprep.mubr.bf16.mxu1 %v5922_v2 }
  0xd1   : > { %1450 = vmatprep.subr.bf16.mxu0 %v5610_v10  ;;  %1533 = vmatprep.subr.bf16.mxu1 %v5613_v19  ;;  %v5650_v10 = vld [vmem:[%s7405_s5 + $0x380] ss:$16 sps:$4 sm:$0xff]   ;;  %v5653_v19 = vld [vmem:[%s7405_s5 + $0x388] ss:$16 sps:$4 sm:$0xff]  }
  0xd3   : > { %1451 = vmatpush1.bf16.msra.mxu0 %v5608_v21  ;;  %1534 = vmatpush1.bf16.msra.mxu1 %v5611_v36  ;;  %v5658_v21 = vld [vmem:[%s7405_s5 + $0x3a4] ss:$16 sps:$4 sm:$0xff]   ;;  %v5661_v36 = vld [vmem:[%s7405_s5 + $0x3ac] ss:$16 sps:$4 sm:$0xff]  }
  0xd4   : > { %1452 = vmatprep.subr.bf16.mxu0 %v5616_v24  ;;  %1535 = vmatprep.subr.bf16.mxu1 %v5619_v3  ;;  %v5656_v24 = vld [vmem:[%s7405_s5 + $0x3a0] ss:$16 sps:$4 sm:$0xff]   ;;  %v5659_v3 = vld [vmem:[%s7405_s5 + $0x3a8] ss:$16 sps:$4 sm:$0xff]  }
  0xd6   : > { %1121 = vmatmul.mubr.bf16.gmra.mrb[12].mxu0 %v6241_v23  ;;  %1204 = vmatmul.mubr.bf16.gmra.mrb[12].mxu1 %v6241_v23  ;;  %v4187_v23 = vpop.permute.xlu1 %4186 }
  0xd7   : > { %1453 = vmatpush1.bf16.msra.mxu0 %v5614_v26  ;;  %1536 = vmatpush1.bf16.msra.mxu1 %v5617_v28  ;;  %v5664_v26 = vld [vmem:[%s7405_s5 + $0x3c4] ss:$16 sps:$4 sm:$0xff]   ;;  %v1271_v28 = vrot.slane %v6274_v42, 1 }
  0xd8   : > { %1130 = vmatprep.mubr.bf16.mxu0 %v5922_v2  ;;  %1213 = vmatprep.mubr.bf16.mxu1 %v5922_v2 }
  0xd9   : > { %1454 = vmatprep.subr.bf16.mxu0 %v5622_v35  ;;  %1537 = vmatprep.subr.bf16.mxu1 %v5625_v63  ;;  %v5662_v35 = vld [vmem:[%s7405_s5 + $0x3c0] ss:$16 sps:$4 sm:$0xff]   ;;  %v5665_v63 = vld [vmem:[%s7405_s5 + $0x3c8] ss:$16 sps:$4 sm:$0xff]  }
  0xdb   : > { %1455 = vmatpush1.bf16.msra.mxu0 %v5620_v43  ;;  %1538 = vmatpush1.bf16.msra.mxu1 %v5623_v45  ;;  %v1272_v43 = vsel %vm1263_vm0, %v1269_v40, %v1271_v28  ;;  %v5670_v45 = vld [vmem:[%s7405_s5 + $0x3e4] ss:$16 sps:$4 sm:$0xff]   ;;  %v5671_v40 = vld [vmem:[%s7405_s5 + $0x3e8] ss:$16 sps:$4 sm:$0xff]  }
  0xdc   : > { %1856 = vmatprep.subr.bf16.mxu0 %v5628_v30  ;;  %1939 = vmatprep.subr.bf16.mxu1 %v5631_v25  ;;  %v5673_v30 = vld [vmem:[%s7405_s5 + $0x3ec] ss:$16 sps:$4 sm:$0xff]   ;;  %v5668_v25 = vld [vmem:[%s7405_s5 + $0x3e0] ss:$16 sps:$4 sm:$0xff]  }
  0xde   : > { %1131 = vmatmul.mubr.bf16.gmra.mrb[16].mxu0 %v6274_v42  ;;  %1214 = vmatmul.mubr.bf16.gmra.mrb[16].mxu1 %v6274_v42 }
  0xdf   : > { %1472 = vmatprep.mubr.bf16.mxu0 %v5922_v2  ;;  %1555 = vmatprep.mubr.bf16.mxu1 %v5922_v2 }
  0xe6   : > { %1473 = vmatmul.mubr.bf16.vlgmr.msra.gmra.mrb[0].mxu0 %v6228_v13  ;;  %1556 = vmatmul.mubr.bf16.vlgmr.msra.gmra.mrb[0].mxu1 %v6228_v13  ;;  %v5643_v13 = vld [vmem:[%s7405_s5 + $0x34c] ss:$16 sps:$4 sm:$0xff]  }
  0xe7   : > { %1857 = vmatpush1.bf16.msra.mxu0 %v5626_v44  ;;  %1940 = vmatpush1.bf16.msra.mxu1 %v5629_v49  ;;  %v5676_v44 = vld [vmem:[%s7405_s5 + $0x404] ss:$16 sps:$4 sm:$0xff]   ;;  %v5679_v49 = vld [vmem:[%s7405_s5 + $0x40c] ss:$16 sps:$4 sm:$0xff]  }
  0xe8   : > { %1858 = vmatprep.subr.bf16.mxu0 %v5634_v50  ;;  %1941 = vmatprep.subr.bf16.mxu1 %v5637_v48  ;;  %v1273_v50 = vrot.slane %v6311_v4, 1 }
  0xe9   : > { %1482 = vmatprep.mubr.bf16.mxu0 %v5922_v2  ;;  %1565 = vmatprep.mubr.bf16.mxu1 %v5922_v2 }
  0xea   : > { %v1274_v48 = vsel %vm1263_vm0, %v1271_v28, %v1273_v50  ;;  %v5712_v28 = vld [vmem:[%s7405_s5 + $0x4c4] ss:$16 sps:$4 sm:$0xff]   ;;  %v1689_v50 = vrot.slane %v6311_v4, 5 }
  0xeb   : > { %1859 = vmatpush1.bf16.msra.mxu0 %v5632_v7  ;;  %1942 = vmatpush1.bf16.msra.mxu1 %v5635_v0  ;;  %v5674_v7 = vld [vmem:[%s7405_s5 + $0x400] ss:$16 sps:$4 sm:$0xff]   ;;  %v5677_v0 = vld [vmem:[%s7405_s5 + $0x408] ss:$16 sps:$4 sm:$0xff]  }
  0xec   : > { %1860 = vmatprep.subr.bf16.mxu0 %v5640_v51  ;;  %1943 = vmatprep.subr.bf16.mxu1 %v5643_v13  ;;  %v5682_v51 = vld [vmem:[%s7405_s5 + $0x424] ss:$16 sps:$4 sm:$0xff]   ;;  %v5685_v13 = vld [vmem:[%s7405_s5 + $0x42c] ss:$16 sps:$4 sm:$0xff]  }
  0xee   : > { %1483 = vmatmul.mubr.bf16.gmra.mrb[4].mxu0 %v6255_v31  ;;  %1566 = vmatmul.mubr.bf16.gmra.mrb[4].mxu1 %v6255_v31  ;;  %v5655_v31 = vld [vmem:[%s7405_s5 + $0x38c] ss:$16 sps:$4 sm:$0xff]  }
  0xef   : > { %1861 = vmatpush1.bf16.msra.mxu0 %v5638_v57  ;;  %1944 = vmatpush1.bf16.msra.mxu1 %v5641_v62  ;;  %v5680_v57 = vld [vmem:[%s7405_s5 + $0x420] ss:$16 sps:$4 sm:$0xff]   ;;  %v5683_v62 = vld [vmem:[%s7405_s5 + $0x428] ss:$16 sps:$4 sm:$0xff]  }
  0xf0   : > { %1862 = vmatprep.subr.bf16.mxu0 %v5646_v6  ;;  %1945 = vmatprep.subr.bf16.mxu1 %v5649_v5  ;;  %v5688_v6 = vld [vmem:[%s7405_s5 + $0x444] ss:$16 sps:$4 sm:$0xff]   ;;  %v5686_v5 = vld [vmem:[%s7405_s5 + $0x440] ss:$16 sps:$4 sm:$0xff]  }
  0xf1   : > { %1492 = vmatprep.mubr.bf16.mxu0 %v5922_v2  ;;  %1575 = vmatprep.mubr.bf16.mxu1 %v5922_v2 }
  0xf3   : > { %1863 = vmatpush1.bf16.msra.mxu0 %v5644_v47  ;;  %1946 = vmatpush1.bf16.msra.mxu1 %v5647_v61  ;;  %v5689_v47 = vld [vmem:[%s7405_s5 + $0x448] ss:$16 sps:$4 sm:$0xff]   ;;  %v5694_v61 = vld [vmem:[%s7405_s5 + $0x464] ss:$16 sps:$4 sm:$0xff]  }
  0xf4   : > { %1864 = vmatprep.subr.bf16.mxu0 %v5652_v9  ;;  %1947 = vmatprep.subr.bf16.mxu1 %v5655_v31  ;;  %v5697_v9 = vld [vmem:[%s7405_s5 + $0x46c] ss:$16 sps:$4 sm:$0xff]   ;;  %v5692_v31 = vld [vmem:[%s7405_s5 + $0x460] ss:$16 sps:$4 sm:$0xff]  }
  0xf6   : > { %1493 = vmatmul.mubr.bf16.gmra.mrb[8].mxu0 %v6296_v54  ;;  %1576 = vmatmul.mubr.bf16.gmra.mrb[8].mxu1 %v6296_v54  ;;  %v5667_v54 = vld [vmem:[%s7405_s5 + $0x3cc] ss:$16 sps:$4 sm:$0xff]  }
  0xf7   : > { %1865 = vmatpush1.bf16.msra.mxu0 %v5650_v10  ;;  %1948 = vmatpush1.bf16.msra.mxu1 %v5653_v19  ;;  %v5695_v10 = vld [vmem:[%s7405_s5 + $0x468] ss:$16 sps:$4 sm:$0xff]   ;;  %v5700_v19 = vld [vmem:[%s7405_s5 + $0x484] ss:$16 sps:$4 sm:$0xff]  }
  0xf8   : > { %1502 = vmatprep.mubr.bf16.mxu0 %v5922_v2  ;;  %1585 = vmatprep.mubr.bf16.mxu1 %v5922_v2 }
  0xf9   : > { %1866 = vmatprep.subr.bf16.mxu0 %v5658_v21  ;;  %1949 = vmatprep.subr.bf16.mxu1 %v5661_v36  ;;  %v5698_v21 = vld [vmem:[%s7405_s5 + $0x480] ss:$16 sps:$4 sm:$0xff]   ;;  %v5701_v36 = vld [vmem:[%s7405_s5 + $0x488] ss:$16 sps:$4 sm:$0xff]  }
  0xfb   : > { %1867 = vmatpush1.bf16.msra.mxu0 %v5656_v24  ;;  %1950 = vmatpush1.bf16.msra.mxu1 %v5659_v3  ;;  %v5706_v24 = vld [vmem:[%s7405_s5 + $0x4a4] ss:$16 sps:$4 sm:$0xff]   ;;  %v5709_v3 = vld [vmem:[%s7405_s5 + $0x4ac] ss:$16 sps:$4 sm:$0xff]  }
  0xfc   : > { %1868 = vmatprep.subr.bf16.mxu0 %v5664_v26  ;;  %1951 = vmatprep.subr.bf16.mxu1 %v5667_v54  ;;  %v5704_v26 = vld [vmem:[%s7405_s5 + $0x4a0] ss:$16 sps:$4 sm:$0xff]   ;;  %v5707_v54 = vld [vmem:[%s7405_s5 + $0x4a8] ss:$16 sps:$4 sm:$0xff]  }
  0xfe   : > { %1503 = vmatmul.mubr.bf16.gmra.mrb[12].mxu0 %v1272_v43  ;;  %1586 = vmatmul.mubr.bf16.gmra.mrb[12].mxu1 %v1272_v43  ;;  %v5713_v43 = vld [vmem:[%s7405_s5 + $0x4c8] ss:$16 sps:$4 sm:$0xff]  }
  0xff   : > { %1869 = vmatpush1.bf16.msra.mxu0 %v5662_v35  ;;  %1952 = vmatpush1.bf16.msra.mxu1 %v5665_v63  ;;  %v1687_v35 = vrot.slane %v6274_v42, 5  ;;  %v5710_v63 = vld [vmem:[%s7405_s5 + $0x4c0] ss:$16 sps:$4 sm:$0xff]  }
 0x100   : > { %1512 = vmatprep.mubr.bf16.mxu0 %v5922_v2  ;;  %1595 = vmatprep.mubr.bf16.mxu1 %v5922_v2 }
 0x101   : > { %1870 = vmatprep.subr.bf16.mxu0 %v5670_v45  ;;  %1953 = vmatprep.subr.bf16.mxu1 %v5673_v30  ;;  %v1688_v45 = vsel %vm1679_vm1, %v1685_v46, %v1687_v35  ;;  %v5718_v30 = vld [vmem:[%s7405_s5 + $0x4e4] ss:$16 sps:$4 sm:$0xff]   ;;  %v5719_v46 = vld [vmem:[%s7405_s5 + $0x4e8] ss:$16 sps:$4 sm:$0xff]  }
 0x103   : > { %1871 = vmatpush1.bf16.msra.mxu0 %v5668_v25  ;;  %1954 = vmatpush1.bf16.msra.mxu1 %v5671_v40  ;;  %v5721_v25 = vld [vmem:[%s7405_s5 + $0x4ec] ss:$16 sps:$4 sm:$0xff]   ;;  %v5716_v40 = vld [vmem:[%s7405_s5 + $0x4e0] ss:$16 sps:$4 sm:$0xff]  }
 0x104   : > { %2286 = vmatprep.subr.bf16.mxu0 %v5676_v44  ;;  %2369 = vmatprep.subr.bf16.mxu1 %v5679_v49  ;;  %v5724_v44 = vld [vmem:[%s7405_s5 + $0x504] ss:$16 sps:$4 sm:$0xff]   ;;  %v5727_v49 = vld [vmem:[%s7405_s5 + $0x50c] ss:$16 sps:$4 sm:$0xff]  }
 0x106   : > { %1513 = vmatmul.mubr.bf16.gmra.mrb[16].mxu0 %v1274_v48  ;;  %1596 = vmatmul.mubr.bf16.gmra.mrb[16].mxu1 %v1274_v48  ;;  %v1690_v48 = vsel %vm1679_vm1, %v1687_v35, %v1689_v50  ;;  %v5769_v35 = vld [vmem:[%s7405_s5 + $0x5ec] ss:$16 sps:$4 sm:$0xff]   ;;  %v5782_v50 = vld [vmem:[%s7405_s5 + $0x640] ss:$16 sps:$4 sm:$0xff]  }
 0x107   : > { %1888 = vmatprep.mubr.bf16.mxu0 %v5922_v2  ;;  %1971 = vmatprep.mubr.bf16.mxu1 %v5922_v2 }
 0x10e   : > { %1889 = vmatmul.mubr.bf16.vlgmr.msra.gmra.mrb[0].mxu0 %v6239_v22  ;;  %1972 = vmatmul.mubr.bf16.vlgmr.msra.gmra.mrb[0].mxu1 %v6239_v22  ;;  %v5691_v22 = vld [vmem:[%s7405_s5 + $0x44c] ss:$16 sps:$4 sm:$0xff]  }
 0x10f   : > { %2287 = vmatpush1.bf16.msra.mxu0 %v5674_v7  ;;  %2370 = vmatpush1.bf16.msra.mxu1 %v5677_v0  ;;  %v5722_v7 = vld [vmem:[%s7405_s5 + $0x500] ss:$16 sps:$4 sm:$0xff]   ;;  %v5725_v0 = vld [vmem:[%s7405_s5 + $0x508] ss:$16 sps:$4 sm:$0xff]  }
 0x110   : > { %2288 = vmatprep.subr.bf16.mxu0 %v5682_v51  ;;  %2371 = vmatprep.subr.bf16.mxu1 %v5685_v13  ;;  %v5730_v51 = vld [vmem:[%s7405_s5 + $0x524] ss:$16 sps:$4 sm:$0xff]   ;;  %v5733_v13 = vld [vmem:[%s7405_s5 + $0x52c] ss:$16 sps:$4 sm:$0xff]  }
 0x111   : > { %1898 = vmatprep.mubr.bf16.mxu0 %v5922_v2  ;;  %1981 = vmatprep.mubr.bf16.mxu1 %v5922_v2 }
 0x113   : > { %2289 = vmatpush1.bf16.msra.mxu0 %v5680_v57  ;;  %2372 = vmatpush1.bf16.msra.mxu1 %v5683_v62  ;;  %v5728_v57 = vld [vmem:[%s7405_s5 + $0x520] ss:$16 sps:$4 sm:$0xff]   ;;  %v5731_v62 = vld [vmem:[%s7405_s5 + $0x528] ss:$16 sps:$4 sm:$0xff]  }
 0x114   : > { %2290 = vmatprep.subr.bf16.mxu0 %v5688_v6  ;;  %2373 = vmatprep.subr.bf16.mxu1 %v5691_v22  ;;  %v5736_v6 = vld [vmem:[%s7405_s5 + $0x544] ss:$16 sps:$4 sm:$0xff]   ;;  %v5734_v22 = vld [vmem:[%s7405_s5 + $0x540] ss:$16 sps:$4 sm:$0xff]  }
 0x116   : > { %1899 = vmatmul.mubr.bf16.gmra.mrb[4].mxu0 %v6272_v41  ;;  %1982 = vmatmul.mubr.bf16.gmra.mrb[4].mxu1 %v6272_v41  ;;  %v5703_v41 = vld [vmem:[%s7405_s5 + $0x48c] ss:$16 sps:$4 sm:$0xff]  }
 0x117   : > { %2291 = vmatpush1.bf16.msra.mxu0 %v5686_v5  ;;  %2374 = vmatpush1.bf16.msra.mxu1 %v5689_v47  ;;  %v5737_v5 = vld [vmem:[%s7405_s5 + $0x548] ss:$16 sps:$4 sm:$0xff]   ;;  %v5742_v47 = vld [vmem:[%s7405_s5 + $0x564] ss:$16 sps:$4 sm:$0xff]  }
 0x118   : > { %2292 = vmatprep.subr.bf16.mxu0 %v5694_v61  ;;  %2375 = vmatprep.subr.bf16.mxu1 %v5697_v9  ;;  %v5745_v61 = vld [vmem:[%s7405_s5 + $0x56c] ss:$16 sps:$4 sm:$0xff]   ;;  %v5740_v9 = vld [vmem:[%s7405_s5 + $0x560] ss:$16 sps:$4 sm:$0xff]  }
 0x119   : > { %1908 = vmatprep.mubr.bf16.mxu0 %v5922_v2  ;;  %1991 = vmatprep.mubr.bf16.mxu1 %v5922_v2 }
 0x11b   : > { %2293 = vmatpush1.bf16.msra.mxu0 %v5692_v31  ;;  %2376 = vmatpush1.bf16.msra.mxu1 %v5695_v10  ;;  %v5743_v31 = vld [vmem:[%s7405_s5 + $0x568] ss:$16 sps:$4 sm:$0xff]   ;;  %v5748_v10 = vld [vmem:[%s7405_s5 + $0x584] ss:$16 sps:$4 sm:$0xff]  }
 0x11c   : > { %2294 = vmatprep.subr.bf16.mxu0 %v5700_v19  ;;  %2377 = vmatprep.subr.bf16.mxu1 %v5703_v41  ;;  %v5746_v19 = vld [vmem:[%s7405_s5 + $0x580] ss:$16 sps:$4 sm:$0xff]   ;;  %v5749_v41 = vld [vmem:[%s7405_s5 + $0x588] ss:$16 sps:$4 sm:$0xff]  }
 0x11e   : > { %1909 = vmatmul.mubr.bf16.gmra.mrb[8].mxu0 %v6309_v60  ;;  %1992 = vmatmul.mubr.bf16.gmra.mrb[8].mxu1 %v6309_v60  ;;  %v5715_v60 = vld [vmem:[%s7405_s5 + $0x4cc] ss:$16 sps:$4 sm:$0xff]  }
 0x11f   : > { %2295 = vmatpush1.bf16.msra.mxu0 %v5698_v21  ;;  %2378 = vmatpush1.bf16.msra.mxu1 %v5701_v36  ;;  %v5754_v21 = vld [vmem:[%s7405_s5 + $0x5a4] ss:$16 sps:$4 sm:$0xff]   ;;  %v5757_v36 = vld [vmem:[%s7405_s5 + $0x5ac] ss:$16 sps:$4 sm:$0xff]  }
 0x120   : > { %1918 = vmatprep.mubr.bf16.mxu0 %v5922_v2  ;;  %2001 = vmatprep.mubr.bf16.mxu1 %v5922_v2 }
 0x121   : > { %2296 = vmatprep.subr.bf16.mxu0 %v5706_v24  ;;  %2379 = vmatprep.subr.bf16.mxu1 %v5709_v3  ;;  %v5752_v24 = vld [vmem:[%s7405_s5 + $0x5a0] ss:$16 sps:$4 sm:$0xff]   ;;  %v5755_v3 = vld [vmem:[%s7405_s5 + $0x5a8] ss:$16 sps:$4 sm:$0xff]  }
 0x123   : > { %2297 = vmatpush1.bf16.msra.mxu0 %v5704_v26  ;;  %2380 = vmatpush1.bf16.msra.mxu1 %v5707_v54  ;;  %v5760_v26 = vld [vmem:[%s7405_s5 + $0x5c4] ss:$16 sps:$4 sm:$0xff]   ;;  %v5758_v54 = vld [vmem:[%s7405_s5 + $0x5c0] ss:$16 sps:$4 sm:$0xff]  }
 0x124   : > { %2298 = vmatprep.subr.bf16.mxu0 %v5712_v28  ;;  %2381 = vmatprep.subr.bf16.mxu1 %v5715_v60  ;;  %v5761_v28 = vld [vmem:[%s7405_s5 + $0x5c8] ss:$16 sps:$4 sm:$0xff]   ;;  %v5766_v60 = vld [vmem:[%s7405_s5 + $0x5e4] ss:$16 sps:$4 sm:$0xff]  }
 0x126   : > { %1919 = vmatmul.mubr.bf16.gmra.mrb[12].mxu0 %v1688_v45  ;;  %2002 = vmatmul.mubr.bf16.gmra.mrb[12].mxu1 %v1688_v45  ;;  %v5772_v45 = vld [vmem:[%s7405_s5 + $0x604] ss:$16 sps:$4 sm:$0xff]  }
 0x127   : > { %2299 = vmatpush1.bf16.msra.mxu0 %v5710_v63  ;;  %2382 = vmatpush1.bf16.msra.mxu1 %v5713_v43  ;;  %v5764_v63 = vld [vmem:[%s7405_s5 + $0x5e0] ss:$16 sps:$4 sm:$0xff]   ;;  %v5767_v43 = vld [vmem:[%s7405_s5 + $0x5e8] ss:$16 sps:$4 sm:$0xff]  }
 0x128   : > { %1928 = vmatprep.mubr.bf16.mxu0 %v5922_v2  ;;  %2011 = vmatprep.mubr.bf16.mxu1 %v5922_v2 }
 0x129   : > { %2300 = vmatprep.subr.bf16.mxu0 %v5718_v30  ;;  %2383 = vmatprep.subr.bf16.mxu1 %v5721_v25  ;;  %v5770_v30 = vld [vmem:[%s7405_s5 + $0x600] ss:$16 sps:$4 sm:$0xff]   ;;  %v5773_v25 = vld [vmem:[%s7405_s5 + $0x608] ss:$16 sps:$4 sm:$0xff]  }
 0x12b   : > { %2301 = vmatpush1.bf16.msra.mxu0 %v5716_v40  ;;  %2384 = vmatpush1.bf16.msra.mxu1 %v5719_v46  ;;  %v5778_v40 = vld [vmem:[%s7405_s5 + $0x624] ss:$16 sps:$4 sm:$0xff]   ;;  %v5776_v46 = vld [vmem:[%s7405_s5 + $0x620] ss:$16 sps:$4 sm:$0xff]  }
 0x12c   : > { %2702 = vmatprep.subr.bf16.mxu0 %v5724_v44  ;;  %2785 = vmatprep.subr.bf16.mxu1 %v5727_v49  ;;  %v5779_v44 = vld [vmem:[%s7405_s5 + $0x628] ss:$16 sps:$4 sm:$0xff]   ;;  %v5784_v49 = vld [vmem:[%s7405_s5 + $0x644] ss:$16 sps:$4 sm:$0xff]  }
 0x12e   : > { %1929 = vmatmul.mubr.bf16.gmra.mrb[16].mxu0 %v1690_v48  ;;  %2012 = vmatmul.mubr.bf16.gmra.mrb[16].mxu1 %v1690_v48  ;;  %v5785_v48 = vld [vmem:[%s7405_s5 + $0x648] ss:$16 sps:$4 sm:$0xff]  }
 0x12f   : > { %2318 = vmatprep.mubr.bf16.mxu0 %v5922_v2  ;;  %2401 = vmatprep.mubr.bf16.mxu1 %v5922_v2 }
 0x136   : > { %2319 = vmatmul.mubr.bf16.vlgmr.msra.gmra.mrb[0].mxu0 %v6340_v18  ;;  %2402 = vmatmul.mubr.bf16.vlgmr.msra.gmra.mrb[0].mxu1 %v6340_v18  ;;  %v5739_v18 = vld [vmem:[%s7405_s5 + $0x54c] ss:$16 sps:$4 sm:$0xff]  }
 0x137   : > { %2703 = vmatpush1.bf16.msra.mxu0 %v5722_v7  ;;  %2786 = vmatpush1.bf16.msra.mxu1 %v5725_v0  ;;  %v5790_v7 = vld [vmem:[%s7405_s5 + $0x664] ss:$16 sps:$4 sm:$0xff]   ;;  %v5793_v0 = vld [vmem:[%s7405_s5 + $0x66c] ss:$16 sps:$4 sm:$0xff]  }
 0x138   : > { %2704 = vmatprep.subr.bf16.mxu0 %v5730_v51  ;;  %2787 = vmatprep.subr.bf16.mxu1 %v5733_v13  ;;  %v5788_v51 = vld [vmem:[%s7405_s5 + $0x660] ss:$16 sps:$4 sm:$0xff]   ;;  %v5791_v13 = vld [vmem:[%s7405_s5 + $0x668] ss:$16 sps:$4 sm:$0xff]  }
 0x139   : > { %2328 = vmatprep.mubr.bf16.mxu0 %v5922_v2  ;;  %2411 = vmatprep.mubr.bf16.mxu1 %v5922_v2 }
 0x13b   : > { %2705 = vmatpush1.bf16.msra.mxu0 %v5728_v57  ;;  %2788 = vmatpush1.bf16.msra.mxu1 %v5731_v62  ;;  %v5796_v57 = vld [vmem:[%s7405_s5 + $0x684] ss:$16 sps:$4 sm:$0xff]   ;;  %v5794_v62 = vld [vmem:[%s7405_s5 + $0x680] ss:$16 sps:$4 sm:$0xff]  }
 0x13c   : > { %2706 = vmatprep.subr.bf16.mxu0 %v5736_v6  ;;  %2789 = vmatprep.subr.bf16.mxu1 %v5739_v18  ;;  %v5797_v6 = vld [vmem:[%s7405_s5 + $0x688] ss:$16 sps:$4 sm:$0xff]   ;;  %v5802_v18 = vld [vmem:[%s7405_s5 + $0x6a4] ss:$16 sps:$4 sm:$0xff]  }
 0x13e   : > { %2329 = vmatmul.mubr.bf16.gmra.mrb[4].mxu0 %v6352_v27  ;;  %2412 = vmatmul.mubr.bf16.gmra.mrb[4].mxu1 %v6352_v27  ;;  %v5751_v27 = vld [vmem:[%s7405_s5 + $0x58c] ss:$16 sps:$4 sm:$0xff]  }
 0x13f   : > { %2707 = vmatpush1.bf16.msra.mxu0 %v5734_v22  ;;  %2790 = vmatpush1.bf16.msra.mxu1 %v5737_v5  ;;  %v5805_v22 = vld [vmem:[%s7405_s5 + $0x6ac] ss:$16 sps:$4 sm:$0xff]   ;;  %v5800_v5 = vld [vmem:[%s7405_s5 + $0x6a0] ss:$16 sps:$4 sm:$0xff]  }
 0x140   : > { %2708 = vmatprep.subr.bf16.mxu0 %v5742_v47  ;;  %2791 = vmatprep.subr.bf16.mxu1 %v5745_v61  ;;  %v5803_v47 = vld [vmem:[%s7405_s5 + $0x6a8] ss:$16 sps:$4 sm:$0xff]   ;;  %v5808_v61 = vld [vmem:[%s7405_s5 + $0x6c4] ss:$16 sps:$4 sm:$0xff]  }
 0x141   : > { %2338 = vmatprep.mubr.bf16.mxu0 %v5922_v2  ;;  %2421 = vmatprep.mubr.bf16.mxu1 %v5922_v2 }
 0x143   : > { %2709 = vmatpush1.bf16.msra.mxu0 %v5740_v9  ;;  %2792 = vmatpush1.bf16.msra.mxu1 %v5743_v31  ;;  %v2533_v9 = vrot.slane %v6274_v42, 6  ;;  %v5806_v31 = vld [vmem:[%s7405_s5 + $0x6c0] ss:$16 sps:$4 sm:$0xff]  }
 0x144   : > { %2710 = vmatprep.subr.bf16.mxu0 %v5748_v10  ;;  %2793 = vmatprep.subr.bf16.mxu1 %v5751_v27  ;;  %v5809_v10 = vld [vmem:[%s7405_s5 + $0x6c8] ss:$16 sps:$4 sm:$0xff]  }
 0x145   : > { %v2534_v27 = vsel %vm2525_vm4, %v2531_v52, %v2533_v9  ;;  %v5815_v52 = vld [vmem:[%s7405_s5 + $0x6e8] ss:$16 sps:$4 sm:$0xff]  }
 0x146   : > { %2339 = vmatmul.mubr.bf16.gmra.mrb[8].mxu0 %v6376_v53  ;;  %2422 = vmatmul.mubr.bf16.gmra.mrb[8].mxu1 %v6376_v53  ;;  %v5763_v53 = vld [vmem:[%s7405_s5 + $0x5cc] ss:$16 sps:$4 sm:$0xff]  }
 0x147   : > { %2711 = vmatpush1.bf16.msra.mxu0 %v5746_v19  ;;  %2794 = vmatpush1.bf16.msra.mxu1 %v5749_v41  ;;  %v5814_v19 = vld [vmem:[%s7405_s5 + $0x6e4] ss:$16 sps:$4 sm:$0xff]   ;;  %v5817_v41 = vld [vmem:[%s7405_s5 + $0x6ec] ss:$16 sps:$4 sm:$0xff]  }
 0x148   : > { %2348 = vmatprep.mubr.bf16.mxu0 %v5922_v2  ;;  %2431 = vmatprep.mubr.bf16.mxu1 %v5922_v2 }
 0x149   : > { %2712 = vmatprep.subr.bf16.mxu0 %v5754_v21  ;;  %2795 = vmatprep.subr.bf16.mxu1 %v5757_v36  ;;  %v5812_v21 = vld [vmem:[%s7405_s5 + $0x6e0] ss:$16 sps:$4 sm:$0xff]   ;;  %v5820_v36 = vld [vmem:[%s7405_s5 + $0x704] ss:$16 sps:$4 sm:$0xff]  }
 0x14b   : > { %2713 = vmatpush1.bf16.msra.mxu0 %v5752_v24  ;;  %2796 = vmatpush1.bf16.msra.mxu1 %v5755_v3  ;;  %v5823_v24 = vld [vmem:[%s7405_s5 + $0x70c] ss:$16 sps:$4 sm:$0xff]   ;;  %v2535_v3 = vrot.slane %v6311_v4, 6 }
 0x14c   : > { %2714 = vmatprep.subr.bf16.mxu0 %v5760_v26  ;;  %2797 = vmatprep.subr.bf16.mxu1 %v5763_v53  ;;  %v5818_v53 = vld [vmem:[%s7405_s5 + $0x700] ss:$16 sps:$4 sm:$0xff]  }
 0x14d   : > { %v2536_v26 = vsel %vm2525_vm4, %v2533_v9, %v2535_v3  ;;  %v5874_v9 = vld [vmem:[%s7405_s5 + $0x824] ss:$16 sps:$4 sm:$0xff]  }
 0x14e   : > { %2349 = vmatmul.mubr.bf16.gmra.mrb[12].mxu0 %v6391_v59  ;;  %2432 = vmatmul.mubr.bf16.gmra.mrb[12].mxu1 %v6391_v59  ;;  %v5775_v59 = vld [vmem:[%s7405_s5 + $0x60c] ss:$16 sps:$4 sm:$0xff]   ;;  %v5892_v3 = vld [vmem:[%s7405_s5 + $0x884] ss:$16 sps:$4 sm:$0xff]  }
 0x14f   : > { %2715 = vmatpush1.bf16.msra.mxu0 %v5758_v54  ;;  %2798 = vmatpush1.bf16.msra.mxu1 %v5761_v28  ;;  %v5821_v54 = vld [vmem:[%s7405_s5 + $0x708] ss:$16 sps:$4 sm:$0xff]   ;;  %v5826_v28 = vld [vmem:[%s7405_s5 + $0x724] ss:$16 sps:$4 sm:$0xff]  }
 0x150   : > { %2358 = vmatprep.mubr.bf16.mxu0 %v5922_v2  ;;  %2441 = vmatprep.mubr.bf16.mxu1 %v5922_v2 }
 0x151   : > { %2716 = vmatprep.subr.bf16.mxu0 %v5766_v60  ;;  %2799 = vmatprep.subr.bf16.mxu1 %v5769_v35  ;;  %v5829_v60 = vld [vmem:[%s7405_s5 + $0x72c] ss:$16 sps:$4 sm:$0xff]   ;;  %v5824_v35 = vld [vmem:[%s7405_s5 + $0x720] ss:$16 sps:$4 sm:$0xff]  }
 0x153   : > { %2717 = vmatpush1.bf16.msra.mxu0 %v5764_v63  ;;  %2800 = vmatpush1.bf16.msra.mxu1 %v5767_v43  ;;  %v5827_v63 = vld [vmem:[%s7405_s5 + $0x728] ss:$16 sps:$4 sm:$0xff]   ;;  %v5832_v43 = vld [vmem:[%s7405_s5 + $0x744] ss:$16 sps:$4 sm:$0xff]  }
 0x154   : > { %3119 = vmatprep.subr.bf16.mxu0 %v5772_v45  ;;  %3202 = vmatprep.subr.bf16.mxu1 %v5775_v59  ;;  %v5830_v45 = vld [vmem:[%s7405_s5 + $0x740] ss:$16 sps:$4 sm:$0xff]   ;;  %v5833_v59 = vld [vmem:[%s7405_s5 + $0x748] ss:$16 sps:$4 sm:$0xff]  }
 0x156   : > { %2359 = vmatmul.mubr.bf16.gmra.mrb[16].mxu0 %v6408_v8  ;;  %2442 = vmatmul.mubr.bf16.gmra.mrb[16].mxu1 %v6408_v8  ;;  %v5781_v8 = vld [vmem:[%s7405_s5 + $0x62c] ss:$16 sps:$4 sm:$0xff]  }
 0x157   : > { %2734 = vmatprep.mubr.bf16.mxu0 %v5922_v2  ;;  %2817 = vmatprep.mubr.bf16.mxu1 %v5922_v2 }
 0x15e   : > { %2735 = vmatmul.mubr.bf16.vlgmr.msra.gmra.mrb[0].mxu0 %v6379_v55  ;;  %2818 = vmatmul.mubr.bf16.vlgmr.msra.gmra.mrb[0].mxu1 %v6379_v55  ;;  %v5787_v55 = vld [vmem:[%s7405_s5 + $0x64c] ss:$16 sps:$4 sm:$0xff]  }
 0x15f   : > { %3120 = vmatpush1.bf16.msra.mxu0 %v5770_v30  ;;  %3203 = vmatpush1.bf16.msra.mxu1 %v5773_v25  ;;  %v5838_v30 = vld [vmem:[%s7405_s5 + $0x764] ss:$16 sps:$4 sm:$0xff]   ;;  %v5841_v25 = vld [vmem:[%s7405_s5 + $0x76c] ss:$16 sps:$4 sm:$0xff]  }
 0x160   : > { %3121 = vmatprep.subr.bf16.mxu0 %v5778_v40  ;;  %3204 = vmatprep.subr.bf16.mxu1 %v5781_v8  ;;  %v5836_v40 = vld [vmem:[%s7405_s5 + $0x760] ss:$16 sps:$4 sm:$0xff]   ;;  %v5839_v8 = vld [vmem:[%s7405_s5 + $0x768] ss:$16 sps:$4 sm:$0xff]  }
 0x161   : > { %2744 = vmatprep.mubr.bf16.mxu0 %v5922_v2  ;;  %2827 = vmatprep.mubr.bf16.mxu1 %v5922_v2 }
 0x163   : > { %3122 = vmatpush1.bf16.msra.mxu0 %v5776_v46  ;;  %3205 = vmatpush1.bf16.msra.mxu1 %v5779_v44  ;;  %v5844_v46 = vld [vmem:[%s7405_s5 + $0x784] ss:$16 sps:$4 sm:$0xff]   ;;  %v2948_v44 = vrot.slane %v6274_v42, 2 }
 0x164   : > { %3123 = vmatprep.subr.bf16.mxu0 %v5784_v49  ;;  %3206 = vmatprep.subr.bf16.mxu1 %v5787_v55  ;;  %v5842_v49 = vld [vmem:[%s7405_s5 + $0x780] ss:$16 sps:$4 sm:$0xff]   ;;  %v5845_v55 = vld [vmem:[%s7405_s5 + $0x788] ss:$16 sps:$4 sm:$0xff]  }
 0x166   : > { %2745 = vmatmul.mubr.bf16.gmra.mrb[4].mxu0 %v6382_v56  ;;  %2828 = vmatmul.mubr.bf16.gmra.mrb[4].mxu1 %v6382_v56  ;;  %v5799_v56 = vld [vmem:[%s7405_s5 + $0x68c] ss:$16 sps:$4 sm:$0xff]  }
 0x167   : > { %3124 = vmatpush1.bf16.msra.mxu0 %v5782_v50  ;;  %3207 = vmatpush1.bf16.msra.mxu1 %v5785_v48  ;;  %v2949_v50 = vsel %vm2942_vm5, %v2946_v11, %v2948_v44  ;;  %v5850_v48 = vld [vmem:[%s7405_s5 + $0x7a4] ss:$16 sps:$4 sm:$0xff]   ;;  %v5851_v11 = vld [vmem:[%s7405_s5 + $0x7a8] ss:$16 sps:$4 sm:$0xff]  }
 0x168   : > { %3125 = vmatprep.subr.bf16.mxu0 %v5790_v7  ;;  %3208 = vmatprep.subr.bf16.mxu1 %v5793_v0  ;;  %v5853_v7 = vld [vmem:[%s7405_s5 + $0x7ac] ss:$16 sps:$4 sm:$0xff]   ;;  %v5848_v0 = vld [vmem:[%s7405_s5 + $0x7a0] ss:$16 sps:$4 sm:$0xff]  }
 0x169   : > { %2754 = vmatprep.mubr.bf16.mxu0 %v5922_v2  ;;  %2837 = vmatprep.mubr.bf16.mxu1 %v5922_v2 }
 0x16b   : > { %3126 = vmatpush1.bf16.msra.mxu0 %v5788_v51  ;;  %3209 = vmatpush1.bf16.msra.mxu1 %v5791_v13  ;;  %v5856_v51 = vld [vmem:[%s7405_s5 + $0x7c4] ss:$16 sps:$4 sm:$0xff]   ;;  %v5859_v13 = vld [vmem:[%s7405_s5 + $0x7cc] ss:$16 sps:$4 sm:$0xff]  }
 0x16c   : > { %3127 = vmatprep.subr.bf16.mxu0 %v5796_v57  ;;  %3210 = vmatprep.subr.bf16.mxu1 %v5799_v56  ;;  %v5854_v57 = vld [vmem:[%s7405_s5 + $0x7c0] ss:$16 sps:$4 sm:$0xff]   ;;  %v5857_v56 = vld [vmem:[%s7405_s5 + $0x7c8] ss:$16 sps:$4 sm:$0xff]  }
 0x16e   : > { %2755 = vmatmul.mubr.bf16.gmra.mrb[8].mxu0 %v6396_v1  ;;  %2838 = vmatmul.mubr.bf16.gmra.mrb[8].mxu1 %v6396_v1  ;;  %v5811_v1 = vld [vmem:[%s7405_s5 + $0x6cc] ss:$16 sps:$4 sm:$0xff]  }
 0x16f   : > { %3128 = vmatpush1.bf16.msra.mxu0 %v5794_v62  ;;  %3211 = vmatpush1.bf16.msra.mxu1 %v5797_v6  ;;  %v2951_v62 = vsel %vm2942_vm5, %v2948_v44, %v2950_v14  ;;  %v5862_v6 = vld [vmem:[%s7405_s5 + $0x7e4] ss:$16 sps:$4 sm:$0xff]   ;;  %v5863_v14 = vld [vmem:[%s7405_s5 + $0x7e8] ss:$16 sps:$4 sm:$0xff]  }
 0x170   : > { %2764 = vmatprep.mubr.bf16.mxu0 %v5922_v2  ;;  %2847 = vmatprep.mubr.bf16.mxu1 %v5922_v2 }
 0x171   : > { %3129 = vmatprep.subr.bf16.mxu0 %v5802_v18  ;;  %3212 = vmatprep.subr.bf16.mxu1 %v5805_v22  ;;  %v5865_v18 = vld [vmem:[%s7405_s5 + $0x7ec] ss:$16 sps:$4 sm:$0xff]   ;;  %v5860_v22 = vld [vmem:[%s7405_s5 + $0x7e0] ss:$16 sps:$4 sm:$0xff]  }
 0x173   : > { %3130 = vmatpush1.bf16.msra.mxu0 %v5800_v5  ;;  %3213 = vmatpush1.bf16.msra.mxu1 %v5803_v47  ;;  %v5868_v5 = vld [vmem:[%s7405_s5 + $0x804] ss:$16 sps:$4 sm:$0xff]   ;;  %v5871_v47 = vld [vmem:[%s7405_s5 + $0x80c] ss:$16 sps:$4 sm:$0xff]  }
 0x174   : > { %3131 = vmatprep.subr.bf16.mxu0 %v5808_v61  ;;  %3214 = vmatprep.subr.bf16.mxu1 %v5811_v1  ;;  %v5866_v61 = vld [vmem:[%s7405_s5 + $0x800] ss:$16 sps:$4 sm:$0xff]   ;;  %v5869_v1 = vld [vmem:[%s7405_s5 + $0x808] ss:$16 sps:$4 sm:$0xff]  }
 0x176   : > { %2765 = vmatmul.mubr.bf16.gmra.mrb[12].mxu0 %v2534_v27  ;;  %2848 = vmatmul.mubr.bf16.gmra.mrb[12].mxu1 %v2534_v27  ;;  %v5880_v27 = vld [vmem:[%s7405_s5 + $0x844] ss:$16 sps:$4 sm:$0xff]  }
 0x177   : > { %3132 = vmatpush1.bf16.msra.mxu0 %v5806_v31  ;;  %3215 = vmatpush1.bf16.msra.mxu1 %v5809_v10  ;;  %v5872_v31 = vld [vmem:[%s7405_s5 + $0x820] ss:$16 sps:$4 sm:$0xff]   ;;  %v5875_v10 = vld [vmem:[%s7405_s5 + $0x828] ss:$16 sps:$4 sm:$0xff]  }
 0x178   : > { %2774 = vmatprep.mubr.bf16.mxu0 %v5922_v2  ;;  %2857 = vmatprep.mubr.bf16.mxu1 %v5922_v2 }
 0x179   : > { %3133 = vmatprep.subr.bf16.mxu0 %v5814_v19  ;;  %3216 = vmatprep.subr.bf16.mxu1 %v5817_v41  ;;  %v5878_v19 = vld [vmem:[%s7405_s5 + $0x840] ss:$16 sps:$4 sm:$0xff]   ;;  %v5881_v41 = vld [vmem:[%s7405_s5 + $0x848] ss:$16 sps:$4 sm:$0xff]  }
 0x17b   : > { %3134 = vmatpush1.bf16.msra.mxu0 %v5812_v21  ;;  %3217 = vmatpush1.bf16.msra.mxu1 %v5815_v52  ;;  %v5886_v21 = vld [vmem:[%s7405_s5 + $0x864] ss:$16 sps:$4 sm:$0xff]   ;;  %v5889_v52 = vld [vmem:[%s7405_s5 + $0x86c] ss:$16 sps:$4 sm:$0xff]  }
 0x17c   : > { %3552 = vmatprep.subr.bf16.mxu0 %v5820_v36  ;;  %3635 = vmatprep.subr.bf16.mxu1 %v5823_v24  ;;  %v5884_v36 = vld [vmem:[%s7405_s5 + $0x860] ss:$16 sps:$4 sm:$0xff]   ;;  %v5887_v24 = vld [vmem:[%s7405_s5 + $0x868] ss:$16 sps:$4 sm:$0xff]  }
 0x17e   : > { %2775 = vmatmul.mubr.bf16.gmra.mrb[16].mxu0 %v2536_v26  ;;  %2858 = vmatmul.mubr.bf16.gmra.mrb[16].mxu1 %v2536_v26  ;;  %v5890_v26 = vld [vmem:[%s7405_s5 + $0x880] ss:$16 sps:$4 sm:$0xff]  }
 0x17f   : > { %3151 = vmatprep.mubr.bf16.mxu0 %v5922_v2  ;;  %3234 = vmatprep.mubr.bf16.mxu1 %v5922_v2 }
 0x186   : > { %3152 = vmatmul.mubr.bf16.vlgmr.msra.gmra.mrb[0].mxu0 %v6424_v29  ;;  %3235 = vmatmul.mubr.bf16.vlgmr.msra.gmra.mrb[0].mxu1 %v6424_v29  ;;  %v5835_v29 = vld [vmem:[%s7405_s5 + $0x74c] ss:$16 sps:$4 sm:$0xff]  }
 0x187   : > { %3553 = vmatpush1.bf16.msra.mxu0 %v5818_v53  ;;  %3636 = vmatpush1.bf16.msra.mxu1 %v5821_v54  ;;  %v5893_v53 = vld [vmem:[%s7405_s5 + $0x888] ss:$16 sps:$4 sm:$0xff]   ;;  %v5898_v54 = vld [vmem:[%s7405_s5 + $0x8a4] ss:$16 sps:$4 sm:$0xff]  }
 0x188   : > { %3554 = vmatprep.subr.bf16.mxu0 %v5826_v28  ;;  %3637 = vmatprep.subr.bf16.mxu1 %v5829_v60  ;;  %v5901_v28 = vld [vmem:[%s7405_s5 + $0x8ac] ss:$16 sps:$4 sm:$0xff]   ;;  %v5896_v60 = vld [vmem:[%s7405_s5 + $0x8a0] ss:$16 sps:$4 sm:$0xff]  }
 0x189   : > { %3161 = vmatprep.mubr.bf16.mxu0 %v5922_v2  ;;  %3244 = vmatprep.mubr.bf16.mxu1 %v5922_v2 }
 0x18b   : > { %3555 = vmatpush1.bf16.msra.mxu0 %v5824_v35  ;;  %3638 = vmatpush1.bf16.msra.mxu1 %v5827_v63  ;;  %v5899_v35 = vld [vmem:[%s7405_s5 + $0x8a8] ss:$16 sps:$4 sm:$0xff]   ;;  %v5904_v63 = vld [vmem:[%s7405_s5 + $0x8c4] ss:$16 sps:$4 sm:$0xff]  }
 0x18c   : > { %3556 = vmatprep.subr.bf16.mxu0 %v5832_v43  ;;  %3639 = vmatprep.subr.bf16.mxu1 %v5835_v29  ;;  %v5902_v43 = vld [vmem:[%s7405_s5 + $0x8c0] ss:$16 sps:$4 sm:$0xff]   ;;  %v5905_v29 = vld [vmem:[%s7405_s5 + $0x8c8] ss:$16 sps:$4 sm:$0xff]  }
 0x18e   : > { %3162 = vmatmul.mubr.bf16.gmra.mrb[4].mxu0 %v6429_v32  ;;  %3245 = vmatmul.mubr.bf16.gmra.mrb[4].mxu1 %v6429_v32  ;;  %v5847_v32 = vld [vmem:[%s7405_s5 + $0x78c] ss:$16 sps:$4 sm:$0xff]  }
 0x18f   : > { %3557 = vmatpush1.bf16.msra.mxu0 %v5830_v45  ;;  %3640 = vmatpush1.bf16.msra.mxu1 %v5833_v59  ;;  %v5910_v45 = vld [vmem:[%s7405_s5 + $0x8e4] ss:$16 sps:$4 sm:$0xff]   ;;  %v5913_v59 = vld [vmem:[%s7405_s5 + $0x8ec] ss:$16 sps:$4 sm:$0xff]  }
 0x190   : > { %3558 = vmatprep.subr.bf16.mxu0 %v5838_v30  ;;  %3641 = vmatprep.subr.bf16.mxu1 %v5841_v25  ;;  %v5908_v30 = vld [vmem:[%s7405_s5 + $0x8e0] ss:$16 sps:$4 sm:$0xff]   ;;  %v5911_v25 = vld [vmem:[%s7405_s5 + $0x8e8] ss:$16 sps:$4 sm:$0xff]  }
 0x191   : > { %3171 = vmatprep.mubr.bf16.mxu0 %v5922_v2  ;;  %3254 = vmatprep.mubr.bf16.mxu1 %v5922_v2 }
 0x193   : > { %3559 = vmatpush1.bf16.msra.mxu0 %v5836_v40  ;;  %3642 = vmatpush1.bf16.msra.mxu1 %v5839_v8 }
 0x194   : > { %3560 = vmatprep.subr.bf16.mxu0 %v5844_v46  ;;  %3643 = vmatprep.subr.bf16.mxu1 %v5847_v32 }
 0x196   : > { %3172 = vmatmul.mubr.bf16.gmra.mrb[8].mxu0 %v2949_v50  ;;  %3255 = vmatmul.mubr.bf16.gmra.mrb[8].mxu1 %v2949_v50 }
 0x197   : > { %3561 = vmatpush1.bf16.msra.mxu0 %v5842_v49  ;;  %3644 = vmatpush1.bf16.msra.mxu1 %v5845_v55 }
 0x198   : > { %3181 = vmatprep.mubr.bf16.mxu0 %v5922_v2  ;;  %3264 = vmatprep.mubr.bf16.mxu1 %v5922_v2 }
 0x199   : > { %3562 = vmatprep.subr.bf16.mxu0 %v5850_v48  ;;  %3645 = vmatprep.subr.bf16.mxu1 %v5853_v7 }
 0x19b   : > { %3563 = vmatpush1.bf16.msra.mxu0 %v5848_v0  ;;  %3646 = vmatpush1.bf16.msra.mxu1 %v5851_v11 }
 0x19c   : > { %3564 = vmatprep.subr.bf16.mxu0 %v5856_v51  ;;  %3647 = vmatprep.subr.bf16.mxu1 %v5859_v13 }
 0x19e   : > { %3182 = vmatmul.mubr.bf16.gmra.mrb[12].mxu0 %v2951_v62  ;;  %3265 = vmatmul.mubr.bf16.gmra.mrb[12].mxu1 %v2951_v62 }
 0x19f   : > { %3565 = vmatpush1.bf16.msra.mxu0 %v5854_v57  ;;  %3648 = vmatpush1.bf16.msra.mxu1 %v5857_v56 }
 0x1a0   : > { %3191 = vmatprep.mubr.bf16.mxu0 %v5922_v2  ;;  %3274 = vmatprep.mubr.bf16.mxu1 %v5922_v2 }
 0x1a1   : > { %3566 = vmatprep.subr.bf16.mxu0 %v5862_v6  ;;  %3649 = vmatprep.subr.bf16.mxu1 %v5865_v18 }
 0x1a3   : > { %3567 = vmatpush1.bf16.msra.mxu0 %v5860_v22  ;;  %3650 = vmatpush1.bf16.msra.mxu1 %v5863_v14 }
 0x1a4   : > { %3968 = vmatprep.subr.bf16.mxu0 %v5868_v5  ;;  %4051 = vmatprep.subr.bf16.mxu1 %v5871_v47  ;;  %v4197_v47 = vpop.permute.xlu1 %4196 }
 0x1a6   : > { %3192 = vmatmul.mubr.bf16.gmra.mrb[16].mxu0 %v6435_v15  ;;  %3275 = vmatmul.mubr.bf16.gmra.mrb[16].mxu1 %v6435_v15  ;;  %v5877_v15 = vld [vmem:[%s7405_s5 + $0x82c] ss:$16 sps:$4 sm:$0xff]  }
 0x1a7   : > { %3584 = vmatprep.mubr.bf16.mxu0 %v5922_v2  ;;  %3667 = vmatprep.mubr.bf16.mxu1 %v5922_v2 }
 0x1ae   : > { %3585 = vmatmul.mubr.bf16.vlgmr.msra.gmra.mrb[0].mxu0 %v6466_v58  ;;  %3668 = vmatmul.mubr.bf16.vlgmr.msra.gmra.mrb[0].mxu1 %v6466_v58  ;;  %v5883_v58 = vld [vmem:[%s7405_s5 + $0x84c] ss:$16 sps:$4 sm:$0xff]  }
 0x1af   : > { %3969 = vmatpush1.bf16.msra.mxu0 %v5866_v61  ;;  %4052 = vmatpush1.bf16.msra.mxu1 %v5869_v1 }
 0x1b0   : > { %3970 = vmatprep.subr.bf16.mxu0 %v5874_v9  ;;  %4053 = vmatprep.subr.bf16.mxu1 %v5877_v15 }
 0x1b1   : > { %3594 = vmatprep.mubr.bf16.mxu0 %v5922_v2  ;;  %3677 = vmatprep.mubr.bf16.mxu1 %v5922_v2 }
 0x1b3   : > { %3971 = vmatpush1.bf16.msra.mxu0 %v5872_v31  ;;  %4054 = vmatpush1.bf16.msra.mxu1 %v5875_v10 }
 0x1b4   : > { %3972 = vmatprep.subr.bf16.mxu0 %v5880_v27  ;;  %4055 = vmatprep.subr.bf16.mxu1 %v5883_v58 }
 0x1b6   : > { %3595 = vmatmul.mubr.bf16.gmra.mrb[4].mxu0 %v6472_v12  ;;  %3678 = vmatmul.mubr.bf16.gmra.mrb[4].mxu1 %v6472_v12  ;;  %v5895_v12 = vld [vmem:[%s7405_s5 + $0x88c] ss:$16 sps:$4 sm:$0xff]  }
 0x1b7   : > { %3973 = vmatpush1.bf16.msra.mxu0 %v5878_v19  ;;  %4056 = vmatpush1.bf16.msra.mxu1 %v5881_v41 }
 0x1b8   : > { %3974 = vmatprep.subr.bf16.mxu0 %v5886_v21  ;;  %4057 = vmatprep.subr.bf16.mxu1 %v5889_v52 }
 0x1b9   : > { %3604 = vmatprep.mubr.bf16.mxu0 %v5922_v2  ;;  %3687 = vmatprep.mubr.bf16.mxu1 %v5922_v2 }
 0x1bb   : > { %3975 = vmatpush1.bf16.msra.mxu0 %v5884_v36  ;;  %4058 = vmatpush1.bf16.msra.mxu1 %v5887_v24 }
 0x1bc   : > { %3976 = vmatprep.subr.bf16.mxu0 %v5892_v3  ;;  %4059 = vmatprep.subr.bf16.mxu1 %v5895_v12  ;;  %v5923_v3 = vmov 1983009808  }
 0x1bd   : > { %v7357_v12 = vunpack.c.l.s4 %v5923_v3 }
 0x1be   : > { %3605 = vmatmul.mubr.bf16.gmra.mrb[8].mxu0 %v6482_v17  ;;  %3688 = vmatmul.mubr.bf16.gmra.mrb[8].mxu1 %v6482_v17  ;;  %v5907_v17 = vld [vmem:[%s7405_s5 + $0x8cc] ss:$16 sps:$4 sm:$0xff]  }
 0x1bf   : > { %3977 = vmatpush1.bf16.msra.mxu0 %v5890_v26  ;;  %4060 = vmatpush1.bf16.msra.mxu1 %v5893_v53  ;;  %v4488_v26 = vlaneseq }
 0x1c0   : > { %3614 = vmatprep.mubr.bf16.mxu0 %v5922_v2  ;;  %3697 = vmatprep.mubr.bf16.mxu1 %v5922_v2 }
 0x1c1   : > { %3978 = vmatprep.subr.bf16.mxu0 %v5898_v54  ;;  %4061 = vmatprep.subr.bf16.mxu1 %v5901_v28 }
 0x1c3   : > { %3979 = vmatpush1.bf16.msra.mxu0 %v5896_v60  ;;  %4062 = vmatpush1.bf16.msra.mxu1 %v5899_v35 }
 0x1c4   : > { %3980 = vmatprep.subr.bf16.mxu0 %v5904_v63  ;;  %4063 = vmatprep.subr.bf16.mxu1 %v5907_v17 }
 0x1c6   : > { %3615 = vmatmul.mubr.bf16.gmra.mrb[12].mxu0 %v6493_v34  ;;  %3698 = vmatmul.mubr.bf16.gmra.mrb[12].mxu1 %v6493_v34  ;;  %v3797_v34 = vrot.slane %v6274_v42, 3  ;;  %v4192_v42 = vpop.permute.xlu0 %4191 }
 0x1c7   : > { %3981 = vmatpush1.bf16.msra.mxu0 %v5902_v43  ;;  %4064 = vmatpush1.bf16.msra.mxu1 %v5905_v29 }
 0x1c8   : > { %3624 = vmatprep.mubr.bf16.mxu0 %v5922_v2  ;;  %3707 = vmatprep.mubr.bf16.mxu1 %v5922_v2 }
 0x1c9   : > { %3982 = vmatprep.subr.bf16.mxu0 %v5910_v45  ;;  %4065 = vmatprep.subr.bf16.mxu1 %v5913_v59 }
 0x1ca   : > { %v4202_v17 = vpop.permute.xlu0 %4201 }
 0x1cb   : > { %3983 = vmatpush1.bf16.msra.mxu0 %v5908_v30  ;;  %4066 = vmatpush1.bf16.msra.mxu1 %v5911_v25 }
 0x1ce   : > { %3625 = vmatmul.mubr.bf16.gmra.mrb[16].mxu0 %v6500_v38  ;;  %3708 = vmatmul.mubr.bf16.gmra.mrb[16].mxu1 %v6500_v38  ;;  %v3798_v38 = vsel %vm3791_vm7, %v3795_v16, %v3797_v34 }
 0x1cf   : > { %4000 = vmatprep.mubr.bf16.mxu0 %v5922_v2  ;;  %4083 = vmatprep.mubr.bf16.mxu1 %v5922_v2 }
 0x1d6   : > { %4001 = vmatmul.mubr.bf16.vlgmr.msra.gmra.mrb[0].mxu0 %v6485_v20  ;;  %4084 = vmatmul.mubr.bf16.vlgmr.msra.gmra.mrb[0].mxu1 %v6485_v20  ;;  %v3800_v20 = vsel %vm3791_vm7, %v3797_v34, %v3799_v37 }
 0x1d7   : > { %4010 = vmatprep.mubr.bf16.mxu0 %v5922_v2  ;;  %4093 = vmatprep.mubr.bf16.mxu1 %v5922_v2 }
 0x1de   : > { %4011 = vmatmul.mubr.bf16.gmra.mrb[4].mxu0 %v6490_v33  ;;  %4094 = vmatmul.mubr.bf16.gmra.mrb[4].mxu1 %v6490_v33 }
 0x1df   : > { %4020 = vmatprep.mubr.bf16.mxu0 %v5922_v2  ;;  %4103 = vmatprep.mubr.bf16.mxu1 %v5922_v2 }
 0x1e6   : > { %4021 = vmatmul.mubr.bf16.gmra.mrb[8].mxu0 %v3798_v38  ;;  %4104 = vmatmul.mubr.bf16.gmra.mrb[8].mxu1 %v3798_v38 }
 0x1e7   : > { %4030 = vmatprep.mubr.bf16.mxu0 %v5922_v2  ;;  %4113 = vmatprep.mubr.bf16.mxu1 %v5922_v2 }
 0x1ee   : > { %4031 = vmatmul.mubr.bf16.gmra.mrb[12].mxu0 %v3800_v20  ;;  %4114 = vmatmul.mubr.bf16.gmra.mrb[12].mxu1 %v3800_v20 }
 0x1ef   : > { %4040 = vmatprep.mubr.bf16.mxu0 %v5922_v2  ;;  %4123 = vmatprep.mubr.bf16.mxu1 %v5922_v2 }
 0x1f6   : > { %4041 = vmatmul.mubr.bf16.gmra.mrb[16].mxu0 %v6505_v39  ;;  %4124 = vmatmul.mubr.bf16.gmra.mrb[16].mxu1 %v6505_v39 }
 0x2a9   : > { %v4002_v4 = vpop.f32.mrb[0].mxu0  ;;  %v4085_v16 = vpop.f32.mrb[0].mxu1 }
 0x2aa   : > { %v4234_v33 = vmul.f32 %v4187_v23, %v4002_v4  ;;  %v4236_v37 = vmul.f32 %v4187_v23, %v4085_v16  ;;  %v4004_v2 = vpop.f32.mrb[1].mxu0  ;;  %v4087_v40 = vpop.f32.mrb[1].mxu1 }
 0x2ab   : > { %v4235_v8 = vmul.f32 %v4187_v23, %v4004_v2  ;;  %v4237_v39 = vmul.f32 %v4187_v23, %v4087_v40  ;;  %v4006_v46 = vpop.f32.mrb[2].mxu0  ;;  %v4089_v32 = vpop.f32.mrb[2].mxu1 }
 0x2ac   : > { %4274 = vst [vmem:[%s7347_s29] sm:$0xff] %v4234_v33  ;;  %v4374_v44 = vmul.f32 %v4234_v33, %v4234_v33  ;;  %4276 = vst [vmem:[%s7347_s29 + $0x10] sm:$0xff] %v4236_v37  ;;  %v4376_v49 = vmul.f32 %v4236_v37, %v4236_v37  ;;  %v4238_v55 = vmul.f32 %v4192_v42, %v4006_v46  ;;  %v4008_v48 = vpop.f32.mrb[3].mxu0  ;;  %v4091_v7 = vpop.f32.mrb[3].mxu1 }
 0x2ad   : > { %v4240_v50 = vmul.f32 %v4192_v42, %v4089_v32  ;;  %4275 = vst [vmem:[%s7347_s29 + $0x8] sm:$0xff] %v4235_v8  ;;  %v4375_v0 = vmul.f32 %v4235_v8, %v4235_v8  ;;  %4277 = vst [vmem:[%s7347_s29 + $0x18] sm:$0xff] %v4237_v39  ;;  %v4377_v11 = vmul.f32 %v4237_v39, %v4237_v39  ;;  %v4207_v16 = vpop.permute.xlu1 %4206 }
 0x2ae   : > { %v4239_v51 = vmul.f32 %v4192_v42, %v4008_v48  ;;  %v4241_v13 = vmul.f32 %v4192_v42, %v4091_v7  ;;  %4278 = vst [vmem:[%s7347_s29 + $0x20] sm:$0xff] %v4238_v55  ;;  %v4314_v57 = vadd.f32 %v4238_v55, %v4234_v33  ;;  %v4378_v56 = vmul.f32 %v4238_v55, %v4238_v55 }
 0x2af   : > { %4280 = vst [vmem:[%s7347_s29 + $0x30] sm:$0xff] %v4240_v50  ;;  %v4344_v62 = vadd.f32 %v4240_v50, %v4236_v37  ;;  %v4380_v6 = vmul.f32 %v4240_v50, %v4240_v50 }
 0x2b0   : > { %4279 = vst [vmem:[%s7347_s29 + $0x28] sm:$0xff] %v4239_v51  ;;  %v4329_v18 = vadd.f32 %v4239_v51, %v4235_v8  ;;  %v4379_v22 = vmul.f32 %v4239_v51, %v4239_v51  ;;  %4281 = vst [vmem:[%s7347_s29 + $0x38] sm:$0xff] %v4241_v13  ;;  %v4359_v14 = vadd.f32 %v4241_v13, %v4237_v39 }
 0x2b1   : > { %v4381_v5 = vmul.f32 %v4241_v13, %v4241_v13  ;;  %v4414_v61 = vadd.f32 %v4378_v56, %v4374_v44  ;;  %v4444_v1 = vadd.f32 %v4380_v6, %v4376_v49  ;;  %v4012_v31 = vpop.f32.mrb[4].mxu0  ;;  %v4095_v10 = vpop.f32.mrb[4].mxu1 }
 0x2b2   : > { %v4429_v9 = vadd.f32 %v4379_v22, %v4375_v0  ;;  %v4242_v27 = vmul.f32 %v4197_v47, %v4012_v31  ;;  %v4244_v58 = vmul.f32 %v4197_v47, %v4095_v10  ;;  %v4014_v19 = vpop.f32.mrb[5].mxu0  ;;  %v4097_v41 = vpop.f32.mrb[5].mxu1 }
 0x2b3   : > { %v4459_v15 = vadd.f32 %v4381_v5, %v4377_v11  ;;  %v4243_v21 = vmul.f32 %v4197_v47, %v4014_v19  ;;  %v4245_v52 = vmul.f32 %v4197_v47, %v4097_v41  ;;  %v4016_v36 = vpop.f32.mrb[6].mxu0  ;;  %v4099_v24 = vpop.f32.mrb[6].mxu1 }
 0x2b4   : > { %4282 = vst [vmem:[%s7347_s29 + $0x40] sm:$0xff] %v4242_v27  ;;  %v4315_v53 = vadd.f32 %v4314_v57, %v4242_v27  ;;  %v4382_v54 = vmul.f32 %v4242_v27, %v4242_v27  ;;  %4284 = vst [vmem:[%s7347_s29 + $0x50] sm:$0xff] %v4244_v58  ;;  %v4345_v28 = vadd.f32 %v4344_v62, %v4244_v58  ;;  %v4018_v35 = vpop.f32.mrb[7].mxu0  ;;  %v4101_v63 = vpop.f32.mrb[7].mxu1 }
 0x2b5   : > { %v4384_v60 = vmul.f32 %v4244_v58, %v4244_v58  ;;  %4283 = vst [vmem:[%s7347_s29 + $0x48] sm:$0xff] %v4243_v21  ;;  %v4330_v43 = vadd.f32 %v4329_v18, %v4243_v21  ;;  %v4383_v29 = vmul.f32 %v4243_v21, %v4243_v21  ;;  %4285 = vst [vmem:[%s7347_s29 + $0x58] sm:$0xff] %v4245_v52  ;;  %v4217_v3 = vpop.permute.xlu1 %4216 }
 0x2b6   : > { %v4360_v45 = vadd.f32 %v4359_v14, %v4245_v52  ;;  %v4385_v59 = vmul.f32 %v4245_v52, %v4245_v52  ;;  %v4415_v30 = vadd.f32 %v4414_v61, %v4382_v54  ;;  %v4246_v34 = vmul.f32 %v4202_v17, %v4016_v36 }
 0x2b7   : > { %v4445_v25 = vadd.f32 %v4444_v1, %v4384_v60  ;;  %v4248_v38 = vmul.f32 %v4202_v17, %v4099_v24  ;;  %v4430_v20 = vadd.f32 %v4429_v9, %v4383_v29  ;;  %v4247_v42 = vmul.f32 %v4202_v17, %v4018_v35  ;;  %v4212_v1 = vpop.permute.xlu0 %4211 }
 0x2b8   : > { %v4460_v23 = vadd.f32 %v4459_v15, %v4385_v59  ;;  %v4249_v4 = vmul.f32 %v4202_v17, %v4101_v63  ;;  %4286 = vst [vmem:[%s7347_s29 + $0x60] sm:$0xff] %v4246_v34  ;;  %v4316_v33 = vadd.f32 %v4315_v53, %v4246_v34  ;;  %v4386_v37 = vmul.f32 %v4246_v34, %v4246_v34 }
 0x2b9   : > { %4288 = vst [vmem:[%s7347_s29 + $0x70] sm:$0xff] %v4248_v38  ;;  %v4346_v2 = vadd.f32 %v4345_v28, %v4248_v38  ;;  %v4388_v40 = vmul.f32 %v4248_v38, %v4248_v38  ;;  %4287 = vst [vmem:[%s7347_s29 + $0x68] sm:$0xff] %v4247_v42  ;;  %v4331_v8 = vadd.f32 %v4330_v43, %v4247_v42  ;;  %v4022_v44 = vpop.f32.mrb[8].mxu0  ;;  %v4105_v49 = vpop.f32.mrb[8].mxu1 }
 0x2ba   : > { %v4387_v39 = vmul.f32 %v4247_v42, %v4247_v42  ;;  %4289 = vst [vmem:[%s7347_s29 + $0x78] sm:$0xff] %v4249_v4  ;;  %v4361_v46 = vadd.f32 %v4360_v45, %v4249_v4  ;;  %v4389_v32 = vmul.f32 %v4249_v4, %v4249_v4  ;;  %v4416_v55 = vadd.f32 %v4415_v30, %v4386_v37  ;;  %v4024_v0 = vpop.f32.mrb[9].mxu0  ;;  %v4107_v11 = vpop.f32.mrb[9].mxu1 }
 0x2bb   : > { %v4446_v50 = vadd.f32 %v4445_v25, %v4388_v40  ;;  %v4250_v48 = vmul.f32 %v4207_v16, %v4022_v44  ;;  %v4252_v7 = vmul.f32 %v4207_v16, %v4105_v49  ;;  %v4251_v57 = vmul.f32 %v4207_v16, %v4024_v0  ;;  %v4026_v62 = vpop.f32.mrb[10].mxu0  ;;  %v4109_v6 = vpop.f32.mrb[10].mxu1 }
 0x2bc   : > { %v4431_v51 = vadd.f32 %v4430_v20, %v4387_v39  ;;  %v4461_v13 = vadd.f32 %v4460_v23, %v4389_v32  ;;  %v4253_v56 = vmul.f32 %v4207_v16, %v4107_v11  ;;  %v4028_v47 = vpop.f32.mrb[11].mxu0  ;;  %v4111_v61 = vpop.f32.mrb[11].mxu1  ;;  %v4254_v19 = vmul.f32 %v4212_v1, %v4026_v62 }
 0x2bd   : > { %4290 = vst [vmem:[%s7347_s29 + $0x80] sm:$0xff] %v4250_v48  ;;  %v4317_v18 = vadd.f32 %v4316_v33, %v4250_v48  ;;  %v4390_v22 = vmul.f32 %v4250_v48, %v4250_v48  ;;  %4292 = vst [vmem:[%s7347_s29 + $0x90] sm:$0xff] %v4252_v7  ;;  %v4347_v14 = vadd.f32 %v4346_v2, %v4252_v7  ;;  %v4222_v44 = vpop.permute.xlu0 %4221 }
 0x2be   : > { %v4392_v5 = vmul.f32 %v4252_v7, %v4252_v7  ;;  %4291 = vst [vmem:[%s7347_s29 + $0x88] sm:$0xff] %v4251_v57  ;;  %v4332_v9 = vadd.f32 %v4331_v8, %v4251_v57  ;;  %v4391_v15 = vmul.f32 %v4251_v57, %v4251_v57  ;;  %4293 = vst [vmem:[%s7347_s29 + $0x98] sm:$0xff] %v4253_v56 }
 0x2bf   : > { %v4362_v31 = vadd.f32 %v4361_v46, %v4253_v56  ;;  %v4393_v10 = vmul.f32 %v4253_v56, %v4253_v56  ;;  %v4417_v27 = vadd.f32 %v4416_v55, %v4390_v22  ;;  %v4256_v41 = vmul.f32 %v4212_v1, %v4109_v6  ;;  %4294 = vst [vmem:[%s7347_s29 + $0xa0] sm:$0xff] %v4254_v19  ;;  %v4227_v6 = vpop.permute.xlu1 %4226 }
 0x2c0   : > { %v4447_v58 = vadd.f32 %v4446_v50, %v4392_v5  ;;  %v4432_v21 = vadd.f32 %v4431_v51, %v4391_v15  ;;  %v4255_v36 = vmul.f32 %v4212_v1, %v4028_v47  ;;  %v4257_v24 = vmul.f32 %v4212_v1, %v4111_v61 }
 0x2c1   : > { %v4462_v52 = vadd.f32 %v4461_v13, %v4393_v10  ;;  %v4318_v53 = vadd.f32 %v4317_v18, %v4254_v19  ;;  %v4394_v54 = vmul.f32 %v4254_v19, %v4254_v19  ;;  %4296 = vst [vmem:[%s7347_s29 + $0xb0] sm:$0xff] %v4256_v41  ;;  %v4348_v28 = vadd.f32 %v4347_v14, %v4256_v41  ;;  %v4032_v29 = vpop.f32.mrb[12].mxu0  ;;  %v4115_v45 = vpop.f32.mrb[12].mxu1 }
 0x2c2   : > { %v4396_v60 = vmul.f32 %v4256_v41, %v4256_v41  ;;  %4295 = vst [vmem:[%s7347_s29 + $0xa8] sm:$0xff] %v4255_v36  ;;  %v4333_v35 = vadd.f32 %v4332_v9, %v4255_v36  ;;  %v4395_v63 = vmul.f32 %v4255_v36, %v4255_v36  ;;  %4297 = vst [vmem:[%s7347_s29 + $0xb8] sm:$0xff] %v4257_v24  ;;  %v4034_v38 = vpop.f32.mrb[13].mxu0  ;;  %v4117_v20 = vpop.f32.mrb[13].mxu1 }
 0x2c3   : > { %v4363_v17 = vadd.f32 %v4362_v31, %v4257_v24  ;;  %v4397_v43 = vmul.f32 %v4257_v24, %v4257_v24  ;;  %v4418_v59 = vadd.f32 %v4417_v27, %v4394_v54  ;;  %v4258_v25 = vmul.f32 %v4217_v3, %v4032_v29  ;;  %v4036_v33 = vpop.f32.mrb[14].mxu0  ;;  %v4119_v37 = vpop.f32.mrb[14].mxu1 }
 0x2c4   : > { %v4448_v30 = vadd.f32 %v4447_v58, %v4396_v60  ;;  %v4260_v34 = vmul.f32 %v4217_v3, %v4115_v45  ;;  %v4433_v23 = vadd.f32 %v4432_v21, %v4395_v63  ;;  %v4259_v4 = vmul.f32 %v4217_v3, %v4034_v38  ;;  %v4038_v46 = vpop.f32.mrb[15].mxu0  ;;  %v4121_v32 = vpop.f32.mrb[15].mxu1 }
 0x2c5   : > { %v4463_v42 = vadd.f32 %v4462_v52, %v4397_v43  ;;  %v4261_v16 = vmul.f32 %v4217_v3, %v4117_v20  ;;  %4298 = vst [vmem:[%s7347_s29 + $0xc0] sm:$0xff] %v4258_v25  ;;  %v4319_v2 = vadd.f32 %v4318_v53, %v4258_v25  ;;  %v4398_v40 = vmul.f32 %v4258_v25, %v4258_v25  ;;  %v4232_v29 = vpop.permute.xlu0 %4231 }
 0x2c6   : > { %4300 = vst [vmem:[%s7347_s29 + $0xd0] sm:$0xff] %v4260_v34  ;;  %v4349_v8 = vadd.f32 %v4348_v28, %v4260_v34  ;;  %v4400_v39 = vmul.f32 %v4260_v34, %v4260_v34  ;;  %4299 = vst [vmem:[%s7347_s29 + $0xc8] sm:$0xff] %v4259_v4  ;;  %v4334_v49 = vadd.f32 %v4333_v35, %v4259_v4 }
 0x2c7   : > { %v4399_v55 = vmul.f32 %v4259_v4, %v4259_v4  ;;  %4301 = vst [vmem:[%s7347_s29 + $0xd8] sm:$0xff] %v4261_v16  ;;  %v4364_v50 = vadd.f32 %v4363_v17, %v4261_v16  ;;  %v4401_v48 = vmul.f32 %v4261_v16, %v4261_v16  ;;  %v4419_v7 = vadd.f32 %v4418_v59, %v4398_v40 }
 0x2c8   : > { %v4449_v0 = vadd.f32 %v4448_v30, %v4400_v39  ;;  %v4262_v11 = vmul.f32 %v4222_v44, %v4036_v33  ;;  %v4264_v51 = vmul.f32 %v4222_v44, %v4119_v37  ;;  %v4263_v56 = vmul.f32 %v4222_v44, %v4038_v46 }
 0x2c9   : > { %v4434_v13 = vadd.f32 %v4433_v23, %v4399_v55  ;;  %v4464_v57 = vadd.f32 %v4463_v42, %v4401_v48  ;;  %v4265_v62 = vmul.f32 %v4222_v44, %v4121_v32  ;;  %v4042_v15 = vpop.f32.mrb[16].mxu0  ;;  %v4125_v31 = vpop.f32.mrb[16].mxu1 }
 0x2ca   : > { %4302 = vst [vmem:[%s7347_s29 + $0xe0] sm:$0xff] %v4262_v11  ;;  %v4320_v18 = vadd.f32 %v4319_v2, %v4262_v11  ;;  %v4402_v22 = vmul.f32 %v4262_v11, %v4262_v11  ;;  %4304 = vst [vmem:[%s7347_s29 + $0xf0] sm:$0xff] %v4264_v51  ;;  %v4350_v14 = vadd.f32 %v4349_v8, %v4264_v51  ;;  %v4044_v41 = vpop.f32.mrb[17].mxu0  ;;  %v4127_v21 = vpop.f32.mrb[17].mxu1 }
 0x2cb   : > { %v4404_v5 = vmul.f32 %v4264_v51, %v4264_v51  ;;  %4303 = vst [vmem:[%s7347_s29 + $0xe8] sm:$0xff] %v4263_v56  ;;  %v4335_v47 = vadd.f32 %v4334_v49, %v4263_v56  ;;  %v4403_v61 = vmul.f32 %v4263_v56, %v4263_v56  ;;  %4305 = vst [vmem:[%s7347_s29 + $0xf8] sm:$0xff] %v4265_v62  ;;  %v4046_v53 = vpop.f32.mrb[18].mxu0  ;;  %v4129_v54 = vpop.f32.mrb[18].mxu1 }
 0x2cc   : > { %v4365_v1 = vadd.f32 %v4364_v50, %v4265_v62  ;;  %v4405_v9 = vmul.f32 %v4265_v62, %v4265_v62  ;;  %v4420_v10 = vadd.f32 %v4419_v7, %v4402_v22  ;;  %v4266_v58 = vmul.f32 %v4227_v6, %v4042_v15  ;;  %v4048_v17 = vpop.f32.mrb[19].mxu0  ;;  %v4131_v43 = vpop.f32.mrb[19].mxu1 }
 0x2cd   : > { %v4450_v27 = vadd.f32 %v4449_v0, %v4404_v5  ;;  %v4268_v19 = vmul.f32 %v4227_v6, %v4125_v31  ;;  %v4435_v52 = vadd.f32 %v4434_v13, %v4403_v61  ;;  %v4267_v24 = vmul.f32 %v4227_v6, %v4044_v41 }
 0x2ce   : > { %v4465_v36 = vadd.f32 %v4464_v57, %v4405_v9  ;;  %v4269_v3 = vmul.f32 %v4227_v6, %v4127_v21  ;;  %4306 = vst [vmem:[%s7347_s29 + $0x100] sm:$0xff] %v4266_v58  ;;  %v4321_v28 = vadd.f32 %v4320_v18, %v4266_v58  ;;  %v4406_v60 = vmul.f32 %v4266_v58, %v4266_v58 }
 0x2cf   : > { %4308 = vst [vmem:[%s7347_s29 + $0x110] sm:$0xff] %v4268_v19  ;;  %v4351_v35 = vadd.f32 %v4350_v14, %v4268_v19  ;;  %v4408_v63 = vmul.f32 %v4268_v19, %v4268_v19  ;;  %4307 = vst [vmem:[%s7347_s29 + $0x108] sm:$0xff] %v4267_v24  ;;  %v4336_v45 = vadd.f32 %v4335_v47, %v4267_v24 }
 0x2d0   : > { %v4407_v59 = vmul.f32 %v4267_v24, %v4267_v24  ;;  %4309 = vst [vmem:[%s7347_s29 + $0x118] sm:$0xff] %v4269_v3  ;;  %v4366_v30 = vadd.f32 %v4365_v1, %v4269_v3  ;;  %v4409_v25 = vmul.f32 %v4269_v3, %v4269_v3  ;;  %v4421_v34 = vadd.f32 %v4420_v10, %v4406_v60 }
 0x2d1   : > { %v4451_v38 = vadd.f32 %v4450_v27, %v4408_v63  ;;  %v4270_v20 = vmul.f32 %v4232_v29, %v4046_v53  ;;  %v4272_v23 = vmul.f32 %v4232_v29, %v4129_v54  ;;  %v4271_v16 = vmul.f32 %v4232_v29, %v4048_v17 }
 0x2d2   : > { %v4436_v42 = vadd.f32 %v4435_v52, %v4407_v59  ;;  %v4466_v4 = vadd.f32 %v4465_v36, %v4409_v25  ;;  %v4273_v33 = vmul.f32 %v4232_v29, %v4131_v43  ;;  %v4489_v59 = vshrl.u32 %v4488_v26, 7 }
 0x2d3   : > { %4310 = vst [vmem:[%s7347_s29 + $0x120] sm:$0xff] %v4270_v20  ;;  %v4322_v37 = vadd.f32 %v4321_v28, %v4270_v20  ;;  %v4410_v2 = vmul.f32 %v4270_v20, %v4270_v20  ;;  %4312 = vst [vmem:[%s7347_s29 + $0x130] sm:$0xff] %v4272_v23  ;;  %v4352_v40 = vadd.f32 %v4351_v35, %v4272_v23 }
 0x2d4   : > { %v4412_v8 = vmul.f32 %v4272_v23, %v4272_v23  ;;  %4311 = vst [vmem:[%s7347_s29 + $0x128] sm:$0xff] %v4271_v16  ;;  %v4337_v39 = vadd.f32 %v4336_v45, %v4271_v16  ;;  %v4411_v46 = vmul.f32 %v4271_v16, %v4271_v16  ;;  %4313 = vst [vmem:[%s7347_s29 + $0x138] sm:$0xff] %v4273_v33  ;;  %v4487_v45 = vunpack.c.0.s8 %v7357_v12 }
 0x2d5   : > { %v4367_v32 = vadd.f32 %v4366_v30, %v4273_v33  ;;  %v4413_v44 = vmul.f32 %v4273_v33, %v4273_v33  ;;  %v4323_v49 = vrot.slane %v4322_v37, 4  ;;  %v4422_v55 = vadd.f32 %v4421_v34, %v4410_v2 }
 0x2d6   : > { %v4353_v50 = vrot.slane %v4352_v40, 4  ;;  %v4452_v48 = vadd.f32 %v4451_v38, %v4412_v8  ;;  %v4338_v7 = vrot.slane %v4337_v39, 4  ;;  %v4437_v0 = vadd.f32 %v4436_v42, %v4411_v46 }
 0x2d7   : > { %v4368_v11 = vrot.slane %v4367_v32, 4  ;;  %v4467_v51 = vadd.f32 %v4466_v4, %v4413_v44  ;;  %v4324_v13 = vadd.f32 %v4323_v49, %v4322_v37  ;;  %v4423_v57 = vrot.slane %v4422_v55, 4 }
 0x2d8   : > { %v4354_v56 = vadd.f32 %v4353_v50, %v4352_v40  ;;  %v4453_v62 = vrot.slane %v4452_v48, 4  ;;  %v4339_v6 = vadd.f32 %v4338_v7, %v4337_v39  ;;  %v4438_v18 = vrot.slane %v4437_v0, 4 }
 0x2d9   : > { %v4369_v22 = vadd.f32 %v4368_v11, %v4367_v32  ;;  %v4468_v14 = vrot.slane %v4467_v51, 4  ;;  %v4325_v5 = vrot.slane %v4324_v13, 2  ;;  %v4424_v47 = vadd.f32 %v4423_v57, %v4422_v55 }
 0x2da   : > { %v4355_v61 = vrot.slane %v4354_v56, 2  ;;  %v4454_v1 = vadd.f32 %v4453_v62, %v4452_v48  ;;  %v4340_v9 = vrot.slane %v4339_v6, 2  ;;  %v4439_v15 = vadd.f32 %v4438_v18, %v4437_v0 }
 0x2db   : > { %v4370_v31 = vrot.slane %v4369_v22, 2  ;;  %v4469_v10 = vadd.f32 %v4468_v14, %v4467_v51  ;;  %v4326_v27 = vadd.f32 %v4325_v5, %v4324_v13  ;;  %v4425_v58 = vrot.slane %v4424_v47, 2 }
 0x2dc   : > { %v4356_v19 = vadd.f32 %v4355_v61, %v4354_v56  ;;  %v4455_v41 = vrot.slane %v4454_v1, 2  ;;  %v4341_v21 = vadd.f32 %v4340_v9, %v4339_v6  ;;  %v4440_v52 = vrot.slane %v4439_v15, 2 }
 0x2dd   : > { %v4371_v36 = vadd.f32 %v4370_v31, %v4369_v22  ;;  %v4470_v24 = vrot.slane %v4469_v10, 2  ;;  %v4327_v3 = vrot.slane %v4326_v27, 1  ;;  %v4426_v53 = vadd.f32 %v4425_v58, %v4424_v47 }
 0x2de   : > { %v4357_v54 = vrot.slane %v4356_v19, 1  ;;  %v4456_v28 = vadd.f32 %v4455_v41, %v4454_v1  ;;  %v4342_v60 = vrot.slane %v4341_v21, 1  ;;  %v4441_v35 = vadd.f32 %v4440_v52, %v4439_v15 }
 0x2df   : > { %v4372_v63 = vrot.slane %v4371_v36, 1  ;;  %v4471_v17 = vadd.f32 %v4470_v24, %v4469_v10  ;;  %v4427_v43 = vrot.slane %v4426_v53, 1  ;;  %v4328_v34 = vadd.f32 %v4327_v3, %v4326_v27 }
 0x2e0   : > { %v4457_v29 = vrot.slane %v4456_v28, 1  ;;  %v4442_v30 = vrot.slane %v4441_v35, 1  ;;  %v4358_v20 = vadd.f32 %v4357_v54, %v4356_v19  ;;  %v4343_v42 = vadd.f32 %v4342_v60, %v4341_v21 }
 0x2e1   : > { %v4472_v25 = vrot.slane %v4471_v17, 1  ;;  %v4428_v38 = vadd.f32 %v4427_v43, %v4426_v53  ;;  %v4373_v16 = vadd.f32 %v4372_v63, %v4371_v36  ;;  %v4490_v40 = vsub.s32 %v4487_v45, %v4489_v59 }
 0x2e2   : > { %v4458_v23 = vadd.f32 %v4457_v29, %v4456_v28  ;;  %v4443_v4 = vadd.f32 %v4442_v30, %v4441_v35 }
 0x2e3   : > { %v4473_v33 = vadd.f32 %v4472_v25, %v4471_v17  ;;  %v4475_v37 = vsel %vm4474_vm8, %v4328_v34, %v4428_v38 }
 0x2e4   : > { %v4477_v2 = vsel %vm4474_vm8, %v4358_v20, %v4458_v23  ;;  %v4476_v8 = vsel %vm4474_vm8, %v4343_v42, %v4443_v4 }
 0x2e5   : > { %v4478_v39 = vsel %vm4474_vm8, %v4373_v16, %v4473_v33  ;;  %v4483_v12 = vcombine.low %v4475_v37, %v4476_v8 }
 0x2e6   : > { %v4484_v26 = vcombine.low %v4477_v2, %v4478_v39 }
 0x2e7   : > { %v4491_v46 = vrot.slane %v4483_v12, %v4490_v40 }
 0x2e8   : > { %v4498_v32 = vrot.slane %v4484_v26, %v4490_v40 }
 0x2ea   : > { %v4499_v44 = vcombine.low %v4491_v46, %v4498_v32 }
 0x2ec   : > { %4501 = vst [vmem:[%s291_s10] sm:$0xff] %v4499_v44 }
 0x2ed PF: > { %s18_s24 = sadd.s32 1, %s5920_s24  }
 0x2ee   : > { %p15_p4 = scmp.ge.s32.totalorder %s18_s24, 4  }
 0x2f0   :  { %17 = sbr.rel (!%p15_p4) target bundleno = 1 (0x1), region = 94 }

// kernel: generator_forward.8
= control target key start
LH: loop header
LB: loop body
LE: loop exit
PB: predicated region body
PF: predicated region fallthrough
CT: control target
= control target key end

     0   :  { %s4503_s24 = smov 0   ;;  %s6253_s0 = inlined_call_operand.vmem [shape: f32[2,128,512], index: 0, kind: input, shape index: {}]   ;;  %s6254_s1 = inlined_call_operand.vmem [shape: f32[128,1], index: 1, kind: input, shape index: {}]   ;;  %s6255_s2 = inlined_call_operand.vmem [shape: f32[128,1], index: 2, kind: input, shape index: {}]   ;;  %s6256_s3 = inlined_call_operand.vmem [shape: f32[1,512], index: 3, kind: input, shape index: {}]   ;;  %s6257_s4 = inlined_call_operand.vmem [shape: f32[1,384], index: 4, kind: input, shape index: {}]   ;;  %s6258_s5 = inlined_call_operand.vmem [shape: bf16[9,64,128], index: 5, kind: input, shape index: {}]   ;;  %s6259_s6 = inlined_call_operand.vmem [shape: f32[2,64,384], index: 6, kind: output, shape index: {0}]   ;;  %s6260_s7 = inlined_call_operand.vmem [shape: f32[2,64,2], index: 7, kind: output, shape index: {1}]  }
   0x1 LB: > { %s3760_s25 = sadd.s32 4294967295, %s4452_s24   ;;  %p3764_p0 = scmp.ge.s32.totalorder %s4452_s24, 1  ;;  %s4452_s24 = sphi %s4503_s24, %s18_s24  }
   0x2   : > { %p240_p1 = scmp.lt.s32.totalorder %s4452_s24, 3 }
   0x4   : > { %p241_p2 = pnand %p3764_p0, %p240_p1 }
   0x6   : > { %244 = sbr.rel (%p241_p2) target bundleno = 1198 (0x4ae), region = 44 }
   0xd   : > { %v517_v0 = vld [vmem:[%s6255_s2] sm:$0xff]  ;;  %v6264_v2 = vmov 0   ;;  %v518_v3 = vld [vmem:[%s6255_s2 + $0x8] sm:$0xff]  ;;  %v360_v5 = vld [vmem:[%s6254_s1 + $0x18] sm:$0xff]  ;;  %p277_p3 = scmp.lt.s32.totalorder %s3760_s25, 1  ;;  %v743_v33 = vlaneseq  ;;  %s4455_s10 = smov 127  }
   0xe   : > { %v357_v1 = vld [vmem:[%s6254_s1] sm:$0xff]  ;;  %4409 = vset.pattern.permute.xlu1 %v6264_v2  ;;  %4408 = vset.pattern.permute.xlu0 %v6264_v2  ;;  %v358_v4 = vld [vmem:[%s6254_s1 + $0x8] sm:$0xff]  ;;  %v359_v6 = vld [vmem:[%s6254_s1 + $0x10] sm:$0xff]  ;;  %s4456_s13 = smov 126   ;;  %vm996_vm0 = vcmask 1039360   ;;  %s4457_s14 = smov 110  }
   0xf   : > { %535 = vperm.xlu1 %4409, %v517_v0   ;;  %375 = vperm.xlu0 %4408, %v357_v1   ;;  %v520_v7 = vld [vmem:[%s6255_s2 + $0x18] sm:$0xff]  ;;  %v519_v8 = vld [vmem:[%s6255_s2 + $0x10] sm:$0xff]  ;;  %v362_v9 = vld [vmem:[%s6254_s1 + $0x28] sm:$0xff]  ;;  %s6281_s25 = smov (!%p277_p3, %s3760_s25), 1  ;;  %v4624_v36 = vshrl.u32 %v743_v33, 7  ;;  %s4458_s17 = smov 109  }
  0x10   : > { %1077 = vmatprep.mubr.bf16.mxu0 %v6264_v2  ;;  %v361_v10 = vld [vmem:[%s6254_s1 + $0x20] sm:$0xff]  ;;  %v522_v11 = vld [vmem:[%s6255_s2 + $0x28] sm:$0xff]  ;;  %v364_v13 = vld [vmem:[%s6254_s1 + $0x38] sm:$0xff]  ;;  %s3872_s27 = sshll.u32 %s6281_s25, 9  ;;  %vm1442_vm1 = vcmask 1031168   ;;  %vm1750_vm2 = vcmask 900096  }
  0x11   : > { %v521_v12 = vld [vmem:[%s6255_s2 + $0x20] sm:$0xff]  ;;  %v363_v14 = vld [vmem:[%s6254_s1 + $0x30] sm:$0xff]  ;;  %v524_v15 = vld [vmem:[%s6255_s2 + $0x38] sm:$0xff]  ;;  %s4620_s30 = scalar_lea.vmem %s6253_s0, %s3872_s27  ;;  %6270 = vst [vmem:[#allocation2_spill] sm:$0xff] %v4624_v36  ;;  %v6262_v43 = vsub.s32 1, %v4624_v36  ;;  %v6261_v44 = vsub.s32 2, %v4624_v36 }
  0x12   : > { %v523_v16 = vld [vmem:[%s6255_s2 + $0x30] sm:$0xff]  ;;  %v366_v17 = vld [vmem:[%s6254_s1 + $0x48] sm:$0xff]  ;;  %v365_v18 = vld [vmem:[%s6254_s1 + $0x40] sm:$0xff]  ;;  %v6263_v53 = vsub.s32 0, %v4624_v36  ;;  %vm2058_vm3 = vcmask 891904   ;;  %s4460_s22 = smov 92  }
  0x13   : > { %540 = vperm.xlu1 %4409, %v518_v3   ;;  %380 = vperm.xlu0 %4408, %v358_v4   ;;  %v526_v19 = vld [vmem:[%s6255_s2 + $0x48] sm:$0xff]  ;;  %v525_v20 = vld [vmem:[%s6255_s2 + $0x40] sm:$0xff]  ;;  %v368_v21 = vld [vmem:[%s6254_s1 + $0x58] sm:$0xff]  ;;  %vm2366_vm4 = vcmask 883712   ;;  %vm2674_vm5 = vcmask 752640   ;;  %s4462_s20 = smov 90  }
  0x14   : > { %v367_v22 = vld [vmem:[%s6254_s1 + $0x50] sm:$0xff]  ;;  %v528_v23 = vld [vmem:[%s6255_s2 + $0x58] sm:$0xff]  ;;  %v370_v25 = vld [vmem:[%s6254_s1 + $0x68] sm:$0xff]  ;;  %vm2982_vm6 = vcmask 744448   ;;  %vm3290_vm7 = vcmask 736256   ;;  %s4390_s29 = smul.u32 192, %s6281_s25 }
  0x15   : > { %v527_v24 = vld [vmem:[%s6255_s2 + $0x50] sm:$0xff]  ;;  %v369_v26 = vld [vmem:[%s6254_s1 + $0x60] sm:$0xff]  ;;  %v530_v27 = vld [vmem:[%s6255_s2 + $0x68] sm:$0xff]  ;;  %s3873_s12 = sshll.u32 %s6281_s25, 6  ;;  %vm3630_vm8 = vcmask 7168   ;;  %vm3639_vm9 = vcmask 15360  }
  0x16   : > { %v529_v28 = vld [vmem:[%s6255_s2 + $0x60] sm:$0xff]  ;;  %v372_v29 = vld [vmem:[%s6254_s1 + $0x78] sm:$0xff]  ;;  %v371_v30 = vld [vmem:[%s6254_s1 + $0x70] sm:$0xff]  ;;  %s6153_s11 = scalar_lea.vmem %s6259_s6, %s4390_s29  ;;  %s6224_s15 = scalar_lea.vmem %s6260_s7, %s3873_s12 }
  0x17   : > { %390 = vperm.xlu1 %4409, %v360_v5   ;;  %385 = vperm.xlu0 %4408, %v359_v6   ;;  %v532_v31 = vld [vmem:[%s6255_s2 + $0x78] sm:$0xff]  ;;  %v531_v32 = vld [vmem:[%s6255_s2 + $0x70] sm:$0xff]  ;;  %v294_v34 = vld [vmem:[%s4620_s30 + $0x8] sm:$0xff] }
  0x18   : > { %v295_v35 = vld [vmem:[%s4620_s30 + $0x10] sm:$0xff]  ;;  %v293_v37 = vld [vmem:[%s4620_s30] sm:$0xff]  ;;  %v298_v47 = vld [vmem:[%s4620_s30 + $0x28] sm:$0xff] }
  0x19   : > { %v297_v46 = vld [vmem:[%s4620_s30 + $0x20] sm:$0xff]  ;;  %v299_v48 = vld [vmem:[%s4620_s30 + $0x30] sm:$0xff]  ;;  %v306_v4 = vld [vmem:[%s4620_s30 + $0x68] sm:$0xff] }
  0x1a   : > { %v4638_v49 = vld [vmem:[%s6256_s3] sm:$0xf]  ;;  %v307_v5 = vld [vmem:[%s4620_s30 + $0x70] sm:$0xff] }
  0x1b   : > { %550 = vperm.xlu1 %4409, %v520_v7   ;;  %545 = vperm.xlu0 %4408, %v519_v8   ;;  %v4653_v58 = vrot.slane %v4638_v49, %v6262_v43  ;;  %v4658_v59 = vrot.slane %v4638_v49, %v6261_v44  ;;  %v305_v3 = vld [vmem:[%s4620_s30 + $0x60] sm:$0xff]  ;;  %v757_v7 = vsub.s32 3, %v4624_v36  ;;  %v4674_v8 = vrot.slane %v4638_v49, %v6263_v53  ;;  %v352_v36 = vld [vmem:[%s4620_s30 + $0x1d8] sm:$0xff] }
  0x1f   : > { %400 = vperm.xlu1 %4409, %v362_v9   ;;  %395 = vperm.xlu0 %4408, %v361_v10  }
  0x23   : > { %560 = vperm.xlu1 %4409, %v522_v11   ;;  %555 = vperm.xlu0 %4408, %v521_v12   ;;  %v301_v12 = vld [vmem:[%s4620_s30 + $0x40] sm:$0xff] }
  0x27   : > { %410 = vperm.xlu1 %4409, %v364_v13   ;;  %405 = vperm.xlu0 %4408, %v363_v14  }
  0x2b   : > { %570 = vperm.xlu1 %4409, %v524_v15   ;;  %565 = vperm.xlu0 %4408, %v523_v16  }
  0x2f   : > { %420 = vperm.xlu1 %4409, %v366_v17   ;;  %415 = vperm.xlu0 %4408, %v365_v18   ;;  %v302_v17 = vld [vmem:[%s4620_s30 + $0x48] sm:$0xff]  ;;  %v303_v18 = vld [vmem:[%s4620_s30 + $0x50] sm:$0xff] }
  0x33   : > { %580 = vperm.xlu1 %4409, %v526_v19   ;;  %575 = vperm.xlu0 %4408, %v525_v20   ;;  %v296_v19 = vld [vmem:[%s4620_s30 + $0x18] sm:$0xff] }
  0x37   : > { %430 = vperm.xlu1 %4409, %v368_v21   ;;  %425 = vperm.xlu0 %4408, %v367_v22  }
  0x3b   : > { %590 = vperm.xlu1 %4409, %v528_v23   ;;  %585 = vperm.xlu0 %4408, %v527_v24  }
  0x3f   : > { %440 = vperm.xlu1 %4409, %v370_v25   ;;  %435 = vperm.xlu0 %4408, %v369_v26  }
  0x43   : > { %600 = vperm.xlu1 %4409, %v530_v27   ;;  %595 = vperm.xlu0 %4408, %v529_v28  }
  0x47   : > { %450 = vperm.xlu1 %4409, %v372_v29   ;;  %445 = vperm.xlu0 %4408, %v371_v30  }
  0x4b   : > { %610 = vperm.xlu1 %4409, %v532_v31   ;;  %605 = vperm.xlu0 %4408, %v531_v32  }
  0x8e   : > { %v4627_v38 = vpop.permute.xlu1 %535  ;;  %v376_v39 = vpop.permute.xlu0 %375 }
  0x8f   : > { %v454_v40 = vmul.f32 %v376_v39, %v294_v34  ;;  %v455_v41 = vmul.f32 %v376_v39, %v295_v35  ;;  %v453_v42 = vmul.f32 %v376_v39, %v293_v37  ;;  %v456_v34 = vmul.f32 %v376_v39, %v296_v19 }
  0x91   : > { %v614_v45 = vadd.f32 %v4627_v38, %v454_v40  ;;  %v615_v50 = vadd.f32 %v4627_v38, %v455_v41  ;;  %v613_v54 = vadd.f32 %v4627_v38, %v453_v42 }
  0x92   : > { %v4641_v51 = vpop.permute.xlu1 %540  ;;  %v4643_v52 = vpop.permute.xlu0 %380 }
  0x93   : > { %v457_v55 = vmul.f32 %v4643_v52, %v297_v46  ;;  %v458_v56 = vmul.f32 %v4643_v52, %v298_v47  ;;  %v459_v57 = vmul.f32 %v4643_v52, %v299_v48  ;;  %v678_v60 = vmax.f32 %v614_v45, 0.0 }
  0x94   : > { %v679_v61 = vmax.f32 %v615_v50, 0.0  ;;  %v677_v9 = vmax.f32 %v613_v54, 0.0  ;;  %v300_v50 = vld [vmem:[%s4620_s30 + $0x38] sm:$0xff] }
  0x95   : > { %v617_v62 = vadd.f32 %v4641_v51, %v457_v55  ;;  %v618_v63 = vadd.f32 %v4641_v51, %v458_v56  ;;  %v619_v0 = vadd.f32 %v4641_v51, %v459_v57  ;;  %v764_v20 = vmul.f32 %v4653_v58, %v678_v60  ;;  %v313_v60 = vld [vmem:[%s4620_s30 + $0xa0] sm:$0xff] }
  0x96   : > { %v4663_v1 = vpop.permute.xlu1 %390  ;;  %v4668_v6 = vpop.permute.xlu0 %385  ;;  %v765_v21 = vmul.f32 %v4658_v59, %v679_v61  ;;  %v763_v48 = vmul.f32 %v4674_v8, %v677_v9  ;;  %v314_v61 = vld [vmem:[%s4620_s30 + $0xa8] sm:$0xff] }
  0x97   : > { %v682_v10 = vmax.f32 %v618_v63, 0.0  ;;  %v683_v11 = vmax.f32 %v619_v0, 0.0  ;;  %v681_v13 = vmax.f32 %v617_v62, 0.0  ;;  %v465_v14 = vmul.f32 %v4663_v1, %v305_v3  ;;  %v315_v62 = vld [vmem:[%s4620_s30 + $0xb0] sm:$0xff]  ;;  %v310_v9 = vld [vmem:[%s4620_s30 + $0x88] sm:$0xff] }
  0x98   : > { %v466_v15 = vmul.f32 %v4663_v1, %v306_v4  ;;  %v467_v16 = vmul.f32 %v4663_v1, %v307_v5  ;;  %v461_v26 = vmul.f32 %v4668_v6, %v301_v12  ;;  %v462_v32 = vmul.f32 %v4668_v6, %v302_v17  ;;  %v309_v5 = vld [vmem:[%s4620_s30 + $0x80] sm:$0xff] }
  0x99   : > { %v768_v22 = vmul.f32 %v4653_v58, %v682_v10  ;;  %v769_v23 = vmul.f32 %v4658_v59, %v683_v11  ;;  %v463_v33 = vmul.f32 %v4668_v6, %v303_v18  ;;  %v767_v35 = vmul.f32 %v4674_v8, %v681_v13  ;;  %v311_v10 = vld [vmem:[%s4620_s30 + $0x90] sm:$0xff] }
  0x9a   : > { %v4687_v24 = vpop.permute.xlu1 %550  ;;  %v4689_v25 = vpop.permute.xlu0 %545  ;;  %v4720_v63 = vrot.slane %v4638_v49, %v757_v7  ;;  %v616_v0 = vadd.f32 %v4627_v38, %v456_v34  ;;  %v460_v11 = vmul.f32 %v4643_v52, %v300_v50  ;;  %v321_v50 = vld [vmem:[%s4620_s30 + $0xe0] sm:$0xff] }
  0x9b   : > { %v625_v27 = vadd.f32 %v4687_v24, %v465_v14  ;;  %v626_v28 = vadd.f32 %v4687_v24, %v466_v15  ;;  %v627_v29 = vadd.f32 %v4687_v24, %v467_v16  ;;  %v4695_v30 = vpack.c.bf16 %v768_v22, %v764_v20 }
  0x9c   : > { %v4697_v31 = vpack.c.bf16 %v769_v23, %v765_v21  ;;  %v621_v42 = vadd.f32 %v4689_v25, %v461_v26  ;;  %v622_v45 = vadd.f32 %v4689_v25, %v462_v32  ;;  %v623_v46 = vadd.f32 %v4689_v25, %v463_v33 }
  0x9d   : > { %v690_v37 = vmax.f32 %v626_v28, 0.0  ;;  %v691_v40 = vmax.f32 %v627_v29, 0.0  ;;  %v689_v41 = vmax.f32 %v625_v27, 0.0  ;;  %934 = vrot.lane.b32.xlu0 %v4695_v30, %s4455_s10  ;;  %v4723_v3 = vpack.c.bf16 %v767_v35, %v763_v48 }
  0x9e   : > { %936 = vrot.lane.b32.xlu1 %v4697_v31, %s4455_s10  ;;  %v4707_v47 = vpop.permute.xlu1 %400  ;;  %v4709_v39 = vpop.permute.xlu0 %395  ;;  %v685_v55 = vmax.f32 %v621_v42, 0.0  ;;  %v686_v56 = vmax.f32 %v622_v45, 0.0  ;;  %v687_v57 = vmax.f32 %v623_v46, 0.0  ;;  %v680_v27 = vmax.f32 %v616_v0, 0.0  ;;  %v308_v42 = vld [vmem:[%s4620_s30 + $0x78] sm:$0xff]  ;;  %v317_v0 = vld [vmem:[%s4620_s30 + $0xc0] sm:$0xff] }
  0x9f   : > { %v776_v54 = vmul.f32 %v4653_v58, %v690_v37  ;;  %v777_v4 = vmul.f32 %v4658_v59, %v691_v40  ;;  %v775_v12 = vmul.f32 %v4674_v8, %v689_v41  ;;  %v473_v7 = vmul.f32 %v4707_v47, %v313_v60 }
  0xa0   : > { %v772_v13 = vmul.f32 %v4653_v58, %v686_v56  ;;  %v773_v14 = vmul.f32 %v4658_v59, %v687_v57  ;;  %v771_v38 = vmul.f32 %v4674_v8, %v685_v55  ;;  %v474_v16 = vmul.f32 %v4707_v47, %v314_v61  ;;  %v322_v56 = vld [vmem:[%s4620_s30 + $0xe8] sm:$0xff]  ;;  %v323_v57 = vld [vmem:[%s4620_s30 + $0xf0] sm:$0xff] }
  0xa1   : > { %v475_v17 = vmul.f32 %v4707_v47, %v315_v62  ;;  %932 = vrot.lane.b32.xlu0 %v4723_v3, %s4455_s10  ;;  %v469_v18 = vmul.f32 %v4709_v39, %v309_v5  ;;  %v470_v19 = vmul.f32 %v4709_v39, %v310_v9  ;;  %v471_v20 = vmul.f32 %v4709_v39, %v311_v10  ;;  %v319_v5 = vld [vmem:[%s4620_s30 + $0xd0] sm:$0xff] }
  0xa2   : > { %v4733_v15 = vpop.permute.xlu1 %560  ;;  %v4735_v49 = vpop.permute.xlu0 %555  ;;  %v4743_v52 = vpack.c.bf16 %v776_v54, %v772_v13  ;;  %v4748_v21 = vpack.c.bf16 %v777_v4, %v773_v14  ;;  %v4763_v35 = vadd.f32 %v4641_v51, %v460_v11  ;;  %v4768_v45 = vpack.c.bf16 %v775_v12, %v771_v38  ;;  %v318_v4 = vld [vmem:[%s4620_s30 + $0xc8] sm:$0xff]  ;;  %v304_v13 = vld [vmem:[%s4620_s30 + $0x58] sm:$0xff] }
  0xa3   : > { %v633_v22 = vadd.f32 %v4733_v15, %v473_v7  ;;  %v634_v23 = vadd.f32 %v4733_v15, %v474_v16  ;;  %v635_v26 = vadd.f32 %v4733_v15, %v475_v17  ;;  %v629_v28 = vadd.f32 %v4735_v49, %v469_v18 }
  0xa4   : > { %v630_v29 = vadd.f32 %v4735_v49, %v470_v19  ;;  %v631_v32 = vadd.f32 %v4735_v49, %v471_v20  ;;  %942 = vrot.lane.b32.xlu1 %v4743_v52, %s4455_s10  ;;  %v4776_v60 = vmul.f32 %v4720_v63, %v680_v27  ;;  %v684_v11 = vmax.f32 %v4763_v35, 0.0  ;;  %v316_v19 = vld [vmem:[%s4620_s30 + $0xb8] sm:$0xff] }
  0xa5   : > { %v697_v37 = vmax.f32 %v633_v22, 0.0  ;;  %v698_v40 = vmax.f32 %v634_v23, 0.0  ;;  %v699_v41 = vmax.f32 %v635_v26, 0.0  ;;  %944 = vrot.lane.b32.xlu0 %v4748_v21, %s4455_s10  ;;  %v693_v55 = vmax.f32 %v629_v28, 0.0 }
  0xa6   : > { %v4758_v33 = vpop.permute.xlu1 %410  ;;  %v4760_v34 = vpop.permute.xlu0 %405  ;;  %v694_v46 = vmax.f32 %v630_v29, 0.0  ;;  %v695_v48 = vmax.f32 %v631_v32, 0.0  ;;  %v468_v12 = vmul.f32 %v4663_v1, %v308_v42  ;;  %v464_v26 = vmul.f32 %v4668_v6, %v304_v13 }
  0xa7   : > { %v784_v54 = vmul.f32 %v4653_v58, %v698_v40  ;;  %v785_v51 = vmul.f32 %v4658_v59, %v699_v41  ;;  %v783_v14 = vmul.f32 %v4674_v8, %v697_v37  ;;  %v481_v38 = vmul.f32 %v4758_v33, %v321_v50  ;;  %v312_v41 = vld [vmem:[%s4620_s30 + $0x98] sm:$0xff] }
  0xa8   : > { %v780_v61 = vmul.f32 %v4653_v58, %v694_v46  ;;  %v781_v62 = vmul.f32 %v4658_v59, %v695_v48  ;;  %940 = vrot.lane.b32.xlu1 %v4768_v45, %s4455_s10  ;;  %v482_v17 = vmul.f32 %v4758_v33, %v322_v56  ;;  %v483_v18 = vmul.f32 %v4758_v33, %v323_v57 }
  0xa9   : > { %v779_v20 = vmul.f32 %v4674_v8, %v693_v55  ;;  %v477_v22 = vmul.f32 %v4760_v34, %v317_v0  ;;  %v478_v1 = vmul.f32 %v4760_v34, %v318_v4  ;;  %v479_v23 = vmul.f32 %v4760_v34, %v319_v5  ;;  %v330_v5 = vld [vmem:[%s4620_s30 + $0x128] sm:$0xff] }
  0xaa   : > { %v4785_v9 = vpop.permute.xlu1 %570  ;;  %v4787_v10 = vpop.permute.xlu0 %565  ;;  %v4794_v7 = vpack.c.bf16 %v784_v54, %v780_v61  ;;  %v4796_v16 = vpack.c.bf16 %v785_v51, %v781_v62  ;;  %v628_v40 = vadd.f32 %v4687_v24, %v468_v12  ;;  %v476_v48 = vmul.f32 %v4707_v47, %v316_v19  ;;  %v329_v61 = vld [vmem:[%s4620_s30 + $0x120] sm:$0xff]  ;;  %v331_v12 = vld [vmem:[%s4620_s30 + $0x130] sm:$0xff] }
  0xab   : > { %v641_v27 = vadd.f32 %v4785_v9, %v481_v38  ;;  %v642_v28 = vadd.f32 %v4785_v9, %v482_v17  ;;  %v643_v29 = vadd.f32 %v4785_v9, %v483_v18  ;;  %v637_v42 = vadd.f32 %v4787_v10, %v477_v22 }
  0xac   : > { %952 = vrot.lane.b32.xlu1 %v4796_v16, %s4455_s10  ;;  %v638_v6 = vadd.f32 %v4787_v10, %v478_v1  ;;  %v639_v46 = vadd.f32 %v4787_v10, %v479_v23  ;;  %950 = vrot.lane.b32.xlu0 %v4794_v7, %s4455_s10  ;;  %v4823_v55 = vpack.c.bf16 %v783_v14, %v779_v20  ;;  %v692_v38 = vmax.f32 %v628_v40, 0.0  ;;  %v326_v20 = vld [vmem:[%s4620_s30 + $0x108] sm:$0xff] }
  0xad   : > { %v705_v50 = vmax.f32 %v641_v27, 0.0  ;;  %v706_v54 = vmax.f32 %v642_v28, 0.0  ;;  %v707_v51 = vmax.f32 %v643_v29, 0.0  ;;  %v701_v24 = vmax.f32 %v637_v42, 0.0 }
  0xae   : > { %v4811_v32 = vpop.permute.xlu1 %420  ;;  %v4813_v37 = vpop.permute.xlu0 %415  ;;  %v702_v56 = vmax.f32 %v638_v6, 0.0  ;;  %v703_v57 = vmax.f32 %v639_v46, 0.0  ;;  %v624_v62 = vadd.f32 %v4689_v25, %v464_v26  ;;  %v472_v0 = vmul.f32 %v4709_v39, %v312_v41  ;;  %v325_v25 = vld [vmem:[%s4620_s30 + $0x100] sm:$0xff]  ;;  %v327_v39 = vld [vmem:[%s4620_s30 + $0x110] sm:$0xff] }
  0xaf   : > { %v792_v4 = vmul.f32 %v4653_v58, %v706_v54  ;;  %v793_v47 = vmul.f32 %v4658_v59, %v707_v51  ;;  %v636_v17 = vadd.f32 %v4733_v15, %v476_v48  ;;  %v791_v1 = vmul.f32 %v4674_v8, %v705_v50 }
  0xb0   : > { %v788_v18 = vmul.f32 %v4653_v58, %v702_v56  ;;  %v789_v19 = vmul.f32 %v4658_v59, %v703_v57  ;;  %948 = vrot.lane.b32.xlu0 %v4823_v55, %s4455_s10  ;;  %v632_v22 = vadd.f32 %v4735_v49, %v472_v0  ;;  %v787_v23 = vmul.f32 %v4674_v8, %v701_v24 }
  0xb1   : > { %v489_v26 = vmul.f32 %v4811_v32, %v329_v61  ;;  %v490_v28 = vmul.f32 %v4811_v32, %v330_v5  ;;  %v491_v29 = vmul.f32 %v4811_v32, %v331_v12  ;;  %v688_v40 = vmax.f32 %v624_v62, 0.0 }
  0xb2   : > { %v4832_v13 = vpop.permute.xlu1 %580  ;;  %v4834_v14 = vpop.permute.xlu0 %575  ;;  %v4848_v27 = vpack.c.bf16 %v792_v4, %v788_v18  ;;  %v4850_v15 = vpack.c.bf16 %v793_v47, %v789_v19  ;;  %v485_v41 = vmul.f32 %v4813_v37, %v325_v25  ;;  %v486_v42 = vmul.f32 %v4813_v37, %v326_v20  ;;  %v320_v18 = vld [vmem:[%s4620_s30 + $0xd8] sm:$0xff]  ;;  %v337_v20 = vld [vmem:[%s4620_s30 + $0x160] sm:$0xff] }
  0xb3   : > { %v487_v49 = vmul.f32 %v4813_v37, %v327_v39  ;;  %v700_v48 = vmax.f32 %v636_v17, 0.0  ;;  %v649_v50 = vadd.f32 %v4832_v13, %v489_v26  ;;  %v650_v54 = vadd.f32 %v4832_v13, %v490_v28  ;;  %v324_v17 = vld [vmem:[%s4620_s30 + $0xf8] sm:$0xff]  ;;  %v339_v26 = vld [vmem:[%s4620_s30 + $0x170] sm:$0xff] }
  0xb4   : > { %v651_v51 = vadd.f32 %v4832_v13, %v491_v29  ;;  %958 = vrot.lane.b32.xlu1 %v4848_v27, %s4455_s10  ;;  %v696_v24 = vmax.f32 %v632_v22, 0.0  ;;  %v645_v56 = vadd.f32 %v4834_v14, %v485_v41  ;;  %v646_v57 = vadd.f32 %v4834_v14, %v486_v42  ;;  %960 = vrot.lane.b32.xlu0 %v4850_v15, %s4455_s10 }
  0xb5   : > { %v647_v61 = vadd.f32 %v4834_v14, %v487_v49  ;;  %v4871_v62 = vpack.c.bf16 %v791_v1, %v787_v23  ;;  %v713_v0 = vmax.f32 %v649_v50, 0.0  ;;  %v714_v4 = vmax.f32 %v650_v54, 0.0  ;;  %v333_v49 = vld [vmem:[%s4620_s30 + $0x140] sm:$0xff]  ;;  %v335_v50 = vld [vmem:[%s4620_s30 + $0x150] sm:$0xff] }
  0xb6   : > { %v4857_v6 = vpop.permute.xlu1 %430  ;;  %v4859_v46 = vpop.permute.xlu0 %425  ;;  %v715_v47 = vmax.f32 %v651_v51, 0.0  ;;  %v770_v5 = vmul.f32 %v4720_v63, %v684_v11  ;;  %v778_v12 = vmul.f32 %v4720_v63, %v692_v38  ;;  %v710_v19 = vmax.f32 %v646_v57, 0.0  ;;  %v338_v38 = vld [vmem:[%s4620_s30 + $0x168] sm:$0xff] }
  0xb7   : > { %v711_v25 = vmax.f32 %v647_v61, 0.0  ;;  %v774_v1 = vmul.f32 %v4720_v63, %v688_v40  ;;  %v800_v35 = vmul.f32 %v4653_v58, %v714_v4  ;;  %v709_v23 = vmax.f32 %v645_v56, 0.0  ;;  %v334_v40 = vld [vmem:[%s4620_s30 + $0x148] sm:$0xff] }
  0xb8   : > { %v801_v11 = vmul.f32 %v4658_v59, %v715_v47  ;;  %956 = vrot.lane.b32.xlu1 %v4871_v62, %s4455_s10  ;;  %v786_v28 = vmul.f32 %v4720_v63, %v700_v48  ;;  %v782_v29 = vmul.f32 %v4720_v63, %v696_v24  ;;  %v796_v41 = vmul.f32 %v4653_v58, %v710_v19 }
  0xb9   : > { %v797_v42 = vmul.f32 %v4658_v59, %v711_v25  ;;  %v484_v54 = vmul.f32 %v4758_v33, %v324_v17  ;;  %v480_v51 = vmul.f32 %v4760_v34, %v320_v18  ;;  %v799_v56 = vmul.f32 %v4674_v8, %v713_v0 }
  0xba   : > { %v4880_v39 = vpop.permute.xlu1 %590  ;;  %v4882_v22 = vpop.permute.xlu0 %585  ;;  %v497_v57 = vmul.f32 %v4857_v6, %v337_v20  ;;  %v4902_v61 = vpack.c.bf16 %v800_v35, %v796_v41  ;;  %v498_v24 = vmul.f32 %v4857_v6, %v338_v38  ;;  %v499_v4 = vmul.f32 %v4857_v6, %v339_v26 }
  0xbb   : > { %v4904_v48 = vpack.c.bf16 %v801_v11, %v797_v42  ;;  %v795_v33 = vmul.f32 %v4674_v8, %v709_v23  ;;  %v493_v34 = vmul.f32 %v4859_v46, %v333_v49  ;;  %v494_v0 = vmul.f32 %v4859_v46, %v334_v40 }
  0xbc   : > { %v495_v17 = vmul.f32 %v4859_v46, %v335_v50  ;;  %v4917_v18 = vadd.f32 %v4785_v9, %v484_v54  ;;  %v657_v25 = vadd.f32 %v4880_v39, %v497_v57  ;;  %v658_v20 = vadd.f32 %v4880_v39, %v498_v24  ;;  %966 = vrot.lane.b32.xlu0 %v4902_v61, %s4455_s10  ;;  %v328_v50 = vld [vmem:[%s4620_s30 + $0x118] sm:$0xff]  ;;  %v345_v24 = vld [vmem:[%s4620_s30 + $0x1a0] sm:$0xff] }
  0xbd   : > { %v659_v35 = vadd.f32 %v4880_v39, %v499_v4  ;;  %968 = vrot.lane.b32.xlu1 %v4904_v48, %s4455_s10  ;;  %v4925_v11 = vadd.f32 %v4787_v10, %v480_v51  ;;  %v653_v23 = vadd.f32 %v4882_v22, %v493_v34  ;;  %v654_v38 = vadd.f32 %v4882_v22, %v494_v0  ;;  %v332_v10 = vld [vmem:[%s4620_s30 + $0x138] sm:$0xff]  ;;  %v347_v0 = vld [vmem:[%s4620_s30 + $0x1b0] sm:$0xff] }
  0xbe   : > { %v4908_v47 = vpop.permute.xlu1 %440  ;;  %v4910_v19 = vpop.permute.xlu0 %435  ;;  %v655_v9 = vadd.f32 %v4882_v22, %v495_v17  ;;  %v4933_v26 = vpack.c.bf16 %v770_v5, %v4776_v60  ;;  %v721_v41 = vmax.f32 %v657_v25, 0.0  ;;  %v722_v42 = vmax.f32 %v658_v20, 0.0  ;;  %v342_v20 = vld [vmem:[%s4620_s30 + $0x188] sm:$0xff] }
  0xbf   : > { %v723_v49 = vmax.f32 %v659_v35, 0.0  ;;  %v4935_v40 = vpack.c.bf16 %v778_v12, %v774_v1  ;;  %v4939_v54 = vpack.c.bf16 %v799_v56, %v795_v33  ;;  %v718_v51 = vmax.f32 %v654_v38, 0.0  ;;  %v346_v1 = vld [vmem:[%s4620_s30 + $0x1a8] sm:$0xff]  ;;  %v343_v35 = vld [vmem:[%s4620_s30 + $0x190] sm:$0xff] }
  0xc0   : > { %v719_v57 = vmax.f32 %v655_v9, 0.0  ;;  %v4944_v60 = vpack.c.bf16 %v786_v28, %v782_v29  ;;  %v808_v5 = vmul.f32 %v4653_v58, %v722_v42  ;;  %v717_v12 = vmax.f32 %v653_v23, 0.0  ;;  %v341_v29 = vld [vmem:[%s4620_s30 + $0x180] sm:$0xff] }
  0xc1   : > { %v809_v34 = vmul.f32 %v4658_v59, %v723_v49  ;;  %938 = vrot.lane.b32.xlu1 %v4933_v26, %s4455_s10  ;;  %v708_v33 = vmax.f32 %v4917_v18, 0.0  ;;  %v704_v17 = vmax.f32 %v4925_v11, 0.0  ;;  %v804_v25 = vmul.f32 %v4653_v58, %v718_v51  ;;  %964 = vrot.lane.b32.xlu0 %v4939_v54, %s4455_s10 }
  0xc2   : > { %v4942_v4 = vpop.permute.xlu1 %600  ;;  %v4952_v56 = vpop.permute.xlu0 %595  ;;  %v805_v28 = vmul.f32 %v4658_v59, %v719_v57  ;;  %v492_v23 = vmul.f32 %v4811_v32, %v332_v10  ;;  %v488_v38 = vmul.f32 %v4813_v37, %v328_v50  ;;  %v807_v9 = vmul.f32 %v4674_v8, %v721_v41 }
  0xc3   : > { %v505_v18 = vmul.f32 %v4908_v47, %v345_v24  ;;  %v4967_v42 = vpack.c.bf16 %v808_v5, %v804_v25  ;;  %v506_v49 = vmul.f32 %v4908_v47, %v346_v1  ;;  %v507_v51 = vmul.f32 %v4908_v47, %v347_v0 }
  0xc4   : > { %v4969_v11 = vpack.c.bf16 %v809_v34, %v805_v28  ;;  %v803_v57 = vmul.f32 %v4674_v8, %v717_v12  ;;  %v501_v44 = vmul.f32 %v4910_v19, %v341_v29  ;;  %v502_v32 = vmul.f32 %v4910_v19, %v342_v20  ;;  %v340_v28 = vld [vmem:[%s4620_s30 + $0x178] sm:$0xff] }
  0xc5   : > { %v503_v37 = vmul.f32 %v4910_v19, %v343_v35  ;;  %v4978_v41 = vadd.f32 %v4832_v13, %v492_v23  ;;  %v665_v10 = vadd.f32 %v4942_v4, %v505_v18  ;;  %v666_v50 = vadd.f32 %v4942_v4, %v506_v49  ;;  %974 = vrot.lane.b32.xlu0 %v4967_v42, %s4455_s10  ;;  %v336_v35 = vld [vmem:[%s4620_s30 + $0x158] sm:$0xff]  ;;  %v353_v49 = vld [vmem:[%s4620_s30 + $0x1e0] sm:$0xff] }
  0xc6   : > { %v667_v24 = vadd.f32 %v4942_v4, %v507_v51  ;;  %976 = vrot.lane.b32.xlu1 %v4969_v11, %s4455_s10  ;;  %v4985_v5 = vpop.permute.xlu1 %450  ;;  %v4988_v34 = vadd.f32 %v4834_v14, %v488_v38  ;;  %v661_v12 = vadd.f32 %v4952_v56, %v501_v44  ;;  %v662_v13 = vadd.f32 %v4952_v56, %v502_v32  ;;  %v4995_v0 = vpop.permute.xlu0 %445 }
  0xc7   : > { %v663_v1 = vadd.f32 %v4952_v56, %v503_v37  ;;  %v4998_v25 = vmul.f32 %v4720_v63, %v708_v33  ;;  %v729_v14 = vmax.f32 %v665_v10, 0.0  ;;  %v730_v29 = vmax.f32 %v666_v50, 0.0  ;;  %v354_v10 = vld [vmem:[%s4620_s30 + $0x1e8] sm:$0xff] }
  0xc8   : > { %v731_v20 = vmax.f32 %v667_v24, 0.0  ;;  %v5002_v44 = vpack.c.bf16 %v807_v9, %v803_v57  ;;  %v725_v23 = vmax.f32 %v661_v12, 0.0  ;;  %v726_v38 = vmax.f32 %v662_v13, 0.0  ;;  %v355_v9 = vld [vmem:[%s4620_s30 + $0x1f0] sm:$0xff]  ;;  %v349_v12 = vld [vmem:[%s4620_s30 + $0x1c0] sm:$0xff]  ;;  %v350_v13 = vld [vmem:[%s4620_s30 + $0x1c8] sm:$0xff] }
  0xc9   : > { %v727_v18 = vmax.f32 %v663_v1, 0.0  ;;  %v5006_v51 = vmul.f32 %v4720_v63, %v704_v17  ;;  %v816_v32 = vmul.f32 %v4653_v58, %v730_v29  ;;  %v500_v50 = vmul.f32 %v4857_v6, %v340_v28  ;;  %v351_v1 = vld [vmem:[%s4620_s30 + $0x1d0] sm:$0xff]  ;;  %v348_v28 = vld [vmem:[%s4620_s30 + $0x1b8] sm:$0xff] }
  0xca   : > { %6271 = vst [vmem:[#allocation3_spill] sm:$0xff] %v5002_v44  ;;  %v817_v37 = vmul.f32 %v4658_v59, %v731_v20  ;;  %946 = vrot.lane.b32.xlu1 %v4935_v40, %s4455_s10  ;;  %v812_v24 = vmul.f32 %v4653_v58, %v726_v38  ;;  %972 = vrot.lane.b32.xlu0 %v5002_v44, %s4455_s10  ;;  %v611_v6 = vpop.permute.xlu1 %610  ;;  %v606_v33 = vpop.permute.xlu0 %605 }
  0xcb   : > { %v813_v17 = vmul.f32 %v4658_v59, %v727_v18  ;;  %v496_v29 = vmul.f32 %v4859_v46, %v336_v35  ;;  %v815_v20 = vmul.f32 %v4674_v8, %v729_v14  ;;  %v811_v43 = vmul.f32 %v4674_v8, %v725_v23  ;;  %v344_v14 = vld [vmem:[%s4620_s30 + $0x198] sm:$0xff] }
  0xcc   : > { %v513_v53 = vmul.f32 %v4985_v5, %v353_v49  ;;  %v5029_v38 = vpack.c.bf16 %v816_v32, %v812_v24  ;;  %v514_v2 = vmul.f32 %v4985_v5, %v354_v10  ;;  %v515_v57 = vmul.f32 %v4985_v5, %v355_v9  ;;  %v356_v9 = vld [vmem:[%s4620_s30 + $0x1f8] sm:$0xff] }
  0xcd   : > { %v5031_v18 = vpack.c.bf16 %v817_v37, %v813_v17  ;;  %v660_v46 = vadd.f32 %v4880_v39, %v500_v50  ;;  %v509_v35 = vmul.f32 %v4995_v0, %v349_v12  ;;  %v510_v23 = vmul.f32 %v4995_v0, %v350_v13 }
  0xce   : > { %v511_v49 = vmul.f32 %v4995_v0, %v351_v1  ;;  %v656_v32 = vadd.f32 %v4882_v22, %v496_v29  ;;  %v673_v24 = vadd.f32 %v611_v6, %v513_v53  ;;  %v674_v37 = vadd.f32 %v611_v6, %v514_v2  ;;  %982 = vrot.lane.b32.xlu0 %v5029_v38, %s4455_s10 }
  0xcf   : > { %v675_v17 = vadd.f32 %v611_v6, %v515_v57  ;;  %984 = vrot.lane.b32.xlu1 %v5031_v18, %s4455_s10  ;;  %v508_v10 = vmul.f32 %v4908_v47, %v348_v28  ;;  %v669_v39 = vadd.f32 %v606_v33, %v509_v35  ;;  %v670_v50 = vadd.f32 %v606_v33, %v510_v23 }
  0xd0   : > { %v671_v44 = vadd.f32 %v606_v33, %v511_v49  ;;  %v504_v12 = vmul.f32 %v4910_v19, %v344_v14  ;;  %v5049_v13 = vpack.c.bf16 %v815_v20, %v811_v43  ;;  %v738_v53 = vmax.f32 %v674_v37, 0.0 }
  0xd1   : > { %v739_v2 = vmax.f32 %v675_v17, 0.0  ;;  %v737_v22 = vmax.f32 %v673_v24, 0.0  ;;  %v733_v57 = vmax.f32 %v669_v39, 0.0  ;;  %v734_v1 = vmax.f32 %v670_v50, 0.0 }
  0xd2   : > { %v735_v29 = vmax.f32 %v671_v44, 0.0  ;;  %v516_v47 = vmul.f32 %v4985_v5, %v356_v9  ;;  %v512_v28 = vmul.f32 %v4995_v0, %v352_v36  ;;  %v824_v35 = vmul.f32 %v4653_v58, %v738_v53  ;;  %980 = vrot.lane.b32.xlu0 %v5049_v13, %s4455_s10  ;;  %v5064_v36 = vld [vmem:[%s6258_s5 + $0x20] sm:$0xff]  }
  0xd3   : > { %v825_v23 = vmul.f32 %v4658_v59, %v739_v2  ;;  %954 = vrot.lane.b32.xlu1 %v4944_v60, %s4455_s10  ;;  %v724_v19 = vmax.f32 %v660_v46, 0.0  ;;  %v720_v43 = vmax.f32 %v656_v32, 0.0  ;;  %v820_v20 = vmul.f32 %v4653_v58, %v734_v1  ;;  %3998 = vmatprep.mubr.bf16.mxu1 %v5064_v36 }
  0xd4   : > { %v821_v14 = vmul.f32 %v4658_v59, %v735_v29  ;;  %v668_v5 = vadd.f32 %v4942_v4, %v508_v10  ;;  %v664_v0 = vadd.f32 %v4952_v56, %v504_v12  ;;  %v676_v44 = vadd.f32 %v611_v6, %v516_v47 }
  0xd5   : > { %v672_v49 = vadd.f32 %v606_v33, %v512_v28  ;;  %v823_v46 = vmul.f32 %v4674_v8, %v737_v22  ;;  %v819_v58 = vmul.f32 %v4674_v8, %v733_v57  ;;  %v5070_v32 = vpack.c.bf16 %v824_v35, %v820_v20 }
  0xd6   : > { %v5072_v59 = vpack.c.bf16 %v825_v23, %v821_v14  ;;  %v5077_v24 = vpack.c.bf16 %v4998_v25, %v5006_v51  ;;  %v6272_v4 = vmax.f32 %v4978_v41, 0.0  ;;  %v6273_v8 = vmax.f32 %v4988_v34, 0.0 }
  0xd7   : > { %990 = vrot.lane.b32.xlu0 %v5070_v32, %s4455_s10  ;;  %v810_v6 = vmul.f32 %v4720_v63, %v724_v19  ;;  %v806_v37 = vmul.f32 %v4720_v63, %v720_v43  ;;  %v732_v25 = vmax.f32 %v668_v5, 0.0  ;;  %v728_v51 = vmax.f32 %v664_v0, 0.0 }
  0xd8   : > { %v802_v56 = vmul.f32 %v4720_v63, %v6272_v4  ;;  %992 = vrot.lane.b32.xlu1 %v5072_v59, %s4455_s10  ;;  %v798_v33 = vmul.f32 %v4720_v63, %v6273_v8  ;;  %v740_v17 = vmax.f32 %v676_v44, 0.0  ;;  %v736_v41 = vmax.f32 %v672_v49, 0.0 }
  0xd9   : > { %v5091_v10 = vpack.c.bf16 %v823_v46, %v819_v58  ;;  %v5099_v34 = vpack.c.bf16 %v810_v6, %v806_v37  ;;  %v818_v39 = vmul.f32 %v4720_v63, %v732_v25  ;;  %v814_v50 = vmul.f32 %v4720_v63, %v728_v51 }
  0xda   : > { %v5097_v9 = vpack.c.bf16 %v802_v56, %v798_v33  ;;  %v826_v12 = vmul.f32 %v4720_v63, %v740_v17  ;;  %v822_v53 = vmul.f32 %v4720_v63, %v736_v41  ;;  %v6274_v63 = vld [vmem:[#allocation3_spill] sm:$0xff] }
  0xdb   : > { %988 = vrot.lane.b32.xlu0 %v5091_v10, %s4455_s10  ;;  %v5109_v2 = vpack.c.bf16 %v818_v39, %v814_v50 }
  0xdc   : > { %962 = vrot.lane.b32.xlu1 %v5077_v24, %s4455_s10  ;;  %v5111_v22 = vpack.c.bf16 %v826_v12, %v822_v53 }
  0xdf   : > { %970 = vrot.lane.b32.xlu0 %v5097_v9, %s4455_s10 }
  0xe0   : > { %978 = vrot.lane.b32.xlu1 %v5099_v34, %s4455_s10 }
  0xe3   : > { %986 = vrot.lane.b32.xlu0 %v5109_v2, %s4455_s10 }
  0xe4   : > { %994 = vrot.lane.b32.xlu1 %v5111_v22, %s4455_s10  ;;  %s4461_s10 = smov 91  }
  0xe7   : > { %1380 = vrot.lane.b32.xlu0 %v4695_v30, %s4456_s13 }
  0xe8   : > { %1382 = vrot.lane.b32.xlu1 %v4697_v31, %s4456_s13 }
  0xeb   : > { %1378 = vrot.lane.b32.xlu0 %v4723_v3, %s4456_s13 }
  0xec   : > { %1388 = vrot.lane.b32.xlu1 %v4743_v52, %s4456_s13 }
  0xef   : > { %1390 = vrot.lane.b32.xlu0 %v4748_v21, %s4456_s13 }
  0xf0   : > { %1386 = vrot.lane.b32.xlu1 %v4768_v45, %s4456_s13 }
  0xf3   : > { %1396 = vrot.lane.b32.xlu0 %v4794_v7, %s4456_s13 }
  0xf4   : > { %1398 = vrot.lane.b32.xlu1 %v4796_v16, %s4456_s13 }
  0xf7   : > { %1394 = vrot.lane.b32.xlu0 %v4823_v55, %s4456_s13 }
  0xf8   : > { %1404 = vrot.lane.b32.xlu1 %v4848_v27, %s4456_s13 }
  0xfb   : > { %1406 = vrot.lane.b32.xlu0 %v4850_v15, %s4456_s13 }
  0xfc   : > { %1402 = vrot.lane.b32.xlu1 %v4871_v62, %s4456_s13 }
  0xff   : > { %1412 = vrot.lane.b32.xlu0 %v4902_v61, %s4456_s13 }
 0x100   : > { %1414 = vrot.lane.b32.xlu1 %v4904_v48, %s4456_s13 }
 0x103   : > { %1410 = vrot.lane.b32.xlu0 %v4939_v54, %s4456_s13 }
 0x104   : > { %1384 = vrot.lane.b32.xlu1 %v4933_v26, %s4456_s13 }
 0x107   : > { %1420 = vrot.lane.b32.xlu0 %v4967_v42, %s4456_s13 }
 0x108   : > { %1422 = vrot.lane.b32.xlu1 %v4969_v11, %s4456_s13 }
 0x10b   : > { %1418 = vrot.lane.b32.xlu0 %v6274_v63, %s4456_s13 }
 0x10c   : > { %1392 = vrot.lane.b32.xlu1 %v4935_v40, %s4456_s13 }
 0x10f   : > { %v935_v1 = vpop.permute.xlu0 %934  ;;  %1428 = vrot.lane.b32.xlu0 %v5029_v38, %s4456_s13 }
 0x110   : > { %v937_v57 = vpop.permute.xlu1 %936  ;;  %1430 = vrot.lane.b32.xlu1 %v5031_v18, %s4456_s13 }
 0x111   : > { %v998_v29 = vsel %vm996_vm0, %v935_v1, %v937_v57 }
 0x112   : > { %1045 = vmatprep.subr.bf16.mxu0 %v998_v29 }
 0x113   : > { %v933_v47 = vpop.permute.xlu0 %932  ;;  %1426 = vrot.lane.b32.xlu0 %v5049_v13, %s4456_s13 }
 0x114   : > { %v997_v28 = vsel %vm996_vm0, %v933_v47, %v935_v1  ;;  %1400 = vrot.lane.b32.xlu1 %v4944_v60, %s4456_s13 }
 0x115   : > { %1046 = vmatpush1.bf16.msra.mxu0 %v997_v28 }
 0x116   : > { %v943_v35 = vpop.permute.xlu1 %942 }
 0x117   : > { %v945_v23 = vpop.permute.xlu0 %944  ;;  %1436 = vrot.lane.b32.xlu0 %v5070_v32, %s4456_s13 }
 0x118   : > { %v1001_v19 = vsel %vm996_vm0, %v943_v35, %v945_v23  ;;  %1438 = vrot.lane.b32.xlu1 %v5072_v59, %s4456_s13 }
 0x119   : > { %1047 = vmatprep.subr.bf16.mxu0 %v1001_v19 }
 0x11a   : > { %v941_v43 = vpop.permute.xlu1 %940 }
 0x11b   : > { %v1000_v20 = vsel %vm996_vm0, %v941_v43, %v943_v35  ;;  %1434 = vrot.lane.b32.xlu0 %v5091_v10, %s4456_s13 }
 0x11c   : > { %1048 = vmatpush1.bf16.msra.mxu0 %v1000_v20  ;;  %1408 = vrot.lane.b32.xlu1 %v5077_v24, %s4456_s13 }
 0x11e   : > { %v5177_v14 = vpop.permute.xlu1 %952  ;;  %v951_v5 = vpop.permute.xlu0 %950 }
 0x11f   : > { %v1004_v0 = vsel %vm996_vm0, %v951_v5, %v5177_v14  ;;  %1688 = vrot.lane.b32.xlu0 %v4695_v30, %s4457_s14 }
 0x120   : > { %1690 = vrot.lane.b32.xlu1 %v4697_v31, %s4457_s14  ;;  %1049 = vmatprep.subr.bf16.mxu0 %v1004_v0 }
 0x122   : > { %v949_v44 = vpop.permute.xlu0 %948 }
 0x123   : > { %v1003_v49 = vsel %vm996_vm0, %v949_v44, %v951_v5  ;;  %1686 = vrot.lane.b32.xlu0 %v4723_v3, %s4457_s14 }
 0x124   : > { %1416 = vrot.lane.b32.xlu1 %v5097_v9, %s4456_s13  ;;  %1050 = vmatpush1.bf16.msra.mxu0 %v1003_v49 }
 0x126   : > { %v959_v46 = vpop.permute.xlu1 %958  ;;  %v5190_v58 = vpop.permute.xlu0 %960 }
 0x127   : > { %1696 = vrot.lane.b32.xlu0 %v4743_v52, %s4457_s14  ;;  %v1007_v4 = vsel %vm996_vm0, %v959_v46, %v5190_v58 }
 0x128   : > { %1698 = vrot.lane.b32.xlu1 %v4748_v21, %s4457_s14  ;;  %1051 = vmatprep.subr.bf16.mxu0 %v1007_v4 }
 0x12a   : > { %v957_v56 = vpop.permute.xlu1 %956 }
 0x12b   : > { %v1006_v8 = vsel %vm996_vm0, %v957_v56, %v959_v46  ;;  %1694 = vrot.lane.b32.xlu0 %v4768_v45, %s4457_s14 }
 0x12c   : > { %1424 = vrot.lane.b32.xlu1 %v5099_v34, %s4456_s13  ;;  %1052 = vmatpush1.bf16.msra.mxu0 %v1006_v8 }
 0x12e   : > { %v967_v6 = vpop.permute.xlu0 %966 }
 0x12f   : > { %v5203_v33 = vpop.permute.xlu1 %968  ;;  %1704 = vrot.lane.b32.xlu0 %v4794_v7, %s4457_s14 }
 0x130   : > { %1706 = vrot.lane.b32.xlu1 %v4796_v16, %s4457_s14  ;;  %v1010_v37 = vsel %vm996_vm0, %v967_v6, %v5203_v33 }
 0x131   : > { %1053 = vmatprep.subr.bf16.mxu0 %v1010_v37 }
 0x133   : > { %v939_v25 = vpop.permute.xlu1 %938  ;;  %1702 = vrot.lane.b32.xlu0 %v4823_v55, %s4457_s14  ;;  %v965_v51 = vpop.permute.xlu0 %964 }
 0x134   : > { %1432 = vrot.lane.b32.xlu1 %v5109_v2, %s4456_s13  ;;  %v999_v17 = vsel %vm996_vm0, %v937_v57, %v939_v25  ;;  %v1009_v41 = vsel %vm996_vm0, %v965_v51, %v967_v6 }
 0x135   : > { %3982 = vmatprep.subr.bf16.mxu1 %v999_v17  ;;  %1054 = vmatpush1.bf16.msra.mxu0 %v1009_v41 }
 0x136   : > { %3983 = vmatpush3.bf16.msra.mxu1 %v999_v17 }
 0x137   : > { %1712 = vrot.lane.b32.xlu0 %v4848_v27, %s4457_s14  ;;  %v975_v50 = vpop.permute.xlu0 %974 }
 0x138   : > { %1714 = vrot.lane.b32.xlu1 %v4850_v15, %s4457_s14  ;;  %v977_v39 = vpop.permute.xlu1 %976 }
 0x139   : > { %v1013_v12 = vsel %vm996_vm0, %v975_v50, %v977_v39 }
 0x13a   : > { %1055 = vmatprep.subr.bf16.mxu0 %v1013_v12 }
 0x13b   : > { %1710 = vrot.lane.b32.xlu0 %v4871_v62, %s4457_s14 }
 0x13c   : > { %1440 = vrot.lane.b32.xlu1 %v5111_v22, %s4456_s13  ;;  %v947_v53 = vpop.permute.xlu1 %946  ;;  %v973_v57 = vpop.permute.xlu0 %972  ;;  %s4459_s13 = smov 108  }
 0x13d   : > { %v1002_v1 = vsel %vm996_vm0, %v945_v23, %v947_v53  ;;  %v1012_v29 = vsel %vm996_vm0, %v973_v57, %v975_v50  ;;  %v4412_v53 = vld [vmem:[%s6258_s5 + $0x30] sm:$0xff]  }
 0x13e   : > { %3984 = vmatprep.subr.bf16.mxu1 %v1002_v1  ;;  %1056 = vmatpush1.bf16.msra.mxu0 %v1012_v29 }
 0x13f   : > { %3985 = vmatpush3.bf16.msra.mxu1 %v1002_v1  ;;  %1720 = vrot.lane.b32.xlu0 %v4902_v61, %s4457_s14 }
 0x140   : > { %1722 = vrot.lane.b32.xlu1 %v4904_v48, %s4457_s14  ;;  %v983_v28 = vpop.permute.xlu0 %982 }
 0x141   : > { %v985_v47 = vpop.permute.xlu1 %984 }
 0x142   : > { %v1016_v35 = vsel %vm996_vm0, %v983_v28, %v985_v47 }
 0x143   : > { %1718 = vrot.lane.b32.xlu0 %v4939_v54, %s4457_s14  ;;  %1057 = vmatprep.subr.bf16.mxu0 %v1016_v35 }
 0x144   : > { %1692 = vrot.lane.b32.xlu1 %v4933_v26, %s4457_s14  ;;  %v981_v19 = vpop.permute.xlu0 %980 }
 0x145   : > { %v955_v23 = vpop.permute.xlu1 %954  ;;  %v1015_v20 = vsel %vm996_vm0, %v981_v19, %v983_v28  ;;  %v4413_v28 = vld [vmem:[%s6258_s5 + $0x38] sm:$0xff]  }
 0x146   : > { %v1005_v43 = vsel %vm996_vm0, %v5177_v14, %v955_v23  ;;  %1058 = vmatpush1.bf16.msra.mxu0 %v1015_v20  ;;  %v4414_v20 = vld [vmem:[%s6258_s5] sm:$0xff]  }
 0x147   : > { %3986 = vmatprep.subr.bf16.mxu1 %v1005_v43  ;;  %1728 = vrot.lane.b32.xlu0 %v4967_v42, %s4457_s14 }
 0x148   : > { %1730 = vrot.lane.b32.xlu1 %v4969_v11, %s4457_s14  ;;  %3987 = vmatpush3.bf16.msra.mxu1 %v1005_v43 }
 0x149   : > { %v991_v0 = vpop.permute.xlu0 %990 }
 0x14a   : > { %v993_v5 = vpop.permute.xlu1 %992 }
 0x14b   : > { %v1019_v44 = vsel %vm996_vm0, %v991_v0, %v993_v5  ;;  %1726 = vrot.lane.b32.xlu0 %v6274_v63, %s4457_s14 }
 0x14c   : > { %1700 = vrot.lane.b32.xlu1 %v4935_v40, %s4457_s14  ;;  %1059 = vmatprep.subr.bf16.mxu0 %v1019_v44 }
 0x14d   : > { %v989_v49 = vpop.permute.xlu0 %988 }
 0x14e   : > { %v963_v14 = vpop.permute.xlu1 %962  ;;  %v1018_v46 = vsel %vm996_vm0, %v989_v49, %v991_v0 }
 0x14f   : > { %v1008_v4 = vsel %vm996_vm0, %v5190_v58, %v963_v14  ;;  %1736 = vrot.lane.b32.xlu0 %v5029_v38, %s4457_s14  ;;  %1060 = vmatpush1.bf16.msra.mxu0 %v1018_v46 }
 0x150   : > { %1738 = vrot.lane.b32.xlu1 %v5031_v18, %s4457_s14  ;;  %3988 = vmatprep.subr.bf16.mxu1 %v1008_v4 }
 0x151   : > { %3989 = vmatpush3.bf16.msra.mxu1 %v1008_v4  ;;  %1207 = vmatprep.subr.bf16.mxu0 %v4695_v30  ;;  %v971_v8 = vpop.permute.xlu0 %970 }
 0x152   : > { %v979_v56 = vpop.permute.xlu1 %978  ;;  %v1011_v6 = vsel %vm996_vm0, %v5203_v33, %v971_v8  ;;  %1078 = vmatmul.mubr.bf16.vlgmr.msra.gmra.mrb[0].mxu0 %v5064_v36  ;;  %v6275_v33 = vmov 0   ;;  %v4411_v36 = vld [vmem:[%s6258_s5 + $0x28] sm:$0xff]  }
 0x153   : > { %1734 = vrot.lane.b32.xlu0 %v5049_v13, %s4457_s14  ;;  %3990 = vmatprep.subr.bf16.mxu1 %v1011_v6  ;;  %v1014_v37 = vsel %vm996_vm0, %v977_v39, %v979_v56  ;;  %v4415_v8 = vld [vmem:[%s6258_s5 + $0x8] sm:$0xff]  }
 0x154   : > { %1708 = vrot.lane.b32.xlu1 %v4944_v60, %s4457_s14  ;;  %1208 = vmatpush1.bf16.msra.mxu0 %v4723_v3 }
 0x155   : > { %3991 = vmatpush3.bf16.msra.mxu1 %v1011_v6  ;;  %v987_v25 = vpop.permute.xlu0 %986  ;;  %1209 = vmatprep.subr.bf16.mxu0 %v4743_v52 }
 0x156   : > { %v995_v58 = vpop.permute.xlu1 %994  ;;  %3992 = vmatprep.subr.bf16.mxu1 %v1014_v37  ;;  %1087 = vmatprep.mubr.bf16.mxu0 %v6275_v33  ;;  %v1017_v17 = vsel %vm996_vm0, %v985_v47, %v987_v25 }
 0x157   : > { %1744 = vrot.lane.b32.xlu0 %v5070_v32, %s4457_s14  ;;  %v1020_v50 = vsel %vm996_vm0, %v993_v5, %v995_v58 }
 0x158   : > { %1746 = vrot.lane.b32.xlu1 %v5072_v59, %s4457_s14  ;;  %1210 = vmatpush1.bf16.msra.mxu0 %v4768_v45 }
 0x159   : > { %3993 = vmatpush3.bf16.msra.mxu1 %v1014_v37  ;;  %v5279_v41 = vpop.permute.xlu0 %1380  ;;  %1211 = vmatprep.subr.bf16.mxu0 %v4794_v7 }
 0x15a   : > { %v5276_v51 = vpop.permute.xlu1 %1382  ;;  %3994 = vmatprep.subr.bf16.mxu1 %v1017_v17  ;;  %1088 = vmatmul.mubr.bf16.gmra.mrb[4].mxu0 %v4411_v36 }
 0x15b   : > { %1742 = vrot.lane.b32.xlu0 %v5091_v10, %s4457_s14  ;;  %1097 = vmatprep.mubr.bf16.mxu0 %v6275_v33  ;;  %v1444_v5 = vsel %vm1442_vm1, %v5279_v41, %v5276_v51 }
 0x15c   : > { %1716 = vrot.lane.b32.xlu1 %v5077_v24, %s4457_s14  ;;  %1212 = vmatpush1.bf16.msra.mxu0 %v4823_v55 }
 0x15d   : > { %3995 = vmatpush3.bf16.msra.mxu1 %v1017_v17  ;;  %v1379_v12 = vpop.permute.xlu0 %1378  ;;  %1213 = vmatprep.subr.bf16.mxu0 %v4848_v27 }
 0x15e   : > { %v5287_v39 = vpop.permute.xlu1 %1388  ;;  %3996 = vmatprep.subr.bf16.mxu1 %v1020_v50  ;;  %v1443_v14 = vsel %vm1442_vm1, %v1379_v12, %v5279_v41 }
 0x15f   : > { %1996 = vrot.lane.b32.xlu0 %v4695_v30, %s4458_s17 }
 0x160   : > { %1998 = vrot.lane.b32.xlu1 %v4697_v31, %s4458_s17  ;;  %1214 = vmatpush1.bf16.msra.mxu0 %v4871_v62 }
 0x161   : > { %3997 = vmatpush3.bf16.msra.mxu1 %v1020_v50  ;;  %v5300_v1 = vpop.permute.xlu0 %1390  ;;  %1215 = vmatprep.subr.bf16.mxu0 %v4902_v61  ;;  %v4416_v50 = vld [vmem:[%s6258_s5 + $0x10] sm:$0xff]  }
 0x162   : > { %v1387_v57 = vpop.permute.xlu1 %1386  ;;  %4006 = vmatprep.subr.bf16.mxu1 %v4697_v31  ;;  %1098 = vmatmul.mubr.bf16.gmra.mrb[8].mxu0 %v4412_v53  ;;  %v1447_v49 = vsel %vm1442_vm1, %v5287_v39, %v5300_v1 }
 0x163   : > { %1994 = vrot.lane.b32.xlu0 %v4723_v3, %s4458_s17  ;;  %1107 = vmatprep.mubr.bf16.mxu0 %v6275_v33  ;;  %v1446_v56 = vsel %vm1442_vm1, %v1387_v57, %v5287_v39 }
 0x164   : > { %1724 = vrot.lane.b32.xlu1 %v5097_v9, %s4457_s14  ;;  %3999 = vmatmul.mubr.bf16.vlgmr.msra.gmra.mrb[0].mxu1 %v4411_v36 }
 0x165   : > { %1216 = vmatpush1.bf16.msra.mxu0 %v4939_v54  ;;  %4007 = vmatpush3.bf16.msra.mxu1 %v4697_v31  ;;  %v5312_v47 = vpop.permute.xlu0 %1396 }
 0x166   : > { %v5310_v29 = vpop.permute.xlu1 %1398  ;;  %1217 = vmatprep.subr.bf16.mxu0 %v4967_v42  ;;  %4008 = vmatprep.subr.bf16.mxu1 %v4748_v21 }
 0x167   : > { %2004 = vrot.lane.b32.xlu0 %v4743_v52, %s4458_s17  ;;  %4002 = vmatprep.mubr.bf16.mxu1 %v4412_v53  ;;  %v1450_v6 = vsel %vm1442_vm1, %v5312_v47, %v5310_v29 }
 0x168   : > { %2006 = vrot.lane.b32.xlu1 %v4748_v21, %s4458_s17 }
 0x169   : > { %1218 = vmatpush1.bf16.msra.mxu0 %v6274_v63  ;;  %4009 = vmatpush3.bf16.msra.mxu1 %v4748_v21  ;;  %v1395_v23 = vpop.permute.xlu0 %1394 }
 0x16a   : > { %v5326_v35 = vpop.permute.xlu1 %1404  ;;  %1219 = vmatprep.subr.bf16.mxu0 %v5029_v38  ;;  %4010 = vmatprep.subr.bf16.mxu1 %v4796_v16  ;;  %v1449_v25 = vsel %vm1442_vm1, %v1395_v23, %v5312_v47 }
 0x16b   : > { %2002 = vrot.lane.b32.xlu0 %v4768_v45, %s4458_s17  ;;  %1108 = vmatmul.mubr.bf16.gmra.mrb[12].mxu0 %v4413_v28 }
 0x16c   : > { %1732 = vrot.lane.b32.xlu1 %v5099_v34, %s4457_s14  ;;  %4003 = vmatmul.mubr.bf16.gmra.mrb[4].mxu1 %v4413_v28 }
 0x16d   : > { %1220 = vmatpush1.bf16.msra.mxu0 %v5049_v13  ;;  %4011 = vmatpush3.bf16.msra.mxu1 %v4796_v16  ;;  %v5336_v43 = vpop.permute.xlu0 %1406 }
 0x16e   : > { %v1403_v19 = vpop.permute.xlu1 %1402  ;;  %1221 = vmatprep.subr.bf16.mxu0 %v5070_v32  ;;  %4012 = vmatprep.subr.bf16.mxu1 %v4850_v15  ;;  %v1453_v36 = vsel %vm1442_vm1, %v5326_v35, %v5336_v43 }
 0x16f   : > { %2012 = vrot.lane.b32.xlu0 %v4794_v7, %s4458_s17  ;;  %1239 = vmatprep.mubr.bf16.mxu0 %v6275_v33  ;;  %v1452_v39 = vsel %vm1442_vm1, %v1403_v19, %v5326_v35 }
 0x170   : > { %2014 = vrot.lane.b32.xlu1 %v4796_v16, %s4458_s17  ;;  %4022 = vmatprep.mubr.bf16.mxu1 %v4414_v20 }
 0x171   : > { %1222 = vmatpush1.bf16.msra.mxu0 %v5091_v10  ;;  %4013 = vmatpush3.bf16.msra.mxu1 %v4850_v15  ;;  %v1413_v44 = vpop.permute.xlu0 %1412 }
 0x172   : > { %v5353_v0 = vpop.permute.xlu1 %1414  ;;  %1491 = vmatprep.subr.bf16.mxu0 %v1444_v5  ;;  %4014 = vmatprep.subr.bf16.mxu1 %v4904_v48  ;;  %v4417_v5 = vld [vmem:[%s6258_s5 + $0x18] sm:$0xff]  }
 0x173   : > { %2010 = vrot.lane.b32.xlu0 %v4823_v55, %s4458_s17  ;;  %v1456_v12 = vsel %vm1442_vm1, %v1413_v44, %v5353_v0 }
 0x174   : > { %1740 = vrot.lane.b32.xlu1 %v5109_v2, %s4457_s14  ;;  %1240 = vmatmul.mubr.bf16.vlgmr.msra.gmra.mrb[0].mxu0 %v4414_v20 }
 0x175   : > { %1492 = vmatpush1.bf16.msra.mxu0 %v1443_v14  ;;  %4015 = vmatpush3.bf16.msra.mxu1 %v4904_v48  ;;  %v1411_v4 = vpop.permute.xlu0 %1410 }
 0x176   : > { %v1385_v46 = vpop.permute.xlu1 %1384  ;;  %1493 = vmatprep.subr.bf16.mxu0 %v1447_v49  ;;  %4016 = vmatprep.subr.bf16.mxu1 %v4969_v11  ;;  %v1455_v28 = vsel %vm1442_vm1, %v1411_v4, %v1413_v44 }
 0x177   : > { %2020 = vrot.lane.b32.xlu0 %v4848_v27, %s4458_s17  ;;  %1249 = vmatprep.mubr.bf16.mxu0 %v6275_v33  ;;  %v1445_v57 = vsel %vm1442_vm1, %v5276_v51, %v1385_v46 }
 0x178   : > { %2022 = vrot.lane.b32.xlu1 %v4850_v15, %s4458_s17 }
 0x179   : > { %1494 = vmatpush1.bf16.msra.mxu0 %v1446_v56  ;;  %4017 = vmatpush3.bf16.msra.mxu1 %v4969_v11  ;;  %v1421_v37 = vpop.permute.xlu0 %1420 }
 0x17a   : > { %v5381_v58 = vpop.permute.xlu1 %1422  ;;  %1495 = vmatprep.subr.bf16.mxu0 %v1450_v6  ;;  %4018 = vmatprep.subr.bf16.mxu1 %v5031_v18 }
 0x17b   : > { %2018 = vrot.lane.b32.xlu0 %v4871_v62, %s4458_s17  ;;  %v1459_v35 = vsel %vm1442_vm1, %v1421_v37, %v5381_v58 }
 0x17c   : > { %1748 = vrot.lane.b32.xlu1 %v5111_v22, %s4457_s14  ;;  %1250 = vmatmul.mubr.bf16.gmra.mrb[4].mxu0 %v4415_v8 }
 0x17d   : > { %1496 = vmatpush1.bf16.msra.mxu0 %v1449_v25  ;;  %4019 = vmatpush3.bf16.msra.mxu1 %v5031_v18  ;;  %v1419_v41 = vpop.permute.xlu0 %1418 }
 0x17e   : > { %v1393_v17 = vpop.permute.xlu1 %1392  ;;  %1497 = vmatprep.subr.bf16.mxu0 %v1453_v36  ;;  %4020 = vmatprep.subr.bf16.mxu1 %v5072_v59  ;;  %v1458_v20 = vsel %vm1442_vm1, %v1419_v41, %v1421_v37  ;;  %v4418_v37 = vld [vmem:[%s6258_s5 + $0x40] sm:$0xff]  }
 0x17f   : > { %2028 = vrot.lane.b32.xlu0 %v4902_v61, %s4458_s17  ;;  %1259 = vmatprep.mubr.bf16.mxu0 %v6275_v33  ;;  %v1448_v51 = vsel %vm1442_vm1, %v5300_v1, %v1393_v17 }
 0x180   : > { %2030 = vrot.lane.b32.xlu1 %v4904_v48, %s4458_s17 }
 0x181   : > { %1498 = vmatpush1.bf16.msra.mxu0 %v1452_v39  ;;  %4021 = vmatpush3.bf16.msra.mxu1 %v5072_v59  ;;  %v1429_v47 = vpop.permute.xlu0 %1428 }
 0x182   : > { %v5408_v53 = vpop.permute.xlu1 %1430  ;;  %1499 = vmatprep.subr.bf16.mxu0 %v1456_v12  ;;  %4030 = vmatprep.subr.bf16.mxu1 %v1445_v57 }
 0x183   : > { %2026 = vrot.lane.b32.xlu0 %v4939_v54, %s4458_s17  ;;  %v1462_v1 = vsel %vm1442_vm1, %v1429_v47, %v5408_v53 }
 0x184   : > { %2000 = vrot.lane.b32.xlu1 %v4933_v26, %s4458_s17  ;;  %4023 = vmatmul.mubr.bf16.vlgmr.msra.gmra.mrb[0].mxu1 %v4415_v8 }
 0x185   : > { %1260 = vmatmul.mubr.bf16.gmra.mrb[8].mxu0 %v4416_v50  ;;  %4031 = vmatpush3.bf16.msra.mxu1 %v1445_v57  ;;  %v1427_v19 = vpop.permute.xlu0 %1426 }
 0x186   : > { %1500 = vmatpush1.bf16.msra.mxu0 %v1455_v28  ;;  %v1401_v23 = vpop.permute.xlu1 %1400  ;;  %4032 = vmatprep.subr.bf16.mxu1 %v1448_v51  ;;  %v1461_v4 = vsel %vm1442_vm1, %v1427_v19, %v1429_v47  ;;  %v4419_v28 = vld [vmem:[%s6258_s5 + $0x48] sm:$0xff]   ;;  %v4420_v19 = vld [vmem:[%s6258_s5 + $0x50] sm:$0xff]  }
 0x187   : > { %1501 = vmatprep.subr.bf16.mxu0 %v1459_v35  ;;  %2036 = vrot.lane.b32.xlu0 %v4967_v42, %s4458_s17  ;;  %v1451_v14 = vsel %vm1442_vm1, %v5310_v29, %v1401_v23 }
 0x188   : > { %2038 = vrot.lane.b32.xlu1 %v4969_v11, %s4458_s17  ;;  %1269 = vmatprep.mubr.bf16.mxu0 %v6275_v33 }
 0x189   : > { %4026 = vmatprep.mubr.bf16.mxu1 %v4416_v50  ;;  %4033 = vmatpush3.bf16.msra.mxu1 %v1448_v51  ;;  %v1437_v49 = vpop.permute.xlu0 %1436 }
 0x18a   : > { %1502 = vmatpush1.bf16.msra.mxu0 %v1458_v20  ;;  %v5432_v44 = vpop.permute.xlu1 %1438  ;;  %4034 = vmatprep.subr.bf16.mxu1 %v1451_v14 }
 0x18b   : > { %1503 = vmatprep.subr.bf16.mxu0 %v1462_v1  ;;  %2034 = vrot.lane.b32.xlu0 %v6274_v63, %s4458_s17  ;;  %v1465_v46 = vsel %vm1442_vm1, %v1437_v49, %v5432_v44 }
 0x18c   : > { %2008 = vrot.lane.b32.xlu1 %v4935_v40, %s4458_s17  ;;  %4027 = vmatmul.mubr.bf16.gmra.mrb[4].mxu1 %v4417_v5 }
 0x18d   : > { %1270 = vmatmul.mubr.bf16.gmra.mrb[12].mxu0 %v4417_v5  ;;  %4035 = vmatpush3.bf16.msra.mxu1 %v1451_v14  ;;  %v1435_v29 = vpop.permute.xlu0 %1434 }
 0x18e   : > { %1504 = vmatpush1.bf16.msra.mxu0 %v1461_v4  ;;  %v1409_v56 = vpop.permute.xlu1 %1408  ;;  %v1464_v8 = vsel %vm1442_vm1, %v1435_v29, %v1437_v49  ;;  %1523 = vmatprep.mubr.bf16.mxu0 %v6275_v33  ;;  %v4421_v4 = vld [vmem:[%s6258_s5 + $0x58] sm:$0xff]  }
 0x18f   : > { %1505 = vmatprep.subr.bf16.mxu0 %v1465_v46  ;;  %v1454_v6 = vsel %vm1442_vm1, %v5336_v43, %v1409_v56  ;;  %2044 = vrot.lane.b32.xlu0 %v5029_v38, %s4458_s17 }
 0x190   : > { %2046 = vrot.lane.b32.xlu1 %v5031_v18, %s4458_s17  ;;  %4036 = vmatprep.subr.bf16.mxu1 %v1454_v6 }
 0x191   : > { %4046 = vmatprep.mubr.bf16.mxu1 %v4418_v37  ;;  %4037 = vmatpush3.bf16.msra.mxu1 %v1454_v6  ;;  %v1689_v43 = vpop.permute.xlu0 %1688 }
 0x192   : > { %1506 = vmatpush1.bf16.msra.mxu0 %v1464_v8  ;;  %v5454_v25 = vpop.permute.xlu1 %1690 }
 0x193   : > { %v1752_v36 = vsel %vm1750_vm2, %v1689_v43, %v5454_v25  ;;  %2042 = vrot.lane.b32.xlu0 %v5049_v13, %s4458_s17 }
 0x194   : > { %2016 = vrot.lane.b32.xlu1 %v4944_v60, %s4458_s17  ;;  %1799 = vmatprep.subr.bf16.mxu0 %v1752_v36 }
 0x195   : > { %1524 = vmatmul.mubr.bf16.vlgmr.msra.gmra.mrb[0].mxu0 %v4418_v37  ;;  %v1687_v41 = vpop.permute.xlu0 %1686 }
 0x196   : > { %v1417_v17 = vpop.permute.xlu1 %1416  ;;  %1533 = vmatprep.mubr.bf16.mxu0 %v6275_v33  ;;  %v1751_v39 = vsel %vm1750_vm2, %v1687_v41, %v1689_v43 }
 0x197   : > { %v1457_v50 = vsel %vm1442_vm1, %v5353_v0, %v1417_v17  ;;  %2052 = vrot.lane.b32.xlu0 %v5070_v32, %s4458_s17  ;;  %1800 = vmatpush1.bf16.msra.mxu0 %v1751_v39 }
 0x198   : > { %2054 = vrot.lane.b32.xlu1 %v5072_v59, %s4458_s17  ;;  %4038 = vmatprep.subr.bf16.mxu1 %v1457_v50 }
 0x199   : > { %4039 = vmatpush3.bf16.msra.mxu1 %v1457_v50  ;;  %v1697_v57 = vpop.permute.xlu0 %1696 }
 0x19a   : > { %v5470_v12 = vpop.permute.xlu1 %1698 }
 0x19b   : > { %v1755_v47 = vsel %vm1750_vm2, %v1697_v57, %v5470_v12  ;;  %2050 = vrot.lane.b32.xlu0 %v5091_v10, %s4458_s17 }
 0x19c   : > { %2024 = vrot.lane.b32.xlu1 %v5077_v24, %s4458_s17  ;;  %1801 = vmatprep.subr.bf16.mxu0 %v1755_v47 }
 0x19d   : > { %1534 = vmatmul.mubr.bf16.gmra.mrb[4].mxu0 %v4419_v28  ;;  %v1695_v35 = vpop.permute.xlu0 %1694 }
 0x19e   : > { %v1425_v0 = vpop.permute.xlu1 %1424  ;;  %1543 = vmatprep.mubr.bf16.mxu0 %v6275_v33  ;;  %v1754_v23 = vsel %vm1750_vm2, %v1695_v35, %v1697_v57 }
 0x19f   : > { %v1460_v51 = vsel %vm1442_vm1, %v5381_v58, %v1425_v0  ;;  %2304 = vrot.lane.b32.xlu0 %v4695_v30, %s4459_s13  ;;  %1802 = vmatpush1.bf16.msra.mxu0 %v1754_v23 }
 0x1a0   : > { %2306 = vrot.lane.b32.xlu1 %v4697_v31, %s4459_s13  ;;  %4040 = vmatprep.subr.bf16.mxu1 %v1460_v51 }
 0x1a1   : > { %4041 = vmatpush3.bf16.msra.mxu1 %v1460_v51  ;;  %v1705_v5 = vpop.permute.xlu0 %1704 }
 0x1a2   : > { %v5492_v20 = vpop.permute.xlu1 %1706 }
 0x1a3   : > { %v1758_v58 = vsel %vm1750_vm2, %v1705_v5, %v5492_v20  ;;  %2302 = vrot.lane.b32.xlu0 %v4723_v3, %s4459_s13 }
 0x1a4   : > { %2032 = vrot.lane.b32.xlu1 %v5097_v9, %s4458_s17  ;;  %1803 = vmatprep.subr.bf16.mxu0 %v1758_v58 }
 0x1a5   : > { %1544 = vmatmul.mubr.bf16.gmra.mrb[8].mxu0 %v4420_v19  ;;  %v1703_v14 = vpop.permute.xlu0 %1702 }
 0x1a6   : > { %v1433_v1 = vpop.permute.xlu1 %1432  ;;  %1553 = vmatprep.mubr.bf16.mxu0 %v6275_v33  ;;  %v1757_v49 = vsel %vm1750_vm2, %v1703_v14, %v1705_v5 }
 0x1a7   : > { %v1463_v46 = vsel %vm1442_vm1, %v5408_v53, %v1433_v1  ;;  %2312 = vrot.lane.b32.xlu0 %v4743_v52, %s4459_s13  ;;  %1804 = vmatpush1.bf16.msra.mxu0 %v1757_v49 }
 0x1a8   : > { %2314 = vrot.lane.b32.xlu1 %v4748_v21, %s4459_s13  ;;  %4042 = vmatprep.subr.bf16.mxu1 %v1463_v46 }
 0x1a9   : > { %4043 = vmatpush3.bf16.msra.mxu1 %v1463_v46  ;;  %v1713_v29 = vpop.permute.xlu0 %1712 }
 0x1aa   : > { %v5511_v56 = vpop.permute.xlu1 %1714 }
 0x1ab   : > { %v1761_v8 = vsel %vm1750_vm2, %v1713_v29, %v5511_v56  ;;  %2310 = vrot.lane.b32.xlu0 %v4768_v45, %s4459_s13 }
 0x1ac   : > { %2040 = vrot.lane.b32.xlu1 %v5099_v34, %s4458_s17  ;;  %1805 = vmatprep.subr.bf16.mxu0 %v1761_v8 }
 0x1ad   : > { %1554 = vmatmul.mubr.bf16.gmra.mrb[12].mxu0 %v4421_v4  ;;  %v1711_v6 = vpop.permute.xlu0 %1710 }
 0x1ae   : > { %v1441_v53 = vpop.permute.xlu1 %1440  ;;  %1831 = vmatprep.mubr.bf16.mxu0 %v6275_v33  ;;  %v1760_v37 = vsel %vm1750_vm2, %v1711_v6, %v1713_v29 }
 0x1af   : > { %v1466_v43 = vsel %vm1442_vm1, %v5432_v44, %v1441_v53  ;;  %2320 = vrot.lane.b32.xlu0 %v4794_v7, %s4459_s13  ;;  %1806 = vmatpush1.bf16.msra.mxu0 %v1760_v37 }
 0x1b0   : > { %2322 = vrot.lane.b32.xlu1 %v4796_v16, %s4459_s13  ;;  %4044 = vmatprep.subr.bf16.mxu1 %v1466_v43 }
 0x1b1   : > { %4045 = vmatpush3.bf16.msra.mxu1 %v1466_v43  ;;  %v1721_v17 = vpop.permute.xlu0 %1720 }
 0x1b2   : > { %v5527_v36 = vpop.permute.xlu1 %1722 }
 0x1b3   : > { %v1764_v41 = vsel %vm1750_vm2, %v1721_v17, %v5527_v36  ;;  %2318 = vrot.lane.b32.xlu0 %v4823_v55, %s4459_s13 }
 0x1b4   : > { %2048 = vrot.lane.b32.xlu1 %v5109_v2, %s4458_s17  ;;  %1807 = vmatprep.subr.bf16.mxu0 %v1764_v41 }
 0x1b5   : > { %4047 = vmatmul.mubr.bf16.vlgmr.msra.gmra.mrb[0].mxu1 %v4419_v28  ;;  %v1719_v39 = vpop.permute.xlu0 %1718 }
 0x1b6   : > { %v1693_v44 = vpop.permute.xlu1 %1692  ;;  %4050 = vmatprep.mubr.bf16.mxu1 %v4420_v19  ;;  %v1763_v50 = vsel %vm1750_vm2, %v1719_v39, %v1721_v17 }
 0x1b7   : > { %v1753_v57 = vsel %vm1750_vm2, %v5454_v25, %v1693_v44  ;;  %2328 = vrot.lane.b32.xlu0 %v4848_v27, %s4459_s13  ;;  %1808 = vmatpush1.bf16.msra.mxu0 %v1763_v50  ;;  %v4422_v25 = vld [vmem:[%s6258_s5 + $0x60] sm:$0xff]  }
 0x1b8   : > { %2330 = vrot.lane.b32.xlu1 %v4850_v15, %s4459_s13  ;;  %4054 = vmatprep.subr.bf16.mxu1 %v1753_v57 }
 0x1b9   : > { %4055 = vmatpush3.bf16.msra.mxu1 %v1753_v57  ;;  %v1729_v28 = vpop.permute.xlu0 %1728 }
 0x1ba   : > { %v5542_v47 = vpop.permute.xlu1 %1730 }
 0x1bb   : > { %v1767_v0 = vsel %vm1750_vm2, %v1729_v28, %v5542_v47  ;;  %2326 = vrot.lane.b32.xlu0 %v4871_v62, %s4459_s13 }
 0x1bc   : > { %2056 = vrot.lane.b32.xlu1 %v5111_v22, %s4458_s17  ;;  %1809 = vmatprep.subr.bf16.mxu0 %v1767_v0 }
 0x1bd   : > { %4051 = vmatmul.mubr.bf16.gmra.mrb[4].mxu1 %v4421_v4  ;;  %v1727_v23 = vpop.permute.xlu0 %1726 }
 0x1be   : > { %v1701_v35 = vpop.permute.xlu1 %1700  ;;  %4070 = vmatprep.mubr.bf16.mxu1 %v4422_v25  ;;  %v1766_v51 = vsel %vm1750_vm2, %v1727_v23, %v1729_v28 }
 0x1bf   : > { %v1756_v19 = vsel %vm1750_vm2, %v5470_v12, %v1701_v35  ;;  %2336 = vrot.lane.b32.xlu0 %v4902_v61, %s4459_s13  ;;  %1810 = vmatpush1.bf16.msra.mxu0 %v1766_v51 }
 0x1c0   : > { %2338 = vrot.lane.b32.xlu1 %v4904_v48, %s4459_s13  ;;  %4056 = vmatprep.subr.bf16.mxu1 %v1756_v19 }
 0x1c1   : > { %4057 = vmatpush3.bf16.msra.mxu1 %v1756_v19  ;;  %v1737_v58 = vpop.permute.xlu0 %1736  ;;  %v4424_v19 = vld [vmem:[%s6258_s5 + $0x70] sm:$0xff]  }
 0x1c2   : > { %v5560_v5 = vpop.permute.xlu1 %1738 }
 0x1c3   : > { %v1770_v1 = vsel %vm1750_vm2, %v1737_v58, %v5560_v5  ;;  %2334 = vrot.lane.b32.xlu0 %v4939_v54, %s4459_s13 }
 0x1c4   : > { %2308 = vrot.lane.b32.xlu1 %v4933_v26, %s4459_s13  ;;  %1811 = vmatprep.subr.bf16.mxu0 %v1770_v1 }
 0x1c5   : > { %v1735_v14 = vpop.permute.xlu0 %1734 }
 0x1c6   : > { %v1709_v12 = vpop.permute.xlu1 %1708  ;;  %v1769_v49 = vsel %vm1750_vm2, %v1735_v14, %v1737_v58 }
 0x1c7   : > { %v1759_v46 = vsel %vm1750_vm2, %v5492_v20, %v1709_v12  ;;  %2344 = vrot.lane.b32.xlu0 %v4967_v42, %s4459_s13  ;;  %1812 = vmatpush1.bf16.msra.mxu0 %v1769_v49 }
 0x1c8   : > { %2346 = vrot.lane.b32.xlu1 %v4969_v11, %s4459_s13  ;;  %4058 = vmatprep.subr.bf16.mxu1 %v1759_v46 }
 0x1c9   : > { %4059 = vmatpush3.bf16.msra.mxu1 %v1759_v46  ;;  %v1745_v29 = vpop.permute.xlu0 %1744 }
 0x1ca   : > { %v5575_v4 = vpop.permute.xlu1 %1746 }
 0x1cb   : > { %v1773_v8 = vsel %vm1750_vm2, %v1745_v29, %v5575_v4  ;;  %2342 = vrot.lane.b32.xlu0 %v6274_v63, %s4459_s13 }
 0x1cc   : > { %2316 = vrot.lane.b32.xlu1 %v4935_v40, %s4459_s13  ;;  %1813 = vmatprep.subr.bf16.mxu0 %v1773_v8 }
 0x1cd   : > { %v1743_v53 = vpop.permute.xlu0 %1742 }
 0x1ce   : > { %v1717_v20 = vpop.permute.xlu1 %1716  ;;  %v1772_v6 = vsel %vm1750_vm2, %v1743_v53, %v1745_v29  ;;  %v4425_v29 = vld [vmem:[%s6258_s5 + $0x78] sm:$0xff]  }
 0x1cf   : > { %v1762_v37 = vsel %vm1750_vm2, %v5511_v56, %v1717_v20  ;;  %2352 = vrot.lane.b32.xlu0 %v5029_v38, %s4459_s13  ;;  %1814 = vmatpush1.bf16.msra.mxu0 %v1772_v6 }
 0x1d0   : > { %2354 = vrot.lane.b32.xlu1 %v5031_v18, %s4459_s13  ;;  %4060 = vmatprep.subr.bf16.mxu1 %v1762_v37 }
 0x1d1   : > { %4061 = vmatpush3.bf16.msra.mxu1 %v1762_v37  ;;  %v1997_v17 = vpop.permute.xlu0 %1996 }
 0x1d2   : > { %v5590_v43 = vpop.permute.xlu1 %1998  ;;  %1832 = vmatmul.mubr.bf16.vlgmr.msra.gmra.mrb[0].mxu0 %v4422_v25  ;;  %v4423_v25 = vld [vmem:[%s6258_s5 + $0x68] sm:$0xff]  }
 0x1d3   : > { %v2060_v41 = vsel %vm2058_vm3, %v1997_v17, %v5590_v43  ;;  %2350 = vrot.lane.b32.xlu0 %v5049_v13, %s4459_s13  ;;  %1841 = vmatprep.mubr.bf16.mxu0 %v6275_v33 }
 0x1d4   : > { %2324 = vrot.lane.b32.xlu1 %v4944_v60, %s4459_s13  ;;  %2107 = vmatprep.subr.bf16.mxu0 %v2060_v41 }
 0x1d5   : > { %v1995_v44 = vpop.permute.xlu0 %1994 }
 0x1d6   : > { %v1725_v56 = vpop.permute.xlu1 %1724  ;;  %v2059_v39 = vsel %vm2058_vm3, %v1995_v44, %v1997_v17 }
 0x1d7   : > { %v1765_v50 = vsel %vm1750_vm2, %v5527_v36, %v1725_v56  ;;  %2360 = vrot.lane.b32.xlu0 %v5070_v32, %s4459_s13  ;;  %2108 = vmatpush1.bf16.msra.mxu0 %v2059_v39 }
 0x1d8   : > { %2362 = vrot.lane.b32.xlu1 %v5072_v59, %s4459_s13  ;;  %4062 = vmatprep.subr.bf16.mxu1 %v1765_v50 }
 0x1d9   : > { %4063 = vmatpush3.bf16.msra.mxu1 %v1765_v50  ;;  %v2005_v28 = vpop.permute.xlu0 %2004 }
 0x1da   : > { %v5606_v57 = vpop.permute.xlu1 %2006  ;;  %1842 = vmatmul.mubr.bf16.gmra.mrb[4].mxu0 %v4423_v25 }
 0x1db   : > { %v2063_v0 = vsel %vm2058_vm3, %v2005_v28, %v5606_v57  ;;  %2358 = vrot.lane.b32.xlu0 %v5091_v10, %s4459_s13  ;;  %1851 = vmatprep.mubr.bf16.mxu0 %v6275_v33 }
 0x1dc   : > { %2332 = vrot.lane.b32.xlu1 %v5077_v24, %s4459_s13  ;;  %2109 = vmatprep.subr.bf16.mxu0 %v2063_v0 }
 0x1dd   : > { %v2003_v35 = vpop.permute.xlu0 %2002 }
 0x1de   : > { %v1733_v36 = vpop.permute.xlu1 %1732  ;;  %v2062_v23 = vsel %vm2058_vm3, %v2003_v35, %v2005_v28 }
 0x1df   : > { %v1768_v51 = vsel %vm1750_vm2, %v5542_v47, %v1733_v36  ;;  %2612 = vrot.lane.b32.xlu0 %v4695_v30, %s4460_s22  ;;  %2110 = vmatpush1.bf16.msra.mxu0 %v2062_v23 }
 0x1e0   : > { %2614 = vrot.lane.b32.xlu1 %v4697_v31, %s4460_s22  ;;  %4064 = vmatprep.subr.bf16.mxu1 %v1768_v51 }
 0x1e1   : > { %4065 = vmatpush3.bf16.msra.mxu1 %v1768_v51  ;;  %v2013_v1 = vpop.permute.xlu0 %2012 }
 0x1e2   : > { %v5628_v58 = vpop.permute.xlu1 %2014  ;;  %1852 = vmatmul.mubr.bf16.gmra.mrb[8].mxu0 %v4424_v19 }
 0x1e3   : > { %v2066_v47 = vsel %vm2058_vm3, %v2013_v1, %v5628_v58  ;;  %2610 = vrot.lane.b32.xlu0 %v4723_v3, %s4460_s22  ;;  %1861 = vmatprep.mubr.bf16.mxu0 %v6275_v33 }
 0x1e4   : > { %2340 = vrot.lane.b32.xlu1 %v5097_v9, %s4459_s13  ;;  %2111 = vmatprep.subr.bf16.mxu0 %v2066_v47 }
 0x1e5   : > { %v2011_v14 = vpop.permute.xlu0 %2010 }
 0x1e6   : > { %v1741_v12 = vpop.permute.xlu1 %1740  ;;  %v2065_v49 = vsel %vm2058_vm3, %v2011_v14, %v2013_v1 }
 0x1e7   : > { %v1771_v46 = vsel %vm1750_vm2, %v5560_v5, %v1741_v12  ;;  %2620 = vrot.lane.b32.xlu0 %v4743_v52, %s4460_s22  ;;  %2112 = vmatpush1.bf16.msra.mxu0 %v2065_v49 }
 0x1e8   : > { %2622 = vrot.lane.b32.xlu1 %v4748_v21, %s4460_s22  ;;  %4066 = vmatprep.subr.bf16.mxu1 %v1771_v46 }
 0x1e9   : > { %4067 = vmatpush3.bf16.msra.mxu1 %v1771_v46  ;;  %v2021_v20 = vpop.permute.xlu0 %2020 }
 0x1ea   : > { %v5647_v8 = vpop.permute.xlu1 %2022  ;;  %1862 = vmatmul.mubr.bf16.gmra.mrb[12].mxu0 %v4425_v29 }
 0x1eb   : > { %v2069_v53 = vsel %vm2058_vm3, %v2021_v20, %v5647_v8  ;;  %2618 = vrot.lane.b32.xlu0 %v4768_v45, %s4460_s22  ;;  %2139 = vmatprep.mubr.bf16.mxu0 %v6275_v33 }
 0x1ec   : > { %2348 = vrot.lane.b32.xlu1 %v5099_v34, %s4459_s13  ;;  %2113 = vmatprep.subr.bf16.mxu0 %v2069_v53 }
 0x1ed   : > { %v2019_v6 = vpop.permute.xlu0 %2018 }
 0x1ee   : > { %v1749_v5 = vpop.permute.xlu1 %1748  ;;  %v2068_v37 = vsel %vm2058_vm3, %v2019_v6, %v2021_v20 }
 0x1ef   : > { %v1774_v17 = vsel %vm1750_vm2, %v5575_v4, %v1749_v5  ;;  %2628 = vrot.lane.b32.xlu0 %v4794_v7, %s4460_s22  ;;  %2114 = vmatpush1.bf16.msra.mxu0 %v2068_v37 }
 0x1f0   : > { %2630 = vrot.lane.b32.xlu1 %v4796_v16, %s4460_s22  ;;  %4068 = vmatprep.subr.bf16.mxu1 %v1774_v17 }
 0x1f1   : > { %4069 = vmatpush3.bf16.msra.mxu1 %v1774_v17  ;;  %v2029_v56 = vpop.permute.xlu0 %2028 }
 0x1f2   : > { %v5663_v41 = vpop.permute.xlu1 %2030 }
 0x1f3   : > { %v2072_v44 = vsel %vm2058_vm3, %v2029_v56, %v5663_v41  ;;  %2626 = vrot.lane.b32.xlu0 %v4823_v55, %s4460_s22 }
 0x1f4   : > { %2356 = vrot.lane.b32.xlu1 %v5109_v2, %s4459_s13  ;;  %2115 = vmatprep.subr.bf16.mxu0 %v2072_v44 }
 0x1f5   : > { %4071 = vmatmul.mubr.bf16.vlgmr.msra.gmra.mrb[0].mxu1 %v4423_v25  ;;  %v2027_v39 = vpop.permute.xlu0 %2026 }
 0x1f6   : > { %v2001_v4 = vpop.permute.xlu1 %2000  ;;  %4074 = vmatprep.mubr.bf16.mxu1 %v4424_v19  ;;  %v2071_v50 = vsel %vm2058_vm3, %v2027_v39, %v2029_v56 }
 0x1f7   : > { %v2061_v28 = vsel %vm2058_vm3, %v5590_v43, %v2001_v4  ;;  %2636 = vrot.lane.b32.xlu0 %v4848_v27, %s4460_s22  ;;  %2116 = vmatpush1.bf16.msra.mxu0 %v2071_v50  ;;  %v4426_v43 = vld [vmem:[%s6258_s5 + $0x80] sm:$0xff]  }
 0x1f8   : > { %2638 = vrot.lane.b32.xlu1 %v4850_v15, %s4460_s22  ;;  %4078 = vmatprep.subr.bf16.mxu1 %v2061_v28 }
 0x1f9   : > { %4079 = vmatpush3.bf16.msra.mxu1 %v2061_v28  ;;  %v2037_v25 = vpop.permute.xlu0 %2036 }
 0x1fa   : > { %v5678_v0 = vpop.permute.xlu1 %2038 }
 0x1fb   : > { %v2075_v36 = vsel %vm2058_vm3, %v2037_v25, %v5678_v0  ;;  %2634 = vrot.lane.b32.xlu0 %v4871_v62, %s4460_s22 }
 0x1fc   : > { %2364 = vrot.lane.b32.xlu1 %v5111_v22, %s4459_s13  ;;  %2117 = vmatprep.subr.bf16.mxu0 %v2075_v36 }
 0x1fd   : > { %4075 = vmatmul.mubr.bf16.gmra.mrb[4].mxu1 %v4425_v29  ;;  %v2035_v23 = vpop.permute.xlu0 %2034 }
 0x1fe   : > { %v2009_v35 = vpop.permute.xlu1 %2008  ;;  %4094 = vmatprep.mubr.bf16.mxu1 %v4426_v43  ;;  %v2074_v51 = vsel %vm2058_vm3, %v2035_v23, %v2037_v25 }
 0x1ff   : > { %v2064_v19 = vsel %vm2058_vm3, %v5606_v57, %v2009_v35  ;;  %2644 = vrot.lane.b32.xlu0 %v4902_v61, %s4460_s22  ;;  %2118 = vmatpush1.bf16.msra.mxu0 %v2074_v51 }
 0x200   : > { %2646 = vrot.lane.b32.xlu1 %v4904_v48, %s4460_s22  ;;  %4080 = vmatprep.subr.bf16.mxu1 %v2064_v19 }
 0x201   : > { %4081 = vmatpush3.bf16.msra.mxu1 %v2064_v19  ;;  %v2045_v47 = vpop.permute.xlu0 %2044  ;;  %v4428_v19 = vld [vmem:[%s6258_s5 + $0x90] sm:$0xff]  }
 0x202   : > { %v5696_v1 = vpop.permute.xlu1 %2046 }
 0x203   : > { %v2078_v12 = vsel %vm2058_vm3, %v2045_v47, %v5696_v1  ;;  %2642 = vrot.lane.b32.xlu0 %v4939_v54, %s4460_s22 }
 0x204   : > { %2616 = vrot.lane.b32.xlu1 %v4933_v26, %s4460_s22  ;;  %2119 = vmatprep.subr.bf16.mxu0 %v2078_v12 }
 0x205   : > { %v2043_v14 = vpop.permute.xlu0 %2042 }
 0x206   : > { %v2017_v57 = vpop.permute.xlu1 %2016  ;;  %v2077_v49 = vsel %vm2058_vm3, %v2043_v14, %v2045_v47 }
 0x207   : > { %v2067_v46 = vsel %vm2058_vm3, %v5628_v58, %v2017_v57  ;;  %2652 = vrot.lane.b32.xlu0 %v4967_v42, %s4460_s22  ;;  %2120 = vmatpush1.bf16.msra.mxu0 %v2077_v49 }
 0x208   : > { %2654 = vrot.lane.b32.xlu1 %v4969_v11, %s4460_s22  ;;  %4082 = vmatprep.subr.bf16.mxu1 %v2067_v46 }
 0x209   : > { %4083 = vmatpush3.bf16.msra.mxu1 %v2067_v46  ;;  %v2053_v20 = vpop.permute.xlu0 %2052 }
 0x20a   : > { %v5711_v29 = vpop.permute.xlu1 %2054 }
 0x20b   : > { %v2081_v53 = vsel %vm2058_vm3, %v2053_v20, %v5711_v29  ;;  %2650 = vrot.lane.b32.xlu0 %v6274_v63, %s4460_s22 }
 0x20c   : > { %2624 = vrot.lane.b32.xlu1 %v4935_v40, %s4460_s22  ;;  %2121 = vmatprep.subr.bf16.mxu0 %v2081_v53 }
 0x20d   : > { %v2051_v5 = vpop.permute.xlu0 %2050 }
 0x20e   : > { %v2025_v58 = vpop.permute.xlu1 %2024  ;;  %v2080_v6 = vsel %vm2058_vm3, %v2051_v5, %v2053_v20  ;;  %v4429_v20 = vld [vmem:[%s6258_s5 + $0x98] sm:$0xff]  }
 0x20f   : > { %v2070_v37 = vsel %vm2058_vm3, %v5647_v8, %v2025_v58  ;;  %2660 = vrot.lane.b32.xlu0 %v5029_v38, %s4460_s22  ;;  %2122 = vmatpush1.bf16.msra.mxu0 %v2080_v6 }
 0x210   : > { %2662 = vrot.lane.b32.xlu1 %v5031_v18, %s4460_s22  ;;  %4084 = vmatprep.subr.bf16.mxu1 %v2070_v37 }
 0x211   : > { %4085 = vmatpush3.bf16.msra.mxu1 %v2070_v37  ;;  %v2305_v56 = vpop.permute.xlu0 %2304 }
 0x212   : > { %v5726_v17 = vpop.permute.xlu1 %2306  ;;  %2140 = vmatmul.mubr.bf16.vlgmr.msra.gmra.mrb[0].mxu0 %v4426_v43  ;;  %v4427_v43 = vld [vmem:[%s6258_s5 + $0x88] sm:$0xff]  }
 0x213   : > { %v2368_v44 = vsel %vm2366_vm4, %v2305_v56, %v5726_v17  ;;  %2658 = vrot.lane.b32.xlu0 %v5049_v13, %s4460_s22  ;;  %2149 = vmatprep.mubr.bf16.mxu0 %v6275_v33 }
 0x214   : > { %2632 = vrot.lane.b32.xlu1 %v4944_v60, %s4460_s22  ;;  %2415 = vmatprep.subr.bf16.mxu0 %v2368_v44 }
 0x215   : > { %v2303_v4 = vpop.permute.xlu0 %2302 }
 0x216   : > { %v2033_v8 = vpop.permute.xlu1 %2032  ;;  %v2367_v39 = vsel %vm2366_vm4, %v2303_v4, %v2305_v56 }
 0x217   : > { %v2073_v50 = vsel %vm2058_vm3, %v5663_v41, %v2033_v8  ;;  %2668 = vrot.lane.b32.xlu0 %v5070_v32, %s4460_s22  ;;  %2416 = vmatpush1.bf16.msra.mxu0 %v2367_v39 }
 0x218   : > { %2670 = vrot.lane.b32.xlu1 %v5072_v59, %s4460_s22  ;;  %4086 = vmatprep.subr.bf16.mxu1 %v2073_v50 }
 0x219   : > { %4087 = vmatpush3.bf16.msra.mxu1 %v2073_v50  ;;  %v2313_v25 = vpop.permute.xlu0 %2312 }
 0x21a   : > { %v5742_v28 = vpop.permute.xlu1 %2314  ;;  %2150 = vmatmul.mubr.bf16.gmra.mrb[4].mxu0 %v4427_v43 }
 0x21b   : > { %v2371_v36 = vsel %vm2366_vm4, %v2313_v25, %v5742_v28  ;;  %2666 = vrot.lane.b32.xlu0 %v5091_v10, %s4460_s22  ;;  %2159 = vmatprep.mubr.bf16.mxu0 %v6275_v33 }
 0x21c   : > { %2640 = vrot.lane.b32.xlu1 %v5077_v24, %s4460_s22  ;;  %2417 = vmatprep.subr.bf16.mxu0 %v2371_v36 }
 0x21d   : > { %v2311_v35 = vpop.permute.xlu0 %2310 }
 0x21e   : > { %v2041_v41 = vpop.permute.xlu1 %2040  ;;  %v2370_v23 = vsel %vm2366_vm4, %v2311_v35, %v2313_v25 }
 0x21f   : > { %v2076_v51 = vsel %vm2058_vm3, %v5678_v0, %v2041_v41  ;;  %2920 = vrot.lane.b32.xlu0 %v4695_v30, %s4461_s10  ;;  %2418 = vmatpush1.bf16.msra.mxu0 %v2370_v23 }
 0x220   : > { %2922 = vrot.lane.b32.xlu1 %v4697_v31, %s4461_s10  ;;  %4088 = vmatprep.subr.bf16.mxu1 %v2076_v51 }
 0x221   : > { %4089 = vmatpush3.bf16.msra.mxu1 %v2076_v51  ;;  %v2321_v12 = vpop.permute.xlu0 %2320 }
 0x222   : > { %v5764_v47 = vpop.permute.xlu1 %2322  ;;  %2160 = vmatmul.mubr.bf16.gmra.mrb[8].mxu0 %v4428_v19 }
 0x223   : > { %v2374_v0 = vsel %vm2366_vm4, %v2321_v12, %v5764_v47  ;;  %2918 = vrot.lane.b32.xlu0 %v4723_v3, %s4461_s10  ;;  %2169 = vmatprep.mubr.bf16.mxu0 %v6275_v33 }
 0x224   : > { %2648 = vrot.lane.b32.xlu1 %v5097_v9, %s4460_s22  ;;  %2419 = vmatprep.subr.bf16.mxu0 %v2374_v0 }
 0x225   : > { %v2319_v14 = vpop.permute.xlu0 %2318 }
 0x226   : > { %v2049_v57 = vpop.permute.xlu1 %2048  ;;  %v2373_v49 = vsel %vm2366_vm4, %v2319_v14, %v2321_v12 }
 0x227   : > { %v2079_v46 = vsel %vm2058_vm3, %v5696_v1, %v2049_v57  ;;  %2928 = vrot.lane.b32.xlu0 %v4743_v52, %s4461_s10  ;;  %2420 = vmatpush1.bf16.msra.mxu0 %v2373_v49 }
 0x228   : > { %2930 = vrot.lane.b32.xlu1 %v4748_v21, %s4461_s10  ;;  %4090 = vmatprep.subr.bf16.mxu1 %v2079_v46 }
 0x229   : > { %4091 = vmatpush3.bf16.msra.mxu1 %v2079_v46  ;;  %v2329_v58 = vpop.permute.xlu0 %2328 }
 0x22a   : > { %v5783_v53 = vpop.permute.xlu1 %2330  ;;  %2170 = vmatmul.mubr.bf16.gmra.mrb[12].mxu0 %v4429_v20 }
 0x22b   : > { %v2377_v5 = vsel %vm2366_vm4, %v2329_v58, %v5783_v53  ;;  %2926 = vrot.lane.b32.xlu0 %v4768_v45, %s4461_s10  ;;  %2447 = vmatprep.mubr.bf16.mxu0 %v6275_v33 }
 0x22c   : > { %2656 = vrot.lane.b32.xlu1 %v5099_v34, %s4460_s22  ;;  %2421 = vmatprep.subr.bf16.mxu0 %v2377_v5 }
 0x22d   : > { %v2327_v6 = vpop.permute.xlu0 %2326 }
 0x22e   : > { %v2057_v1 = vpop.permute.xlu1 %2056  ;;  %v2376_v37 = vsel %vm2366_vm4, %v2327_v6, %v2329_v58 }
 0x22f   : > { %v2082_v56 = vsel %vm2058_vm3, %v5711_v29, %v2057_v1  ;;  %2936 = vrot.lane.b32.xlu0 %v4794_v7, %s4461_s10  ;;  %2422 = vmatpush1.bf16.msra.mxu0 %v2376_v37 }
 0x230   : > { %2938 = vrot.lane.b32.xlu1 %v4796_v16, %s4461_s10  ;;  %4092 = vmatprep.subr.bf16.mxu1 %v2082_v56 }
 0x231   : > { %4093 = vmatpush3.bf16.msra.mxu1 %v2082_v56  ;;  %v2337_v8 = vpop.permute.xlu0 %2336 }
 0x232   : > { %v5799_v44 = vpop.permute.xlu1 %2338 }
 0x233   : > { %v2380_v4 = vsel %vm2366_vm4, %v2337_v8, %v5799_v44  ;;  %2934 = vrot.lane.b32.xlu0 %v4823_v55, %s4461_s10 }
 0x234   : > { %2664 = vrot.lane.b32.xlu1 %v5109_v2, %s4460_s22  ;;  %2423 = vmatprep.subr.bf16.mxu0 %v2380_v4 }
 0x235   : > { %4095 = vmatmul.mubr.bf16.vlgmr.msra.gmra.mrb[0].mxu1 %v4427_v43  ;;  %v2335_v39 = vpop.permute.xlu0 %2334  ;;  %v4430_v43 = vld [vmem:[%s6258_s5 + $0xa0] sm:$0xff]  }
 0x236   : > { %v2309_v29 = vpop.permute.xlu1 %2308  ;;  %4098 = vmatprep.mubr.bf16.mxu1 %v4428_v19  ;;  %v2379_v25 = vsel %vm2366_vm4, %v2335_v39, %v2337_v8 }
 0x237   : > { %v2369_v50 = vsel %vm2366_vm4, %v5726_v17, %v2309_v29  ;;  %2944 = vrot.lane.b32.xlu0 %v4848_v27, %s4461_s10  ;;  %2424 = vmatpush1.bf16.msra.mxu0 %v2379_v25 }
 0x238   : > { %2946 = vrot.lane.b32.xlu1 %v4850_v15, %s4461_s10  ;;  %4102 = vmatprep.subr.bf16.mxu1 %v2369_v50 }
 0x239   : > { %4103 = vmatpush3.bf16.msra.mxu1 %v2369_v50  ;;  %v2345_v41 = vpop.permute.xlu0 %2344 }
 0x23a   : > { %v5814_v36 = vpop.permute.xlu1 %2346 }
 0x23b   : > { %v2383_v17 = vsel %vm2366_vm4, %v2345_v41, %v5814_v36  ;;  %2942 = vrot.lane.b32.xlu0 %v4871_v62, %s4461_s10 }
 0x23c   : > { %2672 = vrot.lane.b32.xlu1 %v5111_v22, %s4460_s22  ;;  %2425 = vmatprep.subr.bf16.mxu0 %v2383_v17 }
 0x23d   : > { %4099 = vmatmul.mubr.bf16.gmra.mrb[4].mxu1 %v4429_v20  ;;  %v2343_v23 = vpop.permute.xlu0 %2342 }
 0x23e   : > { %v2317_v35 = vpop.permute.xlu1 %2316  ;;  %4118 = vmatprep.mubr.bf16.mxu1 %v4430_v43  ;;  %v2382_v19 = vsel %vm2366_vm4, %v2343_v23, %v2345_v41  ;;  %v4431_v41 = vld [vmem:[%s6258_s5 + $0xa8] sm:$0xff]  }
 0x23f   : > { %v2372_v51 = vsel %vm2366_vm4, %v5742_v28, %v2317_v35  ;;  %2952 = vrot.lane.b32.xlu0 %v4902_v61, %s4461_s10  ;;  %2426 = vmatpush1.bf16.msra.mxu0 %v2382_v19  ;;  %v4432_v19 = vld [vmem:[%s6258_s5 + $0xb0] sm:$0xff]  }
 0x240   : > { %2954 = vrot.lane.b32.xlu1 %v4904_v48, %s4461_s10  ;;  %4104 = vmatprep.subr.bf16.mxu1 %v2372_v51 }
 0x241   : > { %4105 = vmatpush3.bf16.msra.mxu1 %v2372_v51  ;;  %v2353_v0 = vpop.permute.xlu0 %2352 }
 0x242   : > { %v5832_v12 = vpop.permute.xlu1 %2354 }
 0x243   : > { %v2386_v28 = vsel %vm2366_vm4, %v2353_v0, %v5832_v12  ;;  %2950 = vrot.lane.b32.xlu0 %v4939_v54, %s4461_s10 }
 0x244   : > { %2924 = vrot.lane.b32.xlu1 %v4933_v26, %s4461_s10  ;;  %2427 = vmatprep.subr.bf16.mxu0 %v2386_v28 }
 0x245   : > { %v2351_v14 = vpop.permute.xlu0 %2350 }
 0x246   : > { %v2325_v57 = vpop.permute.xlu1 %2324  ;;  %v2385_v46 = vsel %vm2366_vm4, %v2351_v14, %v2353_v0 }
 0x247   : > { %v2375_v49 = vsel %vm2366_vm4, %v5764_v47, %v2325_v57  ;;  %2960 = vrot.lane.b32.xlu0 %v4967_v42, %s4461_s10  ;;  %2428 = vmatpush1.bf16.msra.mxu0 %v2385_v46 }
 0x248   : > { %2962 = vrot.lane.b32.xlu1 %v4969_v11, %s4461_s10  ;;  %4106 = vmatprep.subr.bf16.mxu1 %v2375_v49 }
 0x249   : > { %4107 = vmatpush3.bf16.msra.mxu1 %v2375_v49  ;;  %v2361_v58 = vpop.permute.xlu0 %2360  ;;  %v4433_v49 = vld [vmem:[%s6258_s5 + $0xb8] sm:$0xff]  }
 0x24a   : > { %v5847_v20 = vpop.permute.xlu1 %2362 }
 0x24b   : > { %v2389_v47 = vsel %vm2366_vm4, %v2361_v58, %v5847_v20  ;;  %2958 = vrot.lane.b32.xlu0 %v6274_v63, %s4461_s10 }
 0x24c   : > { %2932 = vrot.lane.b32.xlu1 %v4935_v40, %s4461_s10  ;;  %2429 = vmatprep.subr.bf16.mxu0 %v2389_v47 }
 0x24d   : > { %v2359_v1 = vpop.permute.xlu0 %2358 }
 0x24e   : > { %v2333_v5 = vpop.permute.xlu1 %2332  ;;  %v2388_v37 = vsel %vm2366_vm4, %v2359_v1, %v2361_v58 }
 0x24f   : > { %v2378_v6 = vsel %vm2366_vm4, %v5783_v53, %v2333_v5  ;;  %2968 = vrot.lane.b32.xlu0 %v5029_v38, %s4461_s10  ;;  %2430 = vmatpush1.bf16.msra.mxu0 %v2388_v37 }
 0x250   : > { %2970 = vrot.lane.b32.xlu1 %v5031_v18, %s4461_s10  ;;  %4108 = vmatprep.subr.bf16.mxu1 %v2378_v6 }
 0x251   : > { %4109 = vmatpush3.bf16.msra.mxu1 %v2378_v6  ;;  %v2613_v8 = vpop.permute.xlu0 %2612 }
 0x252   : > { %v5862_v56 = vpop.permute.xlu1 %2614  ;;  %2448 = vmatmul.mubr.bf16.vlgmr.msra.gmra.mrb[0].mxu0 %v4430_v43 }
 0x253   : > { %v2676_v53 = vsel %vm2674_vm5, %v2613_v8, %v5862_v56  ;;  %2966 = vrot.lane.b32.xlu0 %v5049_v13, %s4461_s10  ;;  %2457 = vmatprep.mubr.bf16.mxu0 %v6275_v33 }
 0x254   : > { %2940 = vrot.lane.b32.xlu1 %v4944_v60, %s4461_s10  ;;  %2723 = vmatprep.subr.bf16.mxu0 %v2676_v53 }
 0x255   : > { %v2611_v29 = vpop.permute.xlu0 %2610 }
 0x256   : > { %v2341_v4 = vpop.permute.xlu1 %2340  ;;  %v2675_v50 = vsel %vm2674_vm5, %v2611_v29, %v2613_v8 }
 0x257   : > { %v2381_v39 = vsel %vm2366_vm4, %v5799_v44, %v2341_v4  ;;  %2976 = vrot.lane.b32.xlu0 %v5070_v32, %s4461_s10  ;;  %2724 = vmatpush1.bf16.msra.mxu0 %v2675_v50 }
 0x258   : > { %2978 = vrot.lane.b32.xlu1 %v5072_v59, %s4461_s10  ;;  %4110 = vmatprep.subr.bf16.mxu1 %v2381_v39 }
 0x259   : > { %4111 = vmatpush3.bf16.msra.mxu1 %v2381_v39  ;;  %v2621_v17 = vpop.permute.xlu0 %2620 }
 0x25a   : > { %v5878_v25 = vpop.permute.xlu1 %2622  ;;  %2458 = vmatmul.mubr.bf16.gmra.mrb[4].mxu0 %v4431_v41 }
 0x25b   : > { %v2679_v44 = vsel %vm2674_vm5, %v2621_v17, %v5878_v25  ;;  %2974 = vrot.lane.b32.xlu0 %v5091_v10, %s4461_s10  ;;  %2467 = vmatprep.mubr.bf16.mxu0 %v6275_v33 }
 0x25c   : > { %2948 = vrot.lane.b32.xlu1 %v5077_v24, %s4461_s10  ;;  %2725 = vmatprep.subr.bf16.mxu0 %v2679_v44 }
 0x25d   : > { %v2619_v35 = vpop.permute.xlu0 %2618 }
 0x25e   : > { %v2349_v43 = vpop.permute.xlu1 %2348  ;;  %v2678_v51 = vsel %vm2674_vm5, %v2619_v35, %v2621_v17 }
 0x25f   : > { %v2384_v23 = vsel %vm2366_vm4, %v5814_v36, %v2349_v43  ;;  %3228 = vrot.lane.b32.xlu0 %v4695_v30, %s4462_s20  ;;  %2726 = vmatpush1.bf16.msra.mxu0 %v2678_v51 }
 0x260   : > { %3230 = vrot.lane.b32.xlu1 %v4697_v31, %s4462_s20  ;;  %4112 = vmatprep.subr.bf16.mxu1 %v2384_v23 }
 0x261   : > { %4113 = vmatpush3.bf16.msra.mxu1 %v2384_v23  ;;  %v2629_v28 = vpop.permute.xlu0 %2628 }
 0x262   : > { %v5900_v0 = vpop.permute.xlu1 %2630  ;;  %2468 = vmatmul.mubr.bf16.gmra.mrb[8].mxu0 %v4432_v19 }
 0x263   : > { %v2682_v36 = vsel %vm2674_vm5, %v2629_v28, %v5900_v0  ;;  %3226 = vrot.lane.b32.xlu0 %v4723_v3, %s4462_s20  ;;  %2477 = vmatprep.mubr.bf16.mxu0 %v6275_v33 }
 0x264   : > { %2956 = vrot.lane.b32.xlu1 %v5097_v9, %s4461_s10  ;;  %2727 = vmatprep.subr.bf16.mxu0 %v2682_v36 }
 0x265   : > { %v2627_v30 = vpop.permute.xlu0 %2626 }
 0x266   : > { %v2357_v31 = vpop.permute.xlu1 %2356  ;;  %v2681_v14 = vsel %vm2674_vm5, %v2627_v30, %v2629_v28 }
 0x267   : > { %v2387_v57 = vsel %vm2366_vm4, %v5832_v12, %v2357_v31  ;;  %3236 = vrot.lane.b32.xlu0 %v4743_v52, %s4462_s20  ;;  %2728 = vmatpush1.bf16.msra.mxu0 %v2681_v14 }
 0x268   : > { %3238 = vrot.lane.b32.xlu1 %v4748_v21, %s4462_s20  ;;  %4114 = vmatprep.subr.bf16.mxu1 %v2387_v57 }
 0x269   : > { %4115 = vmatpush3.bf16.msra.mxu1 %v2387_v57  ;;  %v2637_v46 = vpop.permute.xlu0 %2636 }
 0x26a   : > { %v5919_v3 = vpop.permute.xlu1 %2638  ;;  %2478 = vmatmul.mubr.bf16.gmra.mrb[12].mxu0 %v4433_v49 }
 0x26b   : > { %v2685_v12 = vsel %vm2674_vm5, %v2637_v46, %v5919_v3  ;;  %3234 = vrot.lane.b32.xlu0 %v4768_v45, %s4462_s20  ;;  %2755 = vmatprep.mubr.bf16.mxu0 %v6275_v33 }
 0x26c   : > { %2964 = vrot.lane.b32.xlu1 %v5099_v34, %s4461_s10  ;;  %2729 = vmatprep.subr.bf16.mxu0 %v2685_v12 }
 0x26d   : > { %v2635_v52 = vpop.permute.xlu0 %2634 }
 0x26e   : > { %v2365_v21 = vpop.permute.xlu1 %2364  ;;  %v2684_v47 = vsel %vm2674_vm5, %v2635_v52, %v2637_v46 }
 0x26f   : > { %v2390_v58 = vsel %vm2366_vm4, %v5847_v20, %v2365_v21  ;;  %3244 = vrot.lane.b32.xlu0 %v4794_v7, %s4462_s20  ;;  %2730 = vmatpush1.bf16.msra.mxu0 %v2684_v47 }
 0x270   : > { %3246 = vrot.lane.b32.xlu1 %v4796_v16, %s4462_s20  ;;  %4116 = vmatprep.subr.bf16.mxu1 %v2390_v58 }
 0x271   : > { %4117 = vmatpush3.bf16.msra.mxu1 %v2390_v58  ;;  %v2645_v5 = vpop.permute.xlu0 %2644 }
 0x272   : > { %v5935_v45 = vpop.permute.xlu1 %2646 }
 0x273   : > { %v2688_v20 = vsel %vm2674_vm5, %v2645_v5, %v5935_v45  ;;  %3242 = vrot.lane.b32.xlu0 %v4823_v55, %s4462_s20 }
 0x274   : > { %2972 = vrot.lane.b32.xlu1 %v5109_v2, %s4461_s10  ;;  %2731 = vmatprep.subr.bf16.mxu0 %v2688_v20 }
 0x275   : > { %4119 = vmatmul.mubr.bf16.vlgmr.msra.gmra.mrb[0].mxu1 %v4431_v41  ;;  %v2643_v1 = vpop.permute.xlu0 %2642 }
 0x276   : > { %v2617_v16 = vpop.permute.xlu1 %2616  ;;  %4122 = vmatprep.mubr.bf16.mxu1 %v4432_v19  ;;  %v2687_v6 = vsel %vm2674_vm5, %v2643_v1, %v2645_v5 }
 0x277   : > { %v2677_v7 = vsel %vm2674_vm5, %v5862_v56, %v2617_v16  ;;  %3252 = vrot.lane.b32.xlu0 %v4848_v27, %s4462_s20  ;;  %2732 = vmatpush1.bf16.msra.mxu0 %v2687_v6  ;;  %v4438_v6 = vld [vmem:[%s6258_s5 + $0xe0] sm:$0xff]  }
 0x278   : > { %3254 = vrot.lane.b32.xlu1 %v4850_v15, %s4462_s20  ;;  %4126 = vmatprep.subr.bf16.mxu1 %v2677_v7  ;;  %v4434_v15 = vld [vmem:[%s6258_s5 + $0xc0] sm:$0xff]  }
 0x279   : > { %4127 = vmatpush3.bf16.msra.mxu1 %v2677_v7  ;;  %v2653_v37 = vpop.permute.xlu0 %2652 }
 0x27a   : > { %v5950_v55 = vpop.permute.xlu1 %2654 }
 0x27b   : > { %v2691_v56 = vsel %vm2674_vm5, %v2653_v37, %v5950_v55  ;;  %3250 = vrot.lane.b32.xlu0 %v4871_v62, %s4462_s20 }
 0x27c   : > { %2980 = vrot.lane.b32.xlu1 %v5111_v22, %s4461_s10  ;;  %2733 = vmatprep.subr.bf16.mxu0 %v2691_v56 }
 0x27d   : > { %4123 = vmatmul.mubr.bf16.gmra.mrb[4].mxu1 %v4433_v49  ;;  %v2651_v8 = vpop.permute.xlu0 %2650 }
 0x27e   : > { %v2625_v27 = vpop.permute.xlu1 %2624  ;;  %4142 = vmatprep.mubr.bf16.mxu1 %v4434_v15  ;;  %v2690_v4 = vsel %vm2674_vm5, %v2651_v8, %v2653_v37 }
 0x27f   : > { %v2680_v53 = vsel %vm2674_vm5, %v5878_v25, %v2625_v27  ;;  %3260 = vrot.lane.b32.xlu0 %v4902_v61, %s4462_s20  ;;  %2734 = vmatpush1.bf16.msra.mxu0 %v2690_v4 }
 0x280   : > { %3262 = vrot.lane.b32.xlu1 %v4904_v48, %s4462_s20  ;;  %4128 = vmatprep.subr.bf16.mxu1 %v2680_v53 }
 0x281   : > { %4129 = vmatpush3.bf16.msra.mxu1 %v2680_v53  ;;  %v2661_v29 = vpop.permute.xlu0 %2660 }
 0x282   : > { %v5968_v62 = vpop.permute.xlu1 %2662 }
 0x283   : > { %v2694_v39 = vsel %vm2674_vm5, %v2661_v29, %v5968_v62  ;;  %3258 = vrot.lane.b32.xlu0 %v4939_v54, %s4462_s20 }
 0x284   : > { %3232 = vrot.lane.b32.xlu1 %v4933_v26, %s4462_s20  ;;  %2735 = vmatprep.subr.bf16.mxu0 %v2694_v39 }
 0x285   : > { %v2659_v50 = vpop.permute.xlu0 %2658 }
 0x286   : > { %v2633_v48 = vpop.permute.xlu1 %2632  ;;  %v2693_v25 = vsel %vm2674_vm5, %v2659_v50, %v2661_v29 }
 0x287   : > { %v2683_v61 = vsel %vm2674_vm5, %v5900_v0, %v2633_v48  ;;  %3268 = vrot.lane.b32.xlu0 %v4967_v42, %s4462_s20  ;;  %2736 = vmatpush1.bf16.msra.mxu0 %v2693_v25 }
 0x288   : > { %3270 = vrot.lane.b32.xlu1 %v4969_v11, %s4462_s20  ;;  %4130 = vmatprep.subr.bf16.mxu1 %v2683_v61 }
 0x289   : > { %4131 = vmatpush3.bf16.msra.mxu1 %v2683_v61  ;;  %v2669_v54 = vpop.permute.xlu0 %2668 }
 0x28a   : > { %v5983_v26 = vpop.permute.xlu1 %2670 }
 0x28b   : > { %v2697_v41 = vsel %vm2674_vm5, %v2669_v54, %v5983_v26  ;;  %3266 = vrot.lane.b32.xlu0 %v6274_v63, %s4462_s20 }
 0x28c   : > { %3240 = vrot.lane.b32.xlu1 %v4935_v40, %s4462_s20  ;;  %2737 = vmatprep.subr.bf16.mxu0 %v2697_v41 }
 0x28d   : > { %v2667_v17 = vpop.permute.xlu0 %2666 }
 0x28e   : > { %v2641_v11 = vpop.permute.xlu1 %2640  ;;  %v2696_v44 = vsel %vm2674_vm5, %v2667_v17, %v2669_v54 }
 0x28f   : > { %v2686_v42 = vsel %vm2674_vm5, %v5919_v3, %v2641_v11  ;;  %3276 = vrot.lane.b32.xlu0 %v5029_v38, %s4462_s20  ;;  %2738 = vmatpush1.bf16.msra.mxu0 %v2696_v44 }
 0x290   : > { %3278 = vrot.lane.b32.xlu1 %v5031_v18, %s4462_s20  ;;  %4132 = vmatprep.subr.bf16.mxu1 %v2686_v42 }
 0x291   : > { %4133 = vmatpush3.bf16.msra.mxu1 %v2686_v42  ;;  %v2921_v63 = vpop.permute.xlu0 %2920 }
 0x292   : > { %v5998_v40 = vpop.permute.xlu1 %2922  ;;  %2756 = vmatmul.mubr.bf16.vlgmr.msra.gmra.mrb[0].mxu0 %v4434_v15 }
 0x293   : > { %v2984_v43 = vsel %vm2982_vm6, %v2921_v63, %v5998_v40  ;;  %3274 = vrot.lane.b32.xlu0 %v5049_v13, %s4462_s20  ;;  %2765 = vmatprep.mubr.bf16.mxu0 %v6275_v33  ;;  %v4435_v13 = vld [vmem:[%s6258_s5 + $0xc8] sm:$0xff]  }
 0x294   : > { %3248 = vrot.lane.b32.xlu1 %v4944_v60, %s4462_s20  ;;  %3031 = vmatprep.subr.bf16.mxu0 %v2984_v43 }
 0x295   : > { %v2919_v38 = vpop.permute.xlu0 %2918 }
 0x296   : > { %v2649_v18 = vpop.permute.xlu1 %2648  ;;  %v2983_v23 = vsel %vm2982_vm6, %v2919_v38, %v2921_v63 }
 0x297   : > { %v2689_v35 = vsel %vm2674_vm5, %v5935_v45, %v2649_v18  ;;  %3284 = vrot.lane.b32.xlu0 %v5070_v32, %s4462_s20  ;;  %3032 = vmatpush1.bf16.msra.mxu0 %v2983_v23 }
 0x298   : > { %3286 = vrot.lane.b32.xlu1 %v5072_v59, %s4462_s20  ;;  %4134 = vmatprep.subr.bf16.mxu1 %v2689_v35 }
 0x299   : > { %4135 = vmatpush3.bf16.msra.mxu1 %v2689_v35  ;;  %v2929_v51 = vpop.permute.xlu0 %2928  ;;  %v4439_v35 = vld [vmem:[%s6258_s5 + $0xe8] sm:$0xff]  }
 0x29a   : > { %v6014_v60 = vpop.permute.xlu1 %2930  ;;  %2766 = vmatmul.mubr.bf16.gmra.mrb[4].mxu0 %v4435_v13 }
 0x29b   : > { %v2987_v19 = vsel %vm2982_vm6, %v2929_v51, %v6014_v60  ;;  %3282 = vrot.lane.b32.xlu0 %v5091_v10, %s4462_s20  ;;  %2775 = vmatprep.mubr.bf16.mxu0 %v6275_v33 }
 0x29c   : > { %3256 = vrot.lane.b32.xlu1 %v5077_v24, %s4462_s20  ;;  %3033 = vmatprep.subr.bf16.mxu0 %v2987_v19  ;;  %v4436_v24 = vld [vmem:[%s6258_s5 + $0xd0] sm:$0xff]  }
 0x29d   : > { %v2927_v59 = vpop.permute.xlu0 %2926 }
 0x29e   : > { %v2657_v32 = vpop.permute.xlu1 %2656  ;;  %v2986_v28 = vsel %vm2982_vm6, %v2927_v59, %v2929_v51  ;;  %v4440_v59 = vld [vmem:[%s6258_s5 + $0xf0] sm:$0xff]  }
 0x29f   : > { %v2692_v0 = vsel %vm2674_vm5, %v5950_v55, %v2657_v32  ;;  %3264 = vrot.lane.b32.xlu0 %v5097_v9, %s4462_s20  ;;  %3034 = vmatpush1.bf16.msra.mxu0 %v2986_v28 }
 0x2a0   : > { %3272 = vrot.lane.b32.xlu1 %v5099_v34, %s4462_s20  ;;  %4136 = vmatprep.subr.bf16.mxu1 %v2692_v0 }
 0x2a1   : > { %4137 = vmatpush3.bf16.msra.mxu1 %v2692_v0  ;;  %v2937_v36 = vpop.permute.xlu0 %2936 }
 0x2a2   : > { %v6036_v10 = vpop.permute.xlu1 %2938  ;;  %2776 = vmatmul.mubr.bf16.gmra.mrb[8].mxu0 %v4436_v24 }
 0x2a3   : > { %v2990_v31 = vsel %vm2982_vm6, %v2937_v36, %v6036_v10  ;;  %3280 = vrot.lane.b32.xlu0 %v5109_v2, %s4462_s20  ;;  %2785 = vmatprep.mubr.bf16.mxu0 %v6275_v33 }
 0x2a4   : > { %3288 = vrot.lane.b32.xlu1 %v5111_v22, %s4462_s20  ;;  %3035 = vmatprep.subr.bf16.mxu0 %v2990_v31  ;;  %v4437_v22 = vld [vmem:[%s6258_s5 + $0xd8] sm:$0xff]  }
 0x2a5   : > { %v2935_v9 = vpop.permute.xlu0 %2934 }
 0x2a6   : > { %v2665_v34 = vpop.permute.xlu1 %2664  ;;  %v2989_v57 = vsel %vm2982_vm6, %v2935_v9, %v2937_v36  ;;  %v4441_v9 = vld [vmem:[%s6258_s5 + $0xf8] sm:$0xff]  }
 0x2a7   : > { %v2695_v30 = vsel %vm2674_vm5, %v5968_v62, %v2665_v34  ;;  %3036 = vmatpush1.bf16.msra.mxu0 %v2989_v57 }
 0x2a8   : > { %4138 = vmatprep.subr.bf16.mxu1 %v2695_v30 }
 0x2a9   : > { %4139 = vmatpush3.bf16.msra.mxu1 %v2695_v30  ;;  %v2945_v49 = vpop.permute.xlu0 %2944 }
 0x2aa   : > { %v2947_v14 = vpop.permute.xlu1 %2946  ;;  %2786 = vmatmul.mubr.bf16.gmra.mrb[12].mxu0 %v4437_v22 }
 0x2ab   : > { %v2993_v2 = vsel %vm2982_vm6, %v2945_v49, %v2947_v14  ;;  %3063 = vmatprep.mubr.bf16.mxu0 %v6275_v33 }
 0x2ac   : > { %3037 = vmatprep.subr.bf16.mxu0 %v2993_v2 }
 0x2ad   : > { %v2943_v46 = vpop.permute.xlu0 %2942 }
 0x2ae   : > { %v2673_v3 = vpop.permute.xlu1 %2672  ;;  %v2992_v21 = vsel %vm2982_vm6, %v2943_v46, %v2945_v49 }
 0x2af   : > { %v2698_v12 = vsel %vm2674_vm5, %v5983_v26, %v2673_v3  ;;  %3038 = vmatpush1.bf16.msra.mxu0 %v2992_v21 }
 0x2b0   : > { %4140 = vmatprep.subr.bf16.mxu1 %v2698_v12 }
 0x2b1   : > { %4141 = vmatpush3.bf16.msra.mxu1 %v2698_v12  ;;  %v2953_v58 = vpop.permute.xlu0 %2952 }
 0x2b2   : > { %v2955_v52 = vpop.permute.xlu1 %2954 }
 0x2b3   : > { %v2996_v47 = vsel %vm2982_vm6, %v2953_v58, %v2955_v52 }
 0x2b4   : > { %4143 = vmatmul.mubr.bf16.vlgmr.msra.gmra.mrb[0].mxu1 %v4435_v13  ;;  %3039 = vmatprep.subr.bf16.mxu0 %v2996_v47 }
 0x2b5   : > { %4146 = vmatprep.mubr.bf16.mxu1 %v4436_v24  ;;  %v2951_v5 = vpop.permute.xlu0 %2950 }
 0x2b6   : > { %v2925_v45 = vpop.permute.xlu1 %2924  ;;  %v2995_v16 = vsel %vm2982_vm6, %v2951_v5, %v2953_v58 }
 0x2b7   : > { %v2985_v20 = vsel %vm2982_vm6, %v5998_v40, %v2925_v45  ;;  %3040 = vmatpush1.bf16.msra.mxu0 %v2995_v16  ;;  %v4442_v16 = vld [vmem:[%s6258_s5 + $0x100] sm:$0xff]  }
 0x2b8   : > { %4150 = vmatprep.subr.bf16.mxu1 %v2985_v20 }
 0x2b9   : > { %4151 = vmatpush3.bf16.msra.mxu1 %v2985_v20  ;;  %v2961_v7 = vpop.permute.xlu0 %2960 }
 0x2ba   : > { %v2963_v1 = vpop.permute.xlu1 %2962 }
 0x2bb   : > { %v2999_v55 = vsel %vm2982_vm6, %v2961_v7, %v2963_v1 }
 0x2bc   : > { %4147 = vmatmul.mubr.bf16.gmra.mrb[4].mxu1 %v4437_v22  ;;  %3041 = vmatprep.subr.bf16.mxu0 %v2999_v55 }
 0x2bd   : > { %4166 = vmatprep.mubr.bf16.mxu1 %v4438_v6  ;;  %v2959_v56 = vpop.permute.xlu0 %2958 }
 0x2be   : > { %v2933_v37 = vpop.permute.xlu1 %2932  ;;  %v2998_v27 = vsel %vm2982_vm6, %v2959_v56, %v2961_v7 }
 0x2bf   : > { %v2988_v15 = vsel %vm2982_vm6, %v6014_v60, %v2933_v37  ;;  %3042 = vmatpush1.bf16.msra.mxu0 %v2998_v27 }
 0x2c0   : > { %4152 = vmatprep.subr.bf16.mxu1 %v2988_v15 }
 0x2c1   : > { %4153 = vmatpush3.bf16.msra.mxu1 %v2988_v15  ;;  %v2969_v53 = vpop.permute.xlu0 %2968 }
 0x2c2   : > { %v2971_v8 = vpop.permute.xlu1 %2970 }
 0x2c3   : > { %v3002_v4 = vsel %vm2982_vm6, %v2969_v53, %v2971_v8 }
 0x2c4   : > { %3043 = vmatprep.subr.bf16.mxu0 %v3002_v4 }
 0x2c5   : > { %v2967_v29 = vpop.permute.xlu0 %2966 }
 0x2c6   : > { %v2941_v62 = vpop.permute.xlu1 %2940  ;;  %v3001_v48 = vsel %vm2982_vm6, %v2967_v29, %v2969_v53 }
 0x2c7   : > { %v2991_v39 = vsel %vm2982_vm6, %v6036_v10, %v2941_v62  ;;  %3044 = vmatpush1.bf16.msra.mxu0 %v3001_v48 }
 0x2c8   : > { %4154 = vmatprep.subr.bf16.mxu1 %v2991_v39 }
 0x2c9   : > { %4155 = vmatpush3.bf16.msra.mxu1 %v2991_v39  ;;  %v2977_v61 = vpop.permute.xlu0 %2976 }
 0x2ca   : > { %v6071_v50 = vpop.permute.xlu1 %2978 }
 0x2cb   : > { %v3005_v25 = vsel %vm2982_vm6, %v2977_v61, %v6071_v50 }
 0x2cc   : > { %3045 = vmatprep.subr.bf16.mxu0 %v3005_v25 }
 0x2cd   : > { %v2975_v54 = vpop.permute.xlu0 %2974 }
 0x2ce   : > { %v2949_v26 = vpop.permute.xlu1 %2948  ;;  %v3004_v11 = vsel %vm2982_vm6, %v2975_v54, %v2977_v61 }
 0x2cf   : > { %v2994_v41 = vsel %vm2982_vm6, %v2947_v14, %v2949_v26  ;;  %3046 = vmatpush1.bf16.msra.mxu0 %v3004_v11 }
 0x2d0   : > { %4156 = vmatprep.subr.bf16.mxu1 %v2994_v41 }
 0x2d1   : > { %4157 = vmatpush3.bf16.msra.mxu1 %v2994_v41  ;;  %v3229_v42 = vpop.permute.xlu0 %3228 }
 0x2d2   : > { %v6077_v17 = vpop.permute.xlu1 %3230  ;;  %3064 = vmatmul.mubr.bf16.vlgmr.msra.gmra.mrb[0].mxu0 %v4438_v6 }
 0x2d3   : > { %v3292_v44 = vsel %vm3290_vm7, %v3229_v42, %v6077_v17  ;;  %3073 = vmatprep.mubr.bf16.mxu0 %v6275_v33 }
 0x2d4   : > { %3339 = vmatprep.subr.bf16.mxu0 %v3292_v44  ;;  %v4443_v44 = vld [vmem:[%s6258_s5 + $0x108] sm:$0xff]  }
 0x2d5   : > { %v3227_v63 = vpop.permute.xlu0 %3226 }
 0x2d6   : > { %v2957_v40 = vpop.permute.xlu1 %2956  ;;  %v3291_v18 = vsel %vm3290_vm7, %v3227_v63, %v3229_v42 }
 0x2d7   : > { %v2997_v43 = vsel %vm2982_vm6, %v2955_v52, %v2957_v40  ;;  %3340 = vmatpush1.bf16.msra.mxu0 %v3291_v18  ;;  %v4444_v18 = vld [vmem:[%s6258_s5 + $0x110] sm:$0xff]  }
 0x2d8   : > { %4158 = vmatprep.subr.bf16.mxu1 %v2997_v43 }
 0x2d9   : > { %4159 = vmatpush3.bf16.msra.mxu1 %v2997_v43  ;;  %v3237_v23 = vpop.permute.xlu0 %3236 }
 0x2da   : > { %v6084_v38 = vpop.permute.xlu1 %3238  ;;  %3074 = vmatmul.mubr.bf16.gmra.mrb[4].mxu0 %v4439_v35 }
 0x2db   : > { %v3295_v60 = vsel %vm3290_vm7, %v3237_v23, %v6084_v38  ;;  %3083 = vmatprep.mubr.bf16.mxu0 %v6275_v33 }
 0x2dc   : > { %3341 = vmatprep.subr.bf16.mxu0 %v3295_v60 }
 0x2dd   : > { %v3235_v51 = vpop.permute.xlu0 %3234 }
 0x2de   : > { %v2965_v13 = vpop.permute.xlu1 %2964  ;;  %v3294_v32 = vsel %vm3290_vm7, %v3235_v51, %v3237_v23  ;;  %v6276_v23 = vld [vmem:[#allocation2_spill] sm:$0xff] }
 0x2df   : > { %v3000_v19 = vsel %vm2982_vm6, %v2963_v1, %v2965_v13  ;;  %3342 = vmatpush1.bf16.msra.mxu0 %v3294_v32  ;;  %v6277_v60 = vsub.s32 0, %v6276_v23 }
 0x2e0   : > { %4160 = vmatprep.subr.bf16.mxu1 %v3000_v19 }
 0x2e1   : > { %4161 = vmatpush3.bf16.msra.mxu1 %v3000_v19  ;;  %v3245_v28 = vpop.permute.xlu0 %3244 }
 0x2e2   : > { %v3247_v0 = vpop.permute.xlu1 %3246  ;;  %3084 = vmatmul.mubr.bf16.gmra.mrb[8].mxu0 %v4440_v59 }
 0x2e3   : > { %v3298_v24 = vsel %vm3290_vm7, %v3245_v28, %v3247_v0  ;;  %3093 = vmatprep.mubr.bf16.mxu0 %v6275_v33 }
 0x2e4   : > { %3343 = vmatprep.subr.bf16.mxu0 %v3298_v24 }
 0x2e5   : > { %v3243_v36 = vpop.permute.xlu0 %3242 }
 0x2e6   : > { %v2973_v10 = vpop.permute.xlu1 %2972  ;;  %v3297_v34 = vsel %vm3290_vm7, %v3243_v36, %v3245_v28 }
 0x2e7   : > { %v3003_v31 = vsel %vm2982_vm6, %v2971_v8, %v2973_v10  ;;  %3344 = vmatpush1.bf16.msra.mxu0 %v3297_v34 }
 0x2e8   : > { %4162 = vmatprep.subr.bf16.mxu1 %v3003_v31 }
 0x2e9   : > { %4163 = vmatpush3.bf16.msra.mxu1 %v3003_v31  ;;  %v3253_v57 = vpop.permute.xlu0 %3252 }
 0x2ea   : > { %v3255_v30 = vpop.permute.xlu1 %3254  ;;  %3094 = vmatmul.mubr.bf16.gmra.mrb[12].mxu0 %v4441_v9 }
 0x2eb   : > { %v3301_v22 = vsel %vm3290_vm7, %v3253_v57, %v3255_v30  ;;  %3371 = vmatprep.mubr.bf16.mxu0 %v6275_v33 }
 0x2ec   : > { %3345 = vmatprep.subr.bf16.mxu0 %v3301_v22 }
 0x2ed   : > { %v3251_v49 = vpop.permute.xlu0 %3250 }
 0x2ee   : > { %v2981_v14 = vpop.permute.xlu1 %2980  ;;  %v3300_v3 = vsel %vm3290_vm7, %v3251_v49, %v3253_v57 }
 0x2ef   : > { %v3006_v2 = vsel %vm2982_vm6, %v6071_v50, %v2981_v14  ;;  %3346 = vmatpush1.bf16.msra.mxu0 %v3300_v3 }
 0x2f0   : > { %4164 = vmatprep.subr.bf16.mxu1 %v3006_v2 }
 0x2f1   : > { %4165 = vmatpush3.bf16.msra.mxu1 %v3006_v2  ;;  %v3261_v12 = vpop.permute.xlu0 %3260 }
 0x2f2   : > { %v3263_v46 = vpop.permute.xlu1 %3262 }
 0x2f3   : > { %v3304_v21 = vsel %vm3290_vm7, %v3261_v12, %v3263_v46 }
 0x2f4   : > { %4167 = vmatmul.mubr.bf16.vlgmr.msra.gmra.mrb[0].mxu1 %v4439_v35  ;;  %3347 = vmatprep.subr.bf16.mxu0 %v3304_v21  ;;  %v3501_v35 = vld [vmem:[%s6257_s4] sm:$0x7] }
 0x2f5   : > { %4170 = vmatprep.mubr.bf16.mxu1 %v4440_v59  ;;  %v3259_v58 = vpop.permute.xlu0 %3258  ;;  %v6148_v13 = vrot.slane %v3501_v35, %v6277_v60 }
 0x2f6   : > { %v3233_v52 = vpop.permute.xlu1 %3232  ;;  %v3303_v45 = vsel %vm3290_vm7, %v3259_v58, %v3261_v12 }
 0x2f7   : > { %v3293_v47 = vsel %vm3290_vm7, %v6077_v17, %v3233_v52  ;;  %3348 = vmatpush1.bf16.msra.mxu0 %v3303_v45 }
 0x2f8   : > { %4174 = vmatprep.subr.bf16.mxu1 %v3293_v47 }
 0x2f9   : > { %4175 = vmatpush3.bf16.msra.mxu1 %v3293_v47  ;;  %v3269_v20 = vpop.permute.xlu0 %3268 }
 0x2fa   : > { %v3271_v5 = vpop.permute.xlu1 %3270 }
 0x2fb   : > { %v3307_v1 = vsel %vm3290_vm7, %v3269_v20, %v3271_v5 }
 0x2fc   : > { %4171 = vmatmul.mubr.bf16.gmra.mrb[4].mxu1 %v4441_v9  ;;  %3349 = vmatprep.subr.bf16.mxu0 %v3307_v1 }
 0x2fd   : > { %4190 = vmatprep.mubr.bf16.mxu1 %v4442_v16  ;;  %v3267_v6 = vpop.permute.xlu0 %3266 }
 0x2fe   : > { %v3241_v7 = vpop.permute.xlu1 %3240  ;;  %v3306_v37 = vsel %vm3290_vm7, %v3267_v6, %v3269_v20 }
 0x2ff   : > { %v3296_v55 = vsel %vm3290_vm7, %v6084_v38, %v3241_v7  ;;  %3350 = vmatpush1.bf16.msra.mxu0 %v3306_v37  ;;  %v4445_v38 = vld [vmem:[%s6258_s5 + $0x118] sm:$0xff]  }
 0x300   : > { %4176 = vmatprep.subr.bf16.mxu1 %v3296_v55 }
 0x301   : > { %4177 = vmatpush3.bf16.msra.mxu1 %v3296_v55  ;;  %v3277_v15 = vpop.permute.xlu0 %3276  ;;  %v6279_v55 = vsub.s32 2, %v6276_v23 }
 0x302   : > { %v3279_v56 = vpop.permute.xlu1 %3278 }
 0x303   : > { %v3310_v27 = vsel %vm3290_vm7, %v3277_v15, %v3279_v56  ;;  %v6181_v37 = vrot.slane %v3501_v35, %v6279_v55 }
 0x304   : > { %3351 = vmatprep.subr.bf16.mxu0 %v3310_v27 }
 0x305   : > { %v3275_v53 = vpop.permute.xlu0 %3274 }
 0x306   : > { %v3249_v8 = vpop.permute.xlu1 %3248  ;;  %v3309_v62 = vsel %vm3290_vm7, %v3275_v53, %v3277_v15 }
 0x307   : > { %v3299_v4 = vsel %vm3290_vm7, %v3247_v0, %v3249_v8  ;;  %3352 = vmatpush1.bf16.msra.mxu0 %v3309_v62 }
 0x308   : > { %4178 = vmatprep.subr.bf16.mxu1 %v3299_v4 }
 0x309   : > { %4179 = vmatpush3.bf16.msra.mxu1 %v3299_v4  ;;  %v3285_v39 = vpop.permute.xlu0 %3284 }
 0x30a   : > { %v3287_v29 = vpop.permute.xlu1 %3286 }
 0x30b   : > { %v3313_v48 = vsel %vm3290_vm7, %v3285_v39, %v3287_v29 }
 0x30c   : > { %3353 = vmatprep.subr.bf16.mxu0 %v3313_v48 }
 0x30d   : > { %v3283_v61 = vpop.permute.xlu0 %3282 }
 0x30e   : > { %v3257_v50 = vpop.permute.xlu1 %3256  ;;  %v3312_v26 = vsel %vm3290_vm7, %v3283_v61, %v3285_v39 }
 0x30f   : > { %v3302_v25 = vsel %vm3290_vm7, %v3255_v30, %v3257_v50  ;;  %3354 = vmatpush1.bf16.msra.mxu0 %v3312_v26 }
 0x310   : > { %4180 = vmatprep.subr.bf16.mxu1 %v3302_v25 }
 0x311   : > { %4181 = vmatpush3.bf16.msra.mxu1 %v3302_v25  ;;  %v3265_v41 = vpop.permute.xlu0 %3264 }
 0x312   : > { %v3273_v54 = vpop.permute.xlu1 %3272  ;;  %3372 = vmatmul.mubr.bf16.vlgmr.msra.gmra.mrb[0].mxu0 %v4442_v16  ;;  %v3305_v11 = vsel %vm3290_vm7, %v3263_v46, %v3265_v41 }
 0x313   : > { %4182 = vmatprep.subr.bf16.mxu1 %v3305_v11  ;;  %3381 = vmatprep.mubr.bf16.mxu0 %v6275_v33  ;;  %v3308_v17 = vsel %vm3290_vm7, %v3271_v5, %v3273_v54 }
 0x315   : > { %4183 = vmatpush3.bf16.msra.mxu1 %v3305_v11  ;;  %v3281_v42 = vpop.permute.xlu0 %3280 }
 0x316   : > { %4184 = vmatprep.subr.bf16.mxu1 %v3308_v17  ;;  %v3311_v40 = vsel %vm3290_vm7, %v3279_v56, %v3281_v42  ;;  %v3289_v63 = vpop.permute.xlu1 %3288 }
 0x317   : > { %v3314_v43 = vsel %vm3290_vm7, %v3287_v29, %v3289_v63 }
 0x319   : > { %4185 = vmatpush3.bf16.msra.mxu1 %v3308_v17 }
 0x31a   : > { %4186 = vmatprep.subr.bf16.mxu1 %v3311_v40  ;;  %3382 = vmatmul.mubr.bf16.gmra.mrb[4].mxu0 %v4443_v44 }
 0x31b   : > { %3391 = vmatprep.mubr.bf16.mxu0 %v6275_v33 }
 0x31d   : > { %4187 = vmatpush3.bf16.msra.mxu1 %v3311_v40 }
 0x31e   : > { %4188 = vmatprep.subr.bf16.mxu1 %v3314_v43 }
 0x321   : > { %4189 = vmatpush3.bf16.msra.mxu1 %v3314_v43 }
 0x322   : > { %3392 = vmatmul.mubr.bf16.gmra.mrb[8].mxu0 %v4444_v18 }
 0x323   : > { %3401 = vmatprep.mubr.bf16.mxu0 %v6275_v33  ;;  %v6278_v33 = vsub.s32 1, %v6276_v23 }
 0x324   : > { %4191 = vmatmul.mubr.bf16.vlgmr.msra.gmra.mrb[0].mxu1 %v4443_v44 }
 0x325   : > { %4194 = vmatprep.mubr.bf16.mxu1 %v4444_v18  ;;  %v6157_v51 = vrot.slane %v3501_v35, %v6278_v33 }
 0x32a   : > { %3402 = vmatmul.mubr.bf16.gmra.mrb[12].mxu0 %v4445_v38 }
 0x32c   : > { %4195 = vmatmul.mubr.bf16.gmra.mrb[4].mxu1 %v4445_v38 }
 0x3e5   : > { %v3373_v19 = vpop.f32.mrb[0].mxu0 }
 0x3e6   : > { %v3518_v32 = vmul.f32 %v6148_v13, %v3373_v19  ;;  %3648 = vst [vmem:[%s6153_s11] sm:$0xff] %v3373_v19  ;;  %v3375_v59 = vpop.f32.mrb[1].mxu0 }
 0x3e7   : > { %v3519_v0 = vmul.f32 %v6157_v51, %v3375_v59  ;;  %3649 = vst [vmem:[%s6153_s11 + $0x8] sm:$0xff] %v3375_v59  ;;  %v3377_v28 = vpop.f32.mrb[2].mxu0 }
 0x3e8   : > { %v3574_v24 = vmul.f32 %v3518_v32, %v3518_v32  ;;  %v3521_v10 = vmul.f32 %v6148_v13, %v3377_v28  ;;  %3651 = vst [vmem:[%s6153_s11 + $0x18] sm:$0xff] %v3377_v28  ;;  %v3379_v36 = vpop.f32.mrb[3].mxu0 }
 0x3e9   : > { %v3542_v31 = vadd.f32 %v3519_v0, %v3518_v32  ;;  %v3575_v34 = vmul.f32 %v3519_v0, %v3519_v0  ;;  %v3522_v9 = vmul.f32 %v6157_v51, %v3379_v36  ;;  %3652 = vst [vmem:[%s6153_s11 + $0x20] sm:$0xff] %v3379_v36 }
 0x3ea   : > { %v3577_v30 = vmul.f32 %v3521_v10, %v3521_v10 }
 0x3eb   : > { %v3598_v57 = vadd.f32 %v3575_v34, %v3574_v24  ;;  %v6167_v22 = vadd.f32 %v3522_v9, %v3521_v10  ;;  %v3578_v14 = vmul.f32 %v3522_v9, %v3522_v9 }
 0x3ed   : > { %v6169_v49 = vadd.f32 %v3578_v14, %v3577_v30  ;;  %v3383_v2 = vpop.f32.mrb[4].mxu0 }
 0x3ee   : > { %v3524_v3 = vmul.f32 %v6148_v13, %v3383_v2  ;;  %3654 = vst [vmem:[%s6153_s11 + $0x30] sm:$0xff] %v3383_v2  ;;  %v3385_v46 = vpop.f32.mrb[5].mxu0 }
 0x3ef   : > { %v3525_v12 = vmul.f32 %v6157_v51, %v3385_v46  ;;  %3655 = vst [vmem:[%s6153_s11 + $0x38] sm:$0xff] %v3385_v46  ;;  %v3387_v21 = vpop.f32.mrb[6].mxu0 }
 0x3f0   : > { %v3580_v52 = vmul.f32 %v3524_v3, %v3524_v3  ;;  %v3527_v58 = vmul.f32 %v6148_v13, %v3387_v21  ;;  %3657 = vst [vmem:[%s6153_s11 + $0x48] sm:$0xff] %v3387_v21  ;;  %v3389_v47 = vpop.f32.mrb[7].mxu0 }
 0x3f1   : > { %v3550_v45 = vadd.f32 %v3525_v12, %v3524_v3  ;;  %v3581_v5 = vmul.f32 %v3525_v12, %v3525_v12  ;;  %v3528_v20 = vmul.f32 %v6157_v51, %v3389_v47  ;;  %3658 = vst [vmem:[%s6153_s11 + $0x50] sm:$0xff] %v3389_v47 }
 0x3f2   : > { %v3583_v16 = vmul.f32 %v3527_v58, %v3527_v58 }
 0x3f3   : > { %v3606_v1 = vadd.f32 %v3581_v5, %v3580_v52  ;;  %v3554_v7 = vadd.f32 %v3528_v20, %v3527_v58  ;;  %v3584_v6 = vmul.f32 %v3528_v20, %v3528_v20 }
 0x3f5   : > { %v3610_v56 = vadd.f32 %v3584_v6, %v3583_v16  ;;  %v3393_v15 = vpop.f32.mrb[8].mxu0 }
 0x3f6   : > { %v3530_v27 = vmul.f32 %v6148_v13, %v3393_v15  ;;  %3660 = vst [vmem:[%s6153_s11 + $0x60] sm:$0xff] %v3393_v15  ;;  %v3395_v8 = vpop.f32.mrb[9].mxu0 }
 0x3f7   : > { %v4192_v53 = vpop.f32.mrb[0].mxu1  ;;  %v3531_v4 = vmul.f32 %v6157_v51, %v3395_v8  ;;  %3661 = vst [vmem:[%s6153_s11 + $0x68] sm:$0xff] %v3395_v8  ;;  %v3397_v29 = vpop.f32.mrb[10].mxu0 }
 0x3f8   : > { %v3526_v62 = vmul.f32 %v4192_v53, %v6181_v37  ;;  %3656 = vst [vmem:[%s6153_s11 + $0x40] sm:$0xff] %v4192_v53  ;;  %v3446_v39 = vpop.f32.mrb[1].mxu1  ;;  %v3586_v48 = vmul.f32 %v3530_v27, %v3530_v27  ;;  %v3533_v50 = vmul.f32 %v6148_v13, %v3397_v29  ;;  %3663 = vst [vmem:[%s6153_s11 + $0x78] sm:$0xff] %v3397_v29  ;;  %v3399_v25 = vpop.f32.mrb[11].mxu0 }
 0x3f9   : > { %v3520_v61 = vmul.f32 %v6181_v37, %v3446_v39  ;;  %3650 = vst [vmem:[%s6153_s11 + $0x10] sm:$0xff] %v3446_v39  ;;  %v4193_v26 = vpop.f32.mrb[2].mxu1  ;;  %v3558_v54 = vadd.f32 %v3531_v4, %v3530_v27  ;;  %v3587_v41 = vmul.f32 %v3531_v4, %v3531_v4  ;;  %3664 = vst [vmem:[%s6153_s11 + $0x80] sm:$0xff] %v3399_v25 }
 0x3fa   : > { %v6193_v11 = vadd.f32 %v3550_v45, %v3526_v62  ;;  %v3582_v17 = vmul.f32 %v3526_v62, %v3526_v62  ;;  %3659 = vst [vmem:[%s6153_s11 + $0x58] sm:$0xff] %v4193_v26  ;;  %v3449_v42 = vpop.f32.mrb[3].mxu1  ;;  %v3589_v44 = vmul.f32 %v3533_v50, %v3533_v50  ;;  %v3534_v43 = vmul.f32 %v6157_v51, %v3399_v25 }
 0x3fb   : > { %v3543_v40 = vadd.f32 %v3542_v31, %v3520_v61  ;;  %v3576_v63 = vmul.f32 %v3520_v61, %v3520_v61  ;;  %3653 = vst [vmem:[%s6153_s11 + $0x28] sm:$0xff] %v3449_v42  ;;  %v3614_v18 = vadd.f32 %v3587_v41, %v3586_v48  ;;  %v3529_v38 = vmul.f32 %v4193_v26, %v6181_v37 }
 0x3fc   : > { %v3523_v35 = vmul.f32 %v6181_v37, %v3449_v42  ;;  %v3607_v23 = vadd.f32 %v3606_v1, %v3582_v17  ;;  %v3562_v60 = vadd.f32 %v3534_v43, %v3533_v50  ;;  %v3590_v33 = vmul.f32 %v3534_v43, %v3534_v43 }
 0x3fd   : > { %3544 = vadd.xlane.f32.xlu0 %v3543_v40  ;;  %v3599_v19 = vadd.f32 %v3598_v57, %v3576_v63  ;;  %v3555_v32 = vadd.f32 %v3554_v7, %v3529_v38  ;;  %v3585_v59 = vmul.f32 %v3529_v38, %v3529_v38  ;;  %v3403_v24 = vpop.f32.mrb[12].mxu0 }
 0x3fe   : > { %v3547_v0 = vadd.f32 %v6167_v22, %v3523_v35  ;;  %v3579_v28 = vmul.f32 %v3523_v35, %v3523_v35  ;;  %v3618_v10 = vadd.f32 %v3590_v33, %v3589_v44  ;;  %v3536_v36 = vmul.f32 %v6148_v13, %v3403_v24  ;;  %3666 = vst [vmem:[%s6153_s11 + $0x90] sm:$0xff] %v3403_v24  ;;  %v3405_v31 = vpop.f32.mrb[13].mxu0 }
 0x3ff   : > { %v4196_v34 = vpop.f32.mrb[4].mxu1  ;;  %v3537_v9 = vmul.f32 %v6157_v51, %v3405_v31  ;;  %3667 = vst [vmem:[%s6153_s11 + $0x98] sm:$0xff] %v3405_v31  ;;  %v3407_v57 = vpop.f32.mrb[14].mxu0  ;;  %v3611_v2 = vadd.f32 %v3610_v56, %v3585_v59 }
 0x400   : > { %3548 = vadd.xlane.f32.xlu1 %v3547_v0  ;;  %v3538_v30 = vmul.f32 %v4196_v34, %v6181_v37  ;;  %3668 = vst [vmem:[%s6153_s11 + $0xa0] sm:$0xff] %v4196_v34  ;;  %v3462_v22 = vpop.f32.mrb[5].mxu1  ;;  %v3603_v14 = vadd.f32 %v6169_v49, %v3579_v28  ;;  %v3592_v3 = vmul.f32 %v3536_v36, %v3536_v36  ;;  %3669 = vst [vmem:[%s6153_s11 + $0xa8] sm:$0xff] %v3407_v57  ;;  %v3409_v21 = vpop.f32.mrb[15].mxu0 }
 0x401   : > { %v3539_v46 = vmul.f32 %v6148_v13, %v3407_v57  ;;  %v3532_v12 = vmul.f32 %v6181_v37, %v3462_v22  ;;  %3662 = vst [vmem:[%s6153_s11 + $0x70] sm:$0xff] %v3462_v22  ;;  %v4197_v52 = vpop.f32.mrb[6].mxu1  ;;  %v3566_v58 = vadd.f32 %v3537_v9, %v3536_v36  ;;  %v3593_v47 = vmul.f32 %v3537_v9, %v3537_v9 }
 0x402   : > { %v3594_v45 = vmul.f32 %v3538_v30, %v3538_v30  ;;  %v3540_v5 = vmul.f32 %v6157_v51, %v3409_v21  ;;  %3670 = vst [vmem:[%s6153_s11 + $0xb0] sm:$0xff] %v3409_v21  ;;  %3604 = vadd.xlane.f32.xlu0 %v3603_v14  ;;  %3671 = vst [vmem:[%s6153_s11 + $0xb8] sm:$0xff] %v4197_v52  ;;  %v3465_v49 = vpop.f32.mrb[7].mxu1  ;;  %v3541_v13 = vmul.f32 %v4197_v52, %v6181_v37 }
 0x403   : > { %v3595_v20 = vmul.f32 %v3539_v46, %v3539_v46  ;;  %v3559_v16 = vadd.f32 %v3558_v54, %v3532_v12  ;;  %v3588_v1 = vmul.f32 %v3532_v12, %v3532_v12  ;;  %3665 = vst [vmem:[%s6153_s11 + $0x88] sm:$0xff] %v3465_v49  ;;  %v3622_v7 = vadd.f32 %v3593_v47, %v3592_v3 }
 0x404   : > { %v3567_v6 = vadd.f32 %v3566_v58, %v3538_v30  ;;  %v3570_v55 = vadd.f32 %v3540_v5, %v3539_v46  ;;  %v3596_v56 = vmul.f32 %v3540_v5, %v3540_v5  ;;  %3600 = vadd.xlane.f32.xlu1 %v3599_v19  ;;  %v3535_v15 = vmul.f32 %v6181_v37, %v3465_v49 }
 0x405   : > { %v3615_v27 = vadd.f32 %v3614_v18, %v3588_v1  ;;  %v3597_v53 = vmul.f32 %v3541_v13, %v3541_v13  ;;  %v3623_v4 = vadd.f32 %v3622_v7, %v3594_v45 }
 0x406   : > { %v3626_v8 = vadd.f32 %v3596_v56, %v3595_v20  ;;  %v3571_v51 = vadd.f32 %v3570_v55, %v3541_v13  ;;  %3552 = vadd.xlane.f32.xlu0 %v6193_v11  ;;  %v3563_v62 = vadd.f32 %v3562_v60, %v3535_v15  ;;  %v3591_v29 = vmul.f32 %v3535_v15, %v3535_v15 }
 0x408   : > { %3608 = vadd.xlane.f32.xlu1 %v3607_v23  ;;  %v3627_v39 = vadd.f32 %v3626_v8, %v3597_v53  ;;  %v3619_v48 = vadd.f32 %v3618_v10, %v3591_v29 }
 0x40a   : > { %3556 = vadd.xlane.f32.xlu0 %v3555_v32 }
 0x40c   : > { %3560 = vadd.xlane.f32.xlu1 %v3559_v16 }
 0x40e   : > { %3612 = vadd.xlane.f32.xlu0 %v3611_v2 }
 0x410   : > { %3616 = vadd.xlane.f32.xlu1 %v3615_v27 }
 0x412   : > { %3564 = vadd.xlane.f32.xlu0 %v3563_v62 }
 0x414   : > { %3568 = vadd.xlane.f32.xlu1 %v3567_v6 }
 0x416   : > { %3620 = vadd.xlane.f32.xlu0 %v3619_v48 }
 0x418   : > { %3624 = vadd.xlane.f32.xlu1 %v3623_v4 }
 0x41a   : > { %3572 = vadd.xlane.f32.xlu0 %v3571_v51 }
 0x41e   : > { %3628 = vadd.xlane.f32.xlu0 %v3627_v39 }
 0x48a   : > { %v3545_v37 = vpop.xlane.xlu0 %3544 }
 0x48d   : > { %v3549_v50 = vpop.xlane.xlu1 %3548 }
 0x48f   : > { %v3605_v61 = vpop.xlane.xlu0 %3604 }
 0x490   : > { %v3632_v25 = vsel %vm3630_vm8, %v3549_v50, %v3605_v61 }
 0x491   : > { %3641 = vst.msk [vmem:[%s6224_s15 + $0x8] sm:$0xff] %vm3639_vm9, %v3632_v25  ;;  %v3601_v26 = vpop.xlane.xlu1 %3600 }
 0x492   : > { %v3631_v54 = vsel %vm3630_vm8, %v3545_v37, %v3601_v26 }
 0x493   : > { %3640 = vst.msk [vmem:[%s6224_s15] sm:$0xff] %vm3639_vm9, %v3631_v54  ;;  %v3553_v41 = vpop.xlane.xlu0 %3552 }
 0x495   : > { %v3609_v11 = vpop.xlane.xlu1 %3608 }
 0x496   : > { %v3633_v17 = vsel %vm3630_vm8, %v3553_v41, %v3609_v11 }
 0x497   : > { %3642 = vst.msk [vmem:[%s6224_s15 + $0x10] sm:$0xff] %vm3639_vm9, %v3633_v17  ;;  %v3557_v42 = vpop.xlane.xlu0 %3556 }
 0x499   : > { %v3561_v44 = vpop.xlane.xlu1 %3560 }
 0x49b   : > { %v3613_v40 = vpop.xlane.xlu0 %3612 }
 0x49c   : > { %v3634_v63 = vsel %vm3630_vm8, %v3557_v42, %v3613_v40 }
 0x49d   : > { %3643 = vst.msk [vmem:[%s6224_s15 + $0x18] sm:$0xff] %vm3639_vm9, %v3634_v63  ;;  %v3617_v43 = vpop.xlane.xlu1 %3616 }
 0x49e   : > { %v3635_v18 = vsel %vm3630_vm8, %v3561_v44, %v3617_v43 }
 0x49f   : > { %3644 = vst.msk [vmem:[%s6224_s15 + $0x20] sm:$0xff] %vm3639_vm9, %v3635_v18  ;;  %v3565_v38 = vpop.xlane.xlu0 %3564 }
 0x4a1   : > { %v3569_v35 = vpop.xlane.xlu1 %3568 }
 0x4a3   : > { %v3621_v23 = vpop.xlane.xlu0 %3620 }
 0x4a4   : > { %v3636_v60 = vsel %vm3630_vm8, %v3565_v38, %v3621_v23 }
 0x4a5   : > { %3645 = vst.msk [vmem:[%s6224_s15 + $0x28] sm:$0xff] %vm3639_vm9, %v3636_v60  ;;  %v3625_v33 = vpop.xlane.xlu1 %3624 }
 0x4a6   : > { %v3637_v19 = vsel %vm3630_vm8, %v3569_v35, %v3625_v33 }
 0x4a7   : > { %3646 = vst.msk [vmem:[%s6224_s15 + $0x30] sm:$0xff] %vm3639_vm9, %v3637_v19  ;;  %v3573_v32 = vpop.xlane.xlu0 %3572 }
 0x4ab   : > { %v3629_v59 = vpop.xlane.xlu0 %3628 }
 0x4ac   : > { %v3638_v0 = vsel %vm3630_vm8, %v3573_v32, %v3629_v59 }
 0x4ad   : > { %3647 = vst.msk [vmem:[%s6224_s15 + $0x38] sm:$0xff] %vm3639_vm9, %v3638_v0 }
 0x4ae PF: > { %s18_s24 = sadd.s32 1, %s4452_s24  }
 0x4af   : > { %p15_p4 = scmp.ge.s32.totalorder %s18_s24, 4  }
 0x4b1   :  { %17 = sbr.rel (!%p15_p4) target bundleno = 1 (0x1), region = 94 }

// kernel: generator_forward.9
= control target key start
LH: loop header
LB: loop body
LE: loop exit
PB: predicated region body
PF: predicated region fallthrough
CT: control target
= control target key end

     0   :  { %s3427_s21 = smov 0   ;;  %s3988_s0 = inlined_call_operand.vmem [shape: f32[2,16,1280], index: 0, kind: input, shape index: {}]   ;;  %s3989_s1 = inlined_call_operand.vmem [shape: f32[16,1], index: 1, kind: input, shape index: {}]   ;;  %s3990_s2 = inlined_call_operand.vmem [shape: f32[16,1], index: 2, kind: input, shape index: {}]   ;;  %s3991_s3 = inlined_call_operand.vmem [shape: f32[1,1280], index: 3, kind: input, shape index: {}]   ;;  %s3992_s4 = inlined_call_operand.vmem [shape: f32[12,1], index: 4, kind: input, shape index: {}]   ;;  %s3993_s5 = inlined_call_operand.vmem [shape: bf16[9,12,16], index: 5, kind: input, shape index: {}]   ;;  %s3994_s6 = inlined_call_operand.vmem [shape: f32[2,12,1152], index: 6, kind: output, shape index: {}]  }
   0x1 LB: > { %s3026_s22 = sadd.s32 4294967295, %s3379_s21   ;;  %p3030_p0 = scmp.ge.s32.totalorder %s3379_s21, 1  ;;  %s3379_s21 = sphi %s3427_s21, %s16_s21  }
   0x2   : > { %p212_p1 = scmp.lt.s32.totalorder %s3379_s21, 3 }
   0x4   : > { %p213_p2 = pnand %p3030_p0, %p212_p1 }
   0x5   : > { %v305_v0 = vld [vmem:[%s3990_s2] sm:$0xff] (!%p213_p2)  ;;  %v3381_v2 = vmov (!%p213_p2), 0   ;;  %v306_v3 = vld [vmem:[%s3990_s2 + $0x8] sm:$0xff] (!%p213_p2)  ;;  %p242_p3 = scmp.lt.s32.totalorder (!%p213_p2), %s3026_s22, 1  ;;  %v361_v5 = vlaneseq (!%p213_p2)  ;;  %s3382_s13 = smov (!%p213_p2), 127   ;;  %vm481_vm0 = vcmask (!%p213_p2), 1039360  }
   0x6   : > { %216 = sbr.rel (%p213_p2) target bundleno = 682 (0x2aa), region = 44  ;;  %v273_v1 = vld [vmem:[%s3989_s1] sm:$0xff] (!%p213_p2)  ;;  %3327 = vset.pattern.permute.xlu1 (!%p213_p2), %v3381_v2  ;;  %3326 = vset.pattern.permute.xlu0 (!%p213_p2), %v3381_v2  ;;  %v274_v4 = vld [vmem:[%s3989_s1 + $0x8] sm:$0xff] (!%p213_p2)  ;;  %s3383_s16 = smov (!%p213_p2), 126   ;;  %vm500_vm1 = vcmask (!%p213_p2), 130048   ;;  %vm3391_vm2 = vmmov (!%p213_p2), 0  }
   0x7   : > { %309 = vperm.xlu1 (!%p213_p2), %3327, %v305_v0   ;;  %277 = vperm.xlu0 (!%p213_p2), %3326, %v273_v1   ;;  %v3454_v6 = vshrl.u32 (!%p213_p2), %v361_v5, 7  ;;  %v3470_v12 = vld [vmem:[%s3991_s3] sm:$0xff] (!%p213_p2)  ;;  %s3384_s17 = smov (!%p213_p2), 94   ;;  %s3385_s18 = smov (!%p213_p2), 93   ;;  %vm966_vm3 = vcmask (!%p213_p2), 1031168   ;;  %vm1247_vm4 = vcmask (!%p213_p2), 769024  }
   0x8   : > { %536 = vmatprep.mubr.bf16.mxu0 (!%p213_p2), %v3381_v2  ;;  %579 = vmatprep.mubr.bf16.mxu1 (!%p213_p2), %v3381_v2  ;;  %s3386_s19 = smov (!%p213_p2), 92   ;;  %s3387_s20 = smov (!%p213_p2), 60   ;;  %vm1528_vm5 = vcmask (!%p213_p2), 760832   ;;  %vm1809_vm6 = vcmask (!%p213_p2), 752640   ;;  %vm2090_vm7 = vcmask (!%p213_p2), 490496   ;;  %vm2371_vm8 = vcmask (!%p213_p2), 482304  }
   0x9   : > { %v363_v9 = vsub.s32 (!%p213_p2), 0, %v3454_v6  ;;  %v367_v10 = vsub.s32 (!%p213_p2), 1, %v3454_v6  ;;  %v371_v13 = vsub.s32 (!%p213_p2), 2, %v3454_v6  ;;  %v375_v14 = vsub.s32 (!%p213_p2), 3, %v3454_v6  ;;  %s3388_s25 = smov (!%p213_p2), 59   ;;  %s3390_s26 = smov (!%p213_p2), 58  }
   0xa   : > { %v383_v15 = vsub.s32 (!%p213_p2), 5, %v3454_v6  ;;  %v387_v16 = vsub.s32 (!%p213_p2), 6, %v3454_v6  ;;  %v379_v27 = vsub.s32 (!%p213_p2), 4, %v3454_v6  ;;  %v391_v28 = vsub.s32 (!%p213_p2), 7, %v3454_v6 }
   0xb   : > { %314 = vperm.xlu1 (!%p213_p2), %3327, %v306_v3   ;;  %282 = vperm.xlu0 (!%p213_p2), %3326, %v274_v4   ;;  %v3489_v25 = vrot.slane (!%p213_p2), %v3470_v12, %v363_v9  ;;  %v368_v26 = vrot.slane (!%p213_p2), %v3470_v12, %v367_v10  ;;  %v372_v32 = vrot.slane (!%p213_p2), %v3470_v12, %v371_v13  ;;  %vm2652_vm9 = vcmask (!%p213_p2), 474112  }
   0xc   : > { %v3501_v33 = vrot.slane (!%p213_p2), %v3470_v12, %v375_v14  ;;  %v3504_v34 = vrot.slane (!%p213_p2), %v3470_v12, %v383_v15  ;;  %v3507_v35 = vrot.slane (!%p213_p2), %v3470_v12, %v387_v16 }
   0xd   : > { %s3996_s22 = smov (!%p242_p3, %s3026_s22), 1 }
   0xe   : > { %s3305_s7 = smul.u32 160, %s3996_s22 }
  0x10   : > { %s3459_s10 = scalar_lea.vmem %s3988_s0, %s3305_s7 }
  0x11   : > { %v254_v8 = vld [vmem:[%s3459_s10 + $0x8] sm:$0xff]  ;;  %v255_v11 = vld [vmem:[%s3459_s10 + $0x10] sm:$0xff]  ;;  %v253_v18 = vld [vmem:[%s3459_s10] sm:$0xff] }
  0x12   : > { %v256_v20 = vld [vmem:[%s3459_s10 + $0x18] sm:$0xff]  ;;  %v257_v21 = vld [vmem:[%s3459_s10 + $0x20] sm:$0xff]  ;;  %v263_v24 = vld [vmem:[%s3459_s10 + $0x50] sm:$0xff] }
  0x13   : > { %v258_v29 = vld [vmem:[%s3459_s10 + $0x28] sm:$0xff]  ;;  %v264_v30 = vld [vmem:[%s3459_s10 + $0x58] sm:$0xff]  ;;  %v265_v31 = vld [vmem:[%s3459_s10 + $0x60] sm:$0xff] }
  0x14   : > { %v259_v36 = vld [vmem:[%s3459_s10 + $0x30] sm:$0xff]  ;;  %v268_v37 = vld [vmem:[%s3459_s10 + $0x78] sm:$0xff]  ;;  %v269_v38 = vld [vmem:[%s3459_s10 + $0x80] sm:$0xff] }
  0x15   : > { %v266_v42 = vld [vmem:[%s3459_s10 + $0x68] sm:$0xff]  ;;  %v260_v44 = vld [vmem:[%s3459_s10 + $0x38] sm:$0xff]  ;;  %v267_v52 = vld [vmem:[%s3459_s10 + $0x70] sm:$0xff] }
  0x16   : > { %v270_v62 = vld [vmem:[%s3459_s10 + $0x88] sm:$0xff]  ;;  %v271_v5 = vld [vmem:[%s3459_s10 + $0x90] sm:$0xff] }
  0x86   : > { %v3461_v7 = vpop.permute.xlu0 %277  ;;  %v3476_v17 = vpop.permute.xlu1 %309 }
  0x87   : > { %v286_v19 = vmul.f32 %v3461_v7, %v254_v8  ;;  %v287_v22 = vmul.f32 %v3461_v7, %v255_v11  ;;  %v285_v39 = vmul.f32 %v3461_v7, %v253_v18  ;;  %v288_v40 = vmul.f32 %v3461_v7, %v256_v20  ;;  %v272_v8 = vld [vmem:[%s3459_s10 + $0x98] sm:$0xff] }
  0x88   : > { %v290_v45 = vmul.f32 %v3461_v7, %v258_v29  ;;  %v289_v49 = vmul.f32 %v3461_v7, %v257_v21  ;;  %v291_v50 = vmul.f32 %v3461_v7, %v259_v36  ;;  %v292_v59 = vmul.f32 %v3461_v7, %v260_v44 }
  0x89   : > { %v318_v41 = vadd.f32 %v3476_v17, %v286_v19  ;;  %v319_v46 = vadd.f32 %v3476_v17, %v287_v22  ;;  %v317_v60 = vadd.f32 %v3476_v17, %v285_v39  ;;  %v320_v0 = vadd.f32 %v3476_v17, %v288_v40  ;;  %v262_v39 = vld [vmem:[%s3459_s10 + $0x48] sm:$0xff] }
  0x8a   : > { %v3483_v23 = vpop.permute.xlu0 %282  ;;  %v315_v51 = vpop.permute.xlu1 %314  ;;  %v322_v1 = vadd.f32 %v3476_v17, %v290_v45  ;;  %v323_v16 = vadd.f32 %v3476_v17, %v291_v50  ;;  %v294_v50 = vmul.f32 %v3461_v7, %v262_v39 }
  0x8b   : > { %v295_v43 = vmul.f32 %v3483_v23, %v263_v24  ;;  %v296_v47 = vmul.f32 %v3483_v23, %v264_v30  ;;  %v297_v48 = vmul.f32 %v3483_v23, %v265_v31  ;;  %v300_v53 = vmul.f32 %v3483_v23, %v268_v37  ;;  %v261_v30 = vld [vmem:[%s3459_s10 + $0x40] sm:$0xff] }
  0x8c   : > { %v301_v54 = vmul.f32 %v3483_v23, %v269_v38  ;;  %v298_v55 = vmul.f32 %v3483_v23, %v266_v42  ;;  %v338_v61 = vmax.f32 %v318_v41, 0.0  ;;  %v339_v3 = vmax.f32 %v319_v46, 0.0 }
  0x8d   : > { %v327_v56 = vadd.f32 %v315_v51, %v295_v43  ;;  %v328_v57 = vadd.f32 %v315_v51, %v296_v47  ;;  %v329_v58 = vadd.f32 %v315_v51, %v297_v48  ;;  %v332_v63 = vadd.f32 %v315_v51, %v300_v53 }
  0x8e   : > { %v299_v4 = vmul.f32 %v3483_v23, %v267_v52  ;;  %v333_v11 = vadd.f32 %v315_v51, %v301_v54  ;;  %v302_v18 = vmul.f32 %v3483_v23, %v270_v62  ;;  %v330_v19 = vadd.f32 %v315_v51, %v298_v55 }
  0x8f   : > { %v347_v13 = vmax.f32 %v327_v56, 0.0  ;;  %v348_v14 = vmax.f32 %v328_v57, 0.0  ;;  %v349_v15 = vmax.f32 %v329_v58, 0.0  ;;  %v352_v20 = vmax.f32 %v332_v63, 0.0 }
  0x90   : > { %v337_v21 = vmax.f32 %v317_v60, 0.0  ;;  %v412_v22 = vmul.f32 %v368_v26, %v338_v61  ;;  %v342_v31 = vmax.f32 %v322_v1, 0.0  ;;  %v413_v36 = vmul.f32 %v372_v32, %v339_v3 }
  0x91   : > { %v422_v24 = vmul.f32 %v368_v26, %v348_v14  ;;  %v423_v29 = vmul.f32 %v372_v32, %v349_v15  ;;  %v303_v37 = vmul.f32 %v3483_v23, %v271_v5  ;;  %v304_v38 = vmul.f32 %v3483_v23, %v272_v8 }
  0x92   : > { %v331_v40 = vadd.f32 %v315_v51, %v299_v4  ;;  %v353_v41 = vmax.f32 %v333_v11, 0.0  ;;  %v421_v42 = vmul.f32 %v3489_v25, %v347_v13  ;;  %v334_v44 = vadd.f32 %v315_v51, %v302_v18 }
  0x93   : > { %v3543_v43 = vpack.c.bf16 %v422_v24, %v412_v22  ;;  %v350_v45 = vmax.f32 %v330_v19, 0.0  ;;  %v426_v46 = vmul.f32 %v3504_v34, %v352_v20  ;;  %v3546_v26 = vpack.c.bf16 %v423_v29, %v413_v36  ;;  %v3328_v36 = vld [vmem:[%s3993_s5 + $0x8] sm:$0x3f]  }
  0x94   : > { %v293_v47 = vmul.f32 %v3461_v7, %v261_v30  ;;  %v321_v32 = vadd.f32 %v3476_v17, %v289_v49  ;;  %v343_v48 = vmax.f32 %v323_v16, 0.0  ;;  %v411_v23 = vmul.f32 %v3489_v25, %v337_v21 }
  0x95   : > { %463 = vrot.lane.b32.xlu0 %v3543_v43, %s3382_s13  ;;  %v324_v52 = vadd.f32 %v3476_v17, %v292_v59  ;;  %v340_v53 = vmax.f32 %v320_v0, 0.0  ;;  %v416_v54 = vmul.f32 %v3504_v34, %v342_v31  ;;  %465 = vrot.lane.b32.xlu1 %v3546_v26, %s3382_s13  ;;  %v335_v55 = vadd.f32 %v315_v51, %v303_v37 }
  0x96   : > { %v351_v56 = vmax.f32 %v331_v40, 0.0  ;;  %v427_v49 = vmul.f32 %v3507_v35, %v353_v41  ;;  %v3559_v57 = vpack.c.bf16 %v421_v42, %v411_v23  ;;  %v336_v25 = vadd.f32 %v315_v51, %v304_v38  ;;  %v358_v51 = vld [vmem:[%s3991_s3 + $0x8] sm:$0x3] }
  0x97   : > { %v354_v58 = vmax.f32 %v334_v44, 0.0  ;;  %v424_v60 = vmul.f32 %v3501_v33, %v350_v45  ;;  %v3562_v61 = vpack.c.bf16 %v426_v46, %v416_v54  ;;  %v380_v7 = vrot.slane %v3470_v12, %v379_v27 }
  0x98   : > { %v325_v34 = vadd.f32 %v3476_v17, %v293_v47  ;;  %v341_v59 = vmax.f32 %v321_v32, 0.0  ;;  %v417_v62 = vmul.f32 %v3507_v35, %v343_v48  ;;  %v392_v63 = vrot.slane %v3470_v12, %v391_v28 }
  0x99   : > { %461 = vrot.lane.b32.xlu0 %v3559_v57, %s3382_s13  ;;  %v326_v0 = vadd.f32 %v3476_v17, %v294_v50  ;;  %v344_v1 = vmax.f32 %v324_v52, 0.0  ;;  %v414_v27 = vmul.f32 %v3501_v33, %v340_v53  ;;  %471 = vrot.lane.b32.xlu1 %v3562_v61, %s3382_s13  ;;  %v355_v35 = vmax.f32 %v335_v55, 0.0 }
  0x9a   : > { %v425_v3 = vmul.f32 %v380_v7, %v351_v56  ;;  %v3581_v4 = vpack.c.bf16 %v427_v49, %v417_v62  ;;  %v356_v5 = vmax.f32 %v336_v25, 0.0  ;;  %v428_v8 = vmul.f32 %v392_v63, %v354_v58  ;;  %v3329_v49 = vld [vmem:[%s3993_s5] sm:$0x3f]  }
  0x9b   : > { %v3583_v11 = vpack.c.bf16 %v424_v60, %v414_v27  ;;  %v396_v13 = vrot.slane %v358_v51, %v363_v9  ;;  %v345_v12 = vmax.f32 %v325_v34, 0.0  ;;  %v415_v28 = vmul.f32 %v380_v7, %v341_v59  ;;  %v2905_v62 = vld [vmem:[%s3992_s4] sm:$0xff]  ;;  %v3330_v27 = vld [vmem:[%s3993_s5 + $0x10] sm:$0x3f]  }
  0x9c   : > { %v346_v17 = vmax.f32 %v326_v0, 0.0  ;;  %v418_v33 = vmul.f32 %v392_v63, %v344_v1  ;;  %v400_v14 = vrot.slane %v358_v51, %v367_v10  ;;  %v3389_v47 = vmov 0.0   ;;  %v2906_v63 = vld [vmem:[%s3992_s4 + $0x8] sm:$0xf] }
  0x9d   : > { %473 = vrot.lane.b32.xlu0 %v3581_v4, %s3382_s13  ;;  %467 = vrot.lane.b32.xlu1 %v3583_v11, %s3382_s13  ;;  %v429_v15 = vmul.f32 %v396_v13, %v355_v35  ;;  %v3593_v16 = vpack.c.bf16 %v425_v3, %v415_v28  ;;  %v419_v9 = vmul.f32 %v396_v13, %v345_v12 }
  0x9e   : > { %v3595_v18 = vpack.c.bf16 %v428_v8, %v418_v33  ;;  %v430_v19 = vmul.f32 %v400_v14, %v356_v5  ;;  %v420_v20 = vmul.f32 %v400_v14, %v346_v17 }
  0x9f   : > { %v3601_v21 = vpack.c.bf16 %v429_v15, %v419_v9 }
  0xa0   : > { %v3603_v22 = vpack.c.bf16 %v430_v19, %v420_v20 }
  0xa1   : > { %469 = vrot.lane.b32.xlu0 %v3593_v16, %s3382_s13  ;;  %475 = vrot.lane.b32.xlu1 %v3595_v18, %s3382_s13 }
  0xa5   : > { %477 = vrot.lane.b32.xlu0 %v3601_v21, %s3382_s13  ;;  %479 = vrot.lane.b32.xlu1 %v3603_v22, %s3382_s13 }
  0xa9   : > { %948 = vrot.lane.b32.xlu0 %v3543_v43, %s3383_s16  ;;  %950 = vrot.lane.b32.xlu1 %v3546_v26, %s3383_s16 }
  0xad   : > { %946 = vrot.lane.b32.xlu0 %v3559_v57, %s3383_s16  ;;  %956 = vrot.lane.b32.xlu1 %v3562_v61, %s3383_s16 }
  0xb1   : > { %958 = vrot.lane.b32.xlu0 %v3581_v4, %s3383_s16  ;;  %952 = vrot.lane.b32.xlu1 %v3583_v11, %s3383_s16 }
  0xb5   : > { %954 = vrot.lane.b32.xlu0 %v3593_v16, %s3383_s16  ;;  %960 = vrot.lane.b32.xlu1 %v3595_v18, %s3383_s16 }
  0xb9   : > { %962 = vrot.lane.b32.xlu0 %v3601_v21, %s3383_s16  ;;  %964 = vrot.lane.b32.xlu1 %v3603_v22, %s3383_s16 }
  0xbd   : > { %1229 = vrot.lane.b32.xlu0 %v3543_v43, %s3384_s17  ;;  %1231 = vrot.lane.b32.xlu1 %v3546_v26, %s3384_s17 }
  0xc1   : > { %1227 = vrot.lane.b32.xlu0 %v3559_v57, %s3384_s17  ;;  %1233 = vrot.lane.b32.xlu1 %v3583_v11, %s3384_s17 }
  0xc5   : > { %1235 = vrot.lane.b32.xlu0 %v3593_v16, %s3384_s17  ;;  %1237 = vrot.lane.b32.xlu1 %v3562_v61, %s3384_s17 }
  0xc9   : > { %1239 = vrot.lane.b32.xlu0 %v3581_v4, %s3384_s17  ;;  %1241 = vrot.lane.b32.xlu1 %v3595_v18, %s3384_s17 }
  0xcd   : > { %1243 = vrot.lane.b32.xlu0 %v3601_v21, %s3384_s17  ;;  %1510 = vrot.lane.b32.xlu1 %v3543_v43, %s3385_s18 }
  0xd1   : > { %1512 = vrot.lane.b32.xlu0 %v3546_v26, %s3385_s18  ;;  %1508 = vrot.lane.b32.xlu1 %v3559_v57, %s3385_s18 }
  0xd5   : > { %1245 = vrot.lane.b32.xlu0 %v3603_v22, %s3384_s17  ;;  %1518 = vrot.lane.b32.xlu1 %v3562_v61, %s3385_s18 }
  0xd9   : > { %1520 = vrot.lane.b32.xlu0 %v3581_v4, %s3385_s18  ;;  %1514 = vrot.lane.b32.xlu1 %v3583_v11, %s3385_s18 }
  0xdd   : > { %1516 = vrot.lane.b32.xlu0 %v3593_v16, %s3385_s18  ;;  %1522 = vrot.lane.b32.xlu1 %v3595_v18, %s3385_s18 }
  0xe1   : > { %1524 = vrot.lane.b32.xlu0 %v3601_v21, %s3385_s18  ;;  %1526 = vrot.lane.b32.xlu1 %v3603_v22, %s3385_s18 }
  0xe5   : > { %1791 = vrot.lane.b32.xlu0 %v3543_v43, %s3386_s19  ;;  %1793 = vrot.lane.b32.xlu1 %v3546_v26, %s3386_s19 }
  0xe9   : > { %1789 = vrot.lane.b32.xlu0 %v3559_v57, %s3386_s19  ;;  %1795 = vrot.lane.b32.xlu1 %v3583_v11, %s3386_s19 }
  0xed   : > { %1797 = vrot.lane.b32.xlu0 %v3593_v16, %s3386_s19  ;;  %1799 = vrot.lane.b32.xlu1 %v3562_v61, %s3386_s19 }
  0xf1   : > { %1801 = vrot.lane.b32.xlu0 %v3581_v4, %s3386_s19  ;;  %1803 = vrot.lane.b32.xlu1 %v3595_v18, %s3386_s19 }
  0xf5   : > { %1805 = vrot.lane.b32.xlu0 %v3601_v21, %s3386_s19  ;;  %2072 = vrot.lane.b32.xlu1 %v3543_v43, %s3387_s20 }
  0xf9   : > { %2074 = vrot.lane.b32.xlu0 %v3546_v26, %s3387_s20  ;;  %2070 = vrot.lane.b32.xlu1 %v3559_v57, %s3387_s20 }
  0xfd   : > { %1807 = vrot.lane.b32.xlu0 %v3603_v22, %s3386_s19  ;;  %2080 = vrot.lane.b32.xlu1 %v3562_v61, %s3387_s20 }
 0x101   : > { %2082 = vrot.lane.b32.xlu0 %v3581_v4, %s3387_s20  ;;  %2076 = vrot.lane.b32.xlu1 %v3583_v11, %s3387_s20 }
 0x105   : > { %2078 = vrot.lane.b32.xlu0 %v3593_v16, %s3387_s20  ;;  %2084 = vrot.lane.b32.xlu1 %v3595_v18, %s3387_s20 }
 0x107   : > { %v464_v6 = vpop.permute.xlu0 %463  ;;  %v466_v10 = vpop.permute.xlu1 %465 }
 0x108   : > { %v483_v24 = vsel %vm481_vm0, %v464_v6, %v466_v10 }
 0x109   : > { %2086 = vrot.lane.b32.xlu0 %v3601_v21, %s3387_s20  ;;  %504 = vmatprep.subr.bf16.mxu0 %v483_v24 }
 0x10a   : > { %2088 = vrot.lane.b32.xlu1 %v3603_v22, %s3387_s20 }
 0x10b   : > { %v462_v29 = vpop.permute.xlu0 %461  ;;  %v472_v30 = vpop.permute.xlu1 %471 }
 0x10c   : > { %v482_v31 = vsel %vm481_vm0, %v462_v29, %v464_v6  ;;  %v3331_v29 = vld [vmem:[%s3993_s5 + $0x18] sm:$0x3f]  }
 0x10d   : > { %2353 = vrot.lane.b32.xlu0 %v3543_v43, %s3388_s25  ;;  %505 = vmatpush1.bf16.msra.mxu0 %v482_v31 }
 0x10e   : > { %2355 = vrot.lane.b32.xlu1 %v3546_v26, %s3388_s25 }
 0x10f   : > { %v474_v37 = vpop.permute.xlu0 %473  ;;  %v468_v38 = vpop.permute.xlu1 %467 }
 0x110   : > { %3036 = vmatmul.mubr.msk.bf16.vlgmr.msra.gmra.mrb[0].mxu0 %vm500_vm1, %v3328_v36  ;;  %v487_v39 = vsel %vm481_vm0, %v472_v30, %v474_v37  ;;  %v484_v45 = vsel %vm481_vm0, %v466_v10, %v468_v38 }
 0x111   : > { %2351 = vrot.lane.b32.xlu0 %v3559_v57, %s3388_s25  ;;  %590 = vmatprep.subr.bf16.mxu0 %v487_v39 }
 0x112   : > { %2357 = vrot.lane.b32.xlu1 %v3583_v11, %s3388_s25  ;;  %622 = vmatprep.mubr.bf16.mxu0 %v3381_v2 }
 0x113   : > { %v470_v40 = vpop.permute.xlu0 %469  ;;  %v476_v41 = vpop.permute.xlu1 %475 }
 0x114   : > { %v486_v42 = vsel %vm481_vm0, %v470_v40, %v472_v30  ;;  %v485_v44 = vsel %vm481_vm0, %v468_v38, %v470_v40  ;;  %v488_v50 = vsel %vm481_vm0, %v474_v37, %v476_v41 }
 0x115   : > { %2359 = vrot.lane.b32.xlu0 %v3593_v16, %s3388_s25  ;;  %547 = vmatprep.subr.bf16.mxu1 %v485_v44 }
 0x116   : > { %2361 = vrot.lane.b32.xlu1 %v3562_v61, %s3388_s25  ;;  %591 = vmatpush1.bf16.msra.mxu0 %v486_v42 }
 0x117   : > { %548 = vmatpush1.bf16.msra.mxu1 %v484_v45  ;;  %v478_v46 = vpop.permute.xlu0 %477  ;;  %3123 = vmatprep.subr.bf16.mxu0 %v3389_v47  ;;  %v480_v32 = vpop.permute.xlu1 %479 }
 0x118   : > { %v489_v48 = vsel %vm481_vm0, %v476_v41, %v478_v46  ;;  %v490_v23 = vsel %vm481_vm0, %v478_v46, %v480_v32 }
 0x119   : > { %3038 = vmatmul.mubr.msk.bf16.vlgmr.msra.gmra.mrb[4].mxu0 %vm500_vm1, %v3328_v36  ;;  %2363 = vrot.lane.b32.xlu0 %v3581_v4, %s3388_s25 }
 0x11a   : > { %2365 = vrot.lane.b32.xlu1 %v3595_v18, %s3388_s25  ;;  %3037 = vmatmul.mubr.msk.bf16.vlgmr.msra.gmra.mrb[0].mxu1 %vm500_vm1, %v3328_v36 }
 0x11b   : > { %633 = vmatprep.subr.bf16.mxu1 %v489_v48  ;;  %3124 = vmatpush3.bf16.msra.mxu0 %v490_v23  ;;  %v949_v52 = vpop.permute.xlu0 %948  ;;  %v3693_v53 = vpop.permute.xlu1 %950 }
 0x11c   : > { %634 = vmatpush1.bf16.msra.mxu1 %v488_v50  ;;  %725 = vmatprep.subr.bf16.mxu0 %v3543_v43  ;;  %v968_v25 = vsel %vm966_vm3, %v949_v52, %v3693_v53  ;;  %v3332_v50 = vld [vmem:[%s3993_s5 + $0x20] sm:$0x3f]  }
 0x11d   : > { %768 = vmatprep.subr.bf16.mxu1 %v3583_v11  ;;  %2367 = vrot.lane.b32.xlu0 %v3601_v21, %s3388_s25 }
 0x11e   : > { %2634 = vrot.lane.b32.xlu1 %v3543_v43, %s3390_s26  ;;  %3125 = vmatprep.mubr.msk.bf16.mxu0 %vm3391_vm2, %v3389_v47 }
 0x11f   : > { %v947_v54 = vpop.permute.xlu0 %946  ;;  %665 = vmatprep.mubr.bf16.mxu1 %v3381_v2  ;;  %v957_v55 = vpop.permute.xlu1 %956 }
 0x120   : > { %v967_v34 = vsel %vm966_vm3, %v947_v54, %v949_v52 }
 0x121   : > { %3126 = vmatmul.mubr.msk.bf16.vlgmr.msra.gmra.mrb[8].mxu0 %vm500_vm1, %v3328_v36  ;;  %2636 = vrot.lane.b32.xlu0 %v3546_v26, %s3390_s26 }
 0x122   : > { %726 = vmatpush1.bf16.msra.mxu0 %v3559_v57  ;;  %2632 = vrot.lane.b32.xlu1 %v3559_v57, %s3390_s26 }
 0x123   : > { %3039 = vmatmul.mubr.msk.bf16.vlgmr.msra.gmra.mrb[4].mxu1 %vm500_vm1, %v3328_v36  ;;  %811 = vmatprep.subr.bf16.mxu0 %v3562_v61  ;;  %v3711_v43 = vpop.permute.xlu0 %958  ;;  %v953_v56 = vpop.permute.xlu1 %952 }
 0x124   : > { %769 = vmatpush1.bf16.msra.mxu1 %v3546_v26  ;;  %757 = vmatprep.mubr.bf16.mxu0 %v3381_v2  ;;  %v972_v59 = vsel %vm966_vm3, %v957_v55, %v3711_v43  ;;  %v969_v5 = vsel %vm966_vm3, %v3693_v53, %v953_v56 }
 0x125   : > { %854 = vmatprep.subr.bf16.mxu1 %v3595_v18  ;;  %2369 = vrot.lane.b32.xlu0 %v3603_v22, %s3388_s25  ;;  %s3306_s25 = smul.u32 144, %s3996_s22 }
 0x126   : > { %2642 = vrot.lane.b32.xlu1 %v3562_v61, %s3390_s26  ;;  %800 = vmatprep.mubr.bf16.mxu1 %v3381_v2 }
 0x127   : > { %v955_v57 = vpop.permute.xlu0 %954  ;;  %v961_v26 = vpop.permute.xlu1 %960  ;;  %s3953_s28 = scalar_lea.vmem %s3994_s6, %s3306_s25 }
 0x128   : > { %v970_v0 = vsel %vm966_vm3, %v953_v56, %v955_v57  ;;  %v973_v14 = vsel %vm966_vm3, %v3711_v43, %v961_v26 }
 0x129   : > { %3042 = vmatmul.mubr.msk.bf16.vlgmr.msra.gmra.mrb[0].mxu0 %vm500_vm1, %v3329_v49  ;;  %2644 = vrot.lane.b32.xlu0 %v3581_v4, %s3390_s26 }
 0x12a   : > { %812 = vmatpush1.bf16.msra.mxu0 %v3593_v16  ;;  %2638 = vrot.lane.b32.xlu1 %v3583_v11, %s3390_s26 }
 0x12b   : > { %3043 = vmatmul.mubr.msk.bf16.vlgmr.msra.gmra.mrb[0].mxu1 %vm500_vm1, %v3329_v49  ;;  %988 = vmatprep.subr.bf16.mxu0 %v968_v25  ;;  %v963_v58 = vpop.permute.xlu0 %962  ;;  %v965_v60 = vpop.permute.xlu1 %964 }
 0x12c   : > { %855 = vmatpush1.bf16.msra.mxu1 %v3581_v4  ;;  %843 = vmatprep.mubr.bf16.mxu0 %v3381_v2  ;;  %v971_v4 = vsel %vm966_vm3, %v955_v57, %v957_v55  ;;  %v974_v11 = vsel %vm966_vm3, %v961_v26, %v963_v58  ;;  %v975_v17 = vsel %vm966_vm3, %v963_v58, %v965_v60 }
 0x12d   : > { %2640 = vrot.lane.b32.xlu0 %v3593_v16, %s3390_s26  ;;  %886 = vmatprep.mubr.bf16.mxu1 %v3381_v2 }
 0x12e   : > { %2646 = vrot.lane.b32.xlu1 %v3595_v18, %s3390_s26  ;;  %3129 = vmatprep.subr.bf16.mxu1 %v3389_v47 }
 0x12f   : > { %v1230_v61 = vpop.permute.xlu0 %1229  ;;  %v1232_v7 = vpop.permute.xlu1 %1231 }
 0x130   : > { %v1249_v33 = vsel %vm1247_vm4, %v1230_v61, %v1232_v7 }
 0x131   : > { %3044 = vmatmul.mubr.msk.bf16.vlgmr.msra.gmra.mrb[4].mxu0 %vm500_vm1, %v3329_v49  ;;  %2648 = vrot.lane.b32.xlu0 %v3601_v21, %s3390_s26 }
 0x132   : > { %989 = vmatpush1.bf16.msra.mxu0 %v967_v34  ;;  %2650 = vrot.lane.b32.xlu1 %v3603_v22, %s3390_s26 }
 0x133   : > { %3045 = vmatmul.mubr.msk.bf16.vlgmr.msra.gmra.mrb[4].mxu1 %vm500_vm1, %v3329_v49  ;;  %1074 = vmatprep.subr.bf16.mxu0 %v972_v59  ;;  %v1228_v51 = vpop.permute.xlu0 %1227  ;;  %v1234_v1 = vpop.permute.xlu1 %1233 }
 0x134   : > { %3130 = vmatpush3.bf16.msra.mxu1 %v3601_v21  ;;  %1020 = vmatprep.mubr.bf16.mxu0 %v3381_v2  ;;  %v1248_v20 = vsel %vm1247_vm4, %v1228_v51, %v1230_v61  ;;  %v1250_v22 = vsel %vm1247_vm4, %v1232_v7, %v1234_v1 }
 0x135   : > { %1031 = vmatprep.subr.bf16.mxu1 %v970_v0  ;;  %2909 = vperm.xlu0 %3326, %v2905_v62  }
 0x136   : > { %2914 = vperm.xlu1 %3327, %v2906_v63   ;;  %3131 = vmatprep.mubr.msk.bf16.mxu1 %vm3391_vm2, %v3389_v47 }
 0x137   : > { %v1236_v35 = vpop.permute.xlu0 %1235  ;;  %v1238_v3 = vpop.permute.xlu1 %1237 }
 0x138   : > { %v1251_v16 = vsel %vm1247_vm4, %v1234_v1, %v1236_v35  ;;  %v1252_v36 = vsel %vm1247_vm4, %v1236_v35, %v1238_v3 }
 0x139   : > { %3050 = vmatmul.mubr.msk.bf16.vlgmr.msra.gmra.mrb[0].mxu0 %vm500_vm1, %v3330_v27 }
 0x13a   : > { %1075 = vmatpush1.bf16.msra.mxu0 %v971_v4  ;;  %1106 = vmatprep.mubr.bf16.mxu0 %v3381_v2 }
 0x13b   : > { %3132 = vmatmul.mubr.msk.bf16.vlgmr.msra.gmra.mrb[8].mxu1 %vm500_vm1, %v3329_v49  ;;  %v1240_v8 = vpop.permute.xlu0 %1239  ;;  %3135 = vmatprep.subr.bf16.mxu0 %v3389_v47  ;;  %v1242_v13 = vpop.permute.xlu1 %1241 }
 0x13c   : > { %1032 = vmatpush1.bf16.msra.mxu1 %v969_v5  ;;  %1063 = vmatprep.mubr.bf16.mxu1 %v3381_v2  ;;  %v1253_v21 = vsel %vm1247_vm4, %v1238_v3, %v1240_v8  ;;  %v1254_v38 = vsel %vm1247_vm4, %v1240_v8, %v1242_v13  ;;  %v3333_v3 = vld [vmem:[%s3993_s5 + $0x28] sm:$0x3f]  }
 0x13d   : > { %1117 = vmatprep.subr.bf16.mxu1 %v974_v11 }
 0x13f   : > { %v1244_v12 = vpop.permute.xlu0 %1243  ;;  %v1511_v28 = vpop.permute.xlu1 %1510 }
 0x140   : > { %v1255_v10 = vsel %vm1247_vm4, %v1242_v13, %v1244_v12 }
 0x141   : > { %3052 = vmatmul.mubr.msk.bf16.vlgmr.msra.gmra.mrb[4].mxu0 %vm500_vm1, %v3330_v27 }
 0x142   : > { %3136 = vmatpush3.bf16.msra.mxu0 %v975_v17  ;;  %3137 = vmatprep.mubr.msk.bf16.mxu0 %vm3391_vm2, %v3389_v47 }
 0x143   : > { %3051 = vmatmul.mubr.msk.bf16.vlgmr.msra.gmra.mrb[0].mxu1 %vm500_vm1, %v3330_v27  ;;  %1269 = vmatprep.subr.bf16.mxu0 %v1249_v33  ;;  %v3781_v15 = vpop.permute.xlu0 %1512  ;;  %v1509_v18 = vpop.permute.xlu1 %1508 }
 0x144   : > { %1118 = vmatpush1.bf16.msra.mxu1 %v973_v14  ;;  %1149 = vmatprep.mubr.bf16.mxu1 %v3381_v2  ;;  %v1530_v37 = vsel %vm1528_vm5, %v1511_v28, %v3781_v15  ;;  %v1529_v44 = vsel %vm1528_vm5, %v1509_v18, %v1511_v28 }
 0x145   : > { %1312 = vmatprep.subr.bf16.mxu1 %v1251_v16 }
 0x147   : > { %v1246_v19 = vpop.permute.xlu0 %1245  ;;  %v1519_v9 = vpop.permute.xlu1 %1518 }
 0x148   : > { %v1256_v46 = vsel %vm1247_vm4, %v1244_v12, %v1246_v19 }
 0x149   : > { %3138 = vmatmul.mubr.msk.bf16.vlgmr.msra.gmra.mrb[12].mxu0 %vm500_vm1, %v3330_v27 }
 0x14a   : > { %1270 = vmatpush1.bf16.msra.mxu0 %v1248_v20  ;;  %1301 = vmatprep.mubr.bf16.mxu0 %v3381_v2 }
 0x14b   : > { %3053 = vmatmul.mubr.msk.bf16.vlgmr.msra.gmra.mrb[4].mxu1 %vm500_vm1, %v3330_v27  ;;  %1355 = vmatprep.subr.bf16.mxu0 %v1253_v21  ;;  %v3791_v6 = vpop.permute.xlu0 %1520  ;;  %v1515_v24 = vpop.permute.xlu1 %1514 }
 0x14c   : > { %1313 = vmatpush1.bf16.msra.mxu1 %v1250_v22  ;;  %1344 = vmatprep.mubr.bf16.mxu1 %v3381_v2  ;;  %v1534_v45 = vsel %vm1528_vm5, %v1519_v9, %v3791_v6  ;;  %v1531_v55 = vsel %vm1528_vm5, %v3781_v15, %v1515_v24 }
 0x14d   : > { %1398 = vmatprep.subr.bf16.mxu1 %v1255_v10 }
 0x14f   : > { %v1517_v30 = vpop.permute.xlu0 %1516  ;;  %v1523_v31 = vpop.permute.xlu1 %1522 }
 0x150   : > { %v1532_v48 = vsel %vm1528_vm5, %v1515_v24, %v1517_v30  ;;  %v1533_v54 = vsel %vm1528_vm5, %v1517_v30, %v1519_v9  ;;  %v1535_v60 = vsel %vm1528_vm5, %v3791_v6, %v1523_v31  ;;  %v3334_v9 = vld [vmem:[%s3993_s5 + $0x30] sm:$0x3f]  }
 0x151   : > { %3058 = vmatmul.mubr.msk.bf16.vlgmr.msra.gmra.mrb[0].mxu0 %vm500_vm1, %v3331_v29 }
 0x152   : > { %1356 = vmatpush1.bf16.msra.mxu0 %v1252_v36  ;;  %1387 = vmatprep.mubr.bf16.mxu0 %v3381_v2 }
 0x153   : > { %3059 = vmatmul.mubr.msk.bf16.vlgmr.msra.gmra.mrb[0].mxu1 %vm500_vm1, %v3331_v29  ;;  %1550 = vmatprep.subr.bf16.mxu0 %v1530_v37  ;;  %v1525_v39 = vpop.permute.xlu0 %1524  ;;  %v1527_v40 = vpop.permute.xlu1 %1526 }
 0x154   : > { %1399 = vmatpush1.bf16.msra.mxu1 %v1254_v38  ;;  %1430 = vmatprep.mubr.bf16.mxu1 %v3381_v2  ;;  %v1536_v56 = vsel %vm1528_vm5, %v1523_v31, %v1525_v39  ;;  %v1537_v25 = vsel %vm1528_vm5, %v1525_v39, %v1527_v40 }
 0x155   : > { %3141 = vmatprep.subr.bf16.mxu1 %v3389_v47 }
 0x157   : > { %v1792_v41 = vpop.permute.xlu0 %1791  ;;  %v1794_v42 = vpop.permute.xlu1 %1793 }
 0x158   : > { %v1811_v58 = vsel %vm1809_vm6, %v1792_v41, %v1794_v42 }
 0x159   : > { %3060 = vmatmul.mubr.msk.bf16.vlgmr.msra.gmra.mrb[4].mxu0 %vm500_vm1, %v3331_v29 }
 0x15a   : > { %1551 = vmatpush1.bf16.msra.mxu0 %v1529_v44  ;;  %1582 = vmatprep.mubr.bf16.mxu0 %v3381_v2 }
 0x15b   : > { %3061 = vmatmul.mubr.msk.bf16.vlgmr.msra.gmra.mrb[4].mxu1 %vm500_vm1, %v3331_v29  ;;  %1636 = vmatprep.subr.bf16.mxu0 %v1534_v45  ;;  %v1790_v32 = vpop.permute.xlu0 %1789  ;;  %v1796_v23 = vpop.permute.xlu1 %1795 }
 0x15c   : > { %3142 = vmatpush3.bf16.msra.mxu1 %v1256_v46  ;;  %3143 = vmatprep.mubr.msk.bf16.mxu1 %vm3391_vm2, %v3389_v47  ;;  %v1810_v51 = vsel %vm1809_vm6, %v1790_v32, %v1792_v41  ;;  %v1812_v0 = vsel %vm1809_vm6, %v1794_v42, %v1796_v23 }
 0x15d   : > { %1593 = vmatprep.subr.bf16.mxu1 %v1532_v48  ;;  %v3335_v48 = vld [vmem:[%s3993_s5 + $0x38] sm:$0x3f]  }
 0x15f   : > { %v1798_v52 = vpop.permute.xlu0 %1797  ;;  %v1800_v53 = vpop.permute.xlu1 %1799 }
 0x160   : > { %v1813_v7 = vsel %vm1809_vm6, %v1796_v23, %v1798_v52  ;;  %v1814_v8 = vsel %vm1809_vm6, %v1798_v52, %v1800_v53 }
 0x161   : > { %3066 = vmatmul.mubr.msk.bf16.vlgmr.msra.gmra.mrb[0].mxu0 %vm500_vm1, %v3332_v50 }
 0x162   : > { %1637 = vmatpush1.bf16.msra.mxu0 %v1533_v54  ;;  %1668 = vmatprep.mubr.bf16.mxu0 %v3381_v2 }
 0x163   : > { %3144 = vmatmul.mubr.msk.bf16.vlgmr.msra.gmra.mrb[12].mxu1 %vm500_vm1, %v3331_v29  ;;  %v1802_v43 = vpop.permute.xlu0 %1801  ;;  %3147 = vmatprep.subr.bf16.mxu0 %v3389_v47  ;;  %v1804_v49 = vpop.permute.xlu1 %1803 }
 0x164   : > { %1594 = vmatpush1.bf16.msra.mxu1 %v1531_v55  ;;  %1625 = vmatprep.mubr.bf16.mxu1 %v3381_v2  ;;  %v1815_v63 = vsel %vm1809_vm6, %v1800_v53, %v1802_v43  ;;  %v1816_v13 = vsel %vm1809_vm6, %v1802_v43, %v1804_v49 }
 0x165   : > { %1679 = vmatprep.subr.bf16.mxu1 %v1536_v56 }
 0x167   : > { %v1806_v57 = vpop.permute.xlu0 %1805  ;;  %v2073_v26 = vpop.permute.xlu1 %2072 }
 0x168   : > { %v1817_v27 = vsel %vm1809_vm6, %v1804_v49, %v1806_v57 }
 0x169   : > { %3068 = vmatmul.mubr.msk.bf16.vlgmr.msra.gmra.mrb[4].mxu0 %vm500_vm1, %v3332_v50 }
 0x16a   : > { %3148 = vmatpush3.bf16.msra.mxu0 %v1537_v25  ;;  %3149 = vmatprep.mubr.msk.bf16.mxu0 %vm3391_vm2, %v3389_v47 }
 0x16b   : > { %3067 = vmatmul.mubr.msk.bf16.vlgmr.msra.gmra.mrb[0].mxu1 %vm500_vm1, %v3332_v50  ;;  %1831 = vmatprep.subr.bf16.mxu0 %v1811_v58  ;;  %v2075_v61 = vpop.permute.xlu0 %2074  ;;  %v2071_v34 = vpop.permute.xlu1 %2070  ;;  %v3336_v58 = vld [vmem:[%s3993_s5 + $0x40] sm:$0x3f]  }
 0x16c   : > { %1680 = vmatpush1.bf16.msra.mxu1 %v1535_v60  ;;  %1711 = vmatprep.mubr.bf16.mxu1 %v3381_v2  ;;  %v2092_v11 = vsel %vm2090_vm7, %v2073_v26, %v2075_v61  ;;  %v2091_v14 = vsel %vm2090_vm7, %v2071_v34, %v2073_v26 }
 0x16d   : > { %1874 = vmatprep.subr.bf16.mxu1 %v1813_v7 }
 0x16f   : > { %v1808_v59 = vpop.permute.xlu0 %1807  ;;  %v2081_v62 = vpop.permute.xlu1 %2080 }
 0x170   : > { %v1818_v16 = vsel %vm1809_vm6, %v1806_v57, %v1808_v59 }
 0x171   : > { %3150 = vmatmul.mubr.msk.bf16.vlgmr.msra.gmra.mrb[16].mxu0 %vm500_vm1, %v3332_v50 }
 0x172   : > { %1832 = vmatpush1.bf16.msra.mxu0 %v1810_v51  ;;  %1863 = vmatprep.mubr.bf16.mxu0 %v3381_v2 }
 0x173   : > { %3069 = vmatmul.mubr.msk.bf16.vlgmr.msra.gmra.mrb[4].mxu1 %vm500_vm1, %v3332_v50  ;;  %1917 = vmatprep.subr.bf16.mxu0 %v1815_v63  ;;  %v3845_v1 = vpop.permute.xlu0 %2082  ;;  %v2077_v35 = vpop.permute.xlu1 %2076 }
 0x174   : > { %1875 = vmatpush1.bf16.msra.mxu1 %v1812_v0  ;;  %1906 = vmatprep.mubr.bf16.mxu1 %v3381_v2  ;;  %v2096_v15 = vsel %vm2090_vm7, %v2081_v62, %v3845_v1  ;;  %v2093_v6 = vsel %vm2090_vm7, %v2075_v61, %v2077_v35 }
 0x175   : > { %1960 = vmatprep.subr.bf16.mxu1 %v1817_v27 }
 0x177   : > { %v2079_v4 = vpop.permute.xlu0 %2078  ;;  %v2085_v5 = vpop.permute.xlu1 %2084 }
 0x178   : > { %v2094_v19 = vsel %vm2090_vm7, %v2077_v35, %v2079_v4  ;;  %v2095_v22 = vsel %vm2090_vm7, %v2079_v4, %v2081_v62  ;;  %v2097_v38 = vsel %vm2090_vm7, %v3845_v1, %v2085_v5 }
 0x179   : > { %3074 = vmatmul.mubr.msk.bf16.vlgmr.msra.gmra.mrb[0].mxu0 %vm500_vm1, %v3333_v3 }
 0x17a   : > { %1918 = vmatpush1.bf16.msra.mxu0 %v1814_v8  ;;  %1949 = vmatprep.mubr.bf16.mxu0 %v3381_v2 }
 0x17b   : > { %3075 = vmatmul.mubr.msk.bf16.vlgmr.msra.gmra.mrb[0].mxu1 %vm500_vm1, %v3333_v3  ;;  %2112 = vmatprep.subr.bf16.mxu0 %v2092_v11  ;;  %v2087_v12 = vpop.permute.xlu0 %2086 }
 0x17c   : > { %1961 = vmatpush1.bf16.msra.mxu1 %v1816_v13  ;;  %v2089_v28 = vpop.permute.xlu1 %2088  ;;  %1992 = vmatprep.mubr.bf16.mxu1 %v3381_v2  ;;  %v2098_v29 = vsel %vm2090_vm7, %v2085_v5, %v2087_v12 }
 0x17d   : > { %3153 = vmatprep.subr.bf16.mxu1 %v3389_v47  ;;  %v2099_v30 = vsel %vm2090_vm7, %v2087_v12, %v2089_v28 }
 0x17f   : > { %v2354_v17 = vpop.permute.xlu0 %2353 }
 0x180   : > { %v2356_v33 = vpop.permute.xlu1 %2355 }
 0x181   : > { %3076 = vmatmul.mubr.msk.bf16.vlgmr.msra.gmra.mrb[4].mxu0 %vm500_vm1, %v3333_v3  ;;  %v2373_v37 = vsel %vm2371_vm8, %v2354_v17, %v2356_v33 }
 0x182   : > { %2113 = vmatpush1.bf16.msra.mxu0 %v2091_v14  ;;  %2144 = vmatprep.mubr.bf16.mxu0 %v3381_v2 }
 0x183   : > { %3077 = vmatmul.mubr.msk.bf16.vlgmr.msra.gmra.mrb[4].mxu1 %vm500_vm1, %v3333_v3  ;;  %2198 = vmatprep.subr.bf16.mxu0 %v2096_v15  ;;  %v2352_v18 = vpop.permute.xlu0 %2351 }
 0x184   : > { %3154 = vmatpush3.bf16.msra.mxu1 %v1818_v16  ;;  %3155 = vmatprep.mubr.msk.bf16.mxu1 %vm3391_vm2, %v3389_v47  ;;  %v2358_v20 = vpop.permute.xlu1 %2357  ;;  %v2372_v42 = vsel %vm2371_vm8, %v2352_v18, %v2354_v17 }
 0x185   : > { %2155 = vmatprep.subr.bf16.mxu1 %v2094_v19  ;;  %v2374_v45 = vsel %vm2371_vm8, %v2356_v33, %v2358_v20 }
 0x187   : > { %v2360_v21 = vpop.permute.xlu0 %2359 }
 0x188   : > { %v2362_v24 = vpop.permute.xlu1 %2361  ;;  %v2375_v39 = vsel %vm2371_vm8, %v2358_v20, %v2360_v21 }
 0x189   : > { %3082 = vmatmul.mubr.msk.bf16.vlgmr.msra.gmra.mrb[0].mxu0 %vm500_vm1, %v3334_v9  ;;  %v2376_v50 = vsel %vm2371_vm8, %v2360_v21, %v2362_v24 }
 0x18a   : > { %2199 = vmatpush1.bf16.msra.mxu0 %v2095_v22  ;;  %2230 = vmatprep.mubr.bf16.mxu0 %v3381_v2 }
 0x18b   : > { %3156 = vmatmul.mubr.msk.bf16.vlgmr.msra.gmra.mrb[16].mxu1 %vm500_vm1, %v3333_v3  ;;  %v2364_v10 = vpop.permute.xlu0 %2363  ;;  %3159 = vmatprep.subr.bf16.mxu0 %v3389_v47 }
 0x18c   : > { %2156 = vmatpush1.bf16.msra.mxu1 %v2093_v6  ;;  %2187 = vmatprep.mubr.bf16.mxu1 %v3381_v2  ;;  %v2366_v36 = vpop.permute.xlu1 %2365  ;;  %v2377_v44 = vsel %vm2371_vm8, %v2362_v24, %v2364_v10 }
 0x18d   : > { %2241 = vmatprep.subr.bf16.mxu1 %v2098_v29  ;;  %v2378_v53 = vsel %vm2371_vm8, %v2364_v10, %v2366_v36 }
 0x18f   : > { %v2368_v31 = vpop.permute.xlu0 %2367 }
 0x190   : > { %v2635_v41 = vpop.permute.xlu1 %2634  ;;  %v2379_v46 = vsel %vm2371_vm8, %v2366_v36, %v2368_v31 }
 0x191   : > { %3084 = vmatmul.mubr.msk.bf16.vlgmr.msra.gmra.mrb[4].mxu0 %vm500_vm1, %v3334_v9 }
 0x192   : > { %3160 = vmatpush3.bf16.msra.mxu0 %v2099_v30  ;;  %3161 = vmatprep.mubr.msk.bf16.mxu0 %vm3391_vm2, %v3389_v47 }
 0x193   : > { %3083 = vmatmul.mubr.msk.bf16.vlgmr.msra.gmra.mrb[0].mxu1 %vm500_vm1, %v3334_v9  ;;  %2393 = vmatprep.subr.bf16.mxu0 %v2373_v37  ;;  %v2637_v40 = vpop.permute.xlu0 %2636 }
 0x194   : > { %2242 = vmatpush1.bf16.msra.mxu1 %v2097_v38  ;;  %2273 = vmatprep.mubr.bf16.mxu1 %v3381_v2  ;;  %v2633_v23 = vpop.permute.xlu1 %2632  ;;  %v2654_v52 = vsel %vm2652_vm9, %v2635_v41, %v2637_v40 }
 0x195   : > { %2436 = vmatprep.subr.bf16.mxu1 %v2375_v39  ;;  %v2653_v43 = vsel %vm2652_vm9, %v2633_v23, %v2635_v41 }
 0x197   : > { %v2370_v32 = vpop.permute.xlu0 %2369 }
 0x198   : > { %v2643_v55 = vpop.permute.xlu1 %2642  ;;  %v2380_v26 = vsel %vm2371_vm8, %v2368_v31, %v2370_v32 }
 0x199   : > { %3162 = vmatmul.mubr.msk.bf16.vlgmr.msra.gmra.mrb[20].mxu0 %vm500_vm1, %v3334_v9 }
 0x19a   : > { %2394 = vmatpush1.bf16.msra.mxu0 %v2372_v42  ;;  %2425 = vmatprep.mubr.bf16.mxu0 %v3381_v2 }
 0x19b   : > { %3085 = vmatmul.mubr.msk.bf16.vlgmr.msra.gmra.mrb[4].mxu1 %vm500_vm1, %v3334_v9  ;;  %2479 = vmatprep.subr.bf16.mxu0 %v2377_v44  ;;  %v2645_v54 = vpop.permute.xlu0 %2644 }
 0x19c   : > { %2437 = vmatpush1.bf16.msra.mxu1 %v2374_v45  ;;  %2468 = vmatprep.mubr.bf16.mxu1 %v3381_v2  ;;  %v2639_v49 = vpop.permute.xlu1 %2638  ;;  %v2658_v57 = vsel %vm2652_vm9, %v2643_v55, %v2645_v54 }
 0x19d   : > { %2522 = vmatprep.subr.bf16.mxu1 %v2379_v46  ;;  %v2655_v34 = vsel %vm2652_vm9, %v2637_v40, %v2639_v49 }
 0x19f   : > { %v2641_v56 = vpop.permute.xlu0 %2640 }
 0x1a0   : > { %v2656_v25 = vsel %vm2652_vm9, %v2639_v49, %v2641_v56  ;;  %v2647_v60 = vpop.permute.xlu1 %2646  ;;  %v2657_v61 = vsel %vm2652_vm9, %v2641_v56, %v2643_v55 }
 0x1a1   : > { %3090 = vmatmul.mubr.msk.bf16.vlgmr.msra.gmra.mrb[0].mxu0 %vm500_vm1, %v3335_v48  ;;  %v2659_v63 = vsel %vm2652_vm9, %v2645_v54, %v2647_v60 }
 0x1a2   : > { %2480 = vmatpush1.bf16.msra.mxu0 %v2376_v50  ;;  %2511 = vmatprep.mubr.bf16.mxu0 %v3381_v2 }
 0x1a3   : > { %3091 = vmatmul.mubr.msk.bf16.vlgmr.msra.gmra.mrb[0].mxu1 %vm500_vm1, %v3335_v48  ;;  %2674 = vmatprep.subr.bf16.mxu0 %v2654_v52  ;;  %v2649_v7 = vpop.permute.xlu0 %2648 }
 0x1a4   : > { %2523 = vmatpush1.bf16.msra.mxu1 %v2378_v53  ;;  %2554 = vmatprep.mubr.bf16.mxu1 %v3381_v2  ;;  %v2660_v59 = vsel %vm2652_vm9, %v2647_v60, %v2649_v7  ;;  %v2651_v62 = vpop.permute.xlu1 %2650 }
 0x1a5   : > { %3165 = vmatprep.subr.bf16.mxu1 %v3389_v47  ;;  %v2661_v51 = vsel %vm2652_vm9, %v2649_v7, %v2651_v62 }
 0x1a9   : > { %3092 = vmatmul.mubr.msk.bf16.vlgmr.msra.gmra.mrb[4].mxu0 %vm500_vm1, %v3335_v48 }
 0x1aa   : > { %2675 = vmatpush1.bf16.msra.mxu0 %v2653_v43  ;;  %2706 = vmatprep.mubr.bf16.mxu0 %v3381_v2 }
 0x1ab   : > { %3093 = vmatmul.mubr.msk.bf16.vlgmr.msra.gmra.mrb[4].mxu1 %vm500_vm1, %v3335_v48  ;;  %2760 = vmatprep.subr.bf16.mxu0 %v2658_v57 }
 0x1ac   : > { %3166 = vmatpush3.bf16.msra.mxu1 %v2380_v26  ;;  %3167 = vmatprep.mubr.msk.bf16.mxu1 %vm3391_vm2, %v3389_v47 }
 0x1ad   : > { %2717 = vmatprep.subr.bf16.mxu1 %v2656_v25 }
 0x1b1   : > { %3098 = vmatmul.mubr.msk.bf16.vlgmr.msra.gmra.mrb[0].mxu0 %vm500_vm1, %v3336_v58 }
 0x1b2   : > { %2761 = vmatpush1.bf16.msra.mxu0 %v2657_v61  ;;  %2792 = vmatprep.mubr.bf16.mxu0 %v3381_v2 }
 0x1b3   : > { %3168 = vmatmul.mubr.msk.bf16.vlgmr.msra.gmra.mrb[20].mxu1 %vm500_vm1, %v3335_v48  ;;  %3171 = vmatprep.subr.bf16.mxu0 %v3389_v47 }
 0x1b4   : > { %2718 = vmatpush1.bf16.msra.mxu1 %v2655_v34  ;;  %2749 = vmatprep.mubr.bf16.mxu1 %v3381_v2  ;;  %v3939_v46 = vpop.permute.xlu0 %2909 }
 0x1b5   : > { %2803 = vmatprep.subr.bf16.mxu1 %v2660_v59  ;;  %v3941_v48 = vpop.permute.xlu1 %2914 }
 0x1b9   : > { %3100 = vmatmul.mubr.msk.bf16.vlgmr.msra.gmra.mrb[4].mxu0 %vm500_vm1, %v3336_v58 }
 0x1ba   : > { %3172 = vmatpush3.bf16.msra.mxu0 %v2661_v51  ;;  %3173 = vmatprep.mubr.msk.bf16.mxu0 %vm3391_vm2, %v3389_v47 }
 0x1bb   : > { %3099 = vmatmul.mubr.msk.bf16.vlgmr.msra.gmra.mrb[0].mxu1 %vm500_vm1, %v3336_v58 }
 0x1bc   : > { %2804 = vmatpush1.bf16.msra.mxu1 %v2659_v63  ;;  %2835 = vmatprep.mubr.bf16.mxu1 %v3381_v2 }
 0x1c1   : > { %3174 = vmatmul.mubr.msk.bf16.vlgmr.msra.gmra.mrb[24].mxu0 %vm500_vm1, %v3336_v58 }
 0x1c3   : > { %3101 = vmatmul.mubr.msk.bf16.vlgmr.msra.gmra.mrb[4].mxu1 %vm500_vm1, %v3336_v58 }
 0x1f4   : > { %v710_v0 = vpop.f32.mrb[8].mxu0 }
 0x1f5   : > { %v3127_v1 = vpop.f32.mrb[9].mxu0 }
 0x1f6   : > { %v713_v27 = vpop.f32.mrb[10].mxu0 }
 0x1f7   : > { %v3128_v35 = vpop.f32.mrb[11].mxu0 }
 0x20e   : > { %v931_v3 = vpop.f32.mrb[8].mxu1 }
 0x20f   : > { %v932_v4 = vadd.f32 %v931_v3, %v710_v0  ;;  %v3133_v5 = vpop.f32.mrb[9].mxu1 }
 0x210   : > { %v934_v8 = vpop.f32.mrb[10].mxu1 }
 0x211   : > { %v935_v47 = vadd.f32 %v934_v8, %v713_v27  ;;  %v3134_v11 = vpop.f32.mrb[11].mxu1 }
 0x21c   : > { %v1194_v13 = vpop.f32.mrb[12].mxu0 }
 0x21d   : > { %v1209_v12 = vadd.f32 %v1194_v13, %v932_v4  ;;  %v3139_v28 = vpop.f32.mrb[13].mxu0 }
 0x21e   : > { %v1197_v17 = vpop.f32.mrb[14].mxu0 }
 0x21f   : > { %v1218_v33 = vadd.f32 %v1197_v17, %v935_v47  ;;  %v3140_v2 = vpop.f32.mrb[15].mxu0 }
 0x236   : > { %v1475_v14 = vpop.f32.mrb[12].mxu1 }
 0x237   : > { %v1490_v15 = vadd.f32 %v1475_v14, %v1209_v12  ;;  %v3145_v16 = vpop.f32.mrb[13].mxu1 }
 0x238   : > { %v1478_v18 = vpop.f32.mrb[14].mxu1 }
 0x239   : > { %v1499_v19 = vadd.f32 %v1478_v18, %v1218_v33  ;;  %v3146_v9 = vpop.f32.mrb[15].mxu1 }
 0x244   : > { %v1756_v20 = vpop.f32.mrb[16].mxu0 }
 0x245   : > { %v1771_v21 = vadd.f32 %v1756_v20, %v1490_v15  ;;  %v3151_v22 = vpop.f32.mrb[17].mxu0 }
 0x246   : > { %v1759_v6 = vpop.f32.mrb[18].mxu0 }
 0x247   : > { %v1780_v10 = vadd.f32 %v1759_v6, %v1499_v19  ;;  %v3152_v24 = vpop.f32.mrb[19].mxu0 }
 0x25e   : > { %v2037_v29 = vpop.f32.mrb[16].mxu1 }
 0x25f   : > { %v2052_v30 = vadd.f32 %v2037_v29, %v1771_v21  ;;  %v3157_v31 = vpop.f32.mrb[17].mxu1 }
 0x260   : > { %v2040_v36 = vpop.f32.mrb[18].mxu1 }
 0x261   : > { %v2061_v37 = vadd.f32 %v2040_v36, %v1780_v10  ;;  %v3158_v38 = vpop.f32.mrb[19].mxu1 }
 0x26c   : > { %v2318_v39 = vpop.f32.mrb[20].mxu0 }
 0x26d   : > { %v2333_v40 = vadd.f32 %v2318_v39, %v2052_v30  ;;  %v3163_v41 = vpop.f32.mrb[21].mxu0 }
 0x26e   : > { %v2321_v42 = vpop.f32.mrb[22].mxu0 }
 0x26f   : > { %v2342_v44 = vadd.f32 %v2321_v42, %v2061_v37  ;;  %v3164_v45 = vpop.f32.mrb[23].mxu0 }
 0x284   : > { %v2708_v32 = vpop.f32.mrb[0].mxu0 }
 0x285   : > { %v2917_v23 = vadd.f32 %v3939_v46, %v2708_v32  ;;  %v2710_v50 = vpop.f32.mrb[1].mxu0 }
 0x286   : > { %v2599_v52 = vpop.f32.mrb[20].mxu1  ;;  %v2918_v53 = vadd.f32 %v3939_v46, %v2710_v50  ;;  %v2712_v54 = vpop.f32.mrb[2].mxu0 }
 0x287   : > { %3337 = vtanh.f32 %v2917_v23  ;;  %v2614_v55 = vadd.f32 %v2599_v52, %v2333_v40  ;;  %v3169_v43 = vpop.f32.mrb[21].mxu1  ;;  %v2926_v56 = vadd.f32 %v3941_v48, %v2712_v54  ;;  %v2714_v49 = vpop.f32.mrb[3].mxu0 }
 0x288   : > { %3339 = vtanh.f32 %v2918_v53  ;;  %v2602_v57 = vpop.f32.mrb[22].mxu1  ;;  %v2927_v26 = vadd.f32 %v3941_v48, %v2714_v49 }
 0x289   : > { %3341 = vtanh.f32 %v2926_v56  ;;  %v2623_v25 = vadd.f32 %v2602_v57, %v2342_v44  ;;  %v3170_v58 = vpop.f32.mrb[23].mxu1 }
 0x28a   : > { %3343 = vtanh.f32 %v2927_v26 }
 0x28c   : > { %v2794_v60 = vpop.f32.mrb[4].mxu0 }
 0x28d   : > { %v2921_v61 = vadd.f32 %v3939_v46, %v2794_v60  ;;  %v2796_v7 = vpop.f32.mrb[5].mxu0 }
 0x28e   : > { %v2751_v34 = vpop.f32.mrb[0].mxu1  ;;  %v2922_v59 = vadd.f32 %v3939_v46, %v2796_v7  ;;  %v2798_v62 = vpop.f32.mrb[6].mxu0 }
 0x28f   : > { %3345 = vtanh.f32 %v2921_v61  ;;  %v2919_v51 = vadd.f32 %v3939_v46, %v2751_v34  ;;  %v2753_v63 = vpop.f32.mrb[1].mxu1  ;;  %v2930_v0 = vadd.f32 %v3941_v48, %v2798_v62  ;;  %v2800_v1 = vpop.f32.mrb[7].mxu0 }
 0x290   : > { %3347 = vtanh.f32 %v2922_v59  ;;  %v2920_v27 = vadd.f32 %v3939_v46, %v2753_v63  ;;  %v2755_v35 = vpop.f32.mrb[2].mxu1  ;;  %v2931_v5 = vadd.f32 %v3941_v48, %v2800_v1 }
 0x291   : > { %v3338_v3 = vpop.eup %3337  ;;  %3349 = vtanh.f32 %v2919_v51  ;;  %v2928_v4 = vadd.f32 %v3941_v48, %v2755_v35  ;;  %v2757_v8 = vpop.f32.mrb[3].mxu1 }
 0x292   : > { %v3340_v47 = vpop.eup %3339  ;;  %2953 = vst [vmem:[%s3953_s28] sm:$0xff] %v3338_v3  ;;  %3351 = vtanh.f32 %v2920_v27  ;;  %v2929_v11 = vadd.f32 %v3941_v48, %v2757_v8 }
 0x293   : > { %v3342_v13 = vpop.eup %3341  ;;  %2954 = vst [vmem:[%s3953_s28 + $0x8] sm:$0xff] %v3340_v47  ;;  %3353 = vtanh.f32 %v2930_v0 }
 0x294   : > { %v3344_v12 = vpop.eup %3343  ;;  %2962 = vst [vmem:[%s3953_s28 + $0x48] sm:$0xf] %v3342_v13  ;;  %3355 = vtanh.f32 %v2928_v4  ;;  %v2880_v28 = vpop.f32.mrb[24].mxu0 }
 0x295   : > { %2963 = vst [vmem:[%s3953_s28 + $0x50] sm:$0xf] %v3344_v12  ;;  %3357 = vtanh.f32 %v2931_v5  ;;  %v2895_v17 = vadd.f32 %v2880_v28, %v2614_v55  ;;  %v3175_v33 = vpop.f32.mrb[25].mxu0 }
 0x296   : > { %3359 = vtanh.f32 %v2929_v11  ;;  %v2837_v2 = vpop.f32.mrb[4].mxu1  ;;  %v2883_v14 = vpop.f32.mrb[26].mxu0 }
 0x297   : > { %v2925_v15 = vadd.f32 %v3939_v46, %v2895_v17  ;;  %v2923_v16 = vadd.f32 %v3939_v46, %v2837_v2  ;;  %v2839_v18 = vpop.f32.mrb[5].mxu1  ;;  %v2904_v19 = vadd.f32 %v2883_v14, %v2623_v25  ;;  %v3176_v9 = vpop.f32.mrb[27].mxu0 }
 0x298   : > { %v2924_v20 = vadd.f32 %v3939_v46, %v2839_v18  ;;  %v2841_v21 = vpop.f32.mrb[6].mxu1 }
 0x299   : > { %v3346_v22 = vpop.eup %3345  ;;  %3361 = vtanh.f32 %v2925_v15  ;;  %v2934_v6 = vadd.f32 %v3941_v48, %v2904_v19  ;;  %v2932_v10 = vadd.f32 %v3941_v48, %v2841_v21  ;;  %v2843_v24 = vpop.f32.mrb[7].mxu1 }
 0x29a   : > { %v3348_v29 = vpop.eup %3347  ;;  %2957 = vst [vmem:[%s3953_s28 + $0x20] sm:$0xff] %v3346_v22  ;;  %3363 = vtanh.f32 %v2923_v16  ;;  %v2933_v30 = vadd.f32 %v3941_v48, %v2843_v24 }
 0x29b   : > { %v3350_v31 = vpop.eup %3349  ;;  %2958 = vst [vmem:[%s3953_s28 + $0x28] sm:$0xff] %v3348_v29  ;;  %3365 = vtanh.f32 %v2924_v20 }
 0x29c   : > { %v3352_v36 = vpop.eup %3351  ;;  %2955 = vst [vmem:[%s3953_s28 + $0x10] sm:$0xff] %v3350_v31  ;;  %3367 = vtanh.f32 %v2934_v6 }
 0x29d   : > { %v3354_v37 = vpop.eup %3353  ;;  %2956 = vst [vmem:[%s3953_s28 + $0x18] sm:$0xff] %v3352_v36  ;;  %3369 = vtanh.f32 %v2932_v10 }
 0x29e   : > { %v3356_v38 = vpop.eup %3355  ;;  %2966 = vst [vmem:[%s3953_s28 + $0x68] sm:$0xf] %v3354_v37  ;;  %3371 = vtanh.f32 %v2933_v30 }
 0x29f   : > { %v3358_v39 = vpop.eup %3357  ;;  %2964 = vst [vmem:[%s3953_s28 + $0x58] sm:$0xf] %v3356_v38 }
 0x2a0   : > { %v3360_v40 = vpop.eup %3359  ;;  %2967 = vst [vmem:[%s3953_s28 + $0x70] sm:$0xf] %v3358_v39 }
 0x2a1   : > { %2965 = vst [vmem:[%s3953_s28 + $0x60] sm:$0xf] %v3360_v40 }
 0x2a3   : > { %v3362_v41 = vpop.eup %3361 }
 0x2a4   : > { %v3364_v42 = vpop.eup %3363  ;;  %2961 = vst [vmem:[%s3953_s28 + $0x40] sm:$0xff] %v3362_v41 }
 0x2a5   : > { %v3366_v44 = vpop.eup %3365  ;;  %2959 = vst [vmem:[%s3953_s28 + $0x30] sm:$0xff] %v3364_v42 }
 0x2a6   : > { %v3368_v45 = vpop.eup %3367  ;;  %2960 = vst [vmem:[%s3953_s28 + $0x38] sm:$0xff] %v3366_v44 }
 0x2a7   : > { %v3370_v46 = vpop.eup %3369  ;;  %2970 = vst [vmem:[%s3953_s28 + $0x88] sm:$0xf] %v3368_v45 }
 0x2a8   : > { %v3372_v32 = vpop.eup %3371  ;;  %2968 = vst [vmem:[%s3953_s28 + $0x78] sm:$0xf] %v3370_v46 }
 0x2a9   : > { %2969 = vst [vmem:[%s3953_s28 + $0x80] sm:$0xf] %v3372_v32 }
 0x2aa PF: > { %s16_s21 = sadd.s32 1, %s3379_s21  }
 0x2ab   : > { %p13_p4 = scmp.ge.s32.totalorder %s16_s21, 4  }
 0x2ad   :  { %15 = sbr.rel (!%p13_p4) target bundleno = 1 (0x1), region = 82 }

</bundles_post_ra>
